<compile_context>
chip_gen: v5e
topology: v5e:2x2
jax: 0.10.0
libtpu: 0.0.40
codegen_flags: <defaults>
</compile_context>

<pallas_src>
import functools

import jax
import jax.numpy as jnp
from jax.experimental import pallas as pl
from jax.experimental.pallas import tpu as pltpu

LEAKY_SLOPE = 0.3            # nn.LeakyReLU(0.3)
BN_EPS = 1e-5                # PyTorch BatchNorm1d default eps
F32 = jnp.float32
PAD_OFF = 16                 # sublane-aligned halo (>= max conv pad of 10, mult of 8)
FC_TK = 512                  # chunk of the 2048-wide hidden dim streamed per grid step
FC_STREAM_DTYPE = jnp.bfloat16   # set to jnp.float32 for bit-exact f32 reference


# ----------------------------------------------------------------------------
# Kernels
# ----------------------------------------------------------------------------
def _encoder_kernel(*refs, kernel_sizes, convs_per_block):
    """Fused encblock0/1/2 for one batch element (channels-last)."""
    n_conv = len(kernel_sizes)
    x_ref = refs[0]
    wb = refs[1:1 + 2 * n_conv]          # (w0, b0, w1, b1, ...)  BN-folded
    o_ref = refs[1 + 2 * n_conv]
    pad_ref = refs[2 + 2 * n_conv]       # (2*PAD_OFF + L0, Cmax) padded acts
    pool_ref = refs[3 + 2 * n_conv]      # (L0, Cmax) maxpool staging

    # One memset of the padded-activation scratch per batch element; per conv
    # we only re-zero the (<=8-row) trailing strip that a longer earlier
    # activation may have left dirty.  The leading halo is never re-written.
    pad_ref[...] = jnp.zeros_like(pad_ref)

    def conv_bn_lrelu(x, w_ref, b_ref, K, zero_rows):
        """Conv1d(stride=1, 'same') + folded BN + LeakyReLU(0.3).

        x:     (L, Cin) activation value (channels-last)
        w_ref: (K, Cin, Cout)  BN-folded taps
        b_ref: (1, Cout)       BN-folded bias
        """
        L, Cin = x.shape
        Cout = w_ref.shape[2]
        P = (K - 1) // 2
        # Activation is stored at the aligned sublane offset PAD_OFF; per-tap
        # reads may start at any sublane offset (unaligned reads are cheap).
        pad_ref[PAD_OFF:PAD_OFF + L, 0:Cin] = x
        if zero_rows:
            pad_ref[PAD_OFF + L:PAD_OFF + L + zero_rows, 0:Cin] = jnp.zeros(
                (zero_rows, Cin), F32)
        acc = jnp.zeros((L, Cout), F32)
        for t in range(K):               # static unroll over taps -> MXU pushes
            lhs = pad_ref[pl.ds(PAD_OFF - P + t, L), 0:Cin]
            acc = acc + jnp.dot(lhs, w_ref[t], preferred_element_type=F32)
        acc = acc + b_ref[...]
        return jnp.where(acc > 0.0, acc, LEAKY_SLOPE * acc)

    def maxpool2(x):
        """MaxPool1d(kernel_size=2, stride=2) along length."""
        L, C = x.shape
        Lh = L // 2
        pool_ref[0:L, 0:C] = x
        even = pool_ref[pl.ds(0, Lh, 2), 0:C]
        odd = pool_ref[pl.ds(1, Lh, 2), 0:C]
        return jnp.maximum(even, odd)

    x = x_ref[...]                       # (L0, Cin0) for this batch element
    ci = 0
    max_lw = 0    # rows [PAD_OFF, PAD_OFF+max_lw) may hold stale activations
    max_cw = 0    # ... in columns [0, max_cw)
    for n_in_block in convs_per_block:
        for _ in range(n_in_block):
            K = kernel_sizes[ci]
            P = (K - 1) // 2
            L, Cin = x.shape
            stale = 0
            if min(Cin, max_cw) > 0:
                stale = max(0, min(L + P, max_lw) - L)
            zero_rows = min(-(-stale // 8) * 8, PAD_OFF) if stale > 0 else 0
            x = conv_bn_lrelu(x, wb[2 * ci], wb[2 * ci + 1], K, zero_rows)
            max_lw = max(max_lw, L)
            max_cw = max(max_cw, Cin)
            ci += 1
        x = maxpool2(x)
    o_ref[...] = x                       # (L0 // 8, 64)


def _fc_head_kernel(feat_ref, w0_ref, b0_ref, w1_ref, b1_ref, w2_ref, b2_ref,
                    o_ref, acc_ref):
    """cls_fc0 + folded cls_bn0 -> cls_fc1 -> (dropout = id) -> cls_fc2.

    Grid streams FC_TK-wide chunks of the 2048-dim hidden layer so the large
    fc0/fc1 weights (bf16) stream from HBM chunk-by-chunk, overlapped with
    compute.  fc0 is pre-transposed to (H0, Fdim) so each chunk is one
    contiguous row-slab DMA; the kernel contracts against the chunk's dim 1.
    """
    k = pl.program_id(0)

    @pl.when(k == 0)
    def _():
        acc_ref[...] = jnp.zeros_like(acc_ref)

    h0 = jax.lax.dot_general(
        feat_ref[...], w0_ref[...],
        dimension_numbers=(((1,), (1,)), ((), ())),
        preferred_element_type=F32) + b0_ref[...]
    acc_ref[...] += jnp.dot(h0.astype(FC_STREAM_DTYPE), w1_ref[...],
                            preferred_element_type=F32)

    @pl.when(k == pl.num_programs(0) - 1)
    def _():
        # No activation between cls_bn0 and cls_fc1 in the reference module,
        # so the hidden-dim-chunked accumulation above is exact.
        # TODO(synk): nn.Dropout() is reproduced with eval semantics
        # (identity); train-mode stochastic masking is not implemented.
        h1 = acc_ref[...] + b1_ref[...]
        o_ref[...] = jnp.dot(h1, w2_ref[...],
                             preferred_element_type=F32) + b2_ref[...]


# ----------------------------------------------------------------------------
# One-time weight preparation (BN folding, fc0 permutation, bf16 cast)
# ----------------------------------------------------------------------------
def _fold_conv_bn(c):
    """Fold eval-mode BatchNorm1d into the conv weight (K, Cin, Cout) / bias."""
    scale = c['gamma'] * jax.lax.rsqrt(c['rvar'] + BN_EPS)
    shift = c['beta'] - c['rmean'] * scale
    w = c['w'] * scale[None, None, :]
    b = c['b'] * scale + shift
    return w, b.reshape(1, -1)


def prepare_params(params, length):
    """Fold BNs and pre-layout / pre-cast the FC weights.  Call ONCE."""
    enc = []
    c_last = None
    for name in ('enc0', 'enc1', 'enc2'):
        blk = []
        for c in params[name]:
            w, b = _fold_conv_bn(c)
            blk.append((w, b))
            c_last = w.shape[2]
        enc.append(blk)
    lout = length // 2 ** len(enc)
    cch = c_last
    fdim = lout * cch

    p = params['fc']
    h0 = p['w0'].shape[1]
    h1 = p['w1'].shape[1]
    ncls = p['w2'].shape[1]
    # Fold cls_bn0 (eval mode) into cls_fc0.
    scale0 = p['bn_gamma'] * jax.lax.rsqrt(p['bn_rvar'] + BN_EPS)
    shift0 = p['bn_beta'] - p['bn_rmean'] * scale0
    w0f = p['w0'] * scale0[None, :]
    b0f = (p['b0'] * scale0 + shift0).reshape(1, h0)
    # Permute fc0 rows from NCL-flatten order (c*Lout+l) to channels-last
    # flatten order (l*C+c), then transpose so each FC grid step streams one
    # CONTIGUOUS (FC_TK, Fdim) row slab from HBM.  Stream in bf16.
    idx = (jnp.arange(fdim) % cch) * lout + (jnp.arange(fdim) // cch)
    w0t = jnp.transpose(w0f[idx, :], (1, 0)).astype(FC_STREAM_DTYPE)
    fc = dict(w0t=w0t, b0=b0f,
              w1=p['w1'].astype(FC_STREAM_DTYPE), b1=p['b1'].reshape(1, h1),
              w2=p['w2'], b2=p['b2'].reshape(1, ncls))
    return dict(enc=enc, fc=fc)


# ----------------------------------------------------------------------------
# Pallas wrappers
# ----------------------------------------------------------------------------
def encoder_forward(x_nlc, enc_blocks):
    """x_nlc: (B, L, Cin) channels-last.  Returns (B, L // 8, 64) channels-last."""
    B, L, Cin0 = x_nlc.shape

    flat_args = []
    in_specs = [pl.BlockSpec((None, L, Cin0), lambda i: (i, 0, 0))]
    kernel_sizes = []
    convs_per_block = []
    cmax = Cin0
    cout_last = Cin0
    for blk in enc_blocks:
        convs_per_block.append(len(blk))
        for (w, b) in blk:
            K, ci, co = w.shape
            assert (K - 1) // 2 <= PAD_OFF
            flat_args += [w, b]
            in_specs += [pl.BlockSpec((K, ci, co), lambda i: (0, 0, 0)),
                         pl.BlockSpec((1, co), lambda i: (0, 0))]
            kernel_sizes.append(K)
            cmax = max(cmax, ci, co)
            cout_last = co
    Lout = L // (2 ** len(enc_blocks))

    kernel = functools.partial(_encoder_kernel,
                               kernel_sizes=tuple(kernel_sizes),
                               convs_per_block=tuple(convs_per_block))
    return pl.pallas_call(
        kernel,
        grid=(B,),
        in_specs=in_specs,
        out_specs=pl.BlockSpec((None, Lout, cout_last), lambda i: (i, 0, 0)),
        out_shape=jax.ShapeDtypeStruct((B, Lout, cout_last), F32),
        scratch_shapes=[
            pltpu.VMEM((2 * PAD_OFF + L, cmax), F32),   # zero-padded activation
            pltpu.VMEM((L, cmax), F32),                 # maxpool staging
        ],
        compiler_params=pltpu.CompilerParams(dimension_semantics=("parallel",)),
    )(x_nlc, *flat_args)


def fc_head(feat_nlc, fcp):
    """feat_nlc: (B, Fdim) channels-last flatten (bf16). fcp: prepared FC params."""
    B, Fdim = feat_nlc.shape
    H0, Fd2 = fcp['w0t'].shape
    assert Fd2 == Fdim
    H1 = fcp['w1'].shape[1]
    N = fcp['w2'].shape[1]
    assert H0 % FC_TK == 0
    return pl.pallas_call(
        _fc_head_kernel,
        grid=(H0 // FC_TK,),
        in_specs=[
            pl.BlockSpec((B, Fdim), lambda k: (0, 0)),        # feat (resident)
            pl.BlockSpec((FC_TK, Fdim), lambda k: (k, 0)),    # fc0^T row slab (contig)
            pl.BlockSpec((1, FC_TK), lambda k: (0, k)),       # fc0 bias chunk
            pl.BlockSpec((FC_TK, H1), lambda k: (k, 0)),      # fc1 weight chunk
            pl.BlockSpec((1, H1), lambda k: (0, 0)),          # fc1 bias (resident)
            pl.BlockSpec((H1, N), lambda k: (0, 0)),          # fc2 weight (resident)
            pl.BlockSpec((1, N), lambda k: (0, 0)),           # fc2 bias (resident)
        ],
        out_specs=pl.BlockSpec((B, N), lambda k: (0, 0)),
        out_shape=jax.ShapeDtypeStruct((B, N), F32),
        scratch_shapes=[pltpu.VMEM((B, H1), F32)],
        compiler_params=pltpu.CompilerParams(dimension_semantics=("arbitrary",)),
    )(feat_nlc, fcp['w0t'], fcp['b0'], fcp['w1'], fcp['b1'], fcp['w2'], fcp['b2'])


# ----------------------------------------------------------------------------
# Model assembly (glue)
# ----------------------------------------------------------------------------
def unified_cnn_forward(spectrum, prep):
    """spectrum: (B, Cin, L) in NCL layout, same as the PyTorch module."""
    x = jnp.transpose(spectrum, (0, 2, 1))            # NCL -> (B, L, Cin)
    x = encoder_forward(x, prep['enc'])               # (B, L//8, 64), one kernel
    B = x.shape[0]
    # Returned `feat` must match torch.reshape(x_ncl, [-1, feature_dim]) order
    # (tiny ~4 KiB transpose; NOT on the FC critical path).
    feat = jnp.transpose(x, (0, 2, 1)).reshape(B, -1)
    # FC head consumes the channels-last flatten directly (fc0 rows were
    # permuted at prep time), so it does not wait on the transpose above.
    feat_nlc = x.reshape(B, -1).astype(FC_STREAM_DTYPE)
    pred = fc_head(feat_nlc, prep['fc'])               # detection=True
    quan_pred = []                                     # quantification=False
    return feat, pred, quan_pred


def init_params(key, cin, length, num_classes, block_type='lenet'):
    keys = iter(jax.random.split(key, 32))

    def conv_layer(ci, co, k):
        # PyTorch Conv1d weight is (Cout, Cin, K); stored here as (K, Cin, Cout).
        return dict(
            w=0.05 * jax.random.normal(next(keys), (k, ci, co), F32),  # normal_init
            b=jnp.zeros((co,), F32),
            gamma=jnp.ones((co,), F32), beta=jnp.zeros((co,), F32),
            rmean=jnp.zeros((co,), F32), rvar=jnp.ones((co,), F32))

    def block(ci, co, k):
        convs = [conv_layer(ci, co, k)]
        if block_type == 'lenet':
            convs.append(conv_layer(co, co, k))
        return convs

    def linear(fin, fout):
        std = (2.0 / fout) ** 0.5                     # kaiming_normal_, fan_out
        w = std * jax.random.normal(next(keys), (fin, fout), F32)
        bound = 1.0 / (fin ** 0.5)                    # torch Linear default bias
        b = jax.random.uniform(next(keys), (fout,), F32, -bound, bound)
        return w, b

    feature_dim = length // 2 ** 3 * 64
    w0, b0 = linear(feature_dim, 2048)
    w1, b1 = linear(2048, 1024)
    w2, b2 = linear(1024, num_classes)
    fc = dict(w0=w0, b0=b0,
              bn_gamma=jnp.ones((2048,), F32), bn_beta=jnp.zeros((2048,), F32),
              bn_rmean=jnp.zeros((2048,), F32), bn_rvar=jnp.ones((2048,), F32),
              w1=w1, b1=b1, w2=w2, b2=b2)
    return dict(enc0=block(cin, 32, 21), enc1=block(32, 64, 11),
                enc2=block(64, 64, 5), fc=fc)


if __name__ == "__main__":
    B, CIN, L = 2, 4, 64          # input_shape = (4, 64) -> feature_dim = 512
    NUM_CLASSES = 8
    BLOCK_TYPE = 'lenet'
    FEATURE_DIM = L // 2 ** 3 * 64

    key = jax.random.PRNGKey(0)
    pkey, xkey = jax.random.split(key)
    params = init_params(pkey, CIN, L, NUM_CLASSES, BLOCK_TYPE)
    spectrum = jax.random.normal(xkey, (B, CIN, L), F32)

    # Weight prep (BN folding, fc0 permutation/transpose, bf16 cast) done once,
    # outside the per-call forward, as it would be in deployment.
    prep = prepare_params(params, L)

    fwd = jax.jit(unified_cnn_forward)
    feat, pred, quan_pred = fwd(spectrum, prep)
    jax.block_until_ready((feat, pred))

    assert feat.shape == (B, FEATURE_DIM)
    assert pred.shape == (B, NUM_CLASSES)
    assert quan_pred == []
    print("KERNEL_OK")
</pallas_src>

<mosaic_0001>
module attributes {stable_mosaic.version = 11 : i64} {
  func.func @_encoder_kernel(%arg0: i32, %arg1: memref<1x64x4xf32, #tpu.memory_space<vmem>>, %arg2: memref<21x4x32xf32, #tpu.memory_space<vmem>>, %arg3: memref<1x32xf32, #tpu.memory_space<vmem>>, %arg4: memref<21x32x32xf32, #tpu.memory_space<vmem>>, %arg5: memref<1x32xf32, #tpu.memory_space<vmem>>, %arg6: memref<11x32x64xf32, #tpu.memory_space<vmem>>, %arg7: memref<1x64xf32, #tpu.memory_space<vmem>>, %arg8: memref<11x64x64xf32, #tpu.memory_space<vmem>>, %arg9: memref<1x64xf32, #tpu.memory_space<vmem>>, %arg10: memref<5x64x64xf32, #tpu.memory_space<vmem>>, %arg11: memref<1x64xf32, #tpu.memory_space<vmem>>, %arg12: memref<5x64x64xf32, #tpu.memory_space<vmem>>, %arg13: memref<1x64xf32, #tpu.memory_space<vmem>>, %arg14: memref<1x8x64xf32, #tpu.memory_space<vmem>>, %arg15: memref<96x64xf32, #tpu.memory_space<vmem>>, %arg16: memref<64x64xf32, #tpu.memory_space<vmem>>) attributes {dimension_semantics = [#tpu.dimension_semantics<parallel>], iteration_bounds = array<i64: 2>, scalar_prefetch = 0 : i64, scratch_operands = 2 : i64, tpu.core_type = #tpu.core_type<tc>, window_params = [{transform_indices = @transform_0, window_bounds = array<i64: 1, 64, 4>}, {pipeline_mode = #tpu.pipeline_mode<synchronous>, transform_indices = @transform_1, window_bounds = array<i64: 21, 4, 32>}, {pipeline_mode = #tpu.pipeline_mode<synchronous>, transform_indices = @transform_2, window_bounds = array<i64: 1, 32>}, {pipeline_mode = #tpu.pipeline_mode<synchronous>, transform_indices = @transform_3, window_bounds = array<i64: 21, 32, 32>}, {pipeline_mode = #tpu.pipeline_mode<synchronous>, transform_indices = @transform_4, window_bounds = array<i64: 1, 32>}, {pipeline_mode = #tpu.pipeline_mode<synchronous>, transform_indices = @transform_5, window_bounds = array<i64: 11, 32, 64>}, {pipeline_mode = #tpu.pipeline_mode<synchronous>, transform_indices = @transform_6, window_bounds = array<i64: 1, 64>}, {pipeline_mode = #tpu.pipeline_mode<synchronous>, transform_indices = @transform_7, window_bounds = array<i64: 11, 64, 64>}, {pipeline_mode = #tpu.pipeline_mode<synchronous>, transform_indices = @transform_8, window_bounds = array<i64: 1, 64>}, {pipeline_mode = #tpu.pipeline_mode<synchronous>, transform_indices = @transform_9, window_bounds = array<i64: 5, 64, 64>}, {pipeline_mode = #tpu.pipeline_mode<synchronous>, transform_indices = @transform_10, window_bounds = array<i64: 1, 64>}, {pipeline_mode = #tpu.pipeline_mode<synchronous>, transform_indices = @transform_11, window_bounds = array<i64: 5, 64, 64>}, {pipeline_mode = #tpu.pipeline_mode<synchronous>, transform_indices = @transform_12, window_bounds = array<i64: 1, 64>}, {transform_indices = @transform_13, window_bounds = array<i64: 1, 8, 64>}]} {
    %cst = arith.constant 0.000000e+00 : f32
    %0 = vector.broadcast %cst : f32 to vector<96x64xf32>
    %c0 = arith.constant 0 : index
    %c0_0 = arith.constant 0 : index
    %1 = vector.load %arg15[%c0, %c0_0] : memref<96x64xf32, #tpu.memory_space<vmem>>, vector<96x64xf32>
    tpu.vector_store %arg15[%c0, %c0_0], %0 {strides = array<i32>} : memref<96x64xf32, #tpu.memory_space<vmem>>, vector<96x64xf32>,
    %c0_1 = arith.constant 0 : index
    %c0_2 = arith.constant 0 : index
    %c0_3 = arith.constant 0 : index
    %2 = vector.load %arg1[%c0_1, %c0_2, %c0_3] : memref<1x64x4xf32, #tpu.memory_space<vmem>>, vector<1x64x4xf32>
    %3 = vector.shape_cast %2 : vector<1x64x4xf32> to vector<64x4xf32>
    %c16 = arith.constant 16 : index
    %c0_4 = arith.constant 0 : index
    %4 = vector.load %arg15[%c16, %c0_4] : memref<96x64xf32, #tpu.memory_space<vmem>>, vector<64x4xf32>
    tpu.vector_store %arg15[%c16, %c0_4], %3 {strides = array<i32>} : memref<96x64xf32, #tpu.memory_space<vmem>>, vector<64x4xf32>,
    %cst_5 = arith.constant 0.000000e+00 : f32
    %5 = vector.broadcast %cst_5 : f32 to vector<64x32xf32>
    %c6 = arith.constant 6 : index
    %c0_6 = arith.constant 0 : index
    %6 = vector.load %arg15[%c6, %c0_6] : memref<96x64xf32, #tpu.memory_space<vmem>>, vector<64x4xf32>
    %c0_7 = arith.constant 0 : index
    %c0_8 = arith.constant 0 : index
    %c0_9 = arith.constant 0 : index
    %7 = vector.load %arg2[%c0_7, %c0_8, %c0_9] : memref<21x4x32xf32, #tpu.memory_space<vmem>>, vector<1x4x32xf32>
    %8 = vector.shape_cast %7 : vector<1x4x32xf32> to vector<4x32xf32>
    %cst_10 = arith.constant dense<0.000000e+00> : vector<64x32xf32>
    %9 = tpu.matmul %6, %8, %cst_10 {dimension_numbers = #tpu.dot_dimension_numbers<[1], [0], [0], [1], [0, 0, 1, 1], [], []>} : vector<64x4xf32>, vector<4x32xf32>, vector<64x32xf32> -> vector<64x32xf32>
    %10 = arith.addf %5, %9 : vector<64x32xf32>
    %c7 = arith.constant 7 : index
    %c0_11 = arith.constant 0 : index
    %11 = vector.load %arg15[%c7, %c0_11] : memref<96x64xf32, #tpu.memory_space<vmem>>, vector<64x4xf32>
    %c1 = arith.constant 1 : index
    %c0_12 = arith.constant 0 : index
    %c0_13 = arith.constant 0 : index
    %12 = vector.load %arg2[%c1, %c0_12, %c0_13] : memref<21x4x32xf32, #tpu.memory_space<vmem>>, vector<1x4x32xf32>
    %13 = vector.shape_cast %12 : vector<1x4x32xf32> to vector<4x32xf32>
    %cst_14 = arith.constant dense<0.000000e+00> : vector<64x32xf32>
    %14 = tpu.matmul %11, %13, %cst_14 {dimension_numbers = #tpu.dot_dimension_numbers<[1], [0], [0], [1], [0, 0, 1, 1], [], []>} : vector<64x4xf32>, vector<4x32xf32>, vector<64x32xf32> -> vector<64x32xf32>
    %15 = arith.addf %10, %14 : vector<64x32xf32>
    %c8 = arith.constant 8 : index
    %c0_15 = arith.constant 0 : index
    %16 = vector.load %arg15[%c8, %c0_15] : memref<96x64xf32, #tpu.memory_space<vmem>>, vector<64x4xf32>
    %c2 = arith.constant 2 : index
    %c0_16 = arith.constant 0 : index
    %c0_17 = arith.constant 0 : index
    %17 = vector.load %arg2[%c2, %c0_16, %c0_17] : memref<21x4x32xf32, #tpu.memory_space<vmem>>, vector<1x4x32xf32>
    %18 = vector.shape_cast %17 : vector<1x4x32xf32> to vector<4x32xf32>
    %cst_18 = arith.constant dense<0.000000e+00> : vector<64x32xf32>
    %19 = tpu.matmul %16, %18, %cst_18 {dimension_numbers = #tpu.dot_dimension_numbers<[1], [0], [0], [1], [0, 0, 1, 1], [], []>} : vector<64x4xf32>, vector<4x32xf32>, vector<64x32xf32> -> vector<64x32xf32>
    %20 = arith.addf %15, %19 : vector<64x32xf32>
    %c9 = arith.constant 9 : index
    %c0_19 = arith.constant 0 : index
    %21 = vector.load %arg15[%c9, %c0_19] : memref<96x64xf32, #tpu.memory_space<vmem>>, vector<64x4xf32>
    %c3 = arith.constant 3 : index
    %c0_20 = arith.constant 0 : index
    %c0_21 = arith.constant 0 : index
    %22 = vector.load %arg2[%c3, %c0_20, %c0_21] : memref<21x4x32xf32, #tpu.memory_space<vmem>>, vector<1x4x32xf32>
    %23 = vector.shape_cast %22 : vector<1x4x32xf32> to vector<4x32xf32>
    %cst_22 = arith.constant dense<0.000000e+00> : vector<64x32xf32>
    %24 = tpu.matmul %21, %23, %cst_22 {dimension_numbers = #tpu.dot_dimension_numbers<[1], [0], [0], [1], [0, 0, 1, 1], [], []>} : vector<64x4xf32>, vector<4x32xf32>, vector<64x32xf32> -> vector<64x32xf32>
    %25 = arith.addf %20, %24 : vector<64x32xf32>
    %c10 = arith.constant 10 : index
    %c0_23 = arith.constant 0 : index
    %26 = vector.load %arg15[%c10, %c0_23] : memref<96x64xf32, #tpu.memory_space<vmem>>, vector<64x4xf32>
    %c4 = arith.constant 4 : index
    %c0_24 = arith.constant 0 : index
    %c0_25 = arith.constant 0 : index
    %27 = vector.load %arg2[%c4, %c0_24, %c0_25] : memref<21x4x32xf32, #tpu.memory_space<vmem>>, vector<1x4x32xf32>
    %28 = vector.shape_cast %27 : vector<1x4x32xf32> to vector<4x32xf32>
    %cst_26 = arith.constant dense<0.000000e+00> : vector<64x32xf32>
    %29 = tpu.matmul %26, %28, %cst_26 {dimension_numbers = #tpu.dot_dimension_numbers<[1], [0], [0], [1], [0, 0, 1, 1], [], []>} : vector<64x4xf32>, vector<4x32xf32>, vector<64x32xf32> -> vector<64x32xf32>
    %30 = arith.addf %25, %29 : vector<64x32xf32>
    %c11 = arith.constant 11 : index
    %c0_27 = arith.constant 0 : index
    %31 = vector.load %arg15[%c11, %c0_27] : memref<96x64xf32, #tpu.memory_space<vmem>>, vector<64x4xf32>
    %c5 = arith.constant 5 : index
    %c0_28 = arith.constant 0 : index
    %c0_29 = arith.constant 0 : index
    %32 = vector.load %arg2[%c5, %c0_28, %c0_29] : memref<21x4x32xf32, #tpu.memory_space<vmem>>, vector<1x4x32xf32>
    %33 = vector.shape_cast %32 : vector<1x4x32xf32> to vector<4x32xf32>
    %cst_30 = arith.constant dense<0.000000e+00> : vector<64x32xf32>
    %34 = tpu.matmul %31, %33, %cst_30 {dimension_numbers = #tpu.dot_dimension_numbers<[1], [0], [0], [1], [0, 0, 1, 1], [], []>} : vector<64x4xf32>, vector<4x32xf32>, vector<64x32xf32> -> vector<64x32xf32>
    %35 = arith.addf %30, %34 : vector<64x32xf32>
    %c12 = arith.constant 12 : index
    %c0_31 = arith.constant 0 : index
    %36 = vector.load %arg15[%c12, %c0_31] : memref<96x64xf32, #tpu.memory_space<vmem>>, vector<64x4xf32>
    %c6_32 = arith.constant 6 : index
    %c0_33 = arith.constant 0 : index
    %c0_34 = arith.constant 0 : index
    %37 = vector.load %arg2[%c6_32, %c0_33, %c0_34] : memref<21x4x32xf32, #tpu.memory_space<vmem>>, vector<1x4x32xf32>
    %38 = vector.shape_cast %37 : vector<1x4x32xf32> to vector<4x32xf32>
    %cst_35 = arith.constant dense<0.000000e+00> : vector<64x32xf32>
    %39 = tpu.matmul %36, %38, %cst_35 {dimension_numbers = #tpu.dot_dimension_numbers<[1], [0], [0], [1], [0, 0, 1, 1], [], []>} : vector<64x4xf32>, vector<4x32xf32>, vector<64x32xf32> -> vector<64x32xf32>
    %40 = arith.addf %35, %39 : vector<64x32xf32>
    %c13 = arith.constant 13 : index
    %c0_36 = arith.constant 0 : index
    %41 = vector.load %arg15[%c13, %c0_36] : memref<96x64xf32, #tpu.memory_space<vmem>>, vector<64x4xf32>
    %c7_37 = arith.constant 7 : index
    %c0_38 = arith.constant 0 : index
    %c0_39 = arith.constant 0 : index
    %42 = vector.load %arg2[%c7_37, %c0_38, %c0_39] : memref<21x4x32xf32, #tpu.memory_space<vmem>>, vector<1x4x32xf32>
    %43 = vector.shape_cast %42 : vector<1x4x32xf32> to vector<4x32xf32>
    %cst_40 = arith.constant dense<0.000000e+00> : vector<64x32xf32>
    %44 = tpu.matmul %41, %43, %cst_40 {dimension_numbers = #tpu.dot_dimension_numbers<[1], [0], [0], [1], [0, 0, 1, 1], [], []>} : vector<64x4xf32>, vector<4x32xf32>, vector<64x32xf32> -> vector<64x32xf32>
    %45 = arith.addf %40, %44 : vector<64x32xf32>
    %c14 = arith.constant 14 : index
    %c0_41 = arith.constant 0 : index
    %46 = vector.load %arg15[%c14, %c0_41] : memref<96x64xf32, #tpu.memory_space<vmem>>, vector<64x4xf32>
    %c8_42 = arith.constant 8 : index
    %c0_43 = arith.constant 0 : index
    %c0_44 = arith.constant 0 : index
    %47 = vector.load %arg2[%c8_42, %c0_43, %c0_44] : memref<21x4x32xf32, #tpu.memory_space<vmem>>, vector<1x4x32xf32>
    %48 = vector.shape_cast %47 : vector<1x4x32xf32> to vector<4x32xf32>
    %cst_45 = arith.constant dense<0.000000e+00> : vector<64x32xf32>
    %49 = tpu.matmul %46, %48, %cst_45 {dimension_numbers = #tpu.dot_dimension_numbers<[1], [0], [0], [1], [0, 0, 1, 1], [], []>} : vector<64x4xf32>, vector<4x32xf32>, vector<64x32xf32> -> vector<64x32xf32>
    %50 = arith.addf %45, %49 : vector<64x32xf32>
    %c15 = arith.constant 15 : index
    %c0_46 = arith.constant 0 : index
    %51 = vector.load %arg15[%c15, %c0_46] : memref<96x64xf32, #tpu.memory_space<vmem>>, vector<64x4xf32>
    %c9_47 = arith.constant 9 : index
    %c0_48 = arith.constant 0 : index
    %c0_49 = arith.constant 0 : index
    %52 = vector.load %arg2[%c9_47, %c0_48, %c0_49] : memref<21x4x32xf32, #tpu.memory_space<vmem>>, vector<1x4x32xf32>
    %53 = vector.shape_cast %52 : vector<1x4x32xf32> to vector<4x32xf32>
    %cst_50 = arith.constant dense<0.000000e+00> : vector<64x32xf32>
    %54 = tpu.matmul %51, %53, %cst_50 {dimension_numbers = #tpu.dot_dimension_numbers<[1], [0], [0], [1], [0, 0, 1, 1], [], []>} : vector<64x4xf32>, vector<4x32xf32>, vector<64x32xf32> -> vector<64x32xf32>
    %55 = arith.addf %50, %54 : vector<64x32xf32>
    %c16_51 = arith.constant 16 : index
    %c0_52 = arith.constant 0 : index
    %56 = vector.load %arg15[%c16_51, %c0_52] : memref<96x64xf32, #tpu.memory_space<vmem>>, vector<64x4xf32>
    %c10_53 = arith.constant 10 : index
    %c0_54 = arith.constant 0 : index
    %c0_55 = arith.constant 0 : index
    %57 = vector.load %arg2[%c10_53, %c0_54, %c0_55] : memref<21x4x32xf32, #tpu.memory_space<vmem>>, vector<1x4x32xf32>
    %58 = vector.shape_cast %57 : vector<1x4x32xf32> to vector<4x32xf32>
    %cst_56 = arith.constant dense<0.000000e+00> : vector<64x32xf32>
    %59 = tpu.matmul %56, %58, %cst_56 {dimension_numbers = #tpu.dot_dimension_numbers<[1], [0], [0], [1], [0, 0, 1, 1], [], []>} : vector<64x4xf32>, vector<4x32xf32>, vector<64x32xf32> -> vector<64x32xf32>
    %60 = arith.addf %55, %59 : vector<64x32xf32>
    %c17 = arith.constant 17 : index
    %c0_57 = arith.constant 0 : index
    %61 = vector.load %arg15[%c17, %c0_57] : memref<96x64xf32, #tpu.memory_space<vmem>>, vector<64x4xf32>
    %c11_58 = arith.constant 11 : index
    %c0_59 = arith.constant 0 : index
    %c0_60 = arith.constant 0 : index
    %62 = vector.load %arg2[%c11_58, %c0_59, %c0_60] : memref<21x4x32xf32, #tpu.memory_space<vmem>>, vector<1x4x32xf32>
    %63 = vector.shape_cast %62 : vector<1x4x32xf32> to vector<4x32xf32>
    %cst_61 = arith.constant dense<0.000000e+00> : vector<64x32xf32>
    %64 = tpu.matmul %61, %63, %cst_61 {dimension_numbers = #tpu.dot_dimension_numbers<[1], [0], [0], [1], [0, 0, 1, 1], [], []>} : vector<64x4xf32>, vector<4x32xf32>, vector<64x32xf32> -> vector<64x32xf32>
    %65 = arith.addf %60, %64 : vector<64x32xf32>
    %c18 = arith.constant 18 : index
    %c0_62 = arith.constant 0 : index
    %66 = vector.load %arg15[%c18, %c0_62] : memref<96x64xf32, #tpu.memory_space<vmem>>, vector<64x4xf32>
    %c12_63 = arith.constant 12 : index
    %c0_64 = arith.constant 0 : index
    %c0_65 = arith.constant 0 : index
    %67 = vector.load %arg2[%c12_63, %c0_64, %c0_65] : memref<21x4x32xf32, #tpu.memory_space<vmem>>, vector<1x4x32xf32>
    %68 = vector.shape_cast %67 : vector<1x4x32xf32> to vector<4x32xf32>
    %cst_66 = arith.constant dense<0.000000e+00> : vector<64x32xf32>
    %69 = tpu.matmul %66, %68, %cst_66 {dimension_numbers = #tpu.dot_dimension_numbers<[1], [0], [0], [1], [0, 0, 1, 1], [], []>} : vector<64x4xf32>, vector<4x32xf32>, vector<64x32xf32> -> vector<64x32xf32>
    %70 = arith.addf %65, %69 : vector<64x32xf32>
    %c19 = arith.constant 19 : index
    %c0_67 = arith.constant 0 : index
    %71 = vector.load %arg15[%c19, %c0_67] : memref<96x64xf32, #tpu.memory_space<vmem>>, vector<64x4xf32>
    %c13_68 = arith.constant 13 : index
    %c0_69 = arith.constant 0 : index
    %c0_70 = arith.constant 0 : index
    %72 = vector.load %arg2[%c13_68, %c0_69, %c0_70] : memref<21x4x32xf32, #tpu.memory_space<vmem>>, vector<1x4x32xf32>
    %73 = vector.shape_cast %72 : vector<1x4x32xf32> to vector<4x32xf32>
    %cst_71 = arith.constant dense<0.000000e+00> : vector<64x32xf32>
    %74 = tpu.matmul %71, %73, %cst_71 {dimension_numbers = #tpu.dot_dimension_numbers<[1], [0], [0], [1], [0, 0, 1, 1], [], []>} : vector<64x4xf32>, vector<4x32xf32>, vector<64x32xf32> -> vector<64x32xf32>
    %75 = arith.addf %70, %74 : vector<64x32xf32>
    %c20 = arith.constant 20 : index
    %c0_72 = arith.constant 0 : index
    %76 = vector.load %arg15[%c20, %c0_72] : memref<96x64xf32, #tpu.memory_space<vmem>>, vector<64x4xf32>
    %c14_73 = arith.constant 14 : index
    %c0_74 = arith.constant 0 : index
    %c0_75 = arith.constant 0 : index
    %77 = vector.load %arg2[%c14_73, %c0_74, %c0_75] : memref<21x4x32xf32, #tpu.memory_space<vmem>>, vector<1x4x32xf32>
    %78 = vector.shape_cast %77 : vector<1x4x32xf32> to vector<4x32xf32>
    %cst_76 = arith.constant dense<0.000000e+00> : vector<64x32xf32>
    %79 = tpu.matmul %76, %78, %cst_76 {dimension_numbers = #tpu.dot_dimension_numbers<[1], [0], [0], [1], [0, 0, 1, 1], [], []>} : vector<64x4xf32>, vector<4x32xf32>, vector<64x32xf32> -> vector<64x32xf32>
    %80 = arith.addf %75, %79 : vector<64x32xf32>
    %c21 = arith.constant 21 : index
    %c0_77 = arith.constant 0 : index
    %81 = vector.load %arg15[%c21, %c0_77] : memref<96x64xf32, #tpu.memory_space<vmem>>, vector<64x4xf32>
    %c15_78 = arith.constant 15 : index
    %c0_79 = arith.constant 0 : index
    %c0_80 = arith.constant 0 : index
    %82 = vector.load %arg2[%c15_78, %c0_79, %c0_80] : memref<21x4x32xf32, #tpu.memory_space<vmem>>, vector<1x4x32xf32>
    %83 = vector.shape_cast %82 : vector<1x4x32xf32> to vector<4x32xf32>
    %cst_81 = arith.constant dense<0.000000e+00> : vector<64x32xf32>
    %84 = tpu.matmul %81, %83, %cst_81 {dimension_numbers = #tpu.dot_dimension_numbers<[1], [0], [0], [1], [0, 0, 1, 1], [], []>} : vector<64x4xf32>, vector<4x32xf32>, vector<64x32xf32> -> vector<64x32xf32>
    %85 = arith.addf %80, %84 : vector<64x32xf32>
    %c22 = arith.constant 22 : index
    %c0_82 = arith.constant 0 : index
    %86 = vector.load %arg15[%c22, %c0_82] : memref<96x64xf32, #tpu.memory_space<vmem>>, vector<64x4xf32>
    %c16_83 = arith.constant 16 : index
    %c0_84 = arith.constant 0 : index
    %c0_85 = arith.constant 0 : index
    %87 = vector.load %arg2[%c16_83, %c0_84, %c0_85] : memref<21x4x32xf32, #tpu.memory_space<vmem>>, vector<1x4x32xf32>
    %88 = vector.shape_cast %87 : vector<1x4x32xf32> to vector<4x32xf32>
    %cst_86 = arith.constant dense<0.000000e+00> : vector<64x32xf32>
    %89 = tpu.matmul %86, %88, %cst_86 {dimension_numbers = #tpu.dot_dimension_numbers<[1], [0], [0], [1], [0, 0, 1, 1], [], []>} : vector<64x4xf32>, vector<4x32xf32>, vector<64x32xf32> -> vector<64x32xf32>
    %90 = arith.addf %85, %89 : vector<64x32xf32>
    %c23 = arith.constant 23 : index
    %c0_87 = arith.constant 0 : index
    %91 = vector.load %arg15[%c23, %c0_87] : memref<96x64xf32, #tpu.memory_space<vmem>>, vector<64x4xf32>
    %c17_88 = arith.constant 17 : index
    %c0_89 = arith.constant 0 : index
    %c0_90 = arith.constant 0 : index
    %92 = vector.load %arg2[%c17_88, %c0_89, %c0_90] : memref<21x4x32xf32, #tpu.memory_space<vmem>>, vector<1x4x32xf32>
    %93 = vector.shape_cast %92 : vector<1x4x32xf32> to vector<4x32xf32>
    %cst_91 = arith.constant dense<0.000000e+00> : vector<64x32xf32>
    %94 = tpu.matmul %91, %93, %cst_91 {dimension_numbers = #tpu.dot_dimension_numbers<[1], [0], [0], [1], [0, 0, 1, 1], [], []>} : vector<64x4xf32>, vector<4x32xf32>, vector<64x32xf32> -> vector<64x32xf32>
    %95 = arith.addf %90, %94 : vector<64x32xf32>
    %c24 = arith.constant 24 : index
    %c0_92 = arith.constant 0 : index
    %96 = vector.load %arg15[%c24, %c0_92] : memref<96x64xf32, #tpu.memory_space<vmem>>, vector<64x4xf32>
    %c18_93 = arith.constant 18 : index
    %c0_94 = arith.constant 0 : index
    %c0_95 = arith.constant 0 : index
    %97 = vector.load %arg2[%c18_93, %c0_94, %c0_95] : memref<21x4x32xf32, #tpu.memory_space<vmem>>, vector<1x4x32xf32>
    %98 = vector.shape_cast %97 : vector<1x4x32xf32> to vector<4x32xf32>
    %cst_96 = arith.constant dense<0.000000e+00> : vector<64x32xf32>
    %99 = tpu.matmul %96, %98, %cst_96 {dimension_numbers = #tpu.dot_dimension_numbers<[1], [0], [0], [1], [0, 0, 1, 1], [], []>} : vector<64x4xf32>, vector<4x32xf32>, vector<64x32xf32> -> vector<64x32xf32>
    %100 = arith.addf %95, %99 : vector<64x32xf32>
    %c25 = arith.constant 25 : index
    %c0_97 = arith.constant 0 : index
    %101 = vector.load %arg15[%c25, %c0_97] : memref<96x64xf32, #tpu.memory_space<vmem>>, vector<64x4xf32>
    %c19_98 = arith.constant 19 : index
    %c0_99 = arith.constant 0 : index
    %c0_100 = arith.constant 0 : index
    %102 = vector.load %arg2[%c19_98, %c0_99, %c0_100] : memref<21x4x32xf32, #tpu.memory_space<vmem>>, vector<1x4x32xf32>
    %103 = vector.shape_cast %102 : vector<1x4x32xf32> to vector<4x32xf32>
    %cst_101 = arith.constant dense<0.000000e+00> : vector<64x32xf32>
    %104 = tpu.matmul %101, %103, %cst_101 {dimension_numbers = #tpu.dot_dimension_numbers<[1], [0], [0], [1], [0, 0, 1, 1], [], []>} : vector<64x4xf32>, vector<4x32xf32>, vector<64x32xf32> -> vector<64x32xf32>
    %105 = arith.addf %100, %104 : vector<64x32xf32>
    %c26 = arith.constant 26 : index
    %c0_102 = arith.constant 0 : index
    %106 = vector.load %arg15[%c26, %c0_102] : memref<96x64xf32, #tpu.memory_space<vmem>>, vector<64x4xf32>
    %c20_103 = arith.constant 20 : index
    %c0_104 = arith.constant 0 : index
    %c0_105 = arith.constant 0 : index
    %107 = vector.load %arg2[%c20_103, %c0_104, %c0_105] : memref<21x4x32xf32, #tpu.memory_space<vmem>>, vector<1x4x32xf32>
    %108 = vector.shape_cast %107 : vector<1x4x32xf32> to vector<4x32xf32>
    %cst_106 = arith.constant dense<0.000000e+00> : vector<64x32xf32>
    %109 = tpu.matmul %106, %108, %cst_106 {dimension_numbers = #tpu.dot_dimension_numbers<[1], [0], [0], [1], [0, 0, 1, 1], [], []>} : vector<64x4xf32>, vector<4x32xf32>, vector<64x32xf32> -> vector<64x32xf32>
    %110 = arith.addf %105, %109 : vector<64x32xf32>
    %c0_107 = arith.constant 0 : index
    %c0_108 = arith.constant 0 : index
    %111 = vector.load %arg3[%c0_107, %c0_108] : memref<1x32xf32, #tpu.memory_space<vmem>>, vector<1x32xf32>
    %112 = vector.broadcast %111 : vector<1x32xf32> to vector<64x32xf32>
    %113 = arith.addf %110, %112 : vector<64x32xf32>
    %cst_109 = arith.constant 0.000000e+00 : f32
    %114 = vector.broadcast %cst_109 : f32 to vector<64x32xf32>
    %115 = arith.cmpf ogt, %113, %114 : vector<64x32xf32>
    %cst_110 = arith.constant 3.000000e-01 : f32
    %116 = vector.broadcast %cst_110 : f32 to vector<64x32xf32>
    %117 = arith.mulf %116, %113 : vector<64x32xf32>
    %118 = arith.select %115, %113, %117 : vector<64x32xi1>, vector<64x32xf32>
    %c16_111 = arith.constant 16 : index
    %c0_112 = arith.constant 0 : index
    %119 = vector.load %arg15[%c16_111, %c0_112] : memref<96x64xf32, #tpu.memory_space<vmem>>, vector<64x32xf32>
    tpu.vector_store %arg15[%c16_111, %c0_112], %118 {strides = array<i32>} : memref<96x64xf32, #tpu.memory_space<vmem>>, vector<64x32xf32>,
    %cst_113 = arith.constant 0.000000e+00 : f32
    %120 = vector.broadcast %cst_113 : f32 to vector<64x32xf32>
    %c6_114 = arith.constant 6 : index
    %c0_115 = arith.constant 0 : index
    %121 = vector.load %arg15[%c6_114, %c0_115] : memref<96x64xf32, #tpu.memory_space<vmem>>, vector<64x32xf32>
    %c0_116 = arith.constant 0 : index
    %c0_117 = arith.constant 0 : index
    %c0_118 = arith.constant 0 : index
    %122 = vector.load %arg4[%c0_116, %c0_117, %c0_118] : memref<21x32x32xf32, #tpu.memory_space<vmem>>, vector<1x32x32xf32>
    %123 = vector.shape_cast %122 : vector<1x32x32xf32> to vector<32x32xf32>
    %cst_119 = arith.constant dense<0.000000e+00> : vector<64x32xf32>
    %124 = tpu.matmul %121, %123, %cst_119 {dimension_numbers = #tpu.dot_dimension_numbers<[1], [0], [0], [1], [0, 0, 1, 1], [], []>} : vector<64x32xf32>, vector<32x32xf32>, vector<64x32xf32> -> vector<64x32xf32>
    %125 = arith.addf %120, %124 : vector<64x32xf32>
    %c7_120 = arith.constant 7 : index
    %c0_121 = arith.constant 0 : index
    %126 = vector.load %arg15[%c7_120, %c0_121] : memref<96x64xf32, #tpu.memory_space<vmem>>, vector<64x32xf32>
    %c1_122 = arith.constant 1 : index
    %c0_123 = arith.constant 0 : index
    %c0_124 = arith.constant 0 : index
    %127 = vector.load %arg4[%c1_122, %c0_123, %c0_124] : memref<21x32x32xf32, #tpu.memory_space<vmem>>, vector<1x32x32xf32>
    %128 = vector.shape_cast %127 : vector<1x32x32xf32> to vector<32x32xf32>
    %cst_125 = arith.constant dense<0.000000e+00> : vector<64x32xf32>
    %129 = tpu.matmul %126, %128, %cst_125 {dimension_numbers = #tpu.dot_dimension_numbers<[1], [0], [0], [1], [0, 0, 1, 1], [], []>} : vector<64x32xf32>, vector<32x32xf32>, vector<64x32xf32> -> vector<64x32xf32>
    %130 = arith.addf %125, %129 : vector<64x32xf32>
    %c8_126 = arith.constant 8 : index
    %c0_127 = arith.constant 0 : index
    %131 = vector.load %arg15[%c8_126, %c0_127] : memref<96x64xf32, #tpu.memory_space<vmem>>, vector<64x32xf32>
    %c2_128 = arith.constant 2 : index
    %c0_129 = arith.constant 0 : index
    %c0_130 = arith.constant 0 : index
    %132 = vector.load %arg4[%c2_128, %c0_129, %c0_130] : memref<21x32x32xf32, #tpu.memory_space<vmem>>, vector<1x32x32xf32>
    %133 = vector.shape_cast %132 : vector<1x32x32xf32> to vector<32x32xf32>
    %cst_131 = arith.constant dense<0.000000e+00> : vector<64x32xf32>
    %134 = tpu.matmul %131, %133, %cst_131 {dimension_numbers = #tpu.dot_dimension_numbers<[1], [0], [0], [1], [0, 0, 1, 1], [], []>} : vector<64x32xf32>, vector<32x32xf32>, vector<64x32xf32> -> vector<64x32xf32>
    %135 = arith.addf %130, %134 : vector<64x32xf32>
    %c9_132 = arith.constant 9 : index
    %c0_133 = arith.constant 0 : index
    %136 = vector.load %arg15[%c9_132, %c0_133] : memref<96x64xf32, #tpu.memory_space<vmem>>, vector<64x32xf32>
    %c3_134 = arith.constant 3 : index
    %c0_135 = arith.constant 0 : index
    %c0_136 = arith.constant 0 : index
    %137 = vector.load %arg4[%c3_134, %c0_135, %c0_136] : memref<21x32x32xf32, #tpu.memory_space<vmem>>, vector<1x32x32xf32>
    %138 = vector.shape_cast %137 : vector<1x32x32xf32> to vector<32x32xf32>
    %cst_137 = arith.constant dense<0.000000e+00> : vector<64x32xf32>
    %139 = tpu.matmul %136, %138, %cst_137 {dimension_numbers = #tpu.dot_dimension_numbers<[1], [0], [0], [1], [0, 0, 1, 1], [], []>} : vector<64x32xf32>, vector<32x32xf32>, vector<64x32xf32> -> vector<64x32xf32>
    %140 = arith.addf %135, %139 : vector<64x32xf32>
    %c10_138 = arith.constant 10 : index
    %c0_139 = arith.constant 0 : index
    %141 = vector.load %arg15[%c10_138, %c0_139] : memref<96x64xf32, #tpu.memory_space<vmem>>, vector<64x32xf32>
    %c4_140 = arith.constant 4 : index
    %c0_141 = arith.constant 0 : index
    %c0_142 = arith.constant 0 : index
    %142 = vector.load %arg4[%c4_140, %c0_141, %c0_142] : memref<21x32x32xf32, #tpu.memory_space<vmem>>, vector<1x32x32xf32>
    %143 = vector.shape_cast %142 : vector<1x32x32xf32> to vector<32x32xf32>
    %cst_143 = arith.constant dense<0.000000e+00> : vector<64x32xf32>
    %144 = tpu.matmul %141, %143, %cst_143 {dimension_numbers = #tpu.dot_dimension_numbers<[1], [0], [0], [1], [0, 0, 1, 1], [], []>} : vector<64x32xf32>, vector<32x32xf32>, vector<64x32xf32> -> vector<64x32xf32>
    %145 = arith.addf %140, %144 : vector<64x32xf32>
    %c11_144 = arith.constant 11 : index
    %c0_145 = arith.constant 0 : index
    %146 = vector.load %arg15[%c11_144, %c0_145] : memref<96x64xf32, #tpu.memory_space<vmem>>, vector<64x32xf32>
    %c5_146 = arith.constant 5 : index
    %c0_147 = arith.constant 0 : index
    %c0_148 = arith.constant 0 : index
    %147 = vector.load %arg4[%c5_146, %c0_147, %c0_148] : memref<21x32x32xf32, #tpu.memory_space<vmem>>, vector<1x32x32xf32>
    %148 = vector.shape_cast %147 : vector<1x32x32xf32> to vector<32x32xf32>
    %cst_149 = arith.constant dense<0.000000e+00> : vector<64x32xf32>
    %149 = tpu.matmul %146, %148, %cst_149 {dimension_numbers = #tpu.dot_dimension_numbers<[1], [0], [0], [1], [0, 0, 1, 1], [], []>} : vector<64x32xf32>, vector<32x32xf32>, vector<64x32xf32> -> vector<64x32xf32>
    %150 = arith.addf %145, %149 : vector<64x32xf32>
    %c12_150 = arith.constant 12 : index
    %c0_151 = arith.constant 0 : index
    %151 = vector.load %arg15[%c12_150, %c0_151] : memref<96x64xf32, #tpu.memory_space<vmem>>, vector<64x32xf32>
    %c6_152 = arith.constant 6 : index
    %c0_153 = arith.constant 0 : index
    %c0_154 = arith.constant 0 : index
    %152 = vector.load %arg4[%c6_152, %c0_153, %c0_154] : memref<21x32x32xf32, #tpu.memory_space<vmem>>, vector<1x32x32xf32>
    %153 = vector.shape_cast %152 : vector<1x32x32xf32> to vector<32x32xf32>
    %cst_155 = arith.constant dense<0.000000e+00> : vector<64x32xf32>
    %154 = tpu.matmul %151, %153, %cst_155 {dimension_numbers = #tpu.dot_dimension_numbers<[1], [0], [0], [1], [0, 0, 1, 1], [], []>} : vector<64x32xf32>, vector<32x32xf32>, vector<64x32xf32> -> vector<64x32xf32>
    %155 = arith.addf %150, %154 : vector<64x32xf32>
    %c13_156 = arith.constant 13 : index
    %c0_157 = arith.constant 0 : index
    %156 = vector.load %arg15[%c13_156, %c0_157] : memref<96x64xf32, #tpu.memory_space<vmem>>, vector<64x32xf32>
    %c7_158 = arith.constant 7 : index
    %c0_159 = arith.constant 0 : index
    %c0_160 = arith.constant 0 : index
    %157 = vector.load %arg4[%c7_158, %c0_159, %c0_160] : memref<21x32x32xf32, #tpu.memory_space<vmem>>, vector<1x32x32xf32>
    %158 = vector.shape_cast %157 : vector<1x32x32xf32> to vector<32x32xf32>
    %cst_161 = arith.constant dense<0.000000e+00> : vector<64x32xf32>
    %159 = tpu.matmul %156, %158, %cst_161 {dimension_numbers = #tpu.dot_dimension_numbers<[1], [0], [0], [1], [0, 0, 1, 1], [], []>} : vector<64x32xf32>, vector<32x32xf32>, vector<64x32xf32> -> vector<64x32xf32>
    %160 = arith.addf %155, %159 : vector<64x32xf32>
    %c14_162 = arith.constant 14 : index
    %c0_163 = arith.constant 0 : index
    %161 = vector.load %arg15[%c14_162, %c0_163] : memref<96x64xf32, #tpu.memory_space<vmem>>, vector<64x32xf32>
    %c8_164 = arith.constant 8 : index
    %c0_165 = arith.constant 0 : index
    %c0_166 = arith.constant 0 : index
    %162 = vector.load %arg4[%c8_164, %c0_165, %c0_166] : memref<21x32x32xf32, #tpu.memory_space<vmem>>, vector<1x32x32xf32>
    %163 = vector.shape_cast %162 : vector<1x32x32xf32> to vector<32x32xf32>
    %cst_167 = arith.constant dense<0.000000e+00> : vector<64x32xf32>
    %164 = tpu.matmul %161, %163, %cst_167 {dimension_numbers = #tpu.dot_dimension_numbers<[1], [0], [0], [1], [0, 0, 1, 1], [], []>} : vector<64x32xf32>, vector<32x32xf32>, vector<64x32xf32> -> vector<64x32xf32>
    %165 = arith.addf %160, %164 : vector<64x32xf32>
    %c15_168 = arith.constant 15 : index
    %c0_169 = arith.constant 0 : index
    %166 = vector.load %arg15[%c15_168, %c0_169] : memref<96x64xf32, #tpu.memory_space<vmem>>, vector<64x32xf32>
    %c9_170 = arith.constant 9 : index
    %c0_171 = arith.constant 0 : index
    %c0_172 = arith.constant 0 : index
    %167 = vector.load %arg4[%c9_170, %c0_171, %c0_172] : memref<21x32x32xf32, #tpu.memory_space<vmem>>, vector<1x32x32xf32>
    %168 = vector.shape_cast %167 : vector<1x32x32xf32> to vector<32x32xf32>
    %cst_173 = arith.constant dense<0.000000e+00> : vector<64x32xf32>
    %169 = tpu.matmul %166, %168, %cst_173 {dimension_numbers = #tpu.dot_dimension_numbers<[1], [0], [0], [1], [0, 0, 1, 1], [], []>} : vector<64x32xf32>, vector<32x32xf32>, vector<64x32xf32> -> vector<64x32xf32>
    %170 = arith.addf %165, %169 : vector<64x32xf32>
    %c16_174 = arith.constant 16 : index
    %c0_175 = arith.constant 0 : index
    %171 = vector.load %arg15[%c16_174, %c0_175] : memref<96x64xf32, #tpu.memory_space<vmem>>, vector<64x32xf32>
    %c10_176 = arith.constant 10 : index
    %c0_177 = arith.constant 0 : index
    %c0_178 = arith.constant 0 : index
    %172 = vector.load %arg4[%c10_176, %c0_177, %c0_178] : memref<21x32x32xf32, #tpu.memory_space<vmem>>, vector<1x32x32xf32>
    %173 = vector.shape_cast %172 : vector<1x32x32xf32> to vector<32x32xf32>
    %cst_179 = arith.constant dense<0.000000e+00> : vector<64x32xf32>
    %174 = tpu.matmul %171, %173, %cst_179 {dimension_numbers = #tpu.dot_dimension_numbers<[1], [0], [0], [1], [0, 0, 1, 1], [], []>} : vector<64x32xf32>, vector<32x32xf32>, vector<64x32xf32> -> vector<64x32xf32>
    %175 = arith.addf %170, %174 : vector<64x32xf32>
    %c17_180 = arith.constant 17 : index
    %c0_181 = arith.constant 0 : index
    %176 = vector.load %arg15[%c17_180, %c0_181] : memref<96x64xf32, #tpu.memory_space<vmem>>, vector<64x32xf32>
    %c11_182 = arith.constant 11 : index
    %c0_183 = arith.constant 0 : index
    %c0_184 = arith.constant 0 : index
    %177 = vector.load %arg4[%c11_182, %c0_183, %c0_184] : memref<21x32x32xf32, #tpu.memory_space<vmem>>, vector<1x32x32xf32>
    %178 = vector.shape_cast %177 : vector<1x32x32xf32> to vector<32x32xf32>
    %cst_185 = arith.constant dense<0.000000e+00> : vector<64x32xf32>
    %179 = tpu.matmul %176, %178, %cst_185 {dimension_numbers = #tpu.dot_dimension_numbers<[1], [0], [0], [1], [0, 0, 1, 1], [], []>} : vector<64x32xf32>, vector<32x32xf32>, vector<64x32xf32> -> vector<64x32xf32>
    %180 = arith.addf %175, %179 : vector<64x32xf32>
    %c18_186 = arith.constant 18 : index
    %c0_187 = arith.constant 0 : index
    %181 = vector.load %arg15[%c18_186, %c0_187] : memref<96x64xf32, #tpu.memory_space<vmem>>, vector<64x32xf32>
    %c12_188 = arith.constant 12 : index
    %c0_189 = arith.constant 0 : index
    %c0_190 = arith.constant 0 : index
    %182 = vector.load %arg4[%c12_188, %c0_189, %c0_190] : memref<21x32x32xf32, #tpu.memory_space<vmem>>, vector<1x32x32xf32>
    %183 = vector.shape_cast %182 : vector<1x32x32xf32> to vector<32x32xf32>
    %cst_191 = arith.constant dense<0.000000e+00> : vector<64x32xf32>
    %184 = tpu.matmul %181, %183, %cst_191 {dimension_numbers = #tpu.dot_dimension_numbers<[1], [0], [0], [1], [0, 0, 1, 1], [], []>} : vector<64x32xf32>, vector<32x32xf32>, vector<64x32xf32> -> vector<64x32xf32>
    %185 = arith.addf %180, %184 : vector<64x32xf32>
    %c19_192 = arith.constant 19 : index
    %c0_193 = arith.constant 0 : index
    %186 = vector.load %arg15[%c19_192, %c0_193] : memref<96x64xf32, #tpu.memory_space<vmem>>, vector<64x32xf32>
    %c13_194 = arith.constant 13 : index
    %c0_195 = arith.constant 0 : index
    %c0_196 = arith.constant 0 : index
    %187 = vector.load %arg4[%c13_194, %c0_195, %c0_196] : memref<21x32x32xf32, #tpu.memory_space<vmem>>, vector<1x32x32xf32>
    %188 = vector.shape_cast %187 : vector<1x32x32xf32> to vector<32x32xf32>
    %cst_197 = arith.constant dense<0.000000e+00> : vector<64x32xf32>
    %189 = tpu.matmul %186, %188, %cst_197 {dimension_numbers = #tpu.dot_dimension_numbers<[1], [0], [0], [1], [0, 0, 1, 1], [], []>} : vector<64x32xf32>, vector<32x32xf32>, vector<64x32xf32> -> vector<64x32xf32>
    %190 = arith.addf %185, %189 : vector<64x32xf32>
    %c20_198 = arith.constant 20 : index
    %c0_199 = arith.constant 0 : index
    %191 = vector.load %arg15[%c20_198, %c0_199] : memref<96x64xf32, #tpu.memory_space<vmem>>, vector<64x32xf32>
    %c14_200 = arith.constant 14 : index
    %c0_201 = arith.constant 0 : index
    %c0_202 = arith.constant 0 : index
    %192 = vector.load %arg4[%c14_200, %c0_201, %c0_202] : memref<21x32x32xf32, #tpu.memory_space<vmem>>, vector<1x32x32xf32>
    %193 = vector.shape_cast %192 : vector<1x32x32xf32> to vector<32x32xf32>
    %cst_203 = arith.constant dense<0.000000e+00> : vector<64x32xf32>
    %194 = tpu.matmul %191, %193, %cst_203 {dimension_numbers = #tpu.dot_dimension_numbers<[1], [0], [0], [1], [0, 0, 1, 1], [], []>} : vector<64x32xf32>, vector<32x32xf32>, vector<64x32xf32> -> vector<64x32xf32>
    %195 = arith.addf %190, %194 : vector<64x32xf32>
    %c21_204 = arith.constant 21 : index
    %c0_205 = arith.constant 0 : index
    %196 = vector.load %arg15[%c21_204, %c0_205] : memref<96x64xf32, #tpu.memory_space<vmem>>, vector<64x32xf32>
    %c15_206 = arith.constant 15 : index
    %c0_207 = arith.constant 0 : index
    %c0_208 = arith.constant 0 : index
    %197 = vector.load %arg4[%c15_206, %c0_207, %c0_208] : memref<21x32x32xf32, #tpu.memory_space<vmem>>, vector<1x32x32xf32>
    %198 = vector.shape_cast %197 : vector<1x32x32xf32> to vector<32x32xf32>
    %cst_209 = arith.constant dense<0.000000e+00> : vector<64x32xf32>
    %199 = tpu.matmul %196, %198, %cst_209 {dimension_numbers = #tpu.dot_dimension_numbers<[1], [0], [0], [1], [0, 0, 1, 1], [], []>} : vector<64x32xf32>, vector<32x32xf32>, vector<64x32xf32> -> vector<64x32xf32>
    %200 = arith.addf %195, %199 : vector<64x32xf32>
    %c22_210 = arith.constant 22 : index
    %c0_211 = arith.constant 0 : index
    %201 = vector.load %arg15[%c22_210, %c0_211] : memref<96x64xf32, #tpu.memory_space<vmem>>, vector<64x32xf32>
    %c16_212 = arith.constant 16 : index
    %c0_213 = arith.constant 0 : index
    %c0_214 = arith.constant 0 : index
    %202 = vector.load %arg4[%c16_212, %c0_213, %c0_214] : memref<21x32x32xf32, #tpu.memory_space<vmem>>, vector<1x32x32xf32>
    %203 = vector.shape_cast %202 : vector<1x32x32xf32> to vector<32x32xf32>
    %cst_215 = arith.constant dense<0.000000e+00> : vector<64x32xf32>
    %204 = tpu.matmul %201, %203, %cst_215 {dimension_numbers = #tpu.dot_dimension_numbers<[1], [0], [0], [1], [0, 0, 1, 1], [], []>} : vector<64x32xf32>, vector<32x32xf32>, vector<64x32xf32> -> vector<64x32xf32>
    %205 = arith.addf %200, %204 : vector<64x32xf32>
    %c23_216 = arith.constant 23 : index
    %c0_217 = arith.constant 0 : index
    %206 = vector.load %arg15[%c23_216, %c0_217] : memref<96x64xf32, #tpu.memory_space<vmem>>, vector<64x32xf32>
    %c17_218 = arith.constant 17 : index
    %c0_219 = arith.constant 0 : index
    %c0_220 = arith.constant 0 : index
    %207 = vector.load %arg4[%c17_218, %c0_219, %c0_220] : memref<21x32x32xf32, #tpu.memory_space<vmem>>, vector<1x32x32xf32>
    %208 = vector.shape_cast %207 : vector<1x32x32xf32> to vector<32x32xf32>
    %cst_221 = arith.constant dense<0.000000e+00> : vector<64x32xf32>
    %209 = tpu.matmul %206, %208, %cst_221 {dimension_numbers = #tpu.dot_dimension_numbers<[1], [0], [0], [1], [0, 0, 1, 1], [], []>} : vector<64x32xf32>, vector<32x32xf32>, vector<64x32xf32> -> vector<64x32xf32>
    %210 = arith.addf %205, %209 : vector<64x32xf32>
    %c24_222 = arith.constant 24 : index
    %c0_223 = arith.constant 0 : index
    %211 = vector.load %arg15[%c24_222, %c0_223] : memref<96x64xf32, #tpu.memory_space<vmem>>, vector<64x32xf32>
    %c18_224 = arith.constant 18 : index
    %c0_225 = arith.constant 0 : index
    %c0_226 = arith.constant 0 : index
    %212 = vector.load %arg4[%c18_224, %c0_225, %c0_226] : memref<21x32x32xf32, #tpu.memory_space<vmem>>, vector<1x32x32xf32>
    %213 = vector.shape_cast %212 : vector<1x32x32xf32> to vector<32x32xf32>
    %cst_227 = arith.constant dense<0.000000e+00> : vector<64x32xf32>
    %214 = tpu.matmul %211, %213, %cst_227 {dimension_numbers = #tpu.dot_dimension_numbers<[1], [0], [0], [1], [0, 0, 1, 1], [], []>} : vector<64x32xf32>, vector<32x32xf32>, vector<64x32xf32> -> vector<64x32xf32>
    %215 = arith.addf %210, %214 : vector<64x32xf32>
    %c25_228 = arith.constant 25 : index
    %c0_229 = arith.constant 0 : index
    %216 = vector.load %arg15[%c25_228, %c0_229] : memref<96x64xf32, #tpu.memory_space<vmem>>, vector<64x32xf32>
    %c19_230 = arith.constant 19 : index
    %c0_231 = arith.constant 0 : index
    %c0_232 = arith.constant 0 : index
    %217 = vector.load %arg4[%c19_230, %c0_231, %c0_232] : memref<21x32x32xf32, #tpu.memory_space<vmem>>, vector<1x32x32xf32>
    %218 = vector.shape_cast %217 : vector<1x32x32xf32> to vector<32x32xf32>
    %cst_233 = arith.constant dense<0.000000e+00> : vector<64x32xf32>
    %219 = tpu.matmul %216, %218, %cst_233 {dimension_numbers = #tpu.dot_dimension_numbers<[1], [0], [0], [1], [0, 0, 1, 1], [], []>} : vector<64x32xf32>, vector<32x32xf32>, vector<64x32xf32> -> vector<64x32xf32>
    %220 = arith.addf %215, %219 : vector<64x32xf32>
    %c26_234 = arith.constant 26 : index
    %c0_235 = arith.constant 0 : index
    %221 = vector.load %arg15[%c26_234, %c0_235] : memref<96x64xf32, #tpu.memory_space<vmem>>, vector<64x32xf32>
    %c20_236 = arith.constant 20 : index
    %c0_237 = arith.constant 0 : index
    %c0_238 = arith.constant 0 : index
    %222 = vector.load %arg4[%c20_236, %c0_237, %c0_238] : memref<21x32x32xf32, #tpu.memory_space<vmem>>, vector<1x32x32xf32>
    %223 = vector.shape_cast %222 : vector<1x32x32xf32> to vector<32x32xf32>
    %cst_239 = arith.constant dense<0.000000e+00> : vector<64x32xf32>
    %224 = tpu.matmul %221, %223, %cst_239 {dimension_numbers = #tpu.dot_dimension_numbers<[1], [0], [0], [1], [0, 0, 1, 1], [], []>} : vector<64x32xf32>, vector<32x32xf32>, vector<64x32xf32> -> vector<64x32xf32>
    %225 = arith.addf %220, %224 : vector<64x32xf32>
    %c0_240 = arith.constant 0 : index
    %c0_241 = arith.constant 0 : index
    %226 = vector.load %arg5[%c0_240, %c0_241] : memref<1x32xf32, #tpu.memory_space<vmem>>, vector<1x32xf32>
    %227 = vector.broadcast %226 : vector<1x32xf32> to vector<64x32xf32>
    %228 = arith.addf %225, %227 : vector<64x32xf32>
    %cst_242 = arith.constant 0.000000e+00 : f32
    %229 = vector.broadcast %cst_242 : f32 to vector<64x32xf32>
    %230 = arith.cmpf ogt, %228, %229 : vector<64x32xf32>
    %cst_243 = arith.constant 3.000000e-01 : f32
    %231 = vector.broadcast %cst_243 : f32 to vector<64x32xf32>
    %232 = arith.mulf %231, %228 : vector<64x32xf32>
    %233 = arith.select %230, %228, %232 : vector<64x32xi1>, vector<64x32xf32>
    %c0_244 = arith.constant 0 : index
    %c0_245 = arith.constant 0 : index
    %234 = vector.load %arg16[%c0_244, %c0_245] : memref<64x64xf32, #tpu.memory_space<vmem>>, vector<64x32xf32>
    tpu.vector_store %arg16[%c0_244, %c0_245], %233 {strides = array<i32>} : memref<64x64xf32, #tpu.memory_space<vmem>>, vector<64x32xf32>,
    %c0_246 = arith.constant 0 : index
    %c0_247 = arith.constant 0 : index
    %235 = tpu.strided_load %arg16[%c0_246, %c0_247] {strides = array<i32: 2, 1>} : memref<64x64xf32, #tpu.memory_space<vmem>>, vector<32x32xf32>
    %c1_248 = arith.constant 1 : index
    %c0_249 = arith.constant 0 : index
    %236 = tpu.strided_load %arg16[%c1_248, %c0_249] {strides = array<i32: 2, 1>} : memref<64x64xf32, #tpu.memory_space<vmem>>, vector<32x32xf32>
    %237 = arith.maximumf %235, %236 : vector<32x32xf32>
    %c16_250 = arith.constant 16 : index
    %c0_251 = arith.constant 0 : index
    %238 = vector.load %arg15[%c16_250, %c0_251] : memref<96x64xf32, #tpu.memory_space<vmem>>, vector<32x32xf32>
    tpu.vector_store %arg15[%c16_250, %c0_251], %237 {strides = array<i32>} : memref<96x64xf32, #tpu.memory_space<vmem>>, vector<32x32xf32>,
    %cst_252 = arith.constant 0.000000e+00 : f32
    %239 = vector.broadcast %cst_252 : f32 to vector<8x32xf32>
    %c48 = arith.constant 48 : index
    %c0_253 = arith.constant 0 : index
    %240 = vector.load %arg15[%c48, %c0_253] : memref<96x64xf32, #tpu.memory_space<vmem>>, vector<8x32xf32>
    tpu.vector_store %arg15[%c48, %c0_253], %239 {strides = array<i32>} : memref<96x64xf32, #tpu.memory_space<vmem>>, vector<8x32xf32>,
    %cst_254 = arith.constant 0.000000e+00 : f32
    %241 = vector.broadcast %cst_254 : f32 to vector<32x64xf32>
    %c11_255 = arith.constant 11 : index
    %c0_256 = arith.constant 0 : index
    %242 = vector.load %arg15[%c11_255, %c0_256] : memref<96x64xf32, #tpu.memory_space<vmem>>, vector<32x32xf32>
    %c0_257 = arith.constant 0 : index
    %c0_258 = arith.constant 0 : index
    %c0_259 = arith.constant 0 : index
    %243 = vector.load %arg6[%c0_257, %c0_258, %c0_259] : memref<11x32x64xf32, #tpu.memory_space<vmem>>, vector<1x32x64xf32>
    %244 = vector.shape_cast %243 : vector<1x32x64xf32> to vector<32x64xf32>
    %cst_260 = arith.constant dense<0.000000e+00> : vector<32x64xf32>
    %245 = tpu.matmul %242, %244, %cst_260 {dimension_numbers = #tpu.dot_dimension_numbers<[1], [0], [0], [1], [0, 0, 1, 1], [], []>} : vector<32x32xf32>, vector<32x64xf32>, vector<32x64xf32> -> vector<32x64xf32>
    %246 = arith.addf %241, %245 : vector<32x64xf32>
    %c12_261 = arith.constant 12 : index
    %c0_262 = arith.constant 0 : index
    %247 = vector.load %arg15[%c12_261, %c0_262] : memref<96x64xf32, #tpu.memory_space<vmem>>, vector<32x32xf32>
    %c1_263 = arith.constant 1 : index
    %c0_264 = arith.constant 0 : index
    %c0_265 = arith.constant 0 : index
    %248 = vector.load %arg6[%c1_263, %c0_264, %c0_265] : memref<11x32x64xf32, #tpu.memory_space<vmem>>, vector<1x32x64xf32>
    %249 = vector.shape_cast %248 : vector<1x32x64xf32> to vector<32x64xf32>
    %cst_266 = arith.constant dense<0.000000e+00> : vector<32x64xf32>
    %250 = tpu.matmul %247, %249, %cst_266 {dimension_numbers = #tpu.dot_dimension_numbers<[1], [0], [0], [1], [0, 0, 1, 1], [], []>} : vector<32x32xf32>, vector<32x64xf32>, vector<32x64xf32> -> vector<32x64xf32>
    %251 = arith.addf %246, %250 : vector<32x64xf32>
    %c13_267 = arith.constant 13 : index
    %c0_268 = arith.constant 0 : index
    %252 = vector.load %arg15[%c13_267, %c0_268] : memref<96x64xf32, #tpu.memory_space<vmem>>, vector<32x32xf32>
    %c2_269 = arith.constant 2 : index
    %c0_270 = arith.constant 0 : index
    %c0_271 = arith.constant 0 : index
    %253 = vector.load %arg6[%c2_269, %c0_270, %c0_271] : memref<11x32x64xf32, #tpu.memory_space<vmem>>, vector<1x32x64xf32>
    %254 = vector.shape_cast %253 : vector<1x32x64xf32> to vector<32x64xf32>
    %cst_272 = arith.constant dense<0.000000e+00> : vector<32x64xf32>
    %255 = tpu.matmul %252, %254, %cst_272 {dimension_numbers = #tpu.dot_dimension_numbers<[1], [0], [0], [1], [0, 0, 1, 1], [], []>} : vector<32x32xf32>, vector<32x64xf32>, vector<32x64xf32> -> vector<32x64xf32>
    %256 = arith.addf %251, %255 : vector<32x64xf32>
    %c14_273 = arith.constant 14 : index
    %c0_274 = arith.constant 0 : index
    %257 = vector.load %arg15[%c14_273, %c0_274] : memref<96x64xf32, #tpu.memory_space<vmem>>, vector<32x32xf32>
    %c3_275 = arith.constant 3 : index
    %c0_276 = arith.constant 0 : index
    %c0_277 = arith.constant 0 : index
    %258 = vector.load %arg6[%c3_275, %c0_276, %c0_277] : memref<11x32x64xf32, #tpu.memory_space<vmem>>, vector<1x32x64xf32>
    %259 = vector.shape_cast %258 : vector<1x32x64xf32> to vector<32x64xf32>
    %cst_278 = arith.constant dense<0.000000e+00> : vector<32x64xf32>
    %260 = tpu.matmul %257, %259, %cst_278 {dimension_numbers = #tpu.dot_dimension_numbers<[1], [0], [0], [1], [0, 0, 1, 1], [], []>} : vector<32x32xf32>, vector<32x64xf32>, vector<32x64xf32> -> vector<32x64xf32>
    %261 = arith.addf %256, %260 : vector<32x64xf32>
    %c15_279 = arith.constant 15 : index
    %c0_280 = arith.constant 0 : index
    %262 = vector.load %arg15[%c15_279, %c0_280] : memref<96x64xf32, #tpu.memory_space<vmem>>, vector<32x32xf32>
    %c4_281 = arith.constant 4 : index
    %c0_282 = arith.constant 0 : index
    %c0_283 = arith.constant 0 : index
    %263 = vector.load %arg6[%c4_281, %c0_282, %c0_283] : memref<11x32x64xf32, #tpu.memory_space<vmem>>, vector<1x32x64xf32>
    %264 = vector.shape_cast %263 : vector<1x32x64xf32> to vector<32x64xf32>
    %cst_284 = arith.constant dense<0.000000e+00> : vector<32x64xf32>
    %265 = tpu.matmul %262, %264, %cst_284 {dimension_numbers = #tpu.dot_dimension_numbers<[1], [0], [0], [1], [0, 0, 1, 1], [], []>} : vector<32x32xf32>, vector<32x64xf32>, vector<32x64xf32> -> vector<32x64xf32>
    %266 = arith.addf %261, %265 : vector<32x64xf32>
    %c16_285 = arith.constant 16 : index
    %c0_286 = arith.constant 0 : index
    %267 = vector.load %arg15[%c16_285, %c0_286] : memref<96x64xf32, #tpu.memory_space<vmem>>, vector<32x32xf32>
    %c5_287 = arith.constant 5 : index
    %c0_288 = arith.constant 0 : index
    %c0_289 = arith.constant 0 : index
    %268 = vector.load %arg6[%c5_287, %c0_288, %c0_289] : memref<11x32x64xf32, #tpu.memory_space<vmem>>, vector<1x32x64xf32>
    %269 = vector.shape_cast %268 : vector<1x32x64xf32> to vector<32x64xf32>
    %cst_290 = arith.constant dense<0.000000e+00> : vector<32x64xf32>
    %270 = tpu.matmul %267, %269, %cst_290 {dimension_numbers = #tpu.dot_dimension_numbers<[1], [0], [0], [1], [0, 0, 1, 1], [], []>} : vector<32x32xf32>, vector<32x64xf32>, vector<32x64xf32> -> vector<32x64xf32>
    %271 = arith.addf %266, %270 : vector<32x64xf32>
    %c17_291 = arith.constant 17 : index
    %c0_292 = arith.constant 0 : index
    %272 = vector.load %arg15[%c17_291, %c0_292] : memref<96x64xf32, #tpu.memory_space<vmem>>, vector<32x32xf32>
    %c6_293 = arith.constant 6 : index
    %c0_294 = arith.constant 0 : index
    %c0_295 = arith.constant 0 : index
    %273 = vector.load %arg6[%c6_293, %c0_294, %c0_295] : memref<11x32x64xf32, #tpu.memory_space<vmem>>, vector<1x32x64xf32>
    %274 = vector.shape_cast %273 : vector<1x32x64xf32> to vector<32x64xf32>
    %cst_296 = arith.constant dense<0.000000e+00> : vector<32x64xf32>
    %275 = tpu.matmul %272, %274, %cst_296 {dimension_numbers = #tpu.dot_dimension_numbers<[1], [0], [0], [1], [0, 0, 1, 1], [], []>} : vector<32x32xf32>, vector<32x64xf32>, vector<32x64xf32> -> vector<32x64xf32>
    %276 = arith.addf %271, %275 : vector<32x64xf32>
    %c18_297 = arith.constant 18 : index
    %c0_298 = arith.constant 0 : index
    %277 = vector.load %arg15[%c18_297, %c0_298] : memref<96x64xf32, #tpu.memory_space<vmem>>, vector<32x32xf32>
    %c7_299 = arith.constant 7 : index
    %c0_300 = arith.constant 0 : index
    %c0_301 = arith.constant 0 : index
    %278 = vector.load %arg6[%c7_299, %c0_300, %c0_301] : memref<11x32x64xf32, #tpu.memory_space<vmem>>, vector<1x32x64xf32>
    %279 = vector.shape_cast %278 : vector<1x32x64xf32> to vector<32x64xf32>
    %cst_302 = arith.constant dense<0.000000e+00> : vector<32x64xf32>
    %280 = tpu.matmul %277, %279, %cst_302 {dimension_numbers = #tpu.dot_dimension_numbers<[1], [0], [0], [1], [0, 0, 1, 1], [], []>} : vector<32x32xf32>, vector<32x64xf32>, vector<32x64xf32> -> vector<32x64xf32>
    %281 = arith.addf %276, %280 : vector<32x64xf32>
    %c19_303 = arith.constant 19 : index
    %c0_304 = arith.constant 0 : index
    %282 = vector.load %arg15[%c19_303, %c0_304] : memref<96x64xf32, #tpu.memory_space<vmem>>, vector<32x32xf32>
    %c8_305 = arith.constant 8 : index
    %c0_306 = arith.constant 0 : index
    %c0_307 = arith.constant 0 : index
    %283 = vector.load %arg6[%c8_305, %c0_306, %c0_307] : memref<11x32x64xf32, #tpu.memory_space<vmem>>, vector<1x32x64xf32>
    %284 = vector.shape_cast %283 : vector<1x32x64xf32> to vector<32x64xf32>
    %cst_308 = arith.constant dense<0.000000e+00> : vector<32x64xf32>
    %285 = tpu.matmul %282, %284, %cst_308 {dimension_numbers = #tpu.dot_dimension_numbers<[1], [0], [0], [1], [0, 0, 1, 1], [], []>} : vector<32x32xf32>, vector<32x64xf32>, vector<32x64xf32> -> vector<32x64xf32>
    %286 = arith.addf %281, %285 : vector<32x64xf32>
    %c20_309 = arith.constant 20 : index
    %c0_310 = arith.constant 0 : index
    %287 = vector.load %arg15[%c20_309, %c0_310] : memref<96x64xf32, #tpu.memory_space<vmem>>, vector<32x32xf32>
    %c9_311 = arith.constant 9 : index
    %c0_312 = arith.constant 0 : index
    %c0_313 = arith.constant 0 : index
    %288 = vector.load %arg6[%c9_311, %c0_312, %c0_313] : memref<11x32x64xf32, #tpu.memory_space<vmem>>, vector<1x32x64xf32>
    %289 = vector.shape_cast %288 : vector<1x32x64xf32> to vector<32x64xf32>
    %cst_314 = arith.constant dense<0.000000e+00> : vector<32x64xf32>
    %290 = tpu.matmul %287, %289, %cst_314 {dimension_numbers = #tpu.dot_dimension_numbers<[1], [0], [0], [1], [0, 0, 1, 1], [], []>} : vector<32x32xf32>, vector<32x64xf32>, vector<32x64xf32> -> vector<32x64xf32>
    %291 = arith.addf %286, %290 : vector<32x64xf32>
    %c21_315 = arith.constant 21 : index
    %c0_316 = arith.constant 0 : index
    %292 = vector.load %arg15[%c21_315, %c0_316] : memref<96x64xf32, #tpu.memory_space<vmem>>, vector<32x32xf32>
    %c10_317 = arith.constant 10 : index
    %c0_318 = arith.constant 0 : index
    %c0_319 = arith.constant 0 : index
    %293 = vector.load %arg6[%c10_317, %c0_318, %c0_319] : memref<11x32x64xf32, #tpu.memory_space<vmem>>, vector<1x32x64xf32>
    %294 = vector.shape_cast %293 : vector<1x32x64xf32> to vector<32x64xf32>
    %cst_320 = arith.constant dense<0.000000e+00> : vector<32x64xf32>
    %295 = tpu.matmul %292, %294, %cst_320 {dimension_numbers = #tpu.dot_dimension_numbers<[1], [0], [0], [1], [0, 0, 1, 1], [], []>} : vector<32x32xf32>, vector<32x64xf32>, vector<32x64xf32> -> vector<32x64xf32>
    %296 = arith.addf %291, %295 : vector<32x64xf32>
    %c0_321 = arith.constant 0 : index
    %c0_322 = arith.constant 0 : index
    %297 = vector.load %arg7[%c0_321, %c0_322] : memref<1x64xf32, #tpu.memory_space<vmem>>, vector<1x64xf32>
    %298 = vector.broadcast %297 : vector<1x64xf32> to vector<32x64xf32>
    %299 = arith.addf %296, %298 : vector<32x64xf32>
    %cst_323 = arith.constant 0.000000e+00 : f32
    %300 = vector.broadcast %cst_323 : f32 to vector<32x64xf32>
    %301 = arith.cmpf ogt, %299, %300 : vector<32x64xf32>
    %cst_324 = arith.constant 3.000000e-01 : f32
    %302 = vector.broadcast %cst_324 : f32 to vector<32x64xf32>
    %303 = arith.mulf %302, %299 : vector<32x64xf32>
    %304 = arith.select %301, %299, %303 : vector<32x64xi1>, vector<32x64xf32>
    %c16_325 = arith.constant 16 : index
    %c0_326 = arith.constant 0 : index
    %305 = vector.load %arg15[%c16_325, %c0_326] : memref<96x64xf32, #tpu.memory_space<vmem>>, vector<32x64xf32>
    tpu.vector_store %arg15[%c16_325, %c0_326], %304 {strides = array<i32>} : memref<96x64xf32, #tpu.memory_space<vmem>>, vector<32x64xf32>,
    %cst_327 = arith.constant 0.000000e+00 : f32
    %306 = vector.broadcast %cst_327 : f32 to vector<8x64xf32>
    %c48_328 = arith.constant 48 : index
    %c0_329 = arith.constant 0 : index
    %307 = vector.load %arg15[%c48_328, %c0_329] : memref<96x64xf32, #tpu.memory_space<vmem>>, vector<8x64xf32>
    tpu.vector_store %arg15[%c48_328, %c0_329], %306 {strides = array<i32>} : memref<96x64xf32, #tpu.memory_space<vmem>>, vector<8x64xf32>,
    %cst_330 = arith.constant 0.000000e+00 : f32
    %308 = vector.broadcast %cst_330 : f32 to vector<32x64xf32>
    %c11_331 = arith.constant 11 : index
    %c0_332 = arith.constant 0 : index
    %309 = vector.load %arg15[%c11_331, %c0_332] : memref<96x64xf32, #tpu.memory_space<vmem>>, vector<32x64xf32>
    %c0_333 = arith.constant 0 : index
    %c0_334 = arith.constant 0 : index
    %c0_335 = arith.constant 0 : index
    %310 = vector.load %arg8[%c0_333, %c0_334, %c0_335] : memref<11x64x64xf32, #tpu.memory_space<vmem>>, vector<1x64x64xf32>
    %311 = vector.shape_cast %310 : vector<1x64x64xf32> to vector<64x64xf32>
    %cst_336 = arith.constant dense<0.000000e+00> : vector<32x64xf32>
    %312 = tpu.matmul %309, %311, %cst_336 {dimension_numbers = #tpu.dot_dimension_numbers<[1], [0], [0], [1], [0, 0, 1, 1], [], []>} : vector<32x64xf32>, vector<64x64xf32>, vector<32x64xf32> -> vector<32x64xf32>
    %313 = arith.addf %308, %312 : vector<32x64xf32>
    %c12_337 = arith.constant 12 : index
    %c0_338 = arith.constant 0 : index
    %314 = vector.load %arg15[%c12_337, %c0_338] : memref<96x64xf32, #tpu.memory_space<vmem>>, vector<32x64xf32>
    %c1_339 = arith.constant 1 : index
    %c0_340 = arith.constant 0 : index
    %c0_341 = arith.constant 0 : index
    %315 = vector.load %arg8[%c1_339, %c0_340, %c0_341] : memref<11x64x64xf32, #tpu.memory_space<vmem>>, vector<1x64x64xf32>
    %316 = vector.shape_cast %315 : vector<1x64x64xf32> to vector<64x64xf32>
    %cst_342 = arith.constant dense<0.000000e+00> : vector<32x64xf32>
    %317 = tpu.matmul %314, %316, %cst_342 {dimension_numbers = #tpu.dot_dimension_numbers<[1], [0], [0], [1], [0, 0, 1, 1], [], []>} : vector<32x64xf32>, vector<64x64xf32>, vector<32x64xf32> -> vector<32x64xf32>
    %318 = arith.addf %313, %317 : vector<32x64xf32>
    %c13_343 = arith.constant 13 : index
    %c0_344 = arith.constant 0 : index
    %319 = vector.load %arg15[%c13_343, %c0_344] : memref<96x64xf32, #tpu.memory_space<vmem>>, vector<32x64xf32>
    %c2_345 = arith.constant 2 : index
    %c0_346 = arith.constant 0 : index
    %c0_347 = arith.constant 0 : index
    %320 = vector.load %arg8[%c2_345, %c0_346, %c0_347] : memref<11x64x64xf32, #tpu.memory_space<vmem>>, vector<1x64x64xf32>
    %321 = vector.shape_cast %320 : vector<1x64x64xf32> to vector<64x64xf32>
    %cst_348 = arith.constant dense<0.000000e+00> : vector<32x64xf32>
    %322 = tpu.matmul %319, %321, %cst_348 {dimension_numbers = #tpu.dot_dimension_numbers<[1], [0], [0], [1], [0, 0, 1, 1], [], []>} : vector<32x64xf32>, vector<64x64xf32>, vector<32x64xf32> -> vector<32x64xf32>
    %323 = arith.addf %318, %322 : vector<32x64xf32>
    %c14_349 = arith.constant 14 : index
    %c0_350 = arith.constant 0 : index
    %324 = vector.load %arg15[%c14_349, %c0_350] : memref<96x64xf32, #tpu.memory_space<vmem>>, vector<32x64xf32>
    %c3_351 = arith.constant 3 : index
    %c0_352 = arith.constant 0 : index
    %c0_353 = arith.constant 0 : index
    %325 = vector.load %arg8[%c3_351, %c0_352, %c0_353] : memref<11x64x64xf32, #tpu.memory_space<vmem>>, vector<1x64x64xf32>
    %326 = vector.shape_cast %325 : vector<1x64x64xf32> to vector<64x64xf32>
    %cst_354 = arith.constant dense<0.000000e+00> : vector<32x64xf32>
    %327 = tpu.matmul %324, %326, %cst_354 {dimension_numbers = #tpu.dot_dimension_numbers<[1], [0], [0], [1], [0, 0, 1, 1], [], []>} : vector<32x64xf32>, vector<64x64xf32>, vector<32x64xf32> -> vector<32x64xf32>
    %328 = arith.addf %323, %327 : vector<32x64xf32>
    %c15_355 = arith.constant 15 : index
    %c0_356 = arith.constant 0 : index
    %329 = vector.load %arg15[%c15_355, %c0_356] : memref<96x64xf32, #tpu.memory_space<vmem>>, vector<32x64xf32>
    %c4_357 = arith.constant 4 : index
    %c0_358 = arith.constant 0 : index
    %c0_359 = arith.constant 0 : index
    %330 = vector.load %arg8[%c4_357, %c0_358, %c0_359] : memref<11x64x64xf32, #tpu.memory_space<vmem>>, vector<1x64x64xf32>
    %331 = vector.shape_cast %330 : vector<1x64x64xf32> to vector<64x64xf32>
    %cst_360 = arith.constant dense<0.000000e+00> : vector<32x64xf32>
    %332 = tpu.matmul %329, %331, %cst_360 {dimension_numbers = #tpu.dot_dimension_numbers<[1], [0], [0], [1], [0, 0, 1, 1], [], []>} : vector<32x64xf32>, vector<64x64xf32>, vector<32x64xf32> -> vector<32x64xf32>
    %333 = arith.addf %328, %332 : vector<32x64xf32>
    %c16_361 = arith.constant 16 : index
    %c0_362 = arith.constant 0 : index
    %334 = vector.load %arg15[%c16_361, %c0_362] : memref<96x64xf32, #tpu.memory_space<vmem>>, vector<32x64xf32>
    %c5_363 = arith.constant 5 : index
    %c0_364 = arith.constant 0 : index
    %c0_365 = arith.constant 0 : index
    %335 = vector.load %arg8[%c5_363, %c0_364, %c0_365] : memref<11x64x64xf32, #tpu.memory_space<vmem>>, vector<1x64x64xf32>
    %336 = vector.shape_cast %335 : vector<1x64x64xf32> to vector<64x64xf32>
    %cst_366 = arith.constant dense<0.000000e+00> : vector<32x64xf32>
    %337 = tpu.matmul %334, %336, %cst_366 {dimension_numbers = #tpu.dot_dimension_numbers<[1], [0], [0], [1], [0, 0, 1, 1], [], []>} : vector<32x64xf32>, vector<64x64xf32>, vector<32x64xf32> -> vector<32x64xf32>
    %338 = arith.addf %333, %337 : vector<32x64xf32>
    %c17_367 = arith.constant 17 : index
    %c0_368 = arith.constant 0 : index
    %339 = vector.load %arg15[%c17_367, %c0_368] : memref<96x64xf32, #tpu.memory_space<vmem>>, vector<32x64xf32>
    %c6_369 = arith.constant 6 : index
    %c0_370 = arith.constant 0 : index
    %c0_371 = arith.constant 0 : index
    %340 = vector.load %arg8[%c6_369, %c0_370, %c0_371] : memref<11x64x64xf32, #tpu.memory_space<vmem>>, vector<1x64x64xf32>
    %341 = vector.shape_cast %340 : vector<1x64x64xf32> to vector<64x64xf32>
    %cst_372 = arith.constant dense<0.000000e+00> : vector<32x64xf32>
    %342 = tpu.matmul %339, %341, %cst_372 {dimension_numbers = #tpu.dot_dimension_numbers<[1], [0], [0], [1], [0, 0, 1, 1], [], []>} : vector<32x64xf32>, vector<64x64xf32>, vector<32x64xf32> -> vector<32x64xf32>
    %343 = arith.addf %338, %342 : vector<32x64xf32>
    %c18_373 = arith.constant 18 : index
    %c0_374 = arith.constant 0 : index
    %344 = vector.load %arg15[%c18_373, %c0_374] : memref<96x64xf32, #tpu.memory_space<vmem>>, vector<32x64xf32>
    %c7_375 = arith.constant 7 : index
    %c0_376 = arith.constant 0 : index
    %c0_377 = arith.constant 0 : index
    %345 = vector.load %arg8[%c7_375, %c0_376, %c0_377] : memref<11x64x64xf32, #tpu.memory_space<vmem>>, vector<1x64x64xf32>
    %346 = vector.shape_cast %345 : vector<1x64x64xf32> to vector<64x64xf32>
    %cst_378 = arith.constant dense<0.000000e+00> : vector<32x64xf32>
    %347 = tpu.matmul %344, %346, %cst_378 {dimension_numbers = #tpu.dot_dimension_numbers<[1], [0], [0], [1], [0, 0, 1, 1], [], []>} : vector<32x64xf32>, vector<64x64xf32>, vector<32x64xf32> -> vector<32x64xf32>
    %348 = arith.addf %343, %347 : vector<32x64xf32>
    %c19_379 = arith.constant 19 : index
    %c0_380 = arith.constant 0 : index
    %349 = vector.load %arg15[%c19_379, %c0_380] : memref<96x64xf32, #tpu.memory_space<vmem>>, vector<32x64xf32>
    %c8_381 = arith.constant 8 : index
    %c0_382 = arith.constant 0 : index
    %c0_383 = arith.constant 0 : index
    %350 = vector.load %arg8[%c8_381, %c0_382, %c0_383] : memref<11x64x64xf32, #tpu.memory_space<vmem>>, vector<1x64x64xf32>
    %351 = vector.shape_cast %350 : vector<1x64x64xf32> to vector<64x64xf32>
    %cst_384 = arith.constant dense<0.000000e+00> : vector<32x64xf32>
    %352 = tpu.matmul %349, %351, %cst_384 {dimension_numbers = #tpu.dot_dimension_numbers<[1], [0], [0], [1], [0, 0, 1, 1], [], []>} : vector<32x64xf32>, vector<64x64xf32>, vector<32x64xf32> -> vector<32x64xf32>
    %353 = arith.addf %348, %352 : vector<32x64xf32>
    %c20_385 = arith.constant 20 : index
    %c0_386 = arith.constant 0 : index
    %354 = vector.load %arg15[%c20_385, %c0_386] : memref<96x64xf32, #tpu.memory_space<vmem>>, vector<32x64xf32>
    %c9_387 = arith.constant 9 : index
    %c0_388 = arith.constant 0 : index
    %c0_389 = arith.constant 0 : index
    %355 = vector.load %arg8[%c9_387, %c0_388, %c0_389] : memref<11x64x64xf32, #tpu.memory_space<vmem>>, vector<1x64x64xf32>
    %356 = vector.shape_cast %355 : vector<1x64x64xf32> to vector<64x64xf32>
    %cst_390 = arith.constant dense<0.000000e+00> : vector<32x64xf32>
    %357 = tpu.matmul %354, %356, %cst_390 {dimension_numbers = #tpu.dot_dimension_numbers<[1], [0], [0], [1], [0, 0, 1, 1], [], []>} : vector<32x64xf32>, vector<64x64xf32>, vector<32x64xf32> -> vector<32x64xf32>
    %358 = arith.addf %353, %357 : vector<32x64xf32>
    %c21_391 = arith.constant 21 : index
    %c0_392 = arith.constant 0 : index
    %359 = vector.load %arg15[%c21_391, %c0_392] : memref<96x64xf32, #tpu.memory_space<vmem>>, vector<32x64xf32>
    %c10_393 = arith.constant 10 : index
    %c0_394 = arith.constant 0 : index
    %c0_395 = arith.constant 0 : index
    %360 = vector.load %arg8[%c10_393, %c0_394, %c0_395] : memref<11x64x64xf32, #tpu.memory_space<vmem>>, vector<1x64x64xf32>
    %361 = vector.shape_cast %360 : vector<1x64x64xf32> to vector<64x64xf32>
    %cst_396 = arith.constant dense<0.000000e+00> : vector<32x64xf32>
    %362 = tpu.matmul %359, %361, %cst_396 {dimension_numbers = #tpu.dot_dimension_numbers<[1], [0], [0], [1], [0, 0, 1, 1], [], []>} : vector<32x64xf32>, vector<64x64xf32>, vector<32x64xf32> -> vector<32x64xf32>
    %363 = arith.addf %358, %362 : vector<32x64xf32>
    %c0_397 = arith.constant 0 : index
    %c0_398 = arith.constant 0 : index
    %364 = vector.load %arg9[%c0_397, %c0_398] : memref<1x64xf32, #tpu.memory_space<vmem>>, vector<1x64xf32>
    %365 = vector.broadcast %364 : vector<1x64xf32> to vector<32x64xf32>
    %366 = arith.addf %363, %365 : vector<32x64xf32>
    %cst_399 = arith.constant 0.000000e+00 : f32
    %367 = vector.broadcast %cst_399 : f32 to vector<32x64xf32>
    %368 = arith.cmpf ogt, %366, %367 : vector<32x64xf32>
    %cst_400 = arith.constant 3.000000e-01 : f32
    %369 = vector.broadcast %cst_400 : f32 to vector<32x64xf32>
    %370 = arith.mulf %369, %366 : vector<32x64xf32>
    %371 = arith.select %368, %366, %370 : vector<32x64xi1>, vector<32x64xf32>
    %c0_401 = arith.constant 0 : index
    %c0_402 = arith.constant 0 : index
    %372 = vector.load %arg16[%c0_401, %c0_402] : memref<64x64xf32, #tpu.memory_space<vmem>>, vector<32x64xf32>
    tpu.vector_store %arg16[%c0_401, %c0_402], %371 {strides = array<i32>} : memref<64x64xf32, #tpu.memory_space<vmem>>, vector<32x64xf32>,
    %c0_403 = arith.constant 0 : index
    %c0_404 = arith.constant 0 : index
    %373 = tpu.strided_load %arg16[%c0_403, %c0_404] {strides = array<i32: 2, 1>} : memref<64x64xf32, #tpu.memory_space<vmem>>, vector<16x64xf32>
    %c1_405 = arith.constant 1 : index
    %c0_406 = arith.constant 0 : index
    %374 = tpu.strided_load %arg16[%c1_405, %c0_406] {strides = array<i32: 2, 1>} : memref<64x64xf32, #tpu.memory_space<vmem>>, vector<16x64xf32>
    %375 = arith.maximumf %373, %374 : vector<16x64xf32>
    %c16_407 = arith.constant 16 : index
    %c0_408 = arith.constant 0 : index
    %376 = vector.load %arg15[%c16_407, %c0_408] : memref<96x64xf32, #tpu.memory_space<vmem>>, vector<16x64xf32>
    tpu.vector_store %arg15[%c16_407, %c0_408], %375 {strides = array<i32>} : memref<96x64xf32, #tpu.memory_space<vmem>>, vector<16x64xf32>,
    %cst_409 = arith.constant 0.000000e+00 : f32
    %377 = vector.broadcast %cst_409 : f32 to vector<8x64xf32>
    %c32 = arith.constant 32 : index
    %c0_410 = arith.constant 0 : index
    %378 = vector.load %arg15[%c32, %c0_410] : memref<96x64xf32, #tpu.memory_space<vmem>>, vector<8x64xf32>
    tpu.vector_store %arg15[%c32, %c0_410], %377 {strides = array<i32>} : memref<96x64xf32, #tpu.memory_space<vmem>>, vector<8x64xf32>,
    %cst_411 = arith.constant 0.000000e+00 : f32
    %379 = vector.broadcast %cst_411 : f32 to vector<16x64xf32>
    %c14_412 = arith.constant 14 : index
    %c0_413 = arith.constant 0 : index
    %380 = vector.load %arg15[%c14_412, %c0_413] : memref<96x64xf32, #tpu.memory_space<vmem>>, vector<16x64xf32>
    %c0_414 = arith.constant 0 : index
    %c0_415 = arith.constant 0 : index
    %c0_416 = arith.constant 0 : index
    %381 = vector.load %arg10[%c0_414, %c0_415, %c0_416] : memref<5x64x64xf32, #tpu.memory_space<vmem>>, vector<1x64x64xf32>
    %382 = vector.shape_cast %381 : vector<1x64x64xf32> to vector<64x64xf32>
    %cst_417 = arith.constant dense<0.000000e+00> : vector<16x64xf32>
    %383 = tpu.matmul %380, %382, %cst_417 {dimension_numbers = #tpu.dot_dimension_numbers<[1], [0], [0], [1], [0, 0, 1, 1], [], []>} : vector<16x64xf32>, vector<64x64xf32>, vector<16x64xf32> -> vector<16x64xf32>
    %384 = arith.addf %379, %383 : vector<16x64xf32>
    %c15_418 = arith.constant 15 : index
    %c0_419 = arith.constant 0 : index
    %385 = vector.load %arg15[%c15_418, %c0_419] : memref<96x64xf32, #tpu.memory_space<vmem>>, vector<16x64xf32>
    %c1_420 = arith.constant 1 : index
    %c0_421 = arith.constant 0 : index
    %c0_422 = arith.constant 0 : index
    %386 = vector.load %arg10[%c1_420, %c0_421, %c0_422] : memref<5x64x64xf32, #tpu.memory_space<vmem>>, vector<1x64x64xf32>
    %387 = vector.shape_cast %386 : vector<1x64x64xf32> to vector<64x64xf32>
    %cst_423 = arith.constant dense<0.000000e+00> : vector<16x64xf32>
    %388 = tpu.matmul %385, %387, %cst_423 {dimension_numbers = #tpu.dot_dimension_numbers<[1], [0], [0], [1], [0, 0, 1, 1], [], []>} : vector<16x64xf32>, vector<64x64xf32>, vector<16x64xf32> -> vector<16x64xf32>
    %389 = arith.addf %384, %388 : vector<16x64xf32>
    %c16_424 = arith.constant 16 : index
    %c0_425 = arith.constant 0 : index
    %390 = vector.load %arg15[%c16_424, %c0_425] : memref<96x64xf32, #tpu.memory_space<vmem>>, vector<16x64xf32>
    %c2_426 = arith.constant 2 : index
    %c0_427 = arith.constant 0 : index
    %c0_428 = arith.constant 0 : index
    %391 = vector.load %arg10[%c2_426, %c0_427, %c0_428] : memref<5x64x64xf32, #tpu.memory_space<vmem>>, vector<1x64x64xf32>
    %392 = vector.shape_cast %391 : vector<1x64x64xf32> to vector<64x64xf32>
    %cst_429 = arith.constant dense<0.000000e+00> : vector<16x64xf32>
    %393 = tpu.matmul %390, %392, %cst_429 {dimension_numbers = #tpu.dot_dimension_numbers<[1], [0], [0], [1], [0, 0, 1, 1], [], []>} : vector<16x64xf32>, vector<64x64xf32>, vector<16x64xf32> -> vector<16x64xf32>
    %394 = arith.addf %389, %393 : vector<16x64xf32>
    %c17_430 = arith.constant 17 : index
    %c0_431 = arith.constant 0 : index
    %395 = vector.load %arg15[%c17_430, %c0_431] : memref<96x64xf32, #tpu.memory_space<vmem>>, vector<16x64xf32>
    %c3_432 = arith.constant 3 : index
    %c0_433 = arith.constant 0 : index
    %c0_434 = arith.constant 0 : index
    %396 = vector.load %arg10[%c3_432, %c0_433, %c0_434] : memref<5x64x64xf32, #tpu.memory_space<vmem>>, vector<1x64x64xf32>
    %397 = vector.shape_cast %396 : vector<1x64x64xf32> to vector<64x64xf32>
    %cst_435 = arith.constant dense<0.000000e+00> : vector<16x64xf32>
    %398 = tpu.matmul %395, %397, %cst_435 {dimension_numbers = #tpu.dot_dimension_numbers<[1], [0], [0], [1], [0, 0, 1, 1], [], []>} : vector<16x64xf32>, vector<64x64xf32>, vector<16x64xf32> -> vector<16x64xf32>
    %399 = arith.addf %394, %398 : vector<16x64xf32>
    %c18_436 = arith.constant 18 : index
    %c0_437 = arith.constant 0 : index
    %400 = vector.load %arg15[%c18_436, %c0_437] : memref<96x64xf32, #tpu.memory_space<vmem>>, vector<16x64xf32>
    %c4_438 = arith.constant 4 : index
    %c0_439 = arith.constant 0 : index
    %c0_440 = arith.constant 0 : index
    %401 = vector.load %arg10[%c4_438, %c0_439, %c0_440] : memref<5x64x64xf32, #tpu.memory_space<vmem>>, vector<1x64x64xf32>
    %402 = vector.shape_cast %401 : vector<1x64x64xf32> to vector<64x64xf32>
    %cst_441 = arith.constant dense<0.000000e+00> : vector<16x64xf32>
    %403 = tpu.matmul %400, %402, %cst_441 {dimension_numbers = #tpu.dot_dimension_numbers<[1], [0], [0], [1], [0, 0, 1, 1], [], []>} : vector<16x64xf32>, vector<64x64xf32>, vector<16x64xf32> -> vector<16x64xf32>
    %404 = arith.addf %399, %403 : vector<16x64xf32>
    %c0_442 = arith.constant 0 : index
    %c0_443 = arith.constant 0 : index
    %405 = vector.load %arg11[%c0_442, %c0_443] : memref<1x64xf32, #tpu.memory_space<vmem>>, vector<1x64xf32>
    %406 = vector.broadcast %405 : vector<1x64xf32> to vector<16x64xf32>
    %407 = arith.addf %404, %406 : vector<16x64xf32>
    %cst_444 = arith.constant 0.000000e+00 : f32
    %408 = vector.broadcast %cst_444 : f32 to vector<16x64xf32>
    %409 = arith.cmpf ogt, %407, %408 : vector<16x64xf32>
    %cst_445 = arith.constant 3.000000e-01 : f32
    %410 = vector.broadcast %cst_445 : f32 to vector<16x64xf32>
    %411 = arith.mulf %410, %407 : vector<16x64xf32>
    %412 = arith.select %409, %407, %411 : vector<16x64xi1>, vector<16x64xf32>
    %c16_446 = arith.constant 16 : index
    %c0_447 = arith.constant 0 : index
    %413 = vector.load %arg15[%c16_446, %c0_447] : memref<96x64xf32, #tpu.memory_space<vmem>>, vector<16x64xf32>
    tpu.vector_store %arg15[%c16_446, %c0_447], %412 {strides = array<i32>} : memref<96x64xf32, #tpu.memory_space<vmem>>, vector<16x64xf32>,
    %cst_448 = arith.constant 0.000000e+00 : f32
    %414 = vector.broadcast %cst_448 : f32 to vector<8x64xf32>
    %c32_449 = arith.constant 32 : index
    %c0_450 = arith.constant 0 : index
    %415 = vector.load %arg15[%c32_449, %c0_450] : memref<96x64xf32, #tpu.memory_space<vmem>>, vector<8x64xf32>
    tpu.vector_store %arg15[%c32_449, %c0_450], %414 {strides = array<i32>} : memref<96x64xf32, #tpu.memory_space<vmem>>, vector<8x64xf32>,
    %cst_451 = arith.constant 0.000000e+00 : f32
    %416 = vector.broadcast %cst_451 : f32 to vector<16x64xf32>
    %c14_452 = arith.constant 14 : index
    %c0_453 = arith.constant 0 : index
    %417 = vector.load %arg15[%c14_452, %c0_453] : memref<96x64xf32, #tpu.memory_space<vmem>>, vector<16x64xf32>
    %c0_454 = arith.constant 0 : index
    %c0_455 = arith.constant 0 : index
    %c0_456 = arith.constant 0 : index
    %418 = vector.load %arg12[%c0_454, %c0_455, %c0_456] : memref<5x64x64xf32, #tpu.memory_space<vmem>>, vector<1x64x64xf32>
    %419 = vector.shape_cast %418 : vector<1x64x64xf32> to vector<64x64xf32>
    %cst_457 = arith.constant dense<0.000000e+00> : vector<16x64xf32>
    %420 = tpu.matmul %417, %419, %cst_457 {dimension_numbers = #tpu.dot_dimension_numbers<[1], [0], [0], [1], [0, 0, 1, 1], [], []>} : vector<16x64xf32>, vector<64x64xf32>, vector<16x64xf32> -> vector<16x64xf32>
    %421 = arith.addf %416, %420 : vector<16x64xf32>
    %c15_458 = arith.constant 15 : index
    %c0_459 = arith.constant 0 : index
    %422 = vector.load %arg15[%c15_458, %c0_459] : memref<96x64xf32, #tpu.memory_space<vmem>>, vector<16x64xf32>
    %c1_460 = arith.constant 1 : index
    %c0_461 = arith.constant 0 : index
    %c0_462 = arith.constant 0 : index
    %423 = vector.load %arg12[%c1_460, %c0_461, %c0_462] : memref<5x64x64xf32, #tpu.memory_space<vmem>>, vector<1x64x64xf32>
    %424 = vector.shape_cast %423 : vector<1x64x64xf32> to vector<64x64xf32>
    %cst_463 = arith.constant dense<0.000000e+00> : vector<16x64xf32>
    %425 = tpu.matmul %422, %424, %cst_463 {dimension_numbers = #tpu.dot_dimension_numbers<[1], [0], [0], [1], [0, 0, 1, 1], [], []>} : vector<16x64xf32>, vector<64x64xf32>, vector<16x64xf32> -> vector<16x64xf32>
    %426 = arith.addf %421, %425 : vector<16x64xf32>
    %c16_464 = arith.constant 16 : index
    %c0_465 = arith.constant 0 : index
    %427 = vector.load %arg15[%c16_464, %c0_465] : memref<96x64xf32, #tpu.memory_space<vmem>>, vector<16x64xf32>
    %c2_466 = arith.constant 2 : index
    %c0_467 = arith.constant 0 : index
    %c0_468 = arith.constant 0 : index
    %428 = vector.load %arg12[%c2_466, %c0_467, %c0_468] : memref<5x64x64xf32, #tpu.memory_space<vmem>>, vector<1x64x64xf32>
    %429 = vector.shape_cast %428 : vector<1x64x64xf32> to vector<64x64xf32>
    %cst_469 = arith.constant dense<0.000000e+00> : vector<16x64xf32>
    %430 = tpu.matmul %427, %429, %cst_469 {dimension_numbers = #tpu.dot_dimension_numbers<[1], [0], [0], [1], [0, 0, 1, 1], [], []>} : vector<16x64xf32>, vector<64x64xf32>, vector<16x64xf32> -> vector<16x64xf32>
    %431 = arith.addf %426, %430 : vector<16x64xf32>
    %c17_470 = arith.constant 17 : index
    %c0_471 = arith.constant 0 : index
    %432 = vector.load %arg15[%c17_470, %c0_471] : memref<96x64xf32, #tpu.memory_space<vmem>>, vector<16x64xf32>
    %c3_472 = arith.constant 3 : index
    %c0_473 = arith.constant 0 : index
    %c0_474 = arith.constant 0 : index
    %433 = vector.load %arg12[%c3_472, %c0_473, %c0_474] : memref<5x64x64xf32, #tpu.memory_space<vmem>>, vector<1x64x64xf32>
    %434 = vector.shape_cast %433 : vector<1x64x64xf32> to vector<64x64xf32>
    %cst_475 = arith.constant dense<0.000000e+00> : vector<16x64xf32>
    %435 = tpu.matmul %432, %434, %cst_475 {dimension_numbers = #tpu.dot_dimension_numbers<[1], [0], [0], [1], [0, 0, 1, 1], [], []>} : vector<16x64xf32>, vector<64x64xf32>, vector<16x64xf32> -> vector<16x64xf32>
    %436 = arith.addf %431, %435 : vector<16x64xf32>
    %c18_476 = arith.constant 18 : index
    %c0_477 = arith.constant 0 : index
    %437 = vector.load %arg15[%c18_476, %c0_477] : memref<96x64xf32, #tpu.memory_space<vmem>>, vector<16x64xf32>
    %c4_478 = arith.constant 4 : index
    %c0_479 = arith.constant 0 : index
    %c0_480 = arith.constant 0 : index
    %438 = vector.load %arg12[%c4_478, %c0_479, %c0_480] : memref<5x64x64xf32, #tpu.memory_space<vmem>>, vector<1x64x64xf32>
    %439 = vector.shape_cast %438 : vector<1x64x64xf32> to vector<64x64xf32>
    %cst_481 = arith.constant dense<0.000000e+00> : vector<16x64xf32>
    %440 = tpu.matmul %437, %439, %cst_481 {dimension_numbers = #tpu.dot_dimension_numbers<[1], [0], [0], [1], [0, 0, 1, 1], [], []>} : vector<16x64xf32>, vector<64x64xf32>, vector<16x64xf32> -> vector<16x64xf32>
    %441 = arith.addf %436, %440 : vector<16x64xf32>
    %c0_482 = arith.constant 0 : index
    %c0_483 = arith.constant 0 : index
    %442 = vector.load %arg13[%c0_482, %c0_483] : memref<1x64xf32, #tpu.memory_space<vmem>>, vector<1x64xf32>
    %443 = vector.broadcast %442 : vector<1x64xf32> to vector<16x64xf32>
    %444 = arith.addf %441, %443 : vector<16x64xf32>
    %cst_484 = arith.constant 0.000000e+00 : f32
    %445 = vector.broadcast %cst_484 : f32 to vector<16x64xf32>
    %446 = arith.cmpf ogt, %444, %445 : vector<16x64xf32>
    %cst_485 = arith.constant 3.000000e-01 : f32
    %447 = vector.broadcast %cst_485 : f32 to vector<16x64xf32>
    %448 = arith.mulf %447, %444 : vector<16x64xf32>
    %449 = arith.select %446, %444, %448 : vector<16x64xi1>, vector<16x64xf32>
    %c0_486 = arith.constant 0 : index
    %c0_487 = arith.constant 0 : index
    %450 = vector.load %arg16[%c0_486, %c0_487] : memref<64x64xf32, #tpu.memory_space<vmem>>, vector<16x64xf32>
    tpu.vector_store %arg16[%c0_486, %c0_487], %449 {strides = array<i32>} : memref<64x64xf32, #tpu.memory_space<vmem>>, vector<16x64xf32>,
    %c0_488 = arith.constant 0 : index
    %c0_489 = arith.constant 0 : index
    %451 = tpu.strided_load %arg16[%c0_488, %c0_489] {strides = array<i32: 2, 1>} : memref<64x64xf32, #tpu.memory_space<vmem>>, vector<8x64xf32>
    %c1_490 = arith.constant 1 : index
    %c0_491 = arith.constant 0 : index
    %452 = tpu.strided_load %arg16[%c1_490, %c0_491] {strides = array<i32: 2, 1>} : memref<64x64xf32, #tpu.memory_space<vmem>>, vector<8x64xf32>
    %453 = arith.maximumf %451, %452 : vector<8x64xf32>
    %c0_492 = arith.constant 0 : index
    %c0_493 = arith.constant 0 : index
    %c0_494 = arith.constant 0 : index
    %454 = vector.load %arg14[%c0_492, %c0_493, %c0_494] : memref<1x8x64xf32, #tpu.memory_space<vmem>>, vector<1x8x64xf32>
    %455 = vector.shape_cast %454 : vector<1x8x64xf32> to vector<8x64xf32>
    %456 = vector.shape_cast %453 : vector<8x64xf32> to vector<1x8x64xf32>
    tpu.vector_store %arg14[%c0_492, %c0_493, %c0_494], %456 {strides = array<i32>} : memref<1x8x64xf32, #tpu.memory_space<vmem>>, vector<1x8x64xf32>,
    return
  }
  func.func @transform_0(%arg0: i32) -> (i32, i32, i32) {
    %c0_i32 = arith.constant 0 : i32
    %c0_i32_0 = arith.constant 0 : i32
    %c0_i32_1 = arith.constant 0 : i32
    return %arg0, %c0_i32, %c0_i32_0 : i32, i32, i32
  }
  func.func @transform_1(%arg0: i32) -> (i32, i32, i32) {
    %c0_i32 = arith.constant 0 : i32
    %c0_i32_0 = arith.constant 0 : i32
    %c0_i32_1 = arith.constant 0 : i32
    %c0_i32_2 = arith.constant 0 : i32
    return %c0_i32, %c0_i32_0, %c0_i32_1 : i32, i32, i32
  }
  func.func @transform_2(%arg0: i32) -> (i32, i32) {
    %c0_i32 = arith.constant 0 : i32
    %c0_i32_0 = arith.constant 0 : i32
    %c0_i32_1 = arith.constant 0 : i32
    return %c0_i32, %c0_i32_0 : i32, i32
  }
  func.func @transform_3(%arg0: i32) -> (i32, i32, i32) {
    %c0_i32 = arith.constant 0 : i32
    %c0_i32_0 = arith.constant 0 : i32
    %c0_i32_1 = arith.constant 0 : i32
    %c0_i32_2 = arith.constant 0 : i32
    return %c0_i32, %c0_i32_0, %c0_i32_1 : i32, i32, i32
  }
  func.func @transform_4(%arg0: i32) -> (i32, i32) {
    %c0_i32 = arith.constant 0 : i32
    %c0_i32_0 = arith.constant 0 : i32
    %c0_i32_1 = arith.constant 0 : i32
    return %c0_i32, %c0_i32_0 : i32, i32
  }
  func.func @transform_5(%arg0: i32) -> (i32, i32, i32) {
    %c0_i32 = arith.constant 0 : i32
    %c0_i32_0 = arith.constant 0 : i32
    %c0_i32_1 = arith.constant 0 : i32
    %c0_i32_2 = arith.constant 0 : i32
    return %c0_i32, %c0_i32_0, %c0_i32_1 : i32, i32, i32
  }
  func.func @transform_6(%arg0: i32) -> (i32, i32) {
    %c0_i32 = arith.constant 0 : i32
    %c0_i32_0 = arith.constant 0 : i32
    %c0_i32_1 = arith.constant 0 : i32
    return %c0_i32, %c0_i32_0 : i32, i32
  }
  func.func @transform_7(%arg0: i32) -> (i32, i32, i32) {
    %c0_i32 = arith.constant 0 : i32
    %c0_i32_0 = arith.constant 0 : i32
    %c0_i32_1 = arith.constant 0 : i32
    %c0_i32_2 = arith.constant 0 : i32
    return %c0_i32, %c0_i32_0, %c0_i32_1 : i32, i32, i32
  }
  func.func @transform_8(%arg0: i32) -> (i32, i32) {
    %c0_i32 = arith.constant 0 : i32
    %c0_i32_0 = arith.constant 0 : i32
    %c0_i32_1 = arith.constant 0 : i32
    return %c0_i32, %c0_i32_0 : i32, i32
  }
  func.func @transform_9(%arg0: i32) -> (i32, i32, i32) {
    %c0_i32 = arith.constant 0 : i32
    %c0_i32_0 = arith.constant 0 : i32
    %c0_i32_1 = arith.constant 0 : i32
    %c0_i32_2 = arith.constant 0 : i32
    return %c0_i32, %c0_i32_0, %c0_i32_1 : i32, i32, i32
  }
  func.func @transform_10(%arg0: i32) -> (i32, i32) {
    %c0_i32 = arith.constant 0 : i32
    %c0_i32_0 = arith.constant 0 : i32
    %c0_i32_1 = arith.constant 0 : i32
    return %c0_i32, %c0_i32_0 : i32, i32
  }
  func.func @transform_11(%arg0: i32) -> (i32, i32, i32) {
    %c0_i32 = arith.constant 0 : i32
    %c0_i32_0 = arith.constant 0 : i32
    %c0_i32_1 = arith.constant 0 : i32
    %c0_i32_2 = arith.constant 0 : i32
    return %c0_i32, %c0_i32_0, %c0_i32_1 : i32, i32, i32
  }
  func.func @transform_12(%arg0: i32) -> (i32, i32) {
    %c0_i32 = arith.constant 0 : i32
    %c0_i32_0 = arith.constant 0 : i32
    %c0_i32_1 = arith.constant 0 : i32
    return %c0_i32, %c0_i32_0 : i32, i32
  }
  func.func @transform_13(%arg0: i32) -> (i32, i32, i32) {
    %c0_i32 = arith.constant 0 : i32
    %c0_i32_0 = arith.constant 0 : i32
    %c0_i32_1 = arith.constant 0 : i32
    return %arg0, %c0_i32, %c0_i32_0 : i32, i32, i32
  }
}

module attributes {stable_mosaic.version = 11 : i64} {
  func.func @_fc_head_kernel(%arg0: i32, %arg1: memref<2x512xbf16, #tpu.memory_space<vmem>>, %arg2: memref<512x512xbf16, #tpu.memory_space<vmem>>, %arg3: memref<1x512xf32, #tpu.memory_space<vmem>>, %arg4: memref<512x1024xbf16, #tpu.memory_space<vmem>>, %arg5: memref<1x1024xf32, #tpu.memory_space<vmem>>, %arg6: memref<1024x8xf32, #tpu.memory_space<vmem>>, %arg7: memref<1x8xf32, #tpu.memory_space<vmem>>, %arg8: memref<2x8xf32, #tpu.memory_space<vmem>>, %arg9: memref<2x1024xf32, #tpu.memory_space<vmem>>) attributes {dimension_semantics = [#tpu.dimension_semantics<arbitrary>], iteration_bounds = array<i64: 4>, scalar_prefetch = 0 : i64, scratch_operands = 1 : i64, tpu.core_type = #tpu.core_type<tc>, window_params = [{pipeline_mode = #tpu.pipeline_mode<synchronous>, transform_indices = @transform_0, window_bounds = array<i64: 2, 512>}, {transform_indices = @transform_1, window_bounds = array<i64: 512, 512>}, {transform_indices = @transform_2, window_bounds = array<i64: 1, 512>}, {transform_indices = @transform_3, window_bounds = array<i64: 512, 1024>}, {pipeline_mode = #tpu.pipeline_mode<synchronous>, transform_indices = @transform_4, window_bounds = array<i64: 1, 1024>}, {pipeline_mode = #tpu.pipeline_mode<synchronous>, transform_indices = @transform_5, window_bounds = array<i64: 1024, 8>}, {pipeline_mode = #tpu.pipeline_mode<synchronous>, transform_indices = @transform_6, window_bounds = array<i64: 1, 8>}, {pipeline_mode = #tpu.pipeline_mode<synchronous>, transform_indices = @transform_7, window_bounds = array<i64: 2, 8>}]} {
    %c0_i32 = arith.constant 0 : i32
    %0 = arith.cmpi eq, %arg0, %c0_i32 : i32
    %1 = arith.extui %0 : i1 to i32
    %c0_i32_0 = arith.constant 0 : i32
    %2 = arith.cmpi ne, %1, %c0_i32_0 : i32
    scf.if %2 {
      %cst_14 = arith.constant 0.000000e+00 : f32
      %18 = vector.broadcast %cst_14 : f32 to vector<2x1024xf32>
      %c0_15 = arith.constant 0 : index
      %c0_16 = arith.constant 0 : index
      %19 = vector.load %arg9[%c0_15, %c0_16] : memref<2x1024xf32, #tpu.memory_space<vmem>>, vector<2x1024xf32>
      tpu.vector_store %arg9[%c0_15, %c0_16], %18 {strides = array<i32>} : memref<2x1024xf32, #tpu.memory_space<vmem>>, vector<2x1024xf32>,
    } else {
    }
    %c0 = arith.constant 0 : index
    %c0_1 = arith.constant 0 : index
    %3 = vector.load %arg1[%c0, %c0_1] : memref<2x512xbf16, #tpu.memory_space<vmem>>, vector<2x512xbf16>
    %c0_2 = arith.constant 0 : index
    %c0_3 = arith.constant 0 : index
    %4 = vector.load %arg2[%c0_2, %c0_3] : memref<512x512xbf16, #tpu.memory_space<vmem>>, vector<512x512xbf16>
    %cst = arith.constant dense<0.000000e+00> : vector<2x512xf32>
    %5 = tpu.matmul %3, %4, %cst {dimension_numbers = #tpu.dot_dimension_numbers<[1], [1], [0], [0], [0, 0, 1, 0], [], []>} : vector<2x512xbf16>, vector<512x512xbf16>, vector<2x512xf32> -> vector<2x512xf32>
    %c0_4 = arith.constant 0 : index
    %c0_5 = arith.constant 0 : index
    %6 = vector.load %arg3[%c0_4, %c0_5] : memref<1x512xf32, #tpu.memory_space<vmem>>, vector<1x512xf32>
    %7 = vector.broadcast %6 : vector<1x512xf32> to vector<2x512xf32>
    %8 = arith.addf %5, %7 : vector<2x512xf32>
    %c0_6 = arith.constant 0 : index
    %c0_7 = arith.constant 0 : index
    %9 = vector.load %arg9[%c0_6, %c0_7] : memref<2x1024xf32, #tpu.memory_space<vmem>>, vector<2x1024xf32>
    %10 = arith.truncf %8 : vector<2x512xf32> to vector<2x512xbf16>
    %c0_8 = arith.constant 0 : index
    %c0_9 = arith.constant 0 : index
    %11 = vector.load %arg4[%c0_8, %c0_9] : memref<512x1024xbf16, #tpu.memory_space<vmem>>, vector<512x1024xbf16>
    %cst_10 = arith.constant dense<0.000000e+00> : vector<2x1024xf32>
    %12 = tpu.matmul %10, %11, %cst_10 {dimension_numbers = #tpu.dot_dimension_numbers<[1], [0], [0], [1], [0, 0, 1, 1], [], []>} : vector<2x512xbf16>, vector<512x1024xbf16>, vector<2x1024xf32> -> vector<2x1024xf32>
    %13 = arith.addf %9, %12 : vector<2x1024xf32>
    %c0_11 = arith.constant 0 : index
    %c0_12 = arith.constant 0 : index
    %14 = vector.load %arg9[%c0_11, %c0_12] : memref<2x1024xf32, #tpu.memory_space<vmem>>, vector<2x1024xf32>
    tpu.vector_store %arg9[%c0_11, %c0_12], %13 {strides = array<i32>} : memref<2x1024xf32, #tpu.memory_space<vmem>>, vector<2x1024xf32>,
    %c3_i32 = arith.constant 3 : i32
    %15 = arith.cmpi eq, %arg0, %c3_i32 : i32
    %16 = arith.extui %15 : i1 to i32
    %c0_i32_13 = arith.constant 0 : i32
    %17 = arith.cmpi ne, %16, %c0_i32_13 : i32
    scf.if %17 {
      %c0_14 = arith.constant 0 : index
      %c0_15 = arith.constant 0 : index
      %18 = vector.load %arg9[%c0_14, %c0_15] : memref<2x1024xf32, #tpu.memory_space<vmem>>, vector<2x1024xf32>
      %c0_16 = arith.constant 0 : index
      %c0_17 = arith.constant 0 : index
      %19 = vector.load %arg5[%c0_16, %c0_17] : memref<1x1024xf32, #tpu.memory_space<vmem>>, vector<1x1024xf32>
      %20 = vector.broadcast %19 : vector<1x1024xf32> to vector<2x1024xf32>
      %21 = arith.addf %18, %20 : vector<2x1024xf32>
      %c0_18 = arith.constant 0 : index
      %c0_19 = arith.constant 0 : index
      %22 = vector.load %arg6[%c0_18, %c0_19] : memref<1024x8xf32, #tpu.memory_space<vmem>>, vector<1024x8xf32>
      %cst_20 = arith.constant dense<0.000000e+00> : vector<2x8xf32>
      %23 = tpu.matmul %21, %22, %cst_20 {dimension_numbers = #tpu.dot_dimension_numbers<[1], [0], [0], [1], [0, 0, 1, 1], [], []>} : vector<2x1024xf32>, vector<1024x8xf32>, vector<2x8xf32> -> vector<2x8xf32>
      %c0_21 = arith.constant 0 : index
      %c0_22 = arith.constant 0 : index
      %24 = vector.load %arg7[%c0_21, %c0_22] : memref<1x8xf32, #tpu.memory_space<vmem>>, vector<1x8xf32>
      %25 = vector.broadcast %24 : vector<1x8xf32> to vector<2x8xf32>
      %26 = arith.addf %23, %25 : vector<2x8xf32>
      %c0_23 = arith.constant 0 : index
      %c0_24 = arith.constant 0 : index
      %27 = vector.load %arg8[%c0_23, %c0_24] : memref<2x8xf32, #tpu.memory_space<vmem>>, vector<2x8xf32>
      tpu.vector_store %arg8[%c0_23, %c0_24], %26 {strides = array<i32>} : memref<2x8xf32, #tpu.memory_space<vmem>>, vector<2x8xf32>,
    } else {
    }
    return
  }
  func.func @transform_0(%arg0: i32) -> (i32, i32) {
    %c0_i32 = arith.constant 0 : i32
    %c0_i32_0 = arith.constant 0 : i32
    %c0_i32_1 = arith.constant 0 : i32
    return %c0_i32, %c0_i32_0 : i32, i32
  }
  func.func @transform_1(%arg0: i32) -> (i32, i32) {
    %c0_i32 = arith.constant 0 : i32
    %c0_i32_0 = arith.constant 0 : i32
    return %arg0, %c0_i32 : i32, i32
  }
  func.func @transform_2(%arg0: i32) -> (i32, i32) {
    %c0_i32 = arith.constant 0 : i32
    %c0_i32_0 = arith.constant 0 : i32
    return %c0_i32, %arg0 : i32, i32
  }
  func.func @transform_3(%arg0: i32) -> (i32, i32) {
    %c0_i32 = arith.constant 0 : i32
    %c0_i32_0 = arith.constant 0 : i32
    return %arg0, %c0_i32 : i32, i32
  }
  func.func @transform_4(%arg0: i32) -> (i32, i32) {
    %c0_i32 = arith.constant 0 : i32
    %c0_i32_0 = arith.constant 0 : i32
    %c0_i32_1 = arith.constant 0 : i32
    return %c0_i32, %c0_i32_0 : i32, i32
  }
  func.func @transform_5(%arg0: i32) -> (i32, i32) {
    %c0_i32 = arith.constant 0 : i32
    %c0_i32_0 = arith.constant 0 : i32
    %c0_i32_1 = arith.constant 0 : i32
    return %c0_i32, %c0_i32_0 : i32, i32
  }
  func.func @transform_6(%arg0: i32) -> (i32, i32) {
    %c0_i32 = arith.constant 0 : i32
    %c0_i32_0 = arith.constant 0 : i32
    %c0_i32_1 = arith.constant 0 : i32
    return %c0_i32, %c0_i32_0 : i32, i32
  }
  func.func @transform_7(%arg0: i32) -> (i32, i32) {
    %c0_i32 = arith.constant 0 : i32
    %c0_i32_0 = arith.constant 0 : i32
    %c0_i32_1 = arith.constant 0 : i32
    return %c0_i32, %c0_i32_0 : i32, i32
  }
}

</mosaic_0001>

<bundles_post_ra>
// kernel: unified_cnn_forward.2
= control target key start
LH: loop header
LB: loop body
LE: loop exit
PB: predicated region body
PF: predicated region fallthrough
CT: control target
= control target key end

     0   :  { %s9291_s0 = inlined_call_operand.vmem [shape: f32[2,64,4], index: 0, kind: input, shape index: {}]   ;;  %s9292_s1 = inlined_call_operand.hbm [shape: f32[21,4,32], index: 1, kind: input, shape index: {}]   ;;  %s9293_s2 = inlined_call_operand.hbm [shape: f32[1,32], index: 2, kind: input, shape index: {}]   ;;  %s9294_s3 = inlined_call_operand.hbm [shape: f32[21,32,32], index: 3, kind: input, shape index: {}]   ;;  %s9295_s4 = inlined_call_operand.hbm [shape: f32[1,32], index: 4, kind: input, shape index: {}]   ;;  %s9296_s5 = inlined_call_operand.hbm [shape: f32[11,32,64], index: 5, kind: input, shape index: {}]   ;;  %s9297_s6 = inlined_call_operand.hbm [shape: f32[1,64], index: 6, kind: input, shape index: {}]   ;;  %s9298_s7 = inlined_call_operand.hbm [shape: f32[11,64,64], index: 7, kind: input, shape index: {}]   ;;  %s9299_s8 = inlined_call_operand.hbm [shape: f32[1,64], index: 8, kind: input, shape index: {}]   ;;  %s9300_s9 = inlined_call_operand.hbm [shape: f32[5,64,64], index: 9, kind: input, shape index: {}]   ;;  %s9301_s10 = inlined_call_operand.hbm [shape: f32[1,64], index: 10, kind: input, shape index: {}]   ;;  %s9302_s11 = inlined_call_operand.hbm [shape: f32[5,64,64], index: 11, kind: input, shape index: {}]   ;;  %s9303_s12 = inlined_call_operand.hbm [shape: f32[1,64], index: 12, kind: input, shape index: {}]   ;;  %s9304_s13 = inlined_call_operand.vmem [shape: f32[2,8,64], index: 13, kind: output, shape index: {}]  }
   0x1   :  { %9318 = sst [smem:[#allocation57_spill]] %s9293_s2 }
   0x2   :  { %9319 = sst [smem:[#allocation58_spill]] %s9295_s4 }
   0x3   :  { %18 = vsyncpa [#allocation5], 0 }
   0x4   :  { %19 = vsyncpa [#allocation7], 0 }
   0x5   :  { %20 = vsyncpa [#allocation10], 0 }
   0x6   :  { %21 = vsyncpa [#allocation13], 0 }
   0x7   :  { %22 = vsyncpa [#allocation16], 0 }
   0x8   :  { %23 = vsyncpa [#allocation19], 0 }
   0x9   :  { %24 = vsyncpa [#allocation22], 0  ;;  %s7358_s25 = smov 0  }
   0xa LB: > { %s9320_s2 = sld [smem:[#allocation57_spill]]  ;;  %s7367_s29 = sadd.s32 4294967295, %s7269_s25   ;;  %s7269_s25 = sphi %s7358_s25, %s30_s25  }
   0xb   : > { %p6235_p0 = scmp.ge.s32.totalorder %s7269_s25, 1  ;;  %p339_p1 = scmp.lt.s32.totalorder %s7269_s25, 3 }
   0xc   : > { %p6820_p2 = scmp.eq.s32.totalorder %s7367_s29, 0  ;;  %s7271_s14 = smov [#allocation6]  }
   0xd   : > { %p7372_p3 = pnand %p6235_p0, %p339_p1  ;;  %s367_s15 = sshll.u32 %s7271_s14, 4  ;;  %s368_s15 = int_to_ptr.vmem [resolvable:$true] %s367_s15 }
   0xe   : > { %s9322_s4 = sld [smem:[#allocation58_spill]]  ;;  %s417_s21 = sshll.u32 %s9297_s6, 4  ;;  %s418_s21 = int_to_ptr.hbm [resolvable:$true] %s417_s21 }
   0xf   : > { %p6783_p4 = pneg %p7372_p3  ;;  %s7272_s23 = smov [#allocation9]  }
  0x10   : > { %s365_s28 = sshll.u32 %s9320_s2, 4  ;;  %s393_s24 = sshll.u32 %s7272_s23, 4  ;;  %s366_s28 = int_to_ptr.hbm [resolvable:$true] %s365_s28  ;;  %s394_s24 = int_to_ptr.vmem [resolvable:$true] %s393_s24 }
  0x11   : > { %p7386_p5 = pnand %p6820_p2, %p6783_p4  ;;  %s7273_s26 = smov [#allocation12]  }
  0x12   : > { %s419_s27 = sshll.u32 %s7273_s26, 4  ;;  %s443_s17 = sshll.u32 %s9299_s8, 4  ;;  %s420_s27 = int_to_ptr.vmem [resolvable:$true] %s419_s27  ;;  %s444_s17 = int_to_ptr.hbm [resolvable:$true] %s443_s17 }
  0x13   : > { %6789 = dma.hbm_to_vmem [thread:$0]  (!%p7386_p5), %s366_s28, 16, %s368_s15, [#allocation7]  }
  0x14   : > { %s391_s18 = sshll.u32 %s9322_s4, 4  ;;  %s469_s23 = sshll.u32 %s9301_s10, 4  ;;  %s392_s18 = int_to_ptr.hbm [resolvable:$true] %s391_s18  ;;  %s470_s23 = int_to_ptr.hbm [resolvable:$true] %s469_s23 }
  0x15   : > { %6795 = dma.hbm_to_vmem [thread:$0]  (!%p7386_p5), %s392_s18, 16, %s394_s24, [#allocation10]  }
  0x16   : > { %6801 = dma.hbm_to_vmem [thread:$0]  (!%p7386_p5), %s418_s21, 16, %s420_s27, [#allocation13]  }
  0x17   : > { %s7274_s2 = smov [#allocation15]   ;;  %s7275_s28 = smov [#allocation18]  }
  0x18   : > { %s445_s4 = sshll.u32 %s7274_s2, 4  ;;  %s471_s15 = sshll.u32 %s7275_s28, 4  ;;  %s446_s4 = int_to_ptr.vmem [resolvable:$true] %s445_s4  ;;  %s472_s15 = int_to_ptr.vmem [resolvable:$true] %s471_s15 }
  0x19   : > { %6807 = dma.hbm_to_vmem [thread:$0]  (!%p7386_p5), %s444_s17, 16, %s446_s4, [#allocation16]  }
  0x1a   : > { %s350_s26 = sshll.u32 %s9292_s1, 4  ;;  %s7276_s21 = smov [#allocation4]   ;;  %s351_s26 = int_to_ptr.hbm [resolvable:$true] %s350_s26 }
  0x1b   : > { %6813 = dma.hbm_to_vmem [thread:$0]  (!%p7386_p5), %s470_s23, 16, %s472_s15, [#allocation19]  }
  0x1c   : > { %s352_s27 = sshll.u32 %s7276_s21, 4  ;;  %s376_s16 = sshll.u32 %s9294_s3, 4  ;;  %s353_s27 = int_to_ptr.vmem [resolvable:$true] %s352_s27  ;;  %s377_s16 = int_to_ptr.hbm [resolvable:$true] %s376_s16 }
  0x1d   : > { %s7277_s19 = smov 64   ;;  %s7278_s4 = smov 4  }
  0x1e   : > { %6786 = dma.hbm_to_vmem [thread:$0]  (!%p7386_p5), %s351_s26, 1344, %s353_s27, [#allocation5], %s7277_s19, %s7277_s19, %s7278_s4  }
  0x1f   : > { %s7279_s17 = smov [#allocation8]   ;;  %s7280_s28 = smov 128  }
  0x20   : > { %s378_s20 = sshll.u32 %s7279_s17, 4  ;;  %s7281_s18 = smov 8   ;;  %s379_s20 = int_to_ptr.vmem [resolvable:$true] %s378_s20 }
  0x21   : > { %6792 = dma.hbm_to_vmem [thread:$0]  (!%p7386_p5), %s377_s16, 10752, %s379_s20, [#allocation7], %s7280_s28, %s7280_s28, %s7281_s18  }
  0x22   : > { %s402_s24 = sshll.u32 %s9296_s5, 4  ;;  %s7282_s21 = smov [#allocation11]   ;;  %s403_s24 = int_to_ptr.hbm [resolvable:$true] %s402_s24 }
  0x23   : > { %s404_s2 = sshll.u32 %s7282_s21, 4  ;;  %s428_s14 = sshll.u32 %s9298_s7, 4  ;;  %s405_s2 = int_to_ptr.vmem [resolvable:$true] %s404_s2  ;;  %s429_s14 = int_to_ptr.hbm [resolvable:$true] %s428_s14 }
  0x24   : > { %6798 = dma.hbm_to_vmem [thread:$0]  (!%p7386_p5), %s403_s24, 5632, %s405_s2, [#allocation10], %s7280_s28, %s7280_s28, %s7281_s18  }
  0x25   : > { %s7283_s16 = smov [#allocation14]   ;;  %s454_s20 = sshll.u32 %s9300_s9, 4  ;;  %s455_s20 = int_to_ptr.hbm [resolvable:$true] %s454_s20 }
  0x26   : > { %s430_s19 = sshll.u32 %s7283_s16, 4  ;;  %s480_s24 = sshll.u32 %s9302_s11, 4  ;;  %s431_s19 = int_to_ptr.vmem [resolvable:$true] %s430_s19  ;;  %s481_s24 = int_to_ptr.hbm [resolvable:$true] %s480_s24 }
  0x27   : > { %6804 = dma.hbm_to_vmem [thread:$0]  (!%p7386_p5), %s429_s14, 11264, %s431_s19, [#allocation13], %s7280_s28, %s7280_s28, %s7281_s18  }
  0x28   : > { %s7284_s21 = smov [#allocation17]   ;;  %s7285_s26 = smov [#allocation20]  }
  0x29   : > { %s456_s2 = sshll.u32 %s7284_s21, 4  ;;  %s482_s27 = sshll.u32 %s7285_s26, 4  ;;  %s457_s2 = int_to_ptr.vmem [resolvable:$true] %s456_s2  ;;  %s483_s27 = int_to_ptr.vmem [resolvable:$true] %s482_s27 }
  0x2a   : > { %6810 = dma.hbm_to_vmem [thread:$0]  (!%p7386_p5), %s455_s20, 5120, %s457_s2, [#allocation16], %s7280_s28, %s7280_s28, %s7281_s18  }
  0x2b   : > { %s495_s14 = sshll.u32 %s9303_s12, 4  ;;  %s7286_s19 = smov [#allocation21]   ;;  %s496_s14 = int_to_ptr.hbm [resolvable:$true] %s495_s14 }
  0x2c   : > { %6816 = dma.hbm_to_vmem [thread:$0]  (!%p7386_p5), %s481_s24, 5120, %s483_s27, [#allocation19], %s7280_s28, %s7280_s28, %s7281_s18  }
  0x2d   : > { %s497_s17 = sshll.u32 %s7286_s19, 4  ;;  %518 = sbr.rel (%p7372_p3) target bundleno = 1845 (0x735), region = 72  ;;  %s498_s17 = int_to_ptr.vmem [resolvable:$true] %s497_s17 }
  0x2e   : > { %6819 = dma.hbm_to_vmem [thread:$0]  (!%p7386_p5), %s496_s14, 16, %s498_s17, [#allocation22]  }
  0x32   : > { %7240 = dma.done.wait (%p6820_p2), [#allocation5], 1344  }
  0x33   : > { %7242 = vsyncadd (%p6820_p2), [#allocation5], 4294965952 }
  0x34   : > { %7244 = dma.done.wait (%p6820_p2), [#allocation7], 10768  }
  0x35   : > { %7246 = vsyncadd (%p6820_p2), [#allocation7], 4294956528 }
  0x36   : > { %7248 = dma.done.wait (%p6820_p2), [#allocation10], 5648  }
  0x37   : > { %7250 = vsyncadd (%p6820_p2), [#allocation10], 4294961648 }
  0x38   : > { %7252 = dma.done.wait (%p6820_p2), [#allocation13], 11280  }
  0x39   : > { %7254 = vsyncadd (%p6820_p2), [#allocation13], 4294956016 }
  0x3a   : > { %7256 = dma.done.wait (%p6820_p2), [#allocation16], 5136  }
  0x3b   : > { %7258 = vsyncadd (%p6820_p2), [#allocation16], 4294962160 }
  0x3c   : > { %7260 = dma.done.wait (%p6820_p2), [#allocation19], 5136  }
  0x3d   : > { %7262 = vsyncadd (%p6820_p2), [#allocation19], 4294962160 }
  0x3e   : > { %7264 = dma.done.wait (%p6820_p2), [#allocation22], 16  }
  0x3f   : > { %7266 = vsyncadd (%p6820_p2), [#allocation22], 4294967280  ;;  %vm626_vm0 = vcmask 523264   ;;  %v9305_v0 = vmov 0.0   ;;  %p617_p6 = scmp.lt.s32.totalorder %s7367_s29, 1  ;;  %vm699_vm1 = vcmask 1043456  }
  0x40   : > { %627 = vst.msk [vmem:[#allocation2] sm:$0xff] %vm626_vm0, %v9305_v0  ;;  %v674_v1 = vld [vmem:[#allocation4 + $0x4] sm:$0xf]  ;;  %v664_v2 = vld [vmem:[#allocation4] sm:$0xf]  ;;  %vm647_vm2 = vcmask 31744  }
  0x41   : > { %628 = vst.msk [vmem:[#allocation2 + $0x8] sm:$0xff] %vm626_vm0, %v9305_v0  ;;  %s9465_s29 = smov (!%p617_p6, %s7367_s29), 1  ;;  %6265 = vmatpush.msk.msra.mxu0 %vm699_vm1, %v674_v1  ;;  %6274 = vmatpush.msk.msra.mxu1 %vm699_vm1, %v664_v2  ;;  %v993_v3 = vld [vmem:[#allocation4 + $0x10] sm:$0xf]  ;;  %v821_v6 = vld [vmem:[#allocation4 + $0x8] sm:$0xf] }
  0x42   : > { %629 = vst.msk [vmem:[#allocation2 + $0x10] sm:$0xff] %vm626_vm0, %v9305_v0  ;;  %s6732_s30 = sshll.u32 %s9465_s29, 6  ;;  %6733 = vmatpush.msk.msra.mxu2 %vm699_vm1, %v674_v1  ;;  %v907_v8 = vld [vmem:[#allocation4 + $0xc] sm:$0xf]  ;;  %6734 = vmatpush.msk.msra.mxu3 %vm699_vm1, %v664_v2  ;;  %v1165_v21 = vld [vmem:[#allocation4 + $0x18] sm:$0xf] }
  0x43   : > { %630 = vst.msk [vmem:[#allocation2 + $0x18] sm:$0xff] %vm626_vm0, %v9305_v0  ;;  %s7508_s18 = scalar_lea.vmem %s9291_s0, %s6732_s30  ;;  %6301 = vmatpush.msk.msrb.mxu0 %vm699_vm1, %v993_v3  ;;  %v1251_v24 = vld [vmem:[#allocation4 + $0x1c] sm:$0xf]  ;;  %v1337_v29 = vld [vmem:[#allocation4 + $0x20] sm:$0xf]  ;;  %vm2482_vm3 = vcmask 261120  }
  0x44   : > { %631 = vst.msk [vmem:[#allocation2 + $0x20] sm:$0xff] %vm626_vm0, %v9305_v0  ;;  %v644_v7 = vld [vmem:[%s7508_s18 + $0x28] sm:$0xff]  ;;  %v645_v9 = vld [vmem:[%s7508_s18 + $0x30] sm:$0xff]  ;;  %6283 = vmatpush.msk.msrb.mxu2 %vm699_vm1, %v821_v6  ;;  %v639_v10 = vld [vmem:[%s7508_s18] sm:$0xff]  ;;  %6292 = vmatpush.msk.msrb.mxu3 %vm699_vm1, %v907_v8  ;;  %s6264_s20 = sshll.u32 %s9465_s29, 3 }
  0x45   : > { %632 = vst.msk [vmem:[#allocation2 + $0x28] sm:$0xff] %vm626_vm0, %v9305_v0  ;;  %v640_v11 = vld [vmem:[%s7508_s18 + $0x8] sm:$0xff]  ;;  %v641_v12 = vld [vmem:[%s7508_s18 + $0x10] sm:$0xff]  ;;  %v642_v13 = vld [vmem:[%s7508_s18 + $0x18] sm:$0xff]  ;;  %s625_s24 = scalar_lea.vmem %s9304_s13, %s6264_s20 }
  0x46   : > { %633 = vst.msk [vmem:[#allocation2 + $0x30] sm:$0xff] %vm626_vm0, %v9305_v0  ;;  %v643_v14 = vld [vmem:[%s7508_s18 + $0x20] sm:$0xff]  ;;  %v1079_v30 = vld [vmem:[#allocation4 + $0x14] sm:$0xf]  ;;  %v646_v35 = vld [vmem:[%s7508_s18 + $0x38] sm:$0xff] }
  0x47   : > { %634 = vst.msk [vmem:[#allocation2 + $0x38] sm:$0xff] %vm626_vm0, %v9305_v0  ;;  %6310 = vmatpush.msk.msrb.mxu1 %vm699_vm1, %v1079_v30  ;;  %v1509_v56 = vld [vmem:[#allocation4 + $0x28] sm:$0xf]  ;;  %v1595_v61 = vld [vmem:[#allocation4 + $0x2c] sm:$0xf] }
  0x48   : > { %v665_v4 = vld [vmem:[#allocation2 + $0x7] sm:$0xff]  ;;  %635 = vst.msk [vmem:[#allocation2 + $0x40] sm:$0xff] %vm626_vm0, %v9305_v0 }
  0x49   : > { %v656_v5 = vld [vmem:[#allocation2 + $0x6] sm:$0xff]  ;;  %6266 = vmatmul.msk.f32.vlgmr.msra.gmra.mxu0 %vm647_vm2, %v665_v4  ;;  %636 = vst.msk [vmem:[#allocation2 + $0x48] sm:$0xff] %vm626_vm0, %v9305_v0  ;;  %v1681_v4 = vld [vmem:[#allocation4 + $0x30] sm:$0xf] }
  0x4a   : > { %6275 = vmatmul.msk.f32.vlgmr.msra.gmra.mxu1 %vm647_vm2, %v656_v5  ;;  %637 = vst.msk [vmem:[#allocation2 + $0x50] sm:$0xff] %vm626_vm0, %v9305_v0  ;;  %v812_v19 = vld [vmem:[#allocation2 + $0x8] sm:$0xff]  ;;  %6337 = vmatpush.msk.msra.mxu0 %vm699_vm1, %v1337_v29  ;;  %v1423_v62 = vld [vmem:[#allocation4 + $0x24] sm:$0xf] }
  0x4b   : > { %638 = vst.msk [vmem:[#allocation2 + $0x58] sm:$0xff] %vm626_vm0, %v9305_v0  ;;  %6346 = vmatpush.msk.msra.mxu1 %vm699_vm1, %v1423_v62  ;;  %v1853_v0 = vld [vmem:[#allocation4 + $0x38] sm:$0xf] }
  0x4c   : > { %653 = vst.msk [vmem:[#allocation2 + $0x38] sm:$0xff] %vm647_vm2, %v644_v7 }
  0x4d   : > { %654 = vst.msk [vmem:[#allocation2 + $0x40] sm:$0xff] %vm647_vm2, %v645_v9 }
  0x4e   : > { %648 = vst.msk [vmem:[#allocation2 + $0x10] sm:$0xff] %vm647_vm2, %v639_v10 }
  0x4f   : > { %649 = vst.msk [vmem:[#allocation2 + $0x18] sm:$0xff] %vm647_vm2, %v640_v11 }
  0x50   : > { %650 = vst.msk [vmem:[#allocation2 + $0x20] sm:$0xff] %vm647_vm2, %v641_v12 }
  0x51   : > { %651 = vst.msk [vmem:[#allocation2 + $0x28] sm:$0xff] %vm647_vm2, %v642_v13 }
  0x52   : > { %652 = vst.msk [vmem:[#allocation2 + $0x30] sm:$0xff] %vm647_vm2, %v643_v14 }
  0x53   : > { %655 = vst.msk [vmem:[#allocation2 + $0x48] sm:$0xff] %vm647_vm2, %v646_v35  ;;  %v7649_v48 = vld [vmem:[#allocation2 + $0x38] sm:$0xff] }
  0x54   : > { %v7543_v15 = vld [vmem:[#allocation2 + $0x3f] sm:$0xff] }
  0x55   : > { %9324 = vst [vmem:[#allocation30_spill] sm:$0xff] %v7543_v15  ;;  %v7545_v16 = vld [vmem:[#allocation2 + $0x3e] sm:$0xff]  ;;  %6273 = vmatmul.msk.f32.vlgmr.msra.gmra.mxu2 %vm647_vm2, %v7543_v15  ;;  %v7549_v17 = vld [vmem:[#allocation2 + $0xf] sm:$0xff] }
  0x56   : > { %9325 = vst [vmem:[#allocation31_spill] sm:$0xff] %v7545_v16  ;;  %v7551_v18 = vld [vmem:[#allocation2 + $0xe] sm:$0xff]  ;;  %6282 = vmatmul.msk.f32.vlgmr.msra.gmra.mxu3 %vm647_vm2, %v7545_v16  ;;  %6267 = vmatmul.msk.f32.gmra.mxu0 %vm647_vm2, %v7549_v17  ;;  %v7559_v22 = vld [vmem:[#allocation2 + $0x17] sm:$0xff]  ;;  %v7665_v52 = vld [vmem:[#allocation2 + $0x40] sm:$0xff] }
  0x57   : > { %6276 = vmatmul.msk.f32.gmra.mxu1 %vm647_vm2, %v7551_v18  ;;  %v898_v20 = vld [vmem:[#allocation2 + $0x9] sm:$0xff]  ;;  %9326 = vst [vmem:[#allocation32_spill] sm:$0xff] %v7559_v22  ;;  %v7561_v23 = vld [vmem:[#allocation2 + $0x16] sm:$0xff]  ;;  %6319 = vmatpush.msk.msra.mxu2 %vm699_vm1, %v1165_v21  ;;  %v7575_v27 = vld [vmem:[#allocation2 + $0x1f] sm:$0xff] }
  0x58   : > { %6328 = vmatpush.msk.msra.mxu3 %vm699_vm1, %v1251_v24  ;;  %v7571_v25 = vld [vmem:[#allocation2 + $0x10] sm:$0xff]  ;;  %9327 = vst [vmem:[#allocation33_spill] sm:$0xff] %v7575_v27  ;;  %v7577_v28 = vld [vmem:[#allocation2 + $0x1e] sm:$0xff]  ;;  %v7593_v33 = vld [vmem:[#allocation2 + $0x27] sm:$0xff] }
  0x59   : > { %v7573_v26 = vld [vmem:[#allocation2 + $0x11] sm:$0xff]  ;;  %9328 = vst [vmem:[#allocation34_spill] sm:$0xff] %v7577_v28  ;;  %v7591_v32 = vld [vmem:[#allocation2 + $0x19] sm:$0xff]  ;;  %v7595_v34 = vld [vmem:[#allocation2 + $0x26] sm:$0xff] }
  0x5a   : > { %v7589_v31 = vld [vmem:[#allocation2 + $0x18] sm:$0xff]  ;;  %v7607_v36 = vld [vmem:[#allocation2 + $0x20] sm:$0xff]  ;;  %v7611_v38 = vld [vmem:[#allocation2 + $0x2f] sm:$0xff] }
  0x5b   : > { %v7609_v37 = vld [vmem:[#allocation2 + $0x21] sm:$0xff]  ;;  %v7613_v39 = vld [vmem:[#allocation2 + $0x2e] sm:$0xff]  ;;  %v7627_v42 = vld [vmem:[#allocation2 + $0x37] sm:$0xff] }
  0x5c   : > { %v7623_v40 = vld [vmem:[#allocation2 + $0x28] sm:$0xff]  ;;  %9329 = vst [vmem:[#allocation35_spill] sm:$0xff] %v7627_v42  ;;  %v7629_v43 = vld [vmem:[#allocation2 + $0x36] sm:$0xff] }
  0x5d   : > { %6284 = vmatmul.msk.f32.vlgmr.msrb.gmra.mxu2 %vm647_vm2, %v812_v19  ;;  %v7625_v41 = vld [vmem:[#allocation2 + $0x29] sm:$0xff]  ;;  %9330 = vst [vmem:[#allocation36_spill] sm:$0xff] %v7629_v43  ;;  %v7641_v45 = vld [vmem:[#allocation2 + $0x31] sm:$0xff]  ;;  %v7651_v49 = vld [vmem:[#allocation2 + $0x39] sm:$0xff] }
  0x5e   : > { %6293 = vmatmul.msk.f32.vlgmr.msrb.gmra.mxu3 %vm647_vm2, %v898_v20  ;;  %6268 = vmatmul.msk.f32.gmra.mxu0 %vm647_vm2, %v7559_v22  ;;  %v7639_v44 = vld [vmem:[#allocation2 + $0x30] sm:$0xff]  ;;  %9331 = vst [vmem:[#allocation37_spill] sm:$0xff] %v7641_v45  ;;  %v7667_v53 = vld [vmem:[#allocation2 + $0x41] sm:$0xff] }
  0x5f   : > { %6277 = vmatmul.msk.f32.gmra.mxu1 %vm647_vm2, %v7561_v23  ;;  %v984_v46 = vld [vmem:[#allocation2 + $0xa] sm:$0xff]  ;;  %v7653_v50 = vld [vmem:[#allocation2 + $0x12] sm:$0xff]  ;;  %v7669_v54 = vld [vmem:[#allocation2 + $0x1a] sm:$0xff]  ;;  %6355 = vmatpush.msk.msrb.mxu2 %vm699_vm1, %v1509_v56 }
  0x60   : > { %v1070_v47 = vld [vmem:[#allocation2 + $0xb] sm:$0xff]  ;;  %v7655_v51 = vld [vmem:[#allocation2 + $0x13] sm:$0xff]  ;;  %v7671_v55 = vld [vmem:[#allocation2 + $0x1b] sm:$0xff]  ;;  %6364 = vmatpush.msk.msrb.mxu3 %vm699_vm1, %v1595_v61 }
  0x61   : > { %v1156_v57 = vld [vmem:[#allocation2 + $0xc] sm:$0xff]  ;;  %v7682_v59 = vld [vmem:[#allocation2 + $0x22] sm:$0xff]  ;;  %v7694_v63 = vld [vmem:[#allocation2 + $0x14] sm:$0xff] }
  0x62   : > { %v1242_v58 = vld [vmem:[#allocation2 + $0xd] sm:$0xff]  ;;  %v7684_v60 = vld [vmem:[#allocation2 + $0x23] sm:$0xff]  ;;  %v7696_v1 = vld [vmem:[#allocation2 + $0x15] sm:$0xff] }
  0x63   : > { %v7698_v2 = vld [vmem:[#allocation2 + $0x2a] sm:$0xff]  ;;  %v7711_v5 = vld [vmem:[#allocation2 + $0x1c] sm:$0xff]  ;;  %v7715_v7 = vld [vmem:[#allocation2 + $0x32] sm:$0xff] }
  0x64   : > { %v7700_v3 = vld [vmem:[#allocation2 + $0x2b] sm:$0xff]  ;;  %v7713_v6 = vld [vmem:[#allocation2 + $0x1d] sm:$0xff]  ;;  %v7717_v8 = vld [vmem:[#allocation2 + $0x33] sm:$0xff] }
  0x65   : > { %6285 = vmatmul.msk.f32.gmra.mxu2 %vm647_vm2, %v7571_v25  ;;  %v7727_v9 = vld [vmem:[#allocation2 + $0x24] sm:$0xff]  ;;  %v7731_v11 = vld [vmem:[#allocation2 + $0x3a] sm:$0xff]  ;;  %v7743_v13 = vld [vmem:[#allocation2 + $0x2c] sm:$0xff] }
  0x66   : > { %6294 = vmatmul.msk.f32.gmra.mxu3 %vm647_vm2, %v7573_v26  ;;  %6269 = vmatmul.msk.f32.gmra.mxu0 %vm647_vm2, %v7575_v27  ;;  %v7729_v10 = vld [vmem:[#allocation2 + $0x25] sm:$0xff]  ;;  %v7733_v12 = vld [vmem:[#allocation2 + $0x3b] sm:$0xff]  ;;  %v7745_v14 = vld [vmem:[#allocation2 + $0x2d] sm:$0xff] }
  0x67   : > { %6278 = vmatmul.msk.f32.gmra.mxu1 %vm647_vm2, %v7577_v28  ;;  %v7747_v19 = vld [vmem:[#allocation2 + $0x42] sm:$0xff]  ;;  %v7759_v21 = vld [vmem:[#allocation2 + $0x34] sm:$0xff] }
  0x68   : > { %v7749_v20 = vld [vmem:[#allocation2 + $0x43] sm:$0xff]  ;;  %v7761_v24 = vld [vmem:[#allocation2 + $0x35] sm:$0xff] }
  0x69   : > { %v7771_v35 = vld [vmem:[#allocation2 + $0x3c] sm:$0xff] }
  0x6d   : > { %6286 = vmatmul.msk.f32.gmra.mxu2 %vm647_vm2, %v7589_v31 }
  0x6e   : > { %6295 = vmatmul.msk.f32.gmra.mxu3 %vm647_vm2, %v7591_v32  ;;  %6270 = vmatmul.msk.f32.gmra.mxu0 %vm647_vm2, %v7593_v33 }
  0x6f   : > { %6279 = vmatmul.msk.f32.gmra.mxu1 %vm647_vm2, %v7595_v34 }
  0x75   : > { %6287 = vmatmul.msk.f32.gmra.mxu2 %vm647_vm2, %v7607_v36 }
  0x76   : > { %6296 = vmatmul.msk.f32.gmra.mxu3 %vm647_vm2, %v7609_v37  ;;  %6271 = vmatmul.msk.f32.gmra.mxu0 %vm647_vm2, %v7611_v38 }
  0x77   : > { %6280 = vmatmul.msk.f32.gmra.mxu1 %vm647_vm2, %v7613_v39 }
  0x7d   : > { %6288 = vmatmul.msk.f32.gmra.mxu2 %vm647_vm2, %v7623_v40 }
  0x7e   : > { %6297 = vmatmul.msk.f32.gmra.mxu3 %vm647_vm2, %v7625_v41  ;;  %6272 = vmatmul.msk.f32.gmra.mxu0 %vm647_vm2, %v7627_v42 }
  0x7f   : > { %6281 = vmatmul.msk.f32.gmra.mxu1 %vm647_vm2, %v7629_v43 }
  0x85   : > { %6289 = vmatmul.msk.f32.gmra.mxu2 %vm647_vm2, %v7639_v44 }
  0x86   : > { %6298 = vmatmul.msk.f32.gmra.mxu3 %vm647_vm2, %v7641_v45  ;;  %6302 = vmatmul.msk.f32.vlgmr.msrb.gmra.mxu0 %vm647_vm2, %v984_v46  ;;  %v7773_v46 = vld [vmem:[#allocation2 + $0x3d] sm:$0xff] }
  0x87   : > { %6311 = vmatmul.msk.f32.vlgmr.msrb.gmra.mxu1 %vm647_vm2, %v1070_v47  ;;  %6373 = vmatpush.msk.msrb.mxu0 %vm699_vm1, %v1681_v4 }
  0x8d   : > { %6290 = vmatmul.msk.f32.gmra.mxu2 %vm647_vm2, %v7649_v48 }
  0x8e   : > { %6299 = vmatmul.msk.f32.gmra.mxu3 %vm647_vm2, %v7651_v49  ;;  %6303 = vmatmul.msk.f32.gmra.mxu0 %vm647_vm2, %v7653_v50 }
  0x8f   : > { %6312 = vmatmul.msk.f32.gmra.mxu1 %vm647_vm2, %v7655_v51 }
  0x95   : > { %6291 = vmatmul.msk.f32.gmra.mxu2 %vm647_vm2, %v7665_v52 }
  0x96   : > { %6300 = vmatmul.msk.f32.gmra.mxu3 %vm647_vm2, %v7667_v53  ;;  %6304 = vmatmul.msk.f32.gmra.mxu0 %vm647_vm2, %v7669_v54 }
  0x97   : > { %6313 = vmatmul.msk.f32.gmra.mxu1 %vm647_vm2, %v7671_v55 }
  0x9d   : > { %6320 = vmatmul.msk.f32.vlgmr.msra.gmra.mxu2 %vm647_vm2, %v1156_v57 }
  0x9e   : > { %6329 = vmatmul.msk.f32.vlgmr.msra.gmra.mxu3 %vm647_vm2, %v1242_v58  ;;  %6305 = vmatmul.msk.f32.gmra.mxu0 %vm647_vm2, %v7682_v59 }
  0x9f   : > { %6314 = vmatmul.msk.f32.gmra.mxu1 %vm647_vm2, %v7684_v60  ;;  %6391 = vmatpush.msk.msra.mxu2 %vm699_vm1, %v1853_v0  ;;  %v2025_v0 = vld [vmem:[#allocation4 + $0x40] sm:$0xf] }
  0xa5   : > { %6321 = vmatmul.msk.f32.gmra.mxu2 %vm647_vm2, %v7694_v63 }
  0xa6   : > { %6330 = vmatmul.msk.f32.gmra.mxu3 %vm647_vm2, %v7696_v1  ;;  %6306 = vmatmul.msk.f32.gmra.mxu0 %vm647_vm2, %v7698_v2 }
  0xa7   : > { %6315 = vmatmul.msk.f32.gmra.mxu1 %vm647_vm2, %v7700_v3 }
  0xad   : > { %6322 = vmatmul.msk.f32.gmra.mxu2 %vm647_vm2, %v7711_v5 }
  0xae   : > { %6331 = vmatmul.msk.f32.gmra.mxu3 %vm647_vm2, %v7713_v6  ;;  %6307 = vmatmul.msk.f32.gmra.mxu0 %vm647_vm2, %v7715_v7 }
  0xaf   : > { %6316 = vmatmul.msk.f32.gmra.mxu1 %vm647_vm2, %v7717_v8 }
  0xb5   : > { %6323 = vmatmul.msk.f32.gmra.mxu2 %vm647_vm2, %v7727_v9 }
  0xb6   : > { %6332 = vmatmul.msk.f32.gmra.mxu3 %vm647_vm2, %v7729_v10  ;;  %6308 = vmatmul.msk.f32.gmra.mxu0 %vm647_vm2, %v7731_v11 }
  0xb7   : > { %6317 = vmatmul.msk.f32.gmra.mxu1 %vm647_vm2, %v7733_v12 }
  0xbd   : > { %6324 = vmatmul.msk.f32.gmra.mxu2 %vm647_vm2, %v7743_v13 }
  0xbe   : > { %6333 = vmatmul.msk.f32.gmra.mxu3 %vm647_vm2, %v7745_v14  ;;  %6309 = vmatmul.msk.f32.gmra.mxu0 %vm647_vm2, %v7747_v19 }
  0xbf   : > { %6318 = vmatmul.msk.f32.gmra.mxu1 %vm647_vm2, %v7749_v20 }
  0xc5   : > { %6325 = vmatmul.msk.f32.gmra.mxu2 %vm647_vm2, %v7759_v21 }
  0xc6   : > { %6334 = vmatmul.msk.f32.gmra.mxu3 %vm647_vm2, %v7761_v24  ;;  %6338 = vmatmul.msk.f32.vlgmr.msra.gmra.mxu0 %vm647_vm2, %v7551_v18  ;;  %v720_v29 = vpop.f32.mrf.mxu0  ;;  %v7783_v18 = vld [vmem:[#allocation2 + $0x44] sm:$0xff] }
  0xc7   : > { %6347 = vmatmul.msk.f32.vlgmr.msra.gmra.mxu1 %vm647_vm2, %v7549_v17  ;;  %v788_v30 = vpop.f32.mrf.mxu1  ;;  %9332 = vst [vmem:[#allocation38_spill] sm:$0xff] %v7783_v18  ;;  %v7785_v17 = vld [vmem:[#allocation2 + $0x45] sm:$0xff]  ;;  %6409 = vmatpush.msk.msra.mxu0 %vm699_vm1, %v2025_v0 }
  0xc8   : > { %9333 = vst [vmem:[#allocation39_spill] sm:$0xff] %v7785_v17 }
  0xcd   : > { %6326 = vmatmul.msk.f32.gmra.mxu2 %vm647_vm2, %v7771_v35 }
  0xce   : > { %6335 = vmatmul.msk.f32.gmra.mxu3 %vm647_vm2, %v7773_v46  ;;  %6339 = vmatmul.msk.f32.gmra.mxu0 %vm647_vm2, %v7561_v23 }
  0xcf   : > { %6348 = vmatmul.msk.f32.gmra.mxu1 %vm647_vm2, %v7559_v22 }
  0xd3   : > { %v723_v47 = vpop.f32.mrf.mxu0 }
  0xd4   : > { %v791_v56 = vpop.f32.mrf.mxu1 }
  0xd5   : > { %6327 = vmatmul.msk.f32.gmra.mxu2 %vm647_vm2, %v7783_v18  ;;  %v1767_v18 = vld [vmem:[#allocation4 + $0x34] sm:$0xf] }
  0xd6   : > { %6336 = vmatmul.msk.f32.gmra.mxu3 %vm647_vm2, %v7785_v17  ;;  %6340 = vmatmul.msk.f32.gmra.mxu0 %vm647_vm2, %v7577_v28  ;;  %v789_v28 = vadd.f32 %v788_v30, %v720_v29 }
  0xd7   : > { %6349 = vmatmul.msk.f32.gmra.mxu1 %vm647_vm2, %v7575_v27  ;;  %v1939_v27 = vld [vmem:[#allocation4 + $0x3c] sm:$0xf] }
  0xd8   : > { %v741_v57 = vpop.f32.mrf.mxu2  ;;  %6400 = vmatpush.msk.msra.mxu3 %vm699_vm1, %v1939_v27  ;;  %6382 = vmatpush.msk.msrb.mxu1 %vm699_vm1, %v1767_v18  ;;  %v792_v27 = vadd.f32 %v791_v56, %v723_v47 }
  0xd9   : > { %v809_v58 = vpop.f32.mrf.mxu3 }
  0xda   : > { %v7795_v61 = vadd.f32 %v809_v58, %v741_v57 }
  0xdb   : > { %v726_v62 = vpop.f32.mrf.mxu0 }
  0xdc   : > { %v794_v4 = vpop.f32.mrf.mxu1 }
  0xdd   : > { %6356 = vmatmul.msk.f32.vlgmr.msrb.gmra.mxu2 %vm647_vm2, %v7571_v25  ;;  %v795_v47 = vadd.f32 %v794_v4, %v726_v62 }
  0xde   : > { %6365 = vmatmul.msk.f32.vlgmr.msrb.gmra.mxu3 %vm647_vm2, %v7573_v26  ;;  %6341 = vmatmul.msk.f32.gmra.mxu0 %vm647_vm2, %v7595_v34 }
  0xdf   : > { %6350 = vmatmul.msk.f32.gmra.mxu1 %vm647_vm2, %v7593_v33 }
  0xe0   : > { %v866_v57 = vpop.f32.mrf.mxu2 }
  0xe1   : > { %v952_v58 = vpop.f32.mrf.mxu3  ;;  %v890_v17 = vadd.f32 %v866_v57, %v789_v28 }
  0xe3   : > { %v976_v25 = vadd.f32 %v952_v58, %v890_v17  ;;  %v729_v26 = vpop.f32.mrf.mxu0 }
  0xe4   : > { %v797_v22 = vpop.f32.mrf.mxu1 }
  0xe5   : > { %6357 = vmatmul.msk.f32.gmra.mxu2 %vm647_vm2, %v7589_v31 }
  0xe6   : > { %6366 = vmatmul.msk.f32.gmra.mxu3 %vm647_vm2, %v7591_v32  ;;  %6342 = vmatmul.msk.f32.gmra.mxu0 %vm647_vm2, %v7613_v39 }
  0xe7   : > { %6351 = vmatmul.msk.f32.gmra.mxu1 %vm647_vm2, %v7611_v38 }
  0xe8   : > { %v869_v28 = vpop.f32.mrf.mxu2 }
  0xe9   : > { %v955_v29 = vpop.f32.mrf.mxu3  ;;  %v891_v30 = vadd.f32 %v869_v28, %v792_v27 }
  0xeb   : > { %v977_v18 = vadd.f32 %v955_v29, %v891_v30  ;;  %v732_v17 = vpop.f32.mrf.mxu0  ;;  %v798_v30 = vadd.f32 %v797_v22, %v729_v26 }
  0xec   : > { %v800_v57 = vpop.f32.mrf.mxu1 }
  0xed   : > { %6358 = vmatmul.msk.f32.gmra.mxu2 %vm647_vm2, %v7607_v36  ;;  %v801_v22 = vadd.f32 %v800_v57, %v732_v17 }
  0xee   : > { %6367 = vmatmul.msk.f32.gmra.mxu3 %vm647_vm2, %v7609_v37  ;;  %6343 = vmatmul.msk.f32.gmra.mxu0 %vm647_vm2, %v7629_v43  ;;  %v7835_v43 = vld [vmem:[#allocation2 + $0x47] sm:$0xff] }
  0xef   : > { %6352 = vmatmul.msk.f32.gmra.mxu1 %vm647_vm2, %v7627_v42 }
  0xf0   : > { %v872_v56 = vpop.f32.mrf.mxu2 }
  0xf1   : > { %v958_v58 = vpop.f32.mrf.mxu3  ;;  %v892_v0 = vadd.f32 %v872_v56, %v795_v47 }
  0xf3   : > { %v978_v27 = vadd.f32 %v958_v58, %v892_v0  ;;  %v735_v28 = vpop.f32.mrf.mxu0  ;;  %v7833_v0 = vld [vmem:[#allocation2 + $0x46] sm:$0xff] }
  0xf4   : > { %v803_v29 = vpop.f32.mrf.mxu1 }
  0xf5   : > { %6359 = vmatmul.msk.f32.gmra.mxu2 %vm647_vm2, %v7623_v40  ;;  %v804_v17 = vadd.f32 %v803_v29, %v735_v28  ;;  %v7861_v29 = vld [vmem:[#allocation2 + $0x48] sm:$0xff] }
  0xf6   : > { %6368 = vmatmul.msk.f32.gmra.mxu3 %vm647_vm2, %v7625_v41  ;;  %6344 = vmatmul.msk.f32.gmra.mxu0 %vm647_vm2, %v7545_v16 }
  0xf7   : > { %6353 = vmatmul.msk.f32.gmra.mxu1 %vm647_vm2, %v7543_v15 }
  0xf8   : > { %v875_v62 = vpop.f32.mrf.mxu2 }
  0xf9   : > { %v961_v4 = vpop.f32.mrf.mxu3  ;;  %v893_v42 = vadd.f32 %v875_v62, %v798_v30 }
  0xfb   : > { %v979_v47 = vadd.f32 %v961_v4, %v893_v42  ;;  %v738_v56 = vpop.f32.mrf.mxu0 }
  0xfc   : > { %v806_v58 = vpop.f32.mrf.mxu1 }
  0xfd   : > { %6360 = vmatmul.msk.f32.gmra.mxu2 %vm647_vm2, %v7639_v44 }
  0xfe   : > { %6369 = vmatmul.msk.f32.gmra.mxu3 %vm647_vm2, %v7641_v45  ;;  %6345 = vmatmul.msk.f32.gmra.mxu0 %vm647_vm2, %v7833_v0 }
  0xff   : > { %6354 = vmatmul.msk.f32.gmra.mxu1 %vm647_vm2, %v7835_v43 }
 0x100   : > { %v878_v42 = vpop.f32.mrf.mxu2 }
 0x101   : > { %v964_v26 = vpop.f32.mrf.mxu3  ;;  %v894_v30 = vadd.f32 %v878_v42, %v801_v22 }
 0x103   : > { %v980_v62 = vadd.f32 %v964_v26, %v894_v30  ;;  %v1038_v4 = vpop.f32.mrf.mxu0 }
 0x104   : > { %v1124_v15 = vpop.f32.mrf.mxu1  ;;  %v1062_v16 = vadd.f32 %v1038_v4, %v976_v25 }
 0x105   : > { %6361 = vmatmul.msk.f32.gmra.mxu2 %vm647_vm2, %v7649_v48 }
 0x106   : > { %6370 = vmatmul.msk.f32.gmra.mxu3 %vm647_vm2, %v7651_v49  ;;  %v1148_v45 = vadd.f32 %v1124_v15, %v1062_v16  ;;  %6374 = vmatmul.msk.f32.vlgmr.msrb.gmra.mxu0 %vm647_vm2, %v7653_v50  ;;  %v807_v16 = vadd.f32 %v806_v58, %v738_v56 }
 0x107   : > { %6383 = vmatmul.msk.f32.vlgmr.msrb.gmra.mxu1 %vm647_vm2, %v7655_v51 }
 0x108   : > { %v881_v57 = vpop.f32.mrf.mxu2 }
 0x109   : > { %v967_v22 = vpop.f32.mrf.mxu3  ;;  %v895_v42 = vadd.f32 %v881_v57, %v804_v17 }
 0x10b   : > { %v981_v26 = vadd.f32 %v967_v22, %v895_v42  ;;  %v1041_v30 = vpop.f32.mrf.mxu0 }
 0x10c   : > { %v1127_v25 = vpop.f32.mrf.mxu1  ;;  %v1063_v4 = vadd.f32 %v1041_v30, %v977_v18  ;;  %v7863_v18 = vld [vmem:[#allocation2 + $0x49] sm:$0xff] }
 0x10d   : > { %6362 = vmatmul.msk.f32.gmra.mxu2 %vm647_vm2, %v7665_v52 }
 0x10e   : > { %6371 = vmatmul.msk.f32.gmra.mxu3 %vm647_vm2, %v7667_v53  ;;  %v1149_v15 = vadd.f32 %v1127_v25, %v1063_v4  ;;  %6375 = vmatmul.msk.f32.gmra.mxu0 %vm647_vm2, %v7669_v54 }
 0x10f   : > { %6384 = vmatmul.msk.f32.gmra.mxu1 %vm647_vm2, %v7671_v55 }
 0x110   : > { %v884_v50 = vpop.f32.mrf.mxu2 }
 0x111   : > { %v970_v51 = vpop.f32.mrf.mxu3  ;;  %v896_v28 = vadd.f32 %v884_v50, %v807_v16  ;;  %v2197_v50 = vld [vmem:[#allocation4 + $0x48] sm:$0xf] }
 0x112   : > { %6427 = vmatpush.msk.msrb.mxu2 %vm699_vm1, %v2197_v50 }
 0x113   : > { %v982_v17 = vadd.f32 %v970_v51, %v896_v28  ;;  %v1044_v57 = vpop.f32.mrf.mxu0 }
 0x114   : > { %v1130_v22 = vpop.f32.mrf.mxu1  ;;  %v1064_v42 = vadd.f32 %v1044_v57, %v978_v27  ;;  %v2111_v57 = vld [vmem:[#allocation4 + $0x44] sm:$0xf] }
 0x115   : > { %6363 = vmatmul.msk.f32.gmra.mxu2 %vm647_vm2, %v7861_v29  ;;  %6418 = vmatpush.msk.msra.mxu1 %vm699_vm1, %v2111_v57  ;;  %v7918_v57 = vld [vmem:[#allocation2 + $0x4a] sm:$0xff] }
 0x116   : > { %6372 = vmatmul.msk.f32.gmra.mxu3 %vm647_vm2, %v7863_v18  ;;  %v1150_v30 = vadd.f32 %v1130_v22, %v1064_v42  ;;  %6376 = vmatmul.msk.f32.gmra.mxu0 %vm647_vm2, %v7682_v59 }
 0x117   : > { %6385 = vmatmul.msk.f32.gmra.mxu1 %vm647_vm2, %v7684_v60  ;;  %v2283_v60 = vld [vmem:[#allocation4 + $0x4c] sm:$0xf] }
 0x118   : > { %v887_v55 = vpop.f32.mrf.mxu2  ;;  %6436 = vmatpush.msk.msrb.mxu3 %vm699_vm1, %v2283_v60 }
 0x119   : > { %v973_v56 = vpop.f32.mrf.mxu3  ;;  %v897_v58 = vadd.f32 %v887_v55, %v7795_v61 }
 0x11b   : > { %v983_v25 = vadd.f32 %v973_v56, %v897_v58  ;;  %v1047_v4 = vpop.f32.mrf.mxu0 }
 0x11c   : > { %v1133_v27 = vpop.f32.mrf.mxu1  ;;  %v1065_v16 = vadd.f32 %v1047_v4, %v979_v47 }
 0x11d   : > { %6392 = vmatmul.msk.f32.vlgmr.msra.gmra.mxu2 %vm647_vm2, %v7694_v63 }
 0x11e   : > { %6401 = vmatmul.msk.f32.vlgmr.msra.gmra.mxu3 %vm647_vm2, %v7696_v1  ;;  %v1151_v51 = vadd.f32 %v1133_v27, %v1065_v16  ;;  %6377 = vmatmul.msk.f32.gmra.mxu0 %vm647_vm2, %v7698_v2 }
 0x11f   : > { %6386 = vmatmul.msk.f32.gmra.mxu1 %vm647_vm2, %v7700_v3 }
 0x120   : > { %v1210_v61 = vpop.f32.mrf.mxu2 }
 0x121   : > { %v1296_v47 = vpop.f32.mrf.mxu3  ;;  %v1234_v28 = vadd.f32 %v1210_v61, %v1148_v45  ;;  %v2369_v45 = vld [vmem:[#allocation4 + $0x50] sm:$0xf] }
 0x122   : > { %6445 = vmatpush.msk.msrb.mxu0 %vm699_vm1, %v2369_v45 }
 0x123   : > { %v7885_v63 = vadd.f32 %v1296_v47, %v1234_v28  ;;  %v1050_v1 = vpop.f32.mrf.mxu0 }
 0x124   : > { %v1136_v22 = vpop.f32.mrf.mxu1  ;;  %v1066_v42 = vadd.f32 %v1050_v1, %v980_v62 }
 0x125   : > { %6393 = vmatmul.msk.f32.gmra.mxu2 %vm647_vm2, %v7711_v5 }
 0x126   : > { %6402 = vmatmul.msk.f32.gmra.mxu3 %vm647_vm2, %v7713_v6  ;;  %v1152_v3 = vadd.f32 %v1136_v22, %v1066_v42  ;;  %6378 = vmatmul.msk.f32.gmra.mxu0 %vm647_vm2, %v7715_v7 }
 0x127   : > { %6387 = vmatmul.msk.f32.gmra.mxu1 %vm647_vm2, %v7717_v8 }
 0x128   : > { %v1213_v55 = vpop.f32.mrf.mxu2 }
 0x129   : > { %v1299_v56 = vpop.f32.mrf.mxu3  ;;  %v1235_v58 = vadd.f32 %v1213_v55, %v1149_v15 }
 0x12b   : > { %v7896_v62 = vadd.f32 %v1299_v56, %v1235_v58  ;;  %v1053_v4 = vpop.f32.mrf.mxu0 }
 0x12c   : > { %v1139_v5 = vpop.f32.mrf.mxu1  ;;  %v1067_v27 = vadd.f32 %v1053_v4, %v981_v26  ;;  %v9335_v4 = vld [vmem:[#allocation38_spill] sm:$0xff] }
 0x12d   : > { %6394 = vmatmul.msk.f32.gmra.mxu2 %vm647_vm2, %v7727_v9 }
 0x12e   : > { %6403 = vmatmul.msk.f32.gmra.mxu3 %vm647_vm2, %v7729_v10  ;;  %v1153_v6 = vadd.f32 %v1139_v5, %v1067_v27  ;;  %6379 = vmatmul.msk.f32.gmra.mxu0 %vm647_vm2, %v7731_v11 }
 0x12f   : > { %6388 = vmatmul.msk.f32.gmra.mxu1 %vm647_vm2, %v7733_v12 }
 0x130   : > { %v1216_v8 = vpop.f32.mrf.mxu2 }
 0x131   : > { %v1302_v15 = vpop.f32.mrf.mxu3  ;;  %v1236_v16 = vadd.f32 %v1216_v8, %v1150_v30  ;;  %v1851_v8 = vld [vmem:[#allocation2 + $0x4c] sm:$0xff] }
 0x133   : > { %v7906_v50 = vadd.f32 %v1302_v15, %v1236_v16  ;;  %v1056_v60 = vpop.f32.mrf.mxu0  ;;  %v1937_v15 = vld [vmem:[#allocation2 + $0x4d] sm:$0xff] }
 0x134   : > { %v1142_v26 = vpop.f32.mrf.mxu1  ;;  %v1068_v61 = vadd.f32 %v1056_v60, %v982_v17 }
 0x135   : > { %6395 = vmatmul.msk.f32.gmra.mxu2 %vm647_vm2, %v7743_v13  ;;  %v1765_v13 = vld [vmem:[#allocation2 + $0x4b] sm:$0xff] }
 0x136   : > { %6404 = vmatmul.msk.f32.gmra.mxu3 %vm647_vm2, %v7745_v14  ;;  %v1154_v9 = vadd.f32 %v1142_v26, %v1068_v61  ;;  %6380 = vmatmul.msk.f32.gmra.mxu0 %vm647_vm2, %v7747_v19 }
 0x137   : > { %6389 = vmatmul.msk.f32.gmra.mxu1 %vm647_vm2, %v7749_v20 }
 0x138   : > { %v1219_v10 = vpop.f32.mrf.mxu2 }
 0x139   : > { %v1305_v12 = vpop.f32.mrf.mxu3  ;;  %v1237_v30 = vadd.f32 %v1219_v10, %v1151_v51 }
 0x13b   : > { %v7916_v47 = vadd.f32 %v1305_v12, %v1237_v30  ;;  %v1059_v28 = vpop.f32.mrf.mxu0 }
 0x13c   : > { %v1145_v17 = vpop.f32.mrf.mxu1  ;;  %v1069_v1 = vadd.f32 %v1059_v28, %v983_v25 }
 0x13d   : > { %6396 = vmatmul.msk.f32.gmra.mxu2 %vm647_vm2, %v7759_v21  ;;  %v9334_v21 = vld [vmem:[#allocation32_spill] sm:$0xff] }
 0x13e   : > { %6405 = vmatmul.msk.f32.gmra.mxu3 %vm647_vm2, %v7761_v24  ;;  %v1155_v14 = vadd.f32 %v1145_v17, %v1069_v1  ;;  %6381 = vmatmul.msk.f32.gmra.mxu0 %vm647_vm2, %v7918_v57 }
 0x13f   : > { %6390 = vmatmul.msk.f32.gmra.mxu1 %vm647_vm2, %v1765_v13 }
 0x140   : > { %v1222_v20 = vpop.f32.mrf.mxu2 }
 0x141   : > { %v1308_v51 = vpop.f32.mrf.mxu3  ;;  %v1238_v22 = vadd.f32 %v1222_v20, %v1152_v3 }
 0x143   : > { %v7927_v42 = vadd.f32 %v1308_v51, %v1238_v22  ;;  %v7929_v45 = vpop.f32.mrf.mxu0 }
 0x144   : > { %v7939_v3 = vpop.f32.mrf.mxu1 }
 0x145   : > { %6397 = vmatmul.msk.f32.gmra.mxu2 %vm647_vm2, %v7771_v35  ;;  %v9336_v35 = vld [vmem:[#allocation39_spill] sm:$0xff] }
 0x146   : > { %6406 = vmatmul.msk.f32.gmra.mxu3 %vm647_vm2, %v7773_v46  ;;  %6410 = vmatmul.msk.f32.vlgmr.msra.gmra.mxu0 %vm647_vm2, %v7561_v23  ;;  %v9337_v46 = vld [vmem:[#allocation34_spill] sm:$0xff]  ;;  %v9338_v23 = vld [vmem:[#allocation33_spill] sm:$0xff] }
 0x147   : > { %6419 = vmatmul.msk.f32.vlgmr.msra.gmra.mxu1 %vm647_vm2, %v9334_v21 }
 0x148   : > { %v1225_v24 = vpop.f32.mrf.mxu2 }
 0x149   : > { %v1311_v25 = vpop.f32.mrf.mxu3  ;;  %v1239_v55 = vadd.f32 %v1225_v24, %v1153_v6 }
 0x14b   : > { %v7941_v56 = vadd.f32 %v1311_v25, %v1239_v55  ;;  %v7943_v58 = vpop.f32.mrf.mxu0  ;;  %v2023_v25 = vld [vmem:[#allocation2 + $0x4e] sm:$0xff] }
 0x14c   : > { %v7957_v26 = vpop.f32.mrf.mxu1  ;;  %v2109_v55 = vld [vmem:[#allocation2 + $0x4f] sm:$0xff] }
 0x14d   : > { %6398 = vmatmul.msk.f32.gmra.mxu2 %vm647_vm2, %v9335_v4 }
 0x14e   : > { %6407 = vmatmul.msk.f32.gmra.mxu3 %vm647_vm2, %v9336_v35  ;;  %6411 = vmatmul.msk.f32.gmra.mxu0 %vm647_vm2, %v9337_v46 }
 0x14f   : > { %6420 = vmatmul.msk.f32.gmra.mxu1 %vm647_vm2, %v9338_v23  ;;  %v2195_v23 = vld [vmem:[#allocation2 + $0x50] sm:$0xff] }
 0x150   : > { %v1228_v5 = vpop.f32.mrf.mxu2 }
 0x151   : > { %v1314_v27 = vpop.f32.mrf.mxu3  ;;  %v1240_v6 = vadd.f32 %v1228_v5, %v1154_v9  ;;  %v2281_v5 = vld [vmem:[#allocation2 + $0x51] sm:$0xff] }
 0x153   : > { %v7953_v16 = vadd.f32 %v1314_v27, %v1240_v6  ;;  %v7955_v60 = vpop.f32.mrf.mxu0 }
 0x155   : > { %6399 = vmatmul.msk.f32.gmra.mxu2 %vm647_vm2, %v1851_v8 }
 0x156   : > { %6408 = vmatmul.msk.f32.gmra.mxu3 %vm647_vm2, %v1937_v15  ;;  %6412 = vmatmul.msk.f32.gmra.mxu0 %vm647_vm2, %v7595_v34 }
 0x157   : > { %6421 = vmatmul.msk.f32.gmra.mxu1 %vm647_vm2, %v7593_v33  ;;  %v7977_v33 = vpop.f32.mrf.mxu1 }
 0x158   : > { %v1231_v61 = vpop.f32.mrf.mxu2 }
 0x159   : > { %v1317_v9 = vpop.f32.mrf.mxu3  ;;  %v1241_v10 = vadd.f32 %v1231_v61, %v1155_v14 }
 0x15b   : > { %v7965_v12 = vadd.f32 %v1317_v9, %v1241_v10  ;;  %v7967_v30 = vpop.f32.mrf.mxu0 }
 0x15d   : > { %9339 = vst [vmem:[#allocation32_spill] sm:$0xff] %v7965_v12  ;;  %6428 = vmatmul.msk.f32.vlgmr.msrb.gmra.mxu2 %vm647_vm2, %v7589_v31  ;;  %v9340_v31 = vld [vmem:[#allocation36_spill] sm:$0xff] }
 0x15e   : > { %6437 = vmatmul.msk.f32.vlgmr.msrb.gmra.mxu3 %vm647_vm2, %v7591_v32  ;;  %6413 = vmatmul.msk.f32.gmra.mxu0 %vm647_vm2, %v7613_v39  ;;  %v9341_v32 = vld [vmem:[#allocation35_spill] sm:$0xff] }
 0x15f   : > { %6422 = vmatmul.msk.f32.gmra.mxu1 %vm647_vm2, %v7611_v38  ;;  %v7997_v13 = vpop.f32.mrf.mxu1 }
 0x160   : > { %v7979_v34 = vpop.f32.mrf.mxu2 }
 0x161   : > { %v7981_v28 = vpop.f32.mrf.mxu3 }
 0x163   : > { %v7983_v17 = vpop.f32.mrf.mxu0 }
 0x165   : > { %6429 = vmatmul.msk.f32.gmra.mxu2 %vm647_vm2, %v7607_v36  ;;  %v9342_v36 = vld [vmem:[#allocation31_spill] sm:$0xff] }
 0x166   : > { %6438 = vmatmul.msk.f32.gmra.mxu3 %vm647_vm2, %v7609_v37  ;;  %6414 = vmatmul.msk.f32.gmra.mxu0 %vm647_vm2, %v9340_v31  ;;  %v9343_v37 = vld [vmem:[#allocation30_spill] sm:$0xff] }
 0x167   : > { %6423 = vmatmul.msk.f32.gmra.mxu1 %vm647_vm2, %v9341_v32  ;;  %v8013_v51 = vpop.f32.mrf.mxu1  ;;  %v2515_v32 = vld [vmem:[#allocation8 + $0x38] sm:$0xff] }
 0x168   : > { %v7993_v38 = vpop.f32.mrf.mxu2  ;;  %2552 = vmatpush.msrb.mxu1 %v2515_v32 }
 0x169   : > { %v7995_v39 = vpop.f32.mrf.mxu3 }
 0x16b   : > { %v7999_v1 = vpop.f32.mrf.mxu0 }
 0x16d   : > { %6430 = vmatmul.msk.f32.gmra.mxu2 %vm647_vm2, %v7623_v40  ;;  %v9344_v40 = vld [vmem:[#allocation37_spill] sm:$0xff] }
 0x16e   : > { %6439 = vmatmul.msk.f32.gmra.mxu3 %vm647_vm2, %v7625_v41  ;;  %6415 = vmatmul.msk.f32.gmra.mxu0 %vm647_vm2, %v9342_v36 }
 0x16f   : > { %6424 = vmatmul.msk.f32.gmra.mxu1 %vm647_vm2, %v9343_v37  ;;  %v8031_v4 = vpop.f32.mrf.mxu1 }
 0x170   : > { %v8009_v14 = vpop.f32.mrf.mxu2 }
 0x171   : > { %v8011_v20 = vpop.f32.mrf.mxu3 }
 0x173   : > { %v8015_v22 = vpop.f32.mrf.mxu0 }
 0x175   : > { %6431 = vmatmul.msk.f32.gmra.mxu2 %vm647_vm2, %v7639_v44 }
 0x176   : > { %6440 = vmatmul.msk.f32.gmra.mxu3 %vm647_vm2, %v9344_v40  ;;  %6416 = vmatmul.msk.f32.gmra.mxu0 %vm647_vm2, %v7833_v0 }
 0x177   : > { %6425 = vmatmul.msk.f32.gmra.mxu1 %vm647_vm2, %v7835_v43 }
 0x178   : > { %v8025_v41 = vpop.f32.mrf.mxu2 }
 0x179   : > { %v8027_v21 = vpop.f32.mrf.mxu3 }
 0x17b   : > { %v8029_v24 = vpop.f32.mrf.mxu0 }
 0x17c   : > { %9345 = vst [vmem:[#allocation38_spill] sm:$0xff] %v8029_v24 }
 0x17d   : > { %6432 = vmatmul.msk.f32.gmra.mxu2 %vm647_vm2, %v7649_v48  ;;  %v8051_v48 = vpop.f32.mrf.mxu1 }
 0x17e   : > { %6441 = vmatmul.msk.f32.gmra.mxu3 %vm647_vm2, %v7651_v49  ;;  %6417 = vmatmul.msk.f32.gmra.mxu0 %vm647_vm2, %v2023_v25  ;;  %9346 = vst [vmem:[#allocation39_spill] sm:$0xff] %v8051_v48  ;;  %v2502_v48 = vld [vmem:[#allocation8 + $0x18] sm:$0xff] }
 0x17f   : > { %6426 = vmatmul.msk.f32.gmra.mxu1 %vm647_vm2, %v2109_v55  ;;  %2617 = vmatpush.msra.mxu2 %v2502_v48 }
 0x180   : > { %v8039_v43 = vpop.f32.mrf.mxu2 }
 0x181   : > { %v8041_v44 = vpop.f32.mrf.mxu3 }
 0x183   : > { %v8043_v0 = vpop.f32.mrf.mxu0 }
 0x185   : > { %6433 = vmatmul.msk.f32.gmra.mxu2 %vm647_vm2, %v7665_v52 }
 0x186   : > { %6442 = vmatmul.msk.f32.gmra.mxu3 %vm647_vm2, %v7667_v53  ;;  %6446 = vmatmul.msk.f32.vlgmr.msrb.gmra.mxu0 %vm647_vm2, %v7669_v54  ;;  %v8069_v54 = vpop.f32.mrf.mxu1 }
 0x187   : > { %9350 = vst [vmem:[#allocation35_spill] sm:$0xff] %v8069_v54  ;;  %v2513_v54 = vld [vmem:[#allocation8 + $0x28] sm:$0xff] }
 0x188   : > { %v8053_v49 = vpop.f32.mrf.mxu2 }
 0x189   : > { %v8055_v35 = vpop.f32.mrf.mxu3 }
 0x18a   : > { %9347 = vst [vmem:[#allocation34_spill] sm:$0xff] %v8055_v35 }
 0x18b   : > { %v8057_v46 = vpop.f32.mrf.mxu0 }
 0x18d   : > { %6434 = vmatmul.msk.f32.gmra.mxu2 %vm647_vm2, %v7861_v29 }
 0x18e   : > { %6443 = vmatmul.msk.f32.gmra.mxu3 %vm647_vm2, %v7863_v18  ;;  %6447 = vmatmul.msk.f32.gmra.mxu0 %vm647_vm2, %v7682_v59  ;;  %v8081_v18 = vpop.f32.mrf.mxu1 }
 0x190   : > { %v8065_v52 = vpop.f32.mrf.mxu2 }
 0x191   : > { %9348 = vst [vmem:[#allocation33_spill] sm:$0xff] %v8065_v52  ;;  %v8067_v53 = vpop.f32.mrf.mxu3 }
 0x192   : > { %9349 = vst [vmem:[#allocation36_spill] sm:$0xff] %v8067_v53 }
 0x193   : > { %v8071_v27 = vpop.f32.mrf.mxu0 }
 0x195   : > { %6435 = vmatmul.msk.f32.gmra.mxu2 %vm647_vm2, %v2195_v23  ;;  %v2367_v23 = vld [vmem:[#allocation2 + $0x52] sm:$0xff] }
 0x196   : > { %6444 = vmatmul.msk.f32.gmra.mxu3 %vm647_vm2, %v2281_v5  ;;  %6448 = vmatmul.msk.f32.gmra.mxu0 %vm647_vm2, %v7698_v2  ;;  %v8093_v9 = vpop.f32.mrf.mxu1  ;;  %v2514_v5 = vld [vmem:[#allocation8 + $0x30] sm:$0xff] }
 0x197   : > { %2553 = vmatpush.msrb.mxu1 %v2514_v5 }
 0x198   : > { %v8077_v29 = vpop.f32.mrf.mxu2 }
 0x199   : > { %9351 = vst [vmem:[#allocation31_spill] sm:$0xff] %v8077_v29  ;;  %v8079_v59 = vpop.f32.mrf.mxu3  ;;  %2554 = vmatpush.msrb.mxu1 %v2513_v54  ;;  %v2658_v54 = vld [vmem:[#allocation8 + $0x58] sm:$0xff] }
 0x19a   : > { %9352 = vst [vmem:[#allocation30_spill] sm:$0xff] %v8079_v59  ;;  %2695 = vmatpush.msra.mxu3 %v2658_v54  ;;  %v1407_v54 = vadd.f32 %v7943_v58, %v7896_v62  ;;  %v2742_v62 = vld [vmem:[#allocation8 + $0x68] sm:$0xff]  ;;  %v1408_v58 = vadd.f32 %v7955_v60, %v7906_v50 }
 0x19b   : > { %v8083_v6 = vpop.f32.mrf.mxu0 }
 0x19e   : > { %6449 = vmatmul.msk.f32.gmra.mxu0 %vm647_vm2, %v7715_v7  ;;  %v8105_v7 = vpop.f32.mrf.mxu1 }
 0x1a0   : > { %v8087_v8 = vpop.f32.mrf.mxu2 }
 0x1a1   : > { %v8089_v15 = vpop.f32.mrf.mxu3 }
 0x1a3   : > { %v8091_v61 = vpop.f32.mrf.mxu0 }
 0x1a6   : > { %6450 = vmatmul.msk.f32.gmra.mxu0 %vm647_vm2, %v7731_v11  ;;  %v8115_v11 = vpop.f32.mrf.mxu1 }
 0x1a8   : > { %v8097_v2 = vpop.f32.mrf.mxu2 }
 0x1a9   : > { %v8099_v10 = vpop.f32.mrf.mxu3 }
 0x1ab   : > { %v8101_v31 = vpop.f32.mrf.mxu0 }
 0x1ac   : > { %9353 = vst [vmem:[#allocation37_spill] sm:$0xff] %v8101_v31  ;;  %v2512_v31 = vld [vmem:[#allocation8 + $0x20] sm:$0xff] }
 0x1ad   : > { %2555 = vmatpush.msrb.mxu1 %v2512_v31  ;;  %v2499_v31 = vld [vmem:[#allocation8] sm:$0xff] }
 0x1ae   : > { %6451 = vmatmul.msk.f32.gmra.mxu0 %vm647_vm2, %v7747_v19  ;;  %v8124_v32 = vpop.f32.mrf.mxu1 }
 0x1b0   : > { %v8107_v36 = vpop.f32.mrf.mxu2 }
 0x1b1   : > { %v8111_v40 = vpop.f32.mrf.mxu3 }
 0x1b3   : > { %v8109_v37 = vpop.f32.mrf.mxu0 }
 0x1b4   : > { %9354 = vst [vmem:[#allocation40_spill] sm:$0xff] %v8109_v37 }
 0x1b6   : > { %6452 = vmatmul.msk.f32.gmra.mxu0 %vm647_vm2, %v7918_v57  ;;  %v8134_v53 = vpop.f32.mrf.mxu1 }
 0x1b7   : > { %9358 = vst [vmem:[#allocation44_spill] sm:$0xff] %v8134_v53  ;;  %v2501_v53 = vld [vmem:[#allocation8 + $0x10] sm:$0xff] }
 0x1b8   : > { %v8117_v25 = vpop.f32.mrf.mxu2  ;;  %2618 = vmatpush.msra.mxu2 %v2501_v53 }
 0x1b9   : > { %v8122_v19 = vpop.f32.mrf.mxu3 }
 0x1bb   : > { %v8119_v55 = vpop.f32.mrf.mxu0 }
 0x1bc   : > { %9355 = vst [vmem:[#allocation41_spill] sm:$0xff] %v8119_v55 }
 0x1be   : > { %6453 = vmatmul.msk.f32.gmra.mxu0 %vm647_vm2, %v2367_v23  ;;  %v8142_v24 = vpop.f32.mrf.mxu1 }
 0x1bf   : > { %9361 = vst [vmem:[#allocation47_spill] sm:$0xff] %v8142_v24  ;;  %v2500_v24 = vld [vmem:[#allocation8 + $0x8] sm:$0xff] }
 0x1c0   : > { %v8128_v29 = vpop.f32.mrf.mxu2  ;;  %2619 = vmatpush.msra.mxu2 %v2500_v24  ;;  %v2646_v24 = vld [vmem:[#allocation2 + $0x8] sm:$0xff] }
 0x1c1   : > { %9356 = vst [vmem:[#allocation42_spill] sm:$0xff] %v8128_v29  ;;  %v8130_v57 = vpop.f32.mrf.mxu3  ;;  %v2657_v29 = vld [vmem:[#allocation8 + $0x50] sm:$0xff] }
 0x1c2   : > { %9357 = vst [vmem:[#allocation43_spill] sm:$0xff] %v8130_v57  ;;  %2696 = vmatpush.msra.mxu3 %v2657_v29  ;;  %2620 = vmatpush.msra.mxu2 %v2499_v31 }
 0x1c3   : > { %v8126_v59 = vpop.f32.mrf.mxu0 }
 0x1c8   : > { %v8136_v55 = vpop.f32.mrf.mxu2 }
 0x1c9   : > { %9359 = vst [vmem:[#allocation45_spill] sm:$0xff] %v8136_v55  ;;  %v8138_v5 = vpop.f32.mrf.mxu3  ;;  %v1406_v55 = vadd.f32 %v7929_v45, %v7885_v63  ;;  %v2491_v63 = vld [vmem:[#allocation2 + $0x6] sm:$0xff]  ;;  %v2655_v45 = vld [vmem:[#allocation8 + $0x40] sm:$0xff] }
 0x1ca   : > { %9360 = vst [vmem:[#allocation46_spill] sm:$0xff] %v8138_v5  ;;  %v8152_v5 = vpop.f32.mrf.mxu1  ;;  %6462 = vmatmul.msk.f32.vlgmr.msra.gmra.mxu2 %vm2482_vm3, %v2491_v63 }
 0x1cb   : > { %v8132_v37 = vpop.f32.mrf.mxu0  ;;  %v1492_v48 = vadd.f32 %v7939_v3, %v1406_v55  ;;  %v2503_v55 = vld [vmem:[#allocation2 + $0x7] sm:$0xff] }
 0x1cc   : > { %6454 = vmatmul.msk.f32.vlgmr.msrb.gmra.mxu1 %vm2482_vm3, %v2503_v55 }
 0x1cd   : > { %v1578_v53 = vadd.f32 %v7979_v34, %v1492_v48  ;;  %v1493_v34 = vadd.f32 %v7957_v26, %v1407_v54 }
 0x1cf   : > { %v1664_v3 = vadd.f32 %v7981_v28, %v1578_v53 }
 0x1d0   : > { %v8144_v12 = vpop.f32.mrf.mxu2 }
 0x1d1   : > { %9362 = vst [vmem:[#allocation48_spill] sm:$0xff] %v8144_v12  ;;  %v8148_v57 = vpop.f32.mrf.mxu3  ;;  %v1750_v48 = vadd.f32 %v8043_v0, %v1664_v3  ;;  %v2830_v0 = vld [vmem:[#allocation8 + $0x98] sm:$0xff] }
 0x1d2   : > { %9363 = vst [vmem:[#allocation49_spill] sm:$0xff] %v8148_v57  ;;  %v2656_v57 = vld [vmem:[#allocation8 + $0x48] sm:$0xff]  ;;  %2867 = vmatpush.msra.mxu1 %v2830_v0 }
 0x1d3   : > { %v8140_v23 = vpop.f32.mrf.mxu0  ;;  %2697 = vmatpush.msra.mxu3 %v2656_v57  ;;  %v2156_v57 = vpop.f32.mrf.mxu1  ;;  %v1836_v28 = vadd.f32 %v8081_v18, %v1750_v48 }
 0x1d5   : > { %2698 = vmatpush.msra.mxu3 %v2655_v45  ;;  %v2743_v45 = vld [vmem:[#allocation8 + $0x70] sm:$0xff]  ;;  %v1922_v26 = vadd.f32 %v8087_v8, %v1836_v28 }
 0x1d6   : > { %6470 = vmatmul.msk.f32.vlgmr.msra.gmra.mxu3 %vm2482_vm3, %v2646_v24  ;;  %v1579_v24 = vadd.f32 %v7993_v38, %v1493_v34  ;;  %v1494_v38 = vadd.f32 %v7977_v33, %v1408_v58  ;;  %v2829_v28 = vld [vmem:[#allocation8 + $0x90] sm:$0xff] }
 0x1d7   : > { %v2008_v60 = vadd.f32 %v8089_v15, %v1922_v26  ;;  %2868 = vmatpush.msra.mxu1 %v2829_v28 }
 0x1d8   : > { %v8154_v12 = vpop.f32.mrf.mxu2  ;;  %v1665_v55 = vadd.f32 %v7995_v39, %v1579_v24  ;;  %v1580_v50 = vadd.f32 %v8009_v14, %v1494_v38  ;;  %v1409_v39 = vadd.f32 %v7967_v30, %v7916_v47 }
 0x1d9   : > { %9364 = vst [vmem:[#allocation50_spill] sm:$0xff] %v8154_v12  ;;  %v8161_v29 = vpop.f32.mrf.mxu3  ;;  %v2744_v12 = vld [vmem:[#allocation8 + $0x78] sm:$0xff] }
 0x1da   : > { %9365 = vst [vmem:[#allocation51_spill] sm:$0xff] %v8161_v29  ;;  %2781 = vmatpush.msra.mxu0 %v2744_v12  ;;  %v2741_v29 = vld [vmem:[#allocation8 + $0x60] sm:$0xff]  ;;  %v1751_v54 = vadd.f32 %v8057_v46, %v1665_v55  ;;  %v1666_v34 = vadd.f32 %v8011_v20, %v1580_v50 }
 0x1db   : > { %v8146_v52 = vpop.f32.mrf.mxu0  ;;  %v2159_v3 = vpop.f32.mrf.mxu1 }
 0x1dc   : > { %2782 = vmatpush.msra.mxu0 %v2743_v45  ;;  %v1837_v8 = vadd.f32 %v8093_v9, %v1751_v54  ;;  %v1495_v45 = vadd.f32 %v7997_v13, %v1409_v39  ;;  %v1752_v14 = vadd.f32 %v8071_v27, %v1666_v34 }
 0x1de   : > { %2783 = vmatpush.msra.mxu0 %v2742_v62  ;;  %v1923_v33 = vadd.f32 %v8097_v2, %v1837_v8  ;;  %v1581_v24 = vadd.f32 %v8025_v41, %v1495_v45  ;;  %v1838_v20 = vadd.f32 %v8105_v7, %v1752_v14 }
 0x1e0   : > { %v2242_v63 = vpop.f32.mrf.mxu2  ;;  %2784 = vmatpush.msra.mxu0 %v2741_v29  ;;  %v2094_v29 = vadd.f32 %v8126_v59, %v2008_v60  ;;  %v2009_v47 = vadd.f32 %v8099_v10, %v1923_v33  ;;  %v1410_v59 = vadd.f32 %v7983_v17, %v7927_v42  ;;  %v1667_v58 = vadd.f32 %v8027_v21, %v1581_v24 }
 0x1e1   : > { %v2328_v53 = vpop.f32.mrf.mxu3  ;;  %v1924_v13 = vadd.f32 %v8107_v36, %v1838_v20 }
 0x1e2   : > { %v2180_v15 = vadd.f32 %v2156_v57, %v2094_v29  ;;  %v2095_v2 = vadd.f32 %v8132_v37, %v2009_v47  ;;  %v8202_v57 = vld [vmem:[#allocation6] ss:$0 sm:$0xff]  ;;  %v1496_v10 = vadd.f32 %v8013_v51, %v1410_v59 }
 0x1e3   : > { %v8156_v35 = vpop.f32.mrf.mxu0  ;;  %v2162_v9 = vpop.f32.mrf.mxu1  ;;  %v2010_v37 = vadd.f32 %v8111_v40, %v1924_v13 }
 0x1e4   : > { %v2266_v30 = vadd.f32 %v2242_v63, %v2180_v15  ;;  %v1753_v63 = vadd.f32 %v8083_v6, %v1667_v58  ;;  %v2181_v55 = vadd.f32 %v2159_v3, %v2095_v2  ;;  %v1582_v7 = vadd.f32 %v8039_v43, %v1496_v10  ;;  %v9370_v58 = vld [vmem:[#allocation33_spill] sm:$0xff] }
 0x1e5   : > { %v2096_v51 = vadd.f32 %v8140_v23, %v2010_v37 }
 0x1e6   : > { %v2352_v27 = vadd.f32 %v2328_v53, %v2266_v30  ;;  %v1411_v53 = vadd.f32 %v7999_v1, %v7941_v56  ;;  %v1839_v26 = vadd.f32 %v8115_v11, %v1753_v63  ;;  %v1668_v38 = vadd.f32 %v8041_v44, %v1582_v7  ;;  %v2828_v30 = vld [vmem:[#allocation8 + $0x88] sm:$0xff]  ;;  %v9372_v63 = vld [vmem:[#allocation32_spill] sm:$0xff] }
 0x1e7   : > { %v2182_v1 = vadd.f32 %v2162_v9, %v2096_v51  ;;  %v9369_v9 = vld [vmem:[#allocation37_spill] sm:$0xff]  ;;  %2869 = vmatpush.msra.mxu1 %v2828_v30 }
 0x1e8   : > { %v2245_v18 = vpop.f32.mrf.mxu2  ;;  %v1925_v54 = vadd.f32 %v8117_v25, %v1839_v26  ;;  %v1497_v60 = vadd.f32 %v8031_v4, %v1411_v53  ;;  %v1754_v56 = vadd.f32 %v8091_v61, %v1668_v38  ;;  %v1412_v25 = vadd.f32 %v8015_v22, %v7953_v16  ;;  %v9366_v61 = vld [vmem:[#allocation34_spill] sm:$0xff]  ;;  %v9368_v16 = vld [vmem:[#allocation39_spill] sm:$0xff]  ;;  %v9375_v53 = vld [vmem:[#allocation36_spill] sm:$0xff] }
 0x1e9   : > { %v2331_v48 = vpop.f32.mrf.mxu3  ;;  %v2267_v21 = vadd.f32 %v2245_v18, %v2181_v55  ;;  %v9373_v55 = vld [vmem:[#allocation38_spill] sm:$0xff]  ;;  %v9376_v51 = vld [vmem:[#allocation45_spill] sm:$0xff] }
 0x1ea   : > { %v1583_v23 = vadd.f32 %v8053_v49, %v1497_v60  ;;  %v2011_v18 = vadd.f32 %v8122_v19, %v1925_v54  ;;  %v1840_v29 = vadd.f32 %v8124_v32, %v1754_v56  ;;  %v1498_v22 = vadd.f32 %v9368_v16, %v1412_v25  ;;  %v9379_v56 = vld [vmem:[#allocation40_spill] sm:$0xff]  ;;  %v9381_v25 = vld [vmem:[#allocation46_spill] sm:$0xff] }
 0x1eb   : > { %v8167_v31 = vpop.f32.mrf.mxu0  ;;  %v2165_v0 = vpop.f32.mrf.mxu1  ;;  %v2353_v43 = vadd.f32 %v2331_v48, %v2267_v21  ;;  %v9367_v48 = vld [vmem:[#allocation42_spill] sm:$0xff]  ;;  %v9384_v16 = vld [vmem:[#allocation48_spill] sm:$0xff] }
 0x1ec   : > { %v2097_v34 = vadd.f32 %v8146_v52, %v2011_v18  ;;  %v1669_v33 = vadd.f32 %v9366_v61, %v1583_v23  ;;  %v1926_v45 = vadd.f32 %v9367_v48, %v1840_v29  ;;  %v1584_v13 = vadd.f32 %v9370_v58, %v1498_v22  ;;  %v9382_v61 = vld [vmem:[#allocation47_spill] sm:$0xff]  ;;  %v9385_v58 = vld [vmem:[#allocation41_spill] sm:$0xff] }
 0x1ee   : > { %v1755_v59 = vadd.f32 %v9369_v9, %v1669_v33  ;;  %v2183_v20 = vadd.f32 %v2165_v0, %v2097_v34  ;;  %v1670_v26 = vadd.f32 %v9375_v53, %v1584_v13  ;;  %v3000_v53 = vld [vmem:[#allocation8 + $0xc8] sm:$0xff] }
 0x1f0   : > { %v2248_v62 = vpop.f32.mrf.mxu2 }
 0x1f1   : > { %v2334_v17 = vpop.f32.mrf.mxu3  ;;  %v2268_v39 = vadd.f32 %v2248_v62, %v2182_v1  ;;  %v1756_v1 = vadd.f32 %v9379_v56, %v1670_v26 }
 0x1f3   : > { %v8178_v12 = vpop.f32.mrf.mxu0  ;;  %v2354_v49 = vadd.f32 %v2334_v17, %v2268_v39  ;;  %v2168_v47 = vpop.f32.mrf.mxu1  ;;  %v9374_v17 = vld [vmem:[#allocation44_spill] sm:$0xff]  ;;  %v9380_v39 = vld [vmem:[#allocation31_spill] sm:$0xff]  ;;  %v1842_v33 = vadd.f32 %v9382_v61, %v1756_v1 }
 0x1f4   : > { %v1841_v7 = vadd.f32 %v9374_v17, %v1755_v59 }
 0x1f5   : > { %v1928_v22 = vadd.f32 %v9384_v16, %v1842_v33 }
 0x1f8   : > { %v2251_v40 = vpop.f32.mrf.mxu2 }
 0x1f9   : > { %v2337_v8 = vpop.f32.mrf.mxu3  ;;  %v2269_v28 = vadd.f32 %v2251_v40, %v2183_v20  ;;  %v9378_v40 = vld [vmem:[#allocation35_spill] sm:$0xff] }
 0x1fb   : > { %v8190_v46 = vpop.f32.mrf.mxu0  ;;  %v2355_v0 = vadd.f32 %v2337_v8, %v2269_v28  ;;  %v2171_v18 = vpop.f32.mrf.mxu1  ;;  %v3002_v28 = vld [vmem:[#allocation8 + $0xd8] sm:$0xff] }
 0x1fc   : > { %3039 = vmatpush.msrb.mxu3 %v3002_v28 }
 0x200   : > { %v2254_v62 = vpop.f32.mrf.mxu2 }
 0x203   : > { %v2414_v41 = vpop.f32.mrf.mxu0 }
 0x204   : > { %v2438_v42 = vadd.f32 %v2414_v41, %v2352_v27  ;;  %v9371_v27 = vld [vmem:[#allocation43_spill] sm:$0xff] }
 0x205   : > { %v2012_v41 = vadd.f32 %v9371_v27, %v1926_v45 }
 0x206   : > { %v2450_v36 = vadd.f32 %v8202_v57, %v2438_v42  ;;  %v1413_v42 = vadd.f32 %v9373_v55, %v9372_v63  ;;  %v3001_v63 = vld [vmem:[#allocation8 + $0xd0] sm:$0xff]  ;;  %v3088_v55 = vld [vmem:[#allocation8 + $0xf8] sm:$0xff] }
 0x207   : > { %v2098_v37 = vadd.f32 %v8156_v35, %v2012_v41  ;;  %3125 = vmatpush.msrb.mxu0 %v3088_v55  ;;  %3040 = vmatpush.msrb.mxu3 %v3001_v63 }
 0x208   : > { %vm2458_vm4 = vcmp.gt.f32.partialorder %v2450_v36, 0.0  ;;  %v2466_v6 = vmul.f32 0.3, %v2450_v36 }
 0x209   : > { %3041 = vmatpush.msrb.mxu3 %v3000_v53  ;;  %v3173_v53 = vld [vmem:[#allocation8 + $0x110] sm:$0xff] }
 0x20a   : > { %v2474_v3 = vsel %vm2458_vm4, %v2450_v36, %v2466_v6  ;;  %v2340_v36 = vpop.f32.mrf.mxu3  ;;  %v1927_v6 = vadd.f32 %v9376_v51, %v1841_v7 }
 0x20b   : > { %2483 = vst.msk [vmem:[#allocation2 + $0x10] sm:$0xff] %vm2482_vm3, %v2474_v3  ;;  %v2417_v50 = vpop.f32.mrf.mxu0 }
 0x20c   : > { %v2439_v11 = vadd.f32 %v2417_v50, %v2353_v43  ;;  %v1499_v50 = vadd.f32 %v9378_v40, %v1413_v42  ;;  %v2013_v8 = vadd.f32 %v9381_v25, %v1927_v6  ;;  %v9386_v42 = vld [vmem:[#allocation49_spill] sm:$0xff]  ;;  %v3174_v25 = vld [vmem:[#allocation8 + $0x118] sm:$0xff] }
 0x20d   : > { %v2014_v17 = vadd.f32 %v9386_v42, %v1928_v22  ;;  %v2999_v40 = vld [vmem:[#allocation8 + $0xc0] sm:$0xff] }
 0x20e   : > { %v2451_v44 = vadd.f32 %v8202_v57, %v2439_v11  ;;  %v2184_v11 = vadd.f32 %v2168_v47, %v2098_v37  ;;  %v2099_v48 = vadd.f32 %v8167_v31, %v2013_v8  ;;  %v3087_v8 = vld [vmem:[#allocation8 + $0xf0] sm:$0xff]  ;;  %3042 = vmatpush.msrb.mxu3 %v2999_v40 }
 0x20f   : > { %v2100_v51 = vadd.f32 %v8178_v12, %v2014_v17  ;;  %3126 = vmatpush.msrb.mxu0 %v3087_v8 }
 0x210   : > { %vm2459_vm5 = vcmp.gt.f32.partialorder %v2451_v44, 0.0  ;;  %v2467_v4 = vmul.f32 0.3, %v2451_v44  ;;  %v2270_v29 = vadd.f32 %v2254_v62, %v2184_v11  ;;  %v2916_v62 = vld [vmem:[#allocation8 + $0xb8] sm:$0xff]  ;;  %v2185_v27 = vadd.f32 %v2171_v18, %v2099_v48 }
 0x211   : > { %2953 = vmatpush.msrb.mxu2 %v2916_v62 }
 0x212   : > { %v2475_v14 = vsel %vm2459_vm5, %v2451_v44, %v2467_v4  ;;  %v8227_v19 = vld [vmem:[#allocation2 + $0xf] sm:$0xff]  ;;  %v1585_v44 = vadd.f32 %v9380_v39, %v1499_v50  ;;  %v2257_v4 = vpop.f32.mrf.mxu2  ;;  %v2356_v47 = vadd.f32 %v2340_v36, %v2270_v29  ;;  %v2343_v59 = vpop.f32.mrf.mxu3  ;;  %v9387_v50 = vld [vmem:[#allocation50_spill] sm:$0xff] }
 0x213   : > { %v8229_v15 = vld [vmem:[#allocation2 + $0xe] sm:$0xff]  ;;  %2484 = vst.msk [vmem:[#allocation2 + $0x18] sm:$0xff] %vm2482_vm3, %v2475_v14  ;;  %v2420_v52 = vpop.f32.mrf.mxu0  ;;  %6455 = vmatmul.msk.f32.gmra.mxu1 %vm2482_vm3, %v8227_v19  ;;  %v2271_v7 = vadd.f32 %v2257_v4, %v2185_v27  ;;  %v2174_v36 = vpop.f32.mrf.mxu1 }
 0x214   : > { %v8231_v24 = vld [vmem:[#allocation2 + $0x10] sm:$0xff]  ;;  %6463 = vmatmul.msk.f32.gmra.mxu2 %vm2482_vm3, %v8229_v15  ;;  %v2440_v2 = vadd.f32 %v2420_v52, %v2354_v49  ;;  %v9383_v49 = vld [vmem:[#allocation30_spill] sm:$0xff]  ;;  %v2186_v39 = vadd.f32 %v2174_v36, %v2100_v51  ;;  %v9388_v4 = vld [vmem:[#allocation51_spill] sm:$0xff] }
 0x215   : > { %v2732_v32 = vld [vmem:[#allocation2 + $0x9] sm:$0xff]  ;;  %6471 = vmatmul.msk.f32.gmra.mxu3 %vm2482_vm3, %v8231_v24  ;;  %v1671_v14 = vadd.f32 %v9383_v49, %v1585_v44  ;;  %v2357_v56 = vadd.f32 %v2343_v59, %v2271_v7 }
 0x216   : > { %6478 = vmatmul.msk.f32.vlgmr.msra.gmra.mxu0 %vm2482_vm3, %v2732_v32  ;;  %v2452_v10 = vadd.f32 %v8202_v57, %v2440_v2  ;;  %v2827_v2 = vld [vmem:[#allocation8 + $0x80] sm:$0xff] }
 0x217   : > { %v1757_v13 = vadd.f32 %v9385_v58, %v1671_v14  ;;  %2870 = vmatpush.msra.mxu1 %v2827_v2 }
 0x218   : > { %vm2460_vm6 = vcmp.gt.f32.partialorder %v2452_v10, 0.0  ;;  %v2468_v21 = vmul.f32 0.3, %v2452_v10 }
 0x219   : > { %v1843_v26 = vadd.f32 %v8152_v5, %v1757_v13  ;;  %3211 = vmatpush.msrb.mxu1 %v3174_v25 }
 0x21a   : > { %v2476_v38 = vsel %vm2460_vm6, %v2452_v10, %v2468_v21  ;;  %v8252_v54 = vld [vmem:[#allocation2 + $0x17] sm:$0xff]  ;;  %v2915_v10 = vld [vmem:[#allocation8 + $0xb0] sm:$0xff]  ;;  %v2346_v29 = vpop.f32.mrf.mxu3 }
 0x21b   : > { %v8254_v43 = vld [vmem:[#allocation2 + $0x16] sm:$0xff]  ;;  %2485 = vst.msk [vmem:[#allocation2 + $0x20] sm:$0xff] %vm2482_vm3, %v2476_v38  ;;  %v2423_v35 = vpop.f32.mrf.mxu0  ;;  %6456 = vmatmul.msk.f32.gmra.mxu1 %vm2482_vm3, %v8252_v54  ;;  %v2914_v21 = vld [vmem:[#allocation8 + $0xa8] sm:$0xff]  ;;  %2954 = vmatpush.msrb.mxu2 %v2915_v10  ;;  %v2177_v16 = vpop.f32.mrf.mxu1 }
 0x21c   : > { %v8256_v3 = vld [vmem:[#allocation2 + $0x18] sm:$0xff]  ;;  %6464 = vmatmul.msk.f32.gmra.mxu2 %vm2482_vm3, %v8254_v43  ;;  %v2441_v23 = vadd.f32 %v2423_v35, %v2355_v0  ;;  %v2260_v0 = vpop.f32.mrf.mxu2  ;;  %v1929_v35 = vadd.f32 %v9387_v50, %v1843_v26  ;;  %3212 = vmatpush.msrb.mxu1 %v3173_v53  ;;  %v3346_v53 = vld [vmem:[#allocation8 + $0x158] sm:$0xff] }
 0x21d   : > { %9377 = vst [vmem:[#allocation34_spill] sm:$0xff] %v8256_v3  ;;  %v8264_v60 = vld [vmem:[#allocation2 + $0x11] sm:$0xff]  ;;  %6472 = vmatmul.msk.f32.gmra.mxu3 %vm2482_vm3, %v8256_v3  ;;  %2955 = vmatpush.msrb.mxu2 %v2914_v21  ;;  %v2272_v33 = vadd.f32 %v2260_v0, %v2186_v39 }
 0x21e   : > { %6479 = vmatmul.msk.f32.gmra.mxu0 %vm2482_vm3, %v8264_v60  ;;  %v2453_v34 = vadd.f32 %v8202_v57, %v2441_v23  ;;  %v2913_v38 = vld [vmem:[#allocation8 + $0xa0] sm:$0xff]  ;;  %v2015_v61 = vadd.f32 %v9388_v4, %v1929_v35  ;;  %3383 = vmatpush.msra.mxu3 %v3346_v53 }
 0x21f   : > { %2956 = vmatpush.msrb.mxu2 %v2913_v38  ;;  %v2358_v22 = vadd.f32 %v2346_v29, %v2272_v33  ;;  %v3343_v53 = vld [vmem:[#allocation8 + $0x140] sm:$0xff] }
 0x220   : > { %vm2461_vm7 = vcmp.gt.f32.partialorder %v2453_v34, 0.0  ;;  %v2469_v45 = vmul.f32 0.3, %v2453_v34  ;;  %v2101_v49 = vadd.f32 %v8190_v46, %v2015_v61  ;;  %v9398_v61 = vmov 0.0  }
 0x222   : > { %v2477_v52 = vsel %vm2461_vm7, %v2453_v34, %v2469_v45  ;;  %v8278_v32 = vld [vmem:[#allocation2 + $0x1f] sm:$0xff]  ;;  %v3085_v45 = vld [vmem:[#allocation8 + $0xe0] sm:$0xff]  ;;  %v2187_v58 = vadd.f32 %v2177_v16, %v2101_v49  ;;  %v2349_v28 = vpop.f32.mrf.mxu3 }
 0x223   : > { %v8280_v30 = vld [vmem:[#allocation2 + $0x1e] sm:$0xff]  ;;  %2486 = vst.msk [vmem:[#allocation2 + $0x28] sm:$0xff] %vm2482_vm3, %v2477_v52  ;;  %v2426_v20 = vpop.f32.mrf.mxu0  ;;  %6457 = vmatmul.msk.f32.gmra.mxu1 %vm2482_vm3, %v8278_v32 }
 0x224   : > { %v8282_v9 = vld [vmem:[#allocation2 + $0x20] sm:$0xff]  ;;  %6465 = vmatmul.msk.f32.gmra.mxu2 %vm2482_vm3, %v8280_v30  ;;  %v2442_v41 = vadd.f32 %v2426_v20, %v2356_v47  ;;  %v2263_v2 = vpop.f32.mrf.mxu2 }
 0x225   : > { %v8289_v31 = vld [vmem:[#allocation2 + $0x19] sm:$0xff]  ;;  %6473 = vmatmul.msk.f32.gmra.mxu3 %vm2482_vm3, %v8282_v9  ;;  %v2273_v27 = vadd.f32 %v2263_v2, %v2187_v58  ;;  %v2990_v2 = vld [vmem:[#allocation2 + $0xc] sm:$0xff] }
 0x226   : > { %6480 = vmatmul.msk.f32.gmra.mxu0 %vm2482_vm3, %v8289_v31  ;;  %v2454_v37 = vadd.f32 %v8202_v57, %v2442_v41  ;;  %v3086_v34 = vld [vmem:[#allocation8 + $0xe8] sm:$0xff]  ;;  %v8417_v58 = vld [vmem:[#allocation2 + $0x12] sm:$0xff] }
 0x227   : > { %3127 = vmatpush.msrb.mxu0 %v3086_v34  ;;  %v2359_v63 = vadd.f32 %v2349_v28, %v2273_v27  ;;  %v8425_v27 = vld [vmem:[#allocation2 + $0x14] sm:$0xff] }
 0x228   : > { %vm2462_vm8 = vcmp.gt.f32.partialorder %v2454_v37, 0.0  ;;  %v2470_v6 = vmul.f32 0.3, %v2454_v37  ;;  %v8430_v28 = vld [vmem:[#allocation2 + $0x1a] sm:$0xff] }
 0x229   : > { %3128 = vmatpush.msrb.mxu0 %v3085_v45 }
 0x22a   : > { %v2478_v1 = vsel %vm2462_vm8, %v2454_v37, %v2470_v6  ;;  %v8301_v11 = vld [vmem:[#allocation2 + $0x27] sm:$0xff] }
 0x22b   : > { %v8303_v23 = vld [vmem:[#allocation2 + $0x26] sm:$0xff]  ;;  %2487 = vst.msk [vmem:[#allocation2 + $0x30] sm:$0xff] %vm2482_vm3, %v2478_v1  ;;  %v2429_v5 = vpop.f32.mrf.mxu0  ;;  %6458 = vmatmul.msk.f32.gmra.mxu1 %vm2482_vm3, %v8301_v11 }
 0x22c   : > { %v8305_v18 = vld [vmem:[#allocation2 + $0x28] sm:$0xff]  ;;  %6466 = vmatmul.msk.f32.gmra.mxu2 %vm2482_vm3, %v8303_v23  ;;  %v2443_v44 = vadd.f32 %v2429_v5, %v2357_v56 }
 0x22d   : > { %v8312_v12 = vld [vmem:[#allocation2 + $0x21] sm:$0xff]  ;;  %6474 = vmatmul.msk.f32.gmra.mxu3 %vm2482_vm3, %v8305_v18 }
 0x22e   : > { %6481 = vmatmul.msk.f32.gmra.mxu0 %vm2482_vm3, %v8312_v12  ;;  %v2455_v48 = vadd.f32 %v8202_v57, %v2443_v44 }
 0x230   : > { %vm2463_vm9 = vcmp.gt.f32.partialorder %v2455_v48, 0.0  ;;  %v2471_v14 = vmul.f32 0.3, %v2455_v48 }
 0x232   : > { %v2479_v47 = vsel %vm2463_vm9, %v2455_v48, %v2471_v14  ;;  %v8321_v52 = vld [vmem:[#allocation2 + $0x2f] sm:$0xff] }
 0x233   : > { %v8323_v59 = vld [vmem:[#allocation2 + $0x2e] sm:$0xff]  ;;  %2488 = vst.msk [vmem:[#allocation2 + $0x38] sm:$0xff] %vm2482_vm3, %v2479_v47  ;;  %v2432_v62 = vpop.f32.mrf.mxu0  ;;  %6459 = vmatmul.msk.f32.gmra.mxu1 %vm2482_vm3, %v8321_v52 }
 0x234   : > { %v8325_v20 = vld [vmem:[#allocation2 + $0x30] sm:$0xff]  ;;  %6467 = vmatmul.msk.f32.gmra.mxu2 %vm2482_vm3, %v8323_v59  ;;  %v2444_v13 = vadd.f32 %v2432_v62, %v2358_v22  ;;  %v3172_v62 = vld [vmem:[#allocation8 + $0x108] sm:$0xff] }
 0x235   : > { %v8332_v46 = vld [vmem:[#allocation2 + $0x29] sm:$0xff]  ;;  %6475 = vmatmul.msk.f32.gmra.mxu3 %vm2482_vm3, %v8325_v20  ;;  %3213 = vmatpush.msrb.mxu1 %v3172_v62  ;;  %v3258_v62 = vld [vmem:[#allocation8 + $0x128] sm:$0xff] }
 0x236   : > { %6482 = vmatmul.msk.f32.gmra.mxu0 %vm2482_vm3, %v8332_v46  ;;  %v2456_v41 = vadd.f32 %v8202_v57, %v2444_v13  ;;  %v8356_v26 = vld [vmem:[#allocation2 + $0x2a] sm:$0xff]  ;;  %v8419_v13 = vld [vmem:[#allocation2 + $0x13] sm:$0xff] }
 0x237   : > { %v8358_v51 = vld [vmem:[#allocation2 + $0x2b] sm:$0xff] }
 0x238   : > { %vm2464_vm10 = vcmp.gt.f32.partialorder %v2456_v41, 0.0  ;;  %v2472_v10 = vmul.f32 0.3, %v2456_v41  ;;  %v8360_v6 = vld [vmem:[#allocation2 + $0x2c] sm:$0xff] }
 0x239   : > { %v8366_v40 = vld [vmem:[#allocation2 + $0x2d] sm:$0xff] }
 0x23a   : > { %v2480_v55 = vsel %vm2464_vm10, %v2456_v41, %v2472_v10  ;;  %v8339_v42 = vld [vmem:[#allocation2 + $0x37] sm:$0xff]  ;;  %v8368_v50 = vld [vmem:[#allocation2 + $0x2e] sm:$0xff] }
 0x23b   : > { %v8341_v17 = vld [vmem:[#allocation2 + $0x36] sm:$0xff]  ;;  %2489 = vst.msk [vmem:[#allocation2 + $0x40] sm:$0xff] %vm2482_vm3, %v2480_v55  ;;  %v2435_v37 = vpop.f32.mrf.mxu0  ;;  %6460 = vmatmul.msk.f32.gmra.mxu1 %vm2482_vm3, %v8339_v42  ;;  %v8374_v1 = vld [vmem:[#allocation2 + $0x29] sm:$0xff] }
 0x23c   : > { %v8343_v7 = vld [vmem:[#allocation2 + $0x38] sm:$0xff]  ;;  %6468 = vmatmul.msk.f32.gmra.mxu2 %vm2482_vm3, %v8341_v17  ;;  %v2445_v36 = vadd.f32 %v2435_v37, %v2359_v63  ;;  %9389 = vst [vmem:[#allocation42_spill] sm:$0xff] %v8368_v50  ;;  %v8370_v35 = vld [vmem:[#allocation2 + $0x2f] sm:$0xff] }
 0x23d   : > { %v8350_v21 = vld [vmem:[#allocation2 + $0x31] sm:$0xff]  ;;  %6476 = vmatmul.msk.f32.gmra.mxu3 %vm2482_vm3, %v8343_v7  ;;  %9390 = vst [vmem:[#allocation39_spill] sm:$0xff] %v8370_v35  ;;  %v8432_v10 = vld [vmem:[#allocation2 + $0x1b] sm:$0xff] }
 0x23e   : > { %6483 = vmatmul.msk.f32.gmra.mxu0 %vm2482_vm3, %v8350_v21  ;;  %v8362_v0 = vld [vmem:[#allocation2 + $0x32] sm:$0xff]  ;;  %9392 = vst [vmem:[#allocation33_spill] sm:$0xff] %v8374_v1  ;;  %v8376_v5 = vld [vmem:[#allocation2 + $0x2a] sm:$0xff]  ;;  %v2457_v8 = vadd.f32 %v8202_v57, %v2445_v36  ;;  %v8438_v63 = vld [vmem:[#allocation2 + $0x1c] sm:$0xff] }
 0x23f   : > { %v8364_v38 = vld [vmem:[#allocation2 + $0x33] sm:$0xff]  ;;  %9393 = vst [vmem:[#allocation43_spill] sm:$0xff] %v8376_v5  ;;  %v2818_v22 = vld [vmem:[#allocation2 + $0xa] sm:$0xff] }
 0x240   : > { %v8372_v56 = vld [vmem:[#allocation2 + $0x30] sm:$0xff]  ;;  %vm2465_vm11 = vcmp.gt.f32.partialorder %v2457_v8, 0.0  ;;  %v2473_v33 = vmul.f32 0.3, %v2457_v8 }
 0x241   : > { %9391 = vst [vmem:[#allocation37_spill] sm:$0xff] %v8372_v56  ;;  %v8378_v39 = vld [vmem:[#allocation2 + $0x34] sm:$0xff]  ;;  %v2904_v47 = vld [vmem:[#allocation2 + $0xb] sm:$0xff] }
 0x242   : > { %v8380_v44 = vld [vmem:[#allocation2 + $0x35] sm:$0xff]  ;;  %v2481_v48 = vsel %vm2465_vm11, %v2457_v8, %v2473_v33  ;;  %v8393_v45 = vld [vmem:[#allocation2 + $0x3f] sm:$0xff]  ;;  %v3076_v41 = vld [vmem:[#allocation2 + $0xd] sm:$0xff] }
 0x243   : > { %v8382_v25 = vld [vmem:[#allocation2 + $0x36] sm:$0xff]  ;;  %v8395_v49 = vld [vmem:[#allocation2 + $0x3e] sm:$0xff]  ;;  %2490 = vst.msk [vmem:[#allocation2 + $0x48] sm:$0xff] %vm2482_vm3, %v2481_v48  ;;  %6461 = vmatmul.msk.f32.gmra.mxu1 %vm2482_vm3, %v8393_v45  ;;  %v3260_v36 = vld [vmem:[#allocation8 + $0x138] sm:$0xff] }
 0x244   : > { %9394 = vst [vmem:[#allocation32_spill] sm:$0xff] %v8382_v25  ;;  %v8385_v29 = vld [vmem:[#allocation2 + $0x37] sm:$0xff]  ;;  %v8397_v14 = vld [vmem:[#allocation2 + $0x40] sm:$0xff]  ;;  %6469 = vmatmul.msk.f32.gmra.mxu2 %vm2482_vm3, %v8395_v49 }
 0x245   : > { %9395 = vst [vmem:[#allocation38_spill] sm:$0xff] %v8385_v29  ;;  %v8387_v34 = vld [vmem:[#allocation2 + $0x31] sm:$0xff]  ;;  %v8404_v57 = vld [vmem:[#allocation2 + $0x39] sm:$0xff]  ;;  %6477 = vmatmul.msk.f32.gmra.mxu3 %vm2482_vm3, %v8397_v14  ;;  %3297 = vmatpush.msra.mxu2 %v3260_v36  ;;  %v8446_v8 = vld [vmem:[#allocation2 + $0x22] sm:$0xff] }
 0x246   : > { %9396 = vst [vmem:[#allocation44_spill] sm:$0xff] %v8387_v34  ;;  %v8389_v4 = vld [vmem:[#allocation2 + $0x32] sm:$0xff]  ;;  %6484 = vmatmul.msk.f32.gmra.mxu0 %vm2482_vm3, %v8404_v57  ;;  %v8448_v33 = vld [vmem:[#allocation2 + $0x23] sm:$0xff] }
 0x247   : > { %9397 = vst [vmem:[#allocation36_spill] sm:$0xff] %v8389_v4  ;;  %v8440_v55 = vld [vmem:[#allocation2 + $0x15] sm:$0xff]  ;;  %v8454_v48 = vld [vmem:[#allocation2 + $0x24] sm:$0xff] }
 0x248   : > { %4347 = vst.msk [vmem:[#allocation2 + $0x30] sm:$0xff] %vm2482_vm3, %v9398_v61  ;;  %v3171_v37 = vld [vmem:[#allocation8 + $0x100] sm:$0xff]  ;;  %v8466_v61 = vld [vmem:[#allocation2 + $0x25] sm:$0xff] }
 0x249   : > { %3214 = vmatpush.msrb.mxu1 %v3171_v37  ;;  %v3432_v37 = vld [vmem:[#allocation8 + $0x178] sm:$0xff]  ;;  %v3257_v36 = vld [vmem:[#allocation8 + $0x120] sm:$0xff]  ;;  %v3516_v34 = vld [vmem:[#allocation8 + $0x188] sm:$0xff] }
 0x24a   : > { %v8410_v16 = vld [vmem:[#allocation2 + $0x41] sm:$0xff]  ;;  %3469 = vmatpush.msra.mxu0 %v3432_v37 }
 0x24b   : > { %6486 = vmatmul.msk.f32.vlgmr.msra.gmra.mxu1 %vm2482_vm3, %v2818_v22  ;;  %v8456_v22 = vld [vmem:[#allocation2 + $0x1d] sm:$0xff]  ;;  %v8512_v5 = vld [vmem:[#allocation2 + $0x45] sm:$0xff] }
 0x24c   : > { %6494 = vmatmul.msk.f32.vlgmr.msrb.gmra.mxu2 %vm2482_vm3, %v2904_v47  ;;  %v3259_v47 = vld [vmem:[#allocation8 + $0x130] sm:$0xff]  ;;  %v8480_v37 = vld [vmem:[#allocation2 + $0x3a] sm:$0xff] }
 0x24d   : > { %6502 = vmatmul.msk.f32.vlgmr.msrb.gmra.mxu3 %vm2482_vm3, %v2990_v2  ;;  %v3345_v2 = vld [vmem:[#allocation8 + $0x150] sm:$0xff]  ;;  %3298 = vmatpush.msra.mxu2 %v3259_v47  ;;  %v3518_v47 = vld [vmem:[#allocation8 + $0x198] sm:$0xff]  ;;  %v8504_v4 = vld [vmem:[#allocation2 + $0x3d] sm:$0xff]  ;;  %v8522_v29 = vpop.f32.mrf.mxu2 }
 0x24e   : > { %6485 = vmatmul.msk.f32.gmra.mxu0 %vm2482_vm3, %v8410_v16  ;;  %3384 = vmatpush.msra.mxu3 %v3345_v2  ;;  %v3431_v2 = vld [vmem:[#allocation8 + $0x170] sm:$0xff] }
 0x24f   : > { %3299 = vmatpush.msra.mxu2 %v3258_v62  ;;  %3555 = vmatpush.msra.mxu1 %v3518_v47  ;;  %v3430_v62 = vld [vmem:[#allocation8 + $0x168] sm:$0xff]  ;;  %v3517_v47 = vld [vmem:[#allocation8 + $0x190] sm:$0xff] }
 0x250   : > { %3470 = vmatpush.msra.mxu0 %v3431_v2  ;;  %v8494_v2 = vld [vmem:[#allocation2 + $0x42] sm:$0xff] }
 0x251   : > { %3300 = vmatpush.msra.mxu2 %v3257_v36  ;;  %v8482_v36 = vld [vmem:[#allocation2 + $0x3b] sm:$0xff]  ;;  %3556 = vmatpush.msra.mxu1 %v3517_v47  ;;  %v8510_v47 = vpop.f32.mrf.mxu1 }
 0x252   : > { %3471 = vmatpush.msra.mxu0 %v3430_v62  ;;  %v8496_v62 = vld [vmem:[#allocation2 + $0x43] sm:$0xff] }
 0x253   : > { %6487 = vmatmul.msk.f32.gmra.mxu1 %vm2482_vm3, %v8417_v58 }
 0x254   : > { %6495 = vmatmul.msk.f32.gmra.mxu2 %vm2482_vm3, %v8419_v13  ;;  %3557 = vmatpush.msra.mxu1 %v3516_v34 }
 0x255   : > { %6503 = vmatmul.msk.f32.gmra.mxu3 %vm2482_vm3, %v8425_v27 }
 0x256   : > { %6510 = vmatmul.msk.f32.vlgmr.msrb.gmra.mxu0 %vm2482_vm3, %v3076_v41  ;;  %v3344_v41 = vld [vmem:[#allocation8 + $0x148] sm:$0xff] }
 0x257   : > { %3385 = vmatpush.msra.mxu3 %v3344_v41  ;;  %v3429_v41 = vld [vmem:[#allocation8 + $0x160] sm:$0xff] }
 0x258   : > { %3472 = vmatpush.msra.mxu0 %v3429_v41  ;;  %v8502_v41 = vld [vmem:[#allocation2 + $0x44] sm:$0xff] }
 0x259   : > { %3386 = vmatpush.msra.mxu3 %v3343_v53  ;;  %v8488_v53 = vld [vmem:[#allocation2 + $0x3c] sm:$0xff]  ;;  %v8524_v25 = vpop.f32.mrf.mxu3 }
 0x25b   : > { %6488 = vmatmul.msk.f32.gmra.mxu1 %vm2482_vm3, %v8430_v28 }
 0x25c   : > { %6496 = vmatmul.msk.f32.gmra.mxu2 %vm2482_vm3, %v8432_v10 }
 0x25d   : > { %6504 = vmatmul.msk.f32.gmra.mxu3 %vm2482_vm3, %v8438_v63 }
 0x25e   : > { %6511 = vmatmul.msk.f32.gmra.mxu0 %vm2482_vm3, %v8440_v55 }
 0x263   : > { %6489 = vmatmul.msk.f32.gmra.mxu1 %vm2482_vm3, %v8446_v8 }
 0x264   : > { %6497 = vmatmul.msk.f32.gmra.mxu2 %vm2482_vm3, %v8448_v33 }
 0x265   : > { %6505 = vmatmul.msk.f32.gmra.mxu3 %vm2482_vm3, %v8454_v48 }
 0x266   : > { %6512 = vmatmul.msk.f32.gmra.mxu0 %vm2482_vm3, %v8456_v22 }
 0x26b   : > { %6490 = vmatmul.msk.f32.gmra.mxu1 %vm2482_vm3, %v8356_v26 }
 0x26c   : > { %6498 = vmatmul.msk.f32.gmra.mxu2 %vm2482_vm3, %v8358_v51 }
 0x26d   : > { %6506 = vmatmul.msk.f32.gmra.mxu3 %vm2482_vm3, %v8360_v6 }
 0x26e   : > { %6513 = vmatmul.msk.f32.gmra.mxu0 %vm2482_vm3, %v8466_v61 }
 0x273   : > { %6491 = vmatmul.msk.f32.gmra.mxu1 %vm2482_vm3, %v8362_v0 }
 0x274   : > { %6499 = vmatmul.msk.f32.gmra.mxu2 %vm2482_vm3, %v8364_v38 }
 0x275   : > { %6507 = vmatmul.msk.f32.gmra.mxu3 %vm2482_vm3, %v8378_v39 }
 0x276   : > { %6514 = vmatmul.msk.f32.gmra.mxu0 %vm2482_vm3, %v8366_v40 }
 0x27b   : > { %6492 = vmatmul.msk.f32.gmra.mxu1 %vm2482_vm3, %v8480_v37 }
 0x27c   : > { %6500 = vmatmul.msk.f32.gmra.mxu2 %vm2482_vm3, %v8482_v36 }
 0x27d   : > { %6508 = vmatmul.msk.f32.gmra.mxu3 %vm2482_vm3, %v8488_v53 }
 0x27e   : > { %6515 = vmatmul.msk.f32.gmra.mxu0 %vm2482_vm3, %v8380_v44 }
 0x283   : > { %6493 = vmatmul.msk.f32.gmra.mxu1 %vm2482_vm3, %v8494_v2 }
 0x284   : > { %6501 = vmatmul.msk.f32.gmra.mxu2 %vm2482_vm3, %v8496_v62 }
 0x285   : > { %6509 = vmatmul.msk.f32.gmra.mxu3 %vm2482_vm3, %v8502_v41 }
 0x286   : > { %6516 = vmatmul.msk.f32.gmra.mxu0 %vm2482_vm3, %v8504_v4 }
 0x28b   : > { %6518 = vmatmul.msk.f32.vlgmr.msrb.gmra.mxu1 %vm2482_vm3, %v8229_v15 }
 0x28c   : > { %6526 = vmatmul.msk.f32.vlgmr.msra.gmra.mxu2 %vm2482_vm3, %v8227_v19 }
 0x28d   : > { %6534 = vmatmul.msk.f32.vlgmr.msra.gmra.mxu3 %vm2482_vm3, %v8231_v24 }
 0x28e   : > { %6517 = vmatmul.msk.f32.gmra.mxu0 %vm2482_vm3, %v8512_v5 }
 0x290   : > { %v2560_v1 = vpop.f32.mrf.mxu1 }
 0x293   : > { %v8526_v56 = vpop.f32.mrf.mxu0  ;;  %6519 = vmatmul.msk.f32.gmra.mxu1 %vm2482_vm3, %v8254_v43 }
 0x294   : > { %6527 = vmatmul.msk.f32.gmra.mxu2 %vm2482_vm3, %v8252_v54  ;;  %v3515_v54 = vld [vmem:[#allocation8 + $0x180] sm:$0xff] }
 0x295   : > { %6535 = vmatmul.msk.f32.gmra.mxu3 %vm2482_vm3, %v8256_v3  ;;  %3558 = vmatpush.msra.mxu1 %v3515_v54 }
 0x296   : > { %6542 = vmatmul.msk.f32.vlgmr.msra.gmra.mxu0 %vm2482_vm3, %v8264_v60 }
 0x297   : > { %v2625_v19 = vpop.f32.mrf.mxu2 }
 0x298   : > { %v2626_v15 = vadd.f32 %v2625_v19, %v2560_v1  ;;  %v2703_v24 = vpop.f32.mrf.mxu3  ;;  %v2563_v34 = vpop.f32.mrf.mxu1 }
 0x29a   : > { %v8536_v35 = vadd.f32 %v2703_v24, %v2626_v15 }
 0x29b   : > { %v8538_v50 = vpop.f32.mrf.mxu0  ;;  %6520 = vmatmul.msk.f32.gmra.mxu1 %vm2482_vm3, %v8280_v30  ;;  %v3604_v30 = vld [vmem:[#allocation8 + $0x1b8] sm:$0xff] }
 0x29c   : > { %6528 = vmatmul.msk.f32.gmra.mxu2 %vm2482_vm3, %v8278_v32  ;;  %v3690_v32 = vld [vmem:[#allocation8 + $0x1d8] sm:$0xff] }
 0x29d   : > { %6536 = vmatmul.msk.f32.gmra.mxu3 %vm2482_vm3, %v8282_v9  ;;  %3641 = vmatpush.msrb.mxu2 %v3604_v30  ;;  %v3687_v30 = vld [vmem:[#allocation8 + $0x1c0] sm:$0xff] }
 0x29e   : > { %6543 = vmatmul.msk.f32.gmra.mxu0 %vm2482_vm3, %v8289_v31  ;;  %3727 = vmatpush.msrb.mxu3 %v3690_v32  ;;  %v3862_v32 = vld [vmem:[#allocation8 + $0x218] sm:$0xff] }
 0x29f   : > { %v2628_v60 = vpop.f32.mrf.mxu2  ;;  %3899 = vmatpush.msrb.mxu1 %v3862_v32 }
 0x2a0   : > { %v2629_v1 = vadd.f32 %v2628_v60, %v2563_v34  ;;  %v2706_v19 = vpop.f32.mrf.mxu3  ;;  %v2566_v15 = vpop.f32.mrf.mxu1 }
 0x2a2   : > { %v8548_v24 = vadd.f32 %v2706_v19, %v2629_v1  ;;  %v3689_v19 = vld [vmem:[#allocation8 + $0x1d0] sm:$0xff] }
 0x2a3   : > { %v8550_v3 = vpop.f32.mrf.mxu0  ;;  %6521 = vmatmul.msk.f32.gmra.mxu1 %vm2482_vm3, %v8303_v23  ;;  %v3603_v23 = vld [vmem:[#allocation8 + $0x1b0] sm:$0xff]  ;;  %3728 = vmatpush.msrb.mxu3 %v3689_v19 }
 0x2a4   : > { %6529 = vmatmul.msk.f32.gmra.mxu2 %vm2482_vm3, %v8301_v11  ;;  %v3602_v11 = vld [vmem:[#allocation8 + $0x1a8] sm:$0xff] }
 0x2a5   : > { %6537 = vmatmul.msk.f32.gmra.mxu3 %vm2482_vm3, %v8305_v18  ;;  %3642 = vmatpush.msrb.mxu2 %v3603_v23  ;;  %v3688_v18 = vld [vmem:[#allocation8 + $0x1c8] sm:$0xff] }
 0x2a6   : > { %6544 = vmatmul.msk.f32.gmra.mxu0 %vm2482_vm3, %v8312_v12  ;;  %v3776_v12 = vld [vmem:[#allocation8 + $0x1f8] sm:$0xff]  ;;  %3729 = vmatpush.msrb.mxu3 %v3688_v18 }
 0x2a7   : > { %v2631_v9 = vpop.f32.mrf.mxu2  ;;  %3643 = vmatpush.msrb.mxu2 %v3602_v11  ;;  %3813 = vmatpush.msrb.mxu0 %v3776_v12 }
 0x2a8   : > { %v2632_v31 = vadd.f32 %v2631_v9, %v2566_v15  ;;  %v2709_v34 = vpop.f32.mrf.mxu3  ;;  %v2569_v54 = vpop.f32.mrf.mxu1  ;;  %v3601_v15 = vld [vmem:[#allocation8 + $0x1a0] sm:$0xff]  ;;  %3730 = vmatpush.msrb.mxu3 %v3687_v30 }
 0x2a9   : > { %3644 = vmatpush.msrb.mxu2 %v3601_v15 }
 0x2aa   : > { %v8560_v60 = vadd.f32 %v2709_v34, %v2632_v31 }
 0x2ab   : > { %v8562_v1 = vpop.f32.mrf.mxu0  ;;  %6522 = vmatmul.msk.f32.gmra.mxu1 %vm2482_vm3, %v8323_v59 }
 0x2ac   : > { %6530 = vmatmul.msk.f32.gmra.mxu2 %vm2482_vm3, %v8321_v52 }
 0x2ad   : > { %6538 = vmatmul.msk.f32.gmra.mxu3 %vm2482_vm3, %v8325_v20  ;;  %v3775_v20 = vld [vmem:[#allocation8 + $0x1f0] sm:$0xff] }
 0x2ae   : > { %6545 = vmatmul.msk.f32.gmra.mxu0 %vm2482_vm3, %v8332_v46  ;;  %v3774_v46 = vld [vmem:[#allocation8 + $0x1e8] sm:$0xff] }
 0x2af   : > { %v2634_v9 = vpop.f32.mrf.mxu2  ;;  %3814 = vmatpush.msrb.mxu0 %v3775_v20 }
 0x2b0   : > { %v2635_v59 = vadd.f32 %v2634_v9, %v2569_v54  ;;  %v2712_v31 = vpop.f32.mrf.mxu3  ;;  %v2572_v52 = vpop.f32.mrf.mxu1  ;;  %v3773_v54 = vld [vmem:[#allocation8 + $0x1e0] sm:$0xff] }
 0x2b1   : > { %3815 = vmatpush.msrb.mxu0 %v3774_v46 }
 0x2b2   : > { %v8572_v34 = vadd.f32 %v2712_v31, %v2635_v59  ;;  %v8602_v31 = vld [vmem:[#allocation2 + $0x47] sm:$0xff] }
 0x2b3   : > { %v8574_v23 = vpop.f32.mrf.mxu0  ;;  %6523 = vmatmul.msk.f32.gmra.mxu1 %vm2482_vm3, %v8341_v17  ;;  %3816 = vmatpush.msrb.mxu0 %v3773_v54 }
 0x2b4   : > { %6531 = vmatmul.msk.f32.gmra.mxu2 %vm2482_vm3, %v8339_v42  ;;  %v3861_v42 = vld [vmem:[#allocation8 + $0x210] sm:$0xff] }
 0x2b5   : > { %6539 = vmatmul.msk.f32.gmra.mxu3 %vm2482_vm3, %v8343_v7  ;;  %3900 = vmatpush.msrb.mxu1 %v3861_v42 }
 0x2b6   : > { %6546 = vmatmul.msk.f32.gmra.mxu0 %vm2482_vm3, %v8350_v21 }
 0x2b7   : > { %v2637_v19 = vpop.f32.mrf.mxu2 }
 0x2b8   : > { %v2638_v11 = vadd.f32 %v2637_v19, %v2572_v52  ;;  %v2715_v18 = vpop.f32.mrf.mxu3  ;;  %v2575_v12 = vpop.f32.mrf.mxu1 }
 0x2ba   : > { %v8584_v15 = vadd.f32 %v2715_v18, %v2638_v11 }
 0x2bb   : > { %v8586_v17 = vpop.f32.mrf.mxu0  ;;  %6524 = vmatmul.msk.f32.gmra.mxu1 %vm2482_vm3, %v8395_v49  ;;  %v8600_v49 = vld [vmem:[#allocation2 + $0x46] sm:$0xff] }
 0x2bc   : > { %6532 = vmatmul.msk.f32.gmra.mxu2 %vm2482_vm3, %v8393_v45  ;;  %v8608_v45 = vld [vmem:[#allocation2 + $0x48] sm:$0xff] }
 0x2bd   : > { %6540 = vmatmul.msk.f32.gmra.mxu3 %vm2482_vm3, %v8397_v14  ;;  %v2623_v14 = vadd.f32 %v8522_v29, %v8510_v47 }
 0x2be   : > { %6547 = vmatmul.msk.f32.gmra.mxu0 %vm2482_vm3, %v8404_v57 }
 0x2bf   : > { %v2640_v7 = vpop.f32.mrf.mxu2  ;;  %v2724_v54 = vadd.f32 %v8524_v25, %v2623_v14  ;;  %v3860_v25 = vld [vmem:[#allocation8 + $0x208] sm:$0xff] }
 0x2c0   : > { %v2641_v21 = vadd.f32 %v2640_v7, %v2575_v12  ;;  %v2718_v30 = vpop.f32.mrf.mxu3  ;;  %v2578_v32 = vpop.f32.mrf.mxu1  ;;  %v8622_v12 = vld [vmem:[#allocation2 + $0x49] sm:$0xff]  ;;  %3901 = vmatpush.msrb.mxu1 %v3860_v25 }
 0x2c1   : > { %v2810_v18 = vadd.f32 %v8526_v56, %v2724_v54 }
 0x2c2   : > { %v8596_v9 = vadd.f32 %v2718_v30, %v2641_v21 }
 0x2c3   : > { %v8598_v59 = vpop.f32.mrf.mxu0  ;;  %6525 = vmatmul.msk.f32.gmra.mxu1 %vm2482_vm3, %v8600_v49 }
 0x2c4   : > { %6533 = vmatmul.msk.f32.gmra.mxu2 %vm2482_vm3, %v8602_v31 }
 0x2c5   : > { %6541 = vmatmul.msk.f32.gmra.mxu3 %vm2482_vm3, %v8608_v45 }
 0x2c6   : > { %6548 = vmatmul.msk.f32.gmra.mxu0 %vm2482_vm3, %v8410_v16 }
 0x2c7   : > { %v2643_v57 = vpop.f32.mrf.mxu2 }
 0x2c8   : > { %v2644_v52 = vadd.f32 %v2643_v57, %v2578_v32  ;;  %v2721_v20 = vpop.f32.mrf.mxu3  ;;  %v2872_v46 = vpop.f32.mrf.mxu1 }
 0x2c9   : > { %v2896_v29 = vadd.f32 %v2872_v46, %v2810_v18 }
 0x2ca   : > { %v8617_v19 = vadd.f32 %v2721_v20, %v2644_v52 }
 0x2cb   : > { %v8619_v11 = vpop.f32.mrf.mxu0  ;;  %6550 = vmatmul.msk.f32.vlgmr.msra.gmra.mxu1 %vm2482_vm3, %v8417_v58  ;;  %v2811_v58 = vadd.f32 %v8538_v50, %v8536_v35  ;;  %v2812_v35 = vadd.f32 %v8550_v3, %v8548_v24 }
 0x2cc   : > { %6558 = vmatmul.msk.f32.vlgmr.msrb.gmra.mxu2 %vm2482_vm3, %v8419_v13 }
 0x2cd   : > { %6566 = vmatmul.msk.f32.vlgmr.msrb.gmra.mxu3 %vm2482_vm3, %v8425_v27 }
 0x2ce   : > { %6549 = vmatmul.msk.f32.gmra.mxu0 %vm2482_vm3, %v8622_v12 }
 0x2cf   : > { %v2958_v16 = vpop.f32.mrf.mxu2 }
 0x2d0   : > { %v2982_v47 = vadd.f32 %v2958_v16, %v2896_v29  ;;  %v3044_v56 = vpop.f32.mrf.mxu3  ;;  %v2875_v42 = vpop.f32.mrf.mxu1  ;;  %v4033_v29 = vld [vmem:[#allocation8 + $0x250] sm:$0xff]  ;;  %v4120_v16 = vld [vmem:[#allocation8 + $0x278] sm:$0xff] }
 0x2d1   : > { %v2897_v13 = vadd.f32 %v2875_v42, %v2811_v58  ;;  %v4206_v42 = vld [vmem:[#allocation8 + $0x298] sm:$0xff]  ;;  %4157 = vmatpush.msra.mxu0 %v4120_v16 }
 0x2d2   : > { %v8632_v7 = vadd.f32 %v3044_v56, %v2982_v47  ;;  %v3945_v47 = vld [vmem:[#allocation8 + $0x220] sm:$0xff] }
 0x2d3   : > { %v8634_v21 = vpop.f32.mrf.mxu0  ;;  %6551 = vmatmul.msk.f32.gmra.mxu1 %vm2482_vm3, %v8430_v28  ;;  %v3859_v28 = vld [vmem:[#allocation8 + $0x200] sm:$0xff] }
 0x2d4   : > { %6559 = vmatmul.msk.f32.gmra.mxu2 %vm2482_vm3, %v8432_v10  ;;  %3902 = vmatpush.msrb.mxu1 %v3859_v28  ;;  %v4031_v56 = vld [vmem:[#allocation8 + $0x240] sm:$0xff] }
 0x2d5   : > { %6567 = vmatmul.msk.f32.gmra.mxu3 %vm2482_vm3, %v8438_v63 }
 0x2d6   : > { %6574 = vmatmul.msk.f32.vlgmr.msrb.gmra.mxu0 %vm2482_vm3, %v8440_v55  ;;  %4243 = vmatpush.msra.mxu1 %v4206_v42 }
 0x2d7   : > { %v2961_v27 = vpop.f32.mrf.mxu2 }
 0x2d8   : > { %v2983_v30 = vadd.f32 %v2961_v27, %v2897_v13  ;;  %v3047_v32 = vpop.f32.mrf.mxu3  ;;  %v2878_v14 = vpop.f32.mrf.mxu1  ;;  %v4119_v27 = vld [vmem:[#allocation8 + $0x270] sm:$0xff] }
 0x2d9   : > { %v2898_v10 = vadd.f32 %v2878_v14, %v2812_v35  ;;  %4158 = vmatpush.msra.mxu0 %v4119_v27 }
 0x2da   : > { %v8646_v57 = vadd.f32 %v3047_v32, %v2983_v30  ;;  %v4118_v30 = vld [vmem:[#allocation8 + $0x268] sm:$0xff]  ;;  %v4117_v32 = vld [vmem:[#allocation8 + $0x260] sm:$0xff] }
 0x2db   : > { %v8648_v50 = vpop.f32.mrf.mxu0  ;;  %6552 = vmatmul.msk.f32.gmra.mxu1 %vm2482_vm3, %v8446_v8  ;;  %v3948_v8 = vld [vmem:[#allocation8 + $0x238] sm:$0xff]  ;;  %4159 = vmatpush.msra.mxu0 %v4118_v30 }
 0x2dc   : > { %6560 = vmatmul.msk.f32.gmra.mxu2 %vm2482_vm3, %v8448_v33  ;;  %v2813_v33 = vadd.f32 %v8562_v1, %v8560_v60 }
 0x2dd   : > { %6568 = vmatmul.msk.f32.gmra.mxu3 %vm2482_vm3, %v8454_v48  ;;  %3985 = vmatpush.msra.mxu2 %v3948_v8  ;;  %v4034_v48 = vld [vmem:[#allocation8 + $0x258] sm:$0xff] }
 0x2de   : > { %6575 = vmatmul.msk.f32.gmra.mxu0 %vm2482_vm3, %v8456_v22  ;;  %4071 = vmatpush.msra.mxu3 %v4034_v48 }
 0x2df   : > { %v2964_v63 = vpop.f32.mrf.mxu2  ;;  %4160 = vmatpush.msra.mxu0 %v4117_v32 }
 0x2e0   : > { %v2984_v55 = vadd.f32 %v2964_v63, %v2898_v10  ;;  %v3050_v52 = vpop.f32.mrf.mxu3  ;;  %v2881_v20 = vpop.f32.mrf.mxu1  ;;  %4072 = vmatpush.msra.mxu3 %v4033_v29 }
 0x2e1   : > { %v2899_v22 = vadd.f32 %v2881_v20, %v2813_v33 }
 0x2e2   : > { %v8660_v3 = vadd.f32 %v3050_v52, %v2984_v55 }
 0x2e3   : > { %v8662_v24 = vpop.f32.mrf.mxu0  ;;  %6553 = vmatmul.msk.f32.gmra.mxu1 %vm2482_vm3, %v8356_v26  ;;  %v3947_v26 = vld [vmem:[#allocation8 + $0x230] sm:$0xff] }
 0x2e4   : > { %6561 = vmatmul.msk.f32.gmra.mxu2 %vm2482_vm3, %v8358_v51  ;;  %v2814_v51 = vadd.f32 %v8574_v23, %v8572_v34 }
 0x2e5   : > { %6569 = vmatmul.msk.f32.gmra.mxu3 %vm2482_vm3, %v8360_v6  ;;  %3986 = vmatpush.msra.mxu2 %v3947_v26  ;;  %v3946_v6 = vld [vmem:[#allocation8 + $0x228] sm:$0xff] }
 0x2e6   : > { %6576 = vmatmul.msk.f32.gmra.mxu0 %vm2482_vm3, %v8466_v61  ;;  %v4032_v61 = vld [vmem:[#allocation8 + $0x248] sm:$0xff] }
 0x2e7   : > { %v2967_v46 = vpop.f32.mrf.mxu2  ;;  %3987 = vmatpush.msra.mxu2 %v3946_v6  ;;  %4073 = vmatpush.msra.mxu3 %v4032_v61  ;;  %v3937_v6 = vld [vmem:[#allocation2 + $0x1f] sm:$0xff] }
 0x2e8   : > { %v2985_v54 = vadd.f32 %v2967_v46, %v2899_v22  ;;  %v3053_v18 = vpop.f32.mrf.mxu3  ;;  %v2884_v25 = vpop.f32.mrf.mxu1  ;;  %v4108_v61 = vld [vmem:[#allocation2 + $0x19] sm:$0xff] }
 0x2e9   : > { %v2900_v58 = vadd.f32 %v2884_v25, %v2814_v51  ;;  %3988 = vmatpush.msra.mxu2 %v3945_v47  ;;  %4074 = vmatpush.msra.mxu3 %v4031_v56  ;;  %v3851_v51 = vld [vmem:[#allocation2 + $0x1e] sm:$0xff] }
 0x2ea   : > { %v8674_v60 = vadd.f32 %v3053_v18, %v2985_v54  ;;  %v3771_v54 = vld [vmem:[#allocation2 + $0x4d] sm:$0xff]  ;;  %v9401_v18 = vld [vmem:[#allocation34_spill] sm:$0xff] }
 0x2eb   : > { %v8676_v1 = vpop.f32.mrf.mxu0  ;;  %6554 = vmatmul.msk.f32.gmra.mxu1 %vm2482_vm3, %v8362_v0 }
 0x2ec   : > { %6562 = vmatmul.msk.f32.gmra.mxu2 %vm2482_vm3, %v8364_v38 }
 0x2ed   : > { %6570 = vmatmul.msk.f32.gmra.mxu3 %vm2482_vm3, %v8378_v39 }
 0x2ee   : > { %6577 = vmatmul.msk.f32.gmra.mxu0 %vm2482_vm3, %v8366_v40  ;;  %v2815_v40 = vadd.f32 %v8586_v17, %v8584_v15 }
 0x2ef   : > { %v2970_v34 = vpop.f32.mrf.mxu2 }
 0x2f0   : > { %v2986_v0 = vadd.f32 %v2970_v34, %v2900_v58  ;;  %v3056_v38 = vpop.f32.mrf.mxu3  ;;  %v2887_v23 = vpop.f32.mrf.mxu1  ;;  %v3852_v58 = vld [vmem:[#allocation2 + $0x26] sm:$0xff] }
 0x2f1   : > { %v2901_v14 = vadd.f32 %v2887_v23, %v2815_v40  ;;  %v3938_v34 = vld [vmem:[#allocation2 + $0x27] sm:$0xff]  ;;  %v4203_v23 = vld [vmem:[#allocation8 + $0x280] sm:$0xff] }
 0x2f2   : > { %v8688_v13 = vadd.f32 %v3056_v38, %v2986_v0  ;;  %v4024_v0 = vld [vmem:[#allocation2 + $0x28] sm:$0xff] }
 0x2f3   : > { %v8690_v39 = vpop.f32.mrf.mxu0  ;;  %6555 = vmatmul.msk.f32.gmra.mxu1 %vm2482_vm3, %v8480_v37  ;;  %v4109_v38 = vld [vmem:[#allocation2 + $0x21] sm:$0xff] }
 0x2f4   : > { %6563 = vmatmul.msk.f32.gmra.mxu2 %vm2482_vm3, %v8482_v36  ;;  %v2816_v36 = vadd.f32 %v8598_v59, %v8596_v9  ;;  %v8718_v59 = vld [vmem:[#allocation2 + $0x4a] sm:$0xff] }
 0x2f5   : > { %6571 = vmatmul.msk.f32.gmra.mxu3 %vm2482_vm3, %v8488_v53 }
 0x2f6   : > { %6578 = vmatmul.msk.f32.gmra.mxu0 %vm2482_vm3, %v8380_v44  ;;  %v4205_v44 = vld [vmem:[#allocation8 + $0x290] sm:$0xff] }
 0x2f7   : > { %v2973_v35 = vpop.f32.mrf.mxu2  ;;  %4244 = vmatpush.msra.mxu1 %v4205_v44 }
 0x2f8   : > { %v2987_v28 = vadd.f32 %v2973_v35, %v2901_v14  ;;  %v3059_v10 = vpop.f32.mrf.mxu3  ;;  %v2890_v15 = vpop.f32.mrf.mxu1  ;;  %v9403_v14 = vld [vmem:[#allocation42_spill] sm:$0xff]  ;;  %v9404_v35 = vld [vmem:[#allocation39_spill] sm:$0xff] }
 0x2f9   : > { %v2902_v53 = vadd.f32 %v2890_v15, %v2816_v36 }
 0x2fa   : > { %v8702_v17 = vadd.f32 %v3059_v10, %v2987_v28  ;;  %v9405_v28 = vld [vmem:[#allocation37_spill] sm:$0xff] }
 0x2fb   : > { %v8704_v37 = vpop.f32.mrf.mxu0  ;;  %6556 = vmatmul.msk.f32.gmra.mxu1 %vm2482_vm3, %v8494_v2  ;;  %v3599_v2 = vld [vmem:[#allocation2 + $0x4b] sm:$0xff]  ;;  %v9406_v10 = vld [vmem:[#allocation33_spill] sm:$0xff] }
 0x2fc   : > { %6564 = vmatmul.msk.f32.gmra.mxu2 %vm2482_vm3, %v8496_v62  ;;  %v2817_v62 = vadd.f32 %v8619_v11, %v8617_v19  ;;  %v3936_v11 = vld [vmem:[#allocation2 + $0x17] sm:$0xff] }
 0x2fd   : > { %6572 = vmatmul.msk.f32.gmra.mxu3 %vm2482_vm3, %v8502_v41 }
 0x2fe   : > { %6579 = vmatmul.msk.f32.gmra.mxu0 %vm2482_vm3, %v8504_v4  ;;  %v3685_v4 = vld [vmem:[#allocation2 + $0x4c] sm:$0xff] }
 0x2ff   : > { %v2976_v63 = vpop.f32.mrf.mxu2 }
 0x300   : > { %v2988_v55 = vadd.f32 %v2976_v63, %v2902_v53  ;;  %v3062_v52 = vpop.f32.mrf.mxu3  ;;  %v2893_v20 = vpop.f32.mrf.mxu1  ;;  %v9407_v53 = vld [vmem:[#allocation32_spill] sm:$0xff]  ;;  %v9408_v63 = vld [vmem:[#allocation38_spill] sm:$0xff] }
 0x301   : > { %v2903_v41 = vadd.f32 %v2893_v20, %v2817_v62  ;;  %v9409_v20 = vld [vmem:[#allocation44_spill] sm:$0xff] }
 0x302   : > { %v8716_v9 = vadd.f32 %v3062_v52, %v2988_v55  ;;  %v4026_v55 = vld [vmem:[#allocation2 + $0x38] sm:$0xff] }
 0x303   : > { %v8722_v8 = vpop.f32.mrf.mxu0  ;;  %6557 = vmatmul.msk.f32.gmra.mxu1 %vm2482_vm3, %v8718_v59 }
 0x304   : > { %9399 = vst [vmem:[#allocation45_spill] sm:$0xff] %v8722_v8  ;;  %6565 = vmatmul.msk.f32.gmra.mxu2 %vm2482_vm3, %v3599_v2 }
 0x305   : > { %6573 = vmatmul.msk.f32.gmra.mxu3 %vm2482_vm3, %v3685_v4  ;;  %v3855_v4 = vld [vmem:[#allocation2 + $0x3e] sm:$0xff] }
 0x306   : > { %6580 = vmatmul.msk.f32.gmra.mxu0 %vm2482_vm3, %v8512_v5  ;;  %v4204_v5 = vld [vmem:[#allocation8 + $0x288] sm:$0xff] }
 0x307   : > { %v2979_v33 = vpop.f32.mrf.mxu2  ;;  %4245 = vmatpush.msra.mxu1 %v4204_v5 }
 0x308   : > { %v2989_v48 = vadd.f32 %v2979_v33, %v2903_v41  ;;  %v3065_v22 = vpop.f32.mrf.mxu3  ;;  %v8730_v46 = vpop.f32.mrf.mxu1  ;;  %v3941_v41 = vld [vmem:[#allocation2 + $0x3f] sm:$0xff] }
 0x309   : > { %4246 = vmatpush.msra.mxu1 %v4203_v23  ;;  %v4027_v33 = vld [vmem:[#allocation2 + $0x40] sm:$0xff] }
 0x30a   : > { %v8732_v19 = vadd.f32 %v3065_v22, %v2989_v48  ;;  %v4112_v48 = vld [vmem:[#allocation2 + $0x39] sm:$0xff] }
 0x30b   : > { %6582 = vmatmul.msk.f32.vlgmr.msrb.gmra.mxu1 %vm2482_vm3, %v8254_v43  ;;  %v8740_v25 = vpop.f32.mrf.mxu0  ;;  %v4023_v43 = vld [vmem:[#allocation2 + $0x20] sm:$0xff] }
 0x30c   : > { %9400 = vst [vmem:[#allocation35_spill] sm:$0xff] %v8732_v19  ;;  %6590 = vmatmul.msk.f32.vlgmr.msra.gmra.mxu2 %vm2482_vm3, %v3936_v11  ;;  %v4194_v23 = vld [vmem:[#allocation2 + $0x1a] sm:$0xff] }
 0x30d   : > { %6598 = vmatmul.msk.f32.vlgmr.msra.gmra.mxu3 %vm2482_vm3, %v9401_v18  ;;  %9402 = vst [vmem:[#allocation40_spill] sm:$0xff] %v8740_v25  ;;  %v4113_v18 = vld [vmem:[#allocation2 + $0x41] sm:$0xff] }
 0x30e   : > { %6581 = vmatmul.msk.f32.gmra.mxu0 %vm2482_vm3, %v3771_v54 }
 0x30f   : > { %v8742_v26 = vpop.f32.mrf.mxu2 }
 0x310   : > { %v8744_v29 = vpop.f32.mrf.mxu1  ;;  %v8748_v16 = vpop.f32.mrf.mxu3 }
 0x313   : > { %6583 = vmatmul.msk.f32.gmra.mxu1 %vm2482_vm3, %v3851_v51  ;;  %v8752_v47 = vpop.f32.mrf.mxu0 }
 0x314   : > { %6591 = vmatmul.msk.f32.gmra.mxu2 %vm2482_vm3, %v3937_v6 }
 0x315   : > { %6599 = vmatmul.msk.f32.gmra.mxu3 %vm2482_vm3, %v4023_v43 }
 0x316   : > { %6606 = vmatmul.msk.f32.vlgmr.msra.gmra.mxu0 %vm2482_vm3, %v4108_v61  ;;  %v4029_v61 = vld [vmem:[#allocation2 + $0x50] sm:$0xff] }
 0x317   : > { %v8754_v56 = vpop.f32.mrf.mxu2 }
 0x318   : > { %v8756_v42 = vpop.f32.mrf.mxu1  ;;  %v8762_v27 = vpop.f32.mrf.mxu3 }
 0x31b   : > { %6584 = vmatmul.msk.f32.gmra.mxu1 %vm2482_vm3, %v3852_v58  ;;  %v8766_v30 = vpop.f32.mrf.mxu0  ;;  %v3857_v58 = vld [vmem:[#allocation2 + $0x4e] sm:$0xff] }
 0x31c   : > { %6592 = vmatmul.msk.f32.gmra.mxu2 %vm2482_vm3, %v3938_v34 }
 0x31d   : > { %6600 = vmatmul.msk.f32.gmra.mxu3 %vm2482_vm3, %v4024_v0  ;;  %v4115_v0 = vld [vmem:[#allocation2 + $0x51] sm:$0xff] }
 0x31e   : > { %6607 = vmatmul.msk.f32.gmra.mxu0 %vm2482_vm3, %v4109_v38 }
 0x31f   : > { %v8768_v32 = vpop.f32.mrf.mxu2 }
 0x320   : > { %v8764_v40 = vpop.f32.mrf.mxu1  ;;  %v8778_v15 = vpop.f32.mrf.mxu3 }
 0x323   : > { %6585 = vmatmul.msk.f32.gmra.mxu1 %vm2482_vm3, %v9403_v14  ;;  %v8782_v44 = vpop.f32.mrf.mxu0 }
 0x324   : > { %6593 = vmatmul.msk.f32.gmra.mxu2 %vm2482_vm3, %v9404_v35 }
 0x325   : > { %6601 = vmatmul.msk.f32.gmra.mxu3 %vm2482_vm3, %v9405_v28 }
 0x326   : > { %6608 = vmatmul.msk.f32.gmra.mxu0 %vm2482_vm3, %v9406_v10 }
 0x327   : > { %v8788_v52 = vpop.f32.mrf.mxu2 }
 0x328   : > { %v8780_v36 = vpop.f32.mrf.mxu1  ;;  %v8795_v62 = vpop.f32.mrf.mxu3 }
 0x32b   : > { %6586 = vmatmul.msk.f32.gmra.mxu1 %vm2482_vm3, %v9407_v53  ;;  %v8801_v22 = vpop.f32.mrf.mxu0 }
 0x32c   : > { %6594 = vmatmul.msk.f32.gmra.mxu2 %vm2482_vm3, %v9408_v63 }
 0x32d   : > { %6602 = vmatmul.msk.f32.gmra.mxu3 %vm2482_vm3, %v4026_v55  ;;  %v9419_v55 = vld [vmem:[#allocation43_spill] sm:$0xff] }
 0x32e   : > { %6609 = vmatmul.msk.f32.gmra.mxu0 %vm2482_vm3, %v9409_v20 }
 0x32f   : > { %v8803_v11 = vpop.f32.mrf.mxu2 }
 0x330   : > { %v8793_v2 = vpop.f32.mrf.mxu1  ;;  %v8811_v5 = vpop.f32.mrf.mxu3 }
 0x333   : > { %6587 = vmatmul.msk.f32.gmra.mxu1 %vm2482_vm3, %v3855_v4  ;;  %v8816_v51 = vpop.f32.mrf.mxu0 }
 0x334   : > { %6595 = vmatmul.msk.f32.gmra.mxu2 %vm2482_vm3, %v3941_v41 }
 0x335   : > { %6603 = vmatmul.msk.f32.gmra.mxu3 %vm2482_vm3, %v4027_v33  ;;  %v9421_v33 = vld [vmem:[#allocation36_spill] sm:$0xff] }
 0x336   : > { %6610 = vmatmul.msk.f32.gmra.mxu0 %vm2482_vm3, %v4112_v48 }
 0x337   : > { %v8818_v6 = vpop.f32.mrf.mxu2 }
 0x338   : > { %v8805_v54 = vpop.f32.mrf.mxu1 }
 0x339   : > { %9410 = vst [vmem:[#allocation31_spill] sm:$0xff] %v8805_v54 }
 0x33b   : > { %6588 = vmatmul.msk.f32.gmra.mxu1 %vm2482_vm3, %v8600_v49  ;;  %v3943_v49 = vld [vmem:[#allocation2 + $0x4f] sm:$0xff]  ;;  %v8831_v34 = vpop.f32.mrf.mxu0 }
 0x33c   : > { %6596 = vmatmul.msk.f32.gmra.mxu2 %vm2482_vm3, %v8602_v31  ;;  %v8827_v31 = vpop.f32.mrf.mxu3  ;;  %9413 = vst [vmem:[#allocation30_spill] sm:$0xff] %v8831_v34 }
 0x33d   : > { %6604 = vmatmul.msk.f32.gmra.mxu3 %vm2482_vm3, %v8608_v45  ;;  %9412 = vst [vmem:[#allocation47_spill] sm:$0xff] %v8827_v31 }
 0x33e   : > { %6611 = vmatmul.msk.f32.gmra.mxu0 %vm2482_vm3, %v4113_v18 }
 0x33f   : > { %v8833_v38 = vpop.f32.mrf.mxu2 }
 0x340   : > { %v8820_v43 = vpop.f32.mrf.mxu1  ;;  %9414 = vst [vmem:[#allocation48_spill] sm:$0xff] %v8833_v38 }
 0x341   : > { %9411 = vst [vmem:[#allocation46_spill] sm:$0xff] %v8820_v43  ;;  %v4201_v43 = vld [vmem:[#allocation2 + $0x52] sm:$0xff] }
 0x343   : > { %6589 = vmatmul.msk.f32.gmra.mxu1 %vm2482_vm3, %v3857_v58  ;;  %v8841_v28 = vpop.f32.mrf.mxu0 }
 0x344   : > { %6597 = vmatmul.msk.f32.gmra.mxu2 %vm2482_vm3, %v3943_v49  ;;  %v8837_v14 = vpop.f32.mrf.mxu3  ;;  %9416 = vst [vmem:[#allocation49_spill] sm:$0xff] %v8841_v28  ;;  %v4198_v49 = vld [vmem:[#allocation2 + $0x3a] sm:$0xff] }
 0x345   : > { %6605 = vmatmul.msk.f32.gmra.mxu3 %vm2482_vm3, %v4029_v61  ;;  %9415 = vst [vmem:[#allocation41_spill] sm:$0xff] %v8837_v14 }
 0x346   : > { %6612 = vmatmul.msk.f32.gmra.mxu0 %vm2482_vm3, %v8622_v12  ;;  %v4195_v12 = vld [vmem:[#allocation2 + $0x22] sm:$0xff] }
 0x347   : > { %v8844_v10 = vpop.f32.mrf.mxu2 }
 0x348   : > { %v8829_v45 = vpop.f32.mrf.mxu1  ;;  %9417 = vst [vmem:[#allocation50_spill] sm:$0xff] %v8844_v10 }
 0x34b   : > { %6614 = vmatmul.msk.f32.vlgmr.msra.gmra.mxu1 %vm2482_vm3, %v4194_v23  ;;  %v8852_v20 = vpop.f32.mrf.mxu0 }
 0x34c   : > { %v8848_v63 = vpop.f32.mrf.mxu3  ;;  %9420 = vst [vmem:[#allocation34_spill] sm:$0xff] %v8852_v20  ;;  %v4199_v20 = vld [vmem:[#allocation2 + $0x42] sm:$0xff] }
 0x34d   : > { %9418 = vst [vmem:[#allocation51_spill] sm:$0xff] %v8848_v63 }
 0x34e   : > { %6613 = vmatmul.msk.f32.gmra.mxu0 %vm2482_vm3, %v4115_v0 }
 0x34f   : > { %v3646_v4 = vpop.f32.mrf.mxu2 }
 0x350   : > { %v8839_v35 = vpop.f32.mrf.mxu1 }
 0x353   : > { %6615 = vmatmul.msk.f32.gmra.mxu1 %vm2482_vm3, %v4195_v12  ;;  %v8858_v18 = vpop.f32.mrf.mxu0 }
 0x354   : > { %v3732_v48 = vpop.f32.mrf.mxu3 }
 0x357   : > { %v8860_v61 = vpop.f32.mrf.mxu2 }
 0x358   : > { %v8846_v53 = vpop.f32.mrf.mxu1 }
 0x35b   : > { %6616 = vmatmul.msk.f32.gmra.mxu1 %vm2482_vm3, %v9419_v55  ;;  %v8869_v12 = vpop.f32.mrf.mxu0 }
 0x35c   : > { %v8865_v0 = vpop.f32.mrf.mxu3 }
 0x35f   : > { %v8871_v55 = vpop.f32.mrf.mxu2 }
 0x360   : > { %v8854_v41 = vpop.f32.mrf.mxu1 }
 0x363   : > { %6617 = vmatmul.msk.f32.gmra.mxu1 %vm2482_vm3, %v9421_v33  ;;  %v8878_v10 = vpop.f32.mrf.mxu0 }
 0x364   : > { %v8874_v33 = vpop.f32.mrf.mxu3 }
 0x368   : > { %v8862_v58 = vpop.f32.mrf.mxu1 }
 0x36b   : > { %6618 = vmatmul.msk.f32.gmra.mxu1 %vm2482_vm3, %v4198_v49  ;;  %v8882_v49 = vpop.f32.mrf.mxu2  ;;  %v8889_v25 = vpop.f32.mrf.mxu0 }
 0x36c   : > { %v8886_v14 = vpop.f32.mrf.mxu3  ;;  %9425 = vst [vmem:[#allocation33_spill] sm:$0xff] %v8889_v25 }
 0x370   : > { %v8867_v23 = vpop.f32.mrf.mxu1 }
 0x371   : > { %9422 = vst [vmem:[#allocation42_spill] sm:$0xff] %v8867_v23 }
 0x373   : > { %6619 = vmatmul.msk.f32.gmra.mxu1 %vm2482_vm3, %v4199_v20  ;;  %v8891_v20 = vpop.f32.mrf.mxu2  ;;  %v8895_v23 = vpop.f32.mrf.mxu0 }
 0x374   : > { %9426 = vst [vmem:[#allocation32_spill] sm:$0xff] %v8891_v20 }
 0x375   : > { %9428 = vst [vmem:[#allocation44_spill] sm:$0xff] %v8895_v23  ;;  %v4364_v23 = vld [vmem:[#allocation11 + $0x38] sm:$0xff] }
 0x376   : > { %4389 = vmatpush.msrb.mxu2 %v4364_v23 }
 0x378   : > { %v8876_v63 = vpop.f32.mrf.mxu1 }
 0x379   : > { %9423 = vst [vmem:[#allocation39_spill] sm:$0xff] %v8876_v63  ;;  %v8893_v63 = vpop.f32.mrf.mxu3 }
 0x37a   : > { %9427 = vst [vmem:[#allocation38_spill] sm:$0xff] %v8893_v63  ;;  %v3154_v63 = vadd.f32 %v8634_v21, %v8632_v7 }
 0x37b   : > { %6620 = vmatmul.msk.f32.gmra.mxu1 %vm2482_vm3, %v8718_v59  ;;  %v8897_v38 = vpop.f32.mrf.mxu2  ;;  %v8903_v54 = vpop.f32.mrf.mxu0 }
 0x37c   : > { %9429 = vst [vmem:[#allocation43_spill] sm:$0xff] %v8897_v38 }
 0x37d   : > { %9431 = vst [vmem:[#allocation52_spill] sm:$0xff] %v8903_v54 }
 0x380   : > { %v8884_v28 = vpop.f32.mrf.mxu1 }
 0x381   : > { %9424 = vst [vmem:[#allocation37_spill] sm:$0xff] %v8884_v28  ;;  %v8899_v34 = vpop.f32.mrf.mxu3 }
 0x382   : > { %9430 = vst [vmem:[#allocation36_spill] sm:$0xff] %v8899_v34  ;;  %v3240_v34 = vadd.f32 %v8730_v46, %v3154_v63 }
 0x383   : > { %6621 = vmatmul.msk.f32.gmra.mxu1 %vm2482_vm3, %v4201_v43  ;;  %v8905_v31 = vpop.f32.mrf.mxu2  ;;  %v8913_v20 = vpop.f32.mrf.mxu0 }
 0x384   : > { %9432 = vst [vmem:[#allocation53_spill] sm:$0xff] %v8905_v31  ;;  %v3326_v8 = vadd.f32 %v8742_v26, %v3240_v34  ;;  %v3156_v34 = vadd.f32 %v8662_v24, %v8660_v3  ;;  %v3157_v3 = vadd.f32 %v8676_v1, %v8674_v60 }
 0x385   : > { %9435 = vst [vmem:[#allocation56_spill] sm:$0xff] %v8913_v20 }
 0x388   : > { %v3904_v19 = vpop.f32.mrf.mxu1 }
 0x389   : > { %v8907_v43 = vpop.f32.mrf.mxu3 }
 0x38a   : > { %9433 = vst [vmem:[#allocation54_spill] sm:$0xff] %v8907_v43  ;;  %v3155_v43 = vadd.f32 %v8648_v50, %v8646_v57 }
 0x38b   : > { %v8915_v38 = vpop.f32.mrf.mxu2  ;;  %v8927_v21 = vpop.f32.mrf.mxu0 }
 0x38c   : > { %v3241_v7 = vadd.f32 %v8744_v29, %v3155_v43  ;;  %v3242_v29 = vadd.f32 %v8756_v42, %v3156_v34 }
 0x38e   : > { %v3327_v46 = vadd.f32 %v8754_v56, %v3241_v7  ;;  %v3328_v43 = vadd.f32 %v8768_v32, %v3242_v29 }
 0x390   : > { %v3907_v59 = vpop.f32.mrf.mxu1  ;;  %v3413_v57 = vadd.f32 %v8762_v27, %v3327_v46  ;;  %v3414_v24 = vadd.f32 %v8778_v15, %v3328_v43  ;;  %v3158_v15 = vadd.f32 %v8690_v39, %v8688_v13  ;;  %v4617_v43 = vld [vmem:[#allocation11 + $0xb8] sm:$0xff] }
 0x391   : > { %v8921_v31 = vpop.f32.mrf.mxu3  ;;  %4642 = vmatpush.msrb.mxu1 %v4617_v43 }
 0x393   : > { %v3990_v20 = vpop.f32.mrf.mxu2 }
 0x398   : > { %v8901_v28 = vpop.f32.mrf.mxu1 }
 0x39b   : > { %v3993_v56 = vpop.f32.mrf.mxu2 }
 0x3a0   : > { %v8909_v25 = vpop.f32.mrf.mxu1 }
 0x3a1   : > { %9434 = vst [vmem:[#allocation55_spill] sm:$0xff] %v8909_v25  ;;  %v3412_v25 = vadd.f32 %v8748_v16, %v3326_v8  ;;  %v4076_v8 = vpop.f32.mrf.mxu3  ;;  %v3499_v16 = vadd.f32 %v8766_v30, %v3413_v57  ;;  %v3243_v30 = vadd.f32 %v8764_v40, %v3157_v3 }
 0x3a3   : > { %v3498_v23 = vadd.f32 %v8752_v47, %v3412_v25  ;;  %v4162_v47 = vpop.f32.mrf.mxu0  ;;  %v3329_v32 = vadd.f32 %v8788_v52, %v3243_v30  ;;  %v3996_v40 = vpop.f32.mrf.mxu2 }
 0x3a5   : > { %v3584_v26 = vadd.f32 %v8829_v45, %v3498_v23  ;;  %v3585_v45 = vadd.f32 %v8839_v35, %v3499_v16  ;;  %v3500_v23 = vadd.f32 %v8782_v44, %v3414_v24  ;;  %v4563_v16 = vld [vmem:[#allocation11 + $0x98] sm:$0xff] }
 0x3a6   : > { %4588 = vmatpush.msrb.mxu0 %v4563_v16  ;;  %v9444_v16 = vld [vmem:[#allocation38_spill] sm:$0xff] }
 0x3a7   : > { %v3670_v50 = vadd.f32 %v3646_v4, %v3584_v26  ;;  %v3671_v42 = vadd.f32 %v8860_v61, %v3585_v45  ;;  %v3586_v60 = vadd.f32 %v8846_v53, %v3500_v23  ;;  %v4355_v61 = vld [vmem:[#allocation11 + $0x18] sm:$0xff]  ;;  %v4616_v45 = vld [vmem:[#allocation11 + $0xb0] sm:$0xff]  ;;  %v4352_v23 = vld [vmem:[#allocation11] sm:$0xff] }
 0x3a8   : > { %v8919_v54 = vpop.f32.mrf.mxu1  ;;  %4430 = vmatpush.msrb.mxu3 %v4355_v61  ;;  %4643 = vmatpush.msrb.mxu1 %v4616_v45 }
 0x3a9   : > { %v3756_v25 = vadd.f32 %v3732_v48, %v3670_v50  ;;  %v4079_v48 = vpop.f32.mrf.mxu3  ;;  %v3757_v46 = vadd.f32 %v8865_v0, %v3671_v42  ;;  %v3672_v44 = vadd.f32 %v8871_v55, %v3586_v60  ;;  %v3244_v0 = vadd.f32 %v8780_v36, %v3158_v15  ;;  %v8964_v50 = vld [vmem:[#allocation9] ss:$0 sm:$0xff]  ;;  %v9436_v60 = vld [vmem:[#allocation45_spill] sm:$0xff]  ;;  %v9437_v15 = vld [vmem:[#allocation47_spill] sm:$0xff] }
 0x3aa   : > { %v3159_v36 = vadd.f32 %v8704_v37, %v8702_v17 }
 0x3ab   : > { %v3842_v27 = vadd.f32 %v8858_v18, %v3756_v25  ;;  %v4165_v1 = vpop.f32.mrf.mxu0  ;;  %v3415_v18 = vadd.f32 %v8795_v62, %v3329_v32  ;;  %v3843_v52 = vadd.f32 %v8869_v12, %v3757_v46  ;;  %v3330_v57 = vadd.f32 %v8803_v11, %v3244_v0  ;;  %v3999_v24 = vpop.f32.mrf.mxu2  ;;  %v4560_v46 = vld [vmem:[#allocation11 + $0x80] sm:$0xff] }
 0x3ac   : > { %v3758_v13 = vadd.f32 %v8874_v33, %v3672_v44  ;;  %v3245_v3 = vadd.f32 %v8793_v2, %v3159_v36  ;;  %v4615_v2 = vld [vmem:[#allocation11 + $0xa8] sm:$0xff] }
 0x3ad   : > { %v3928_v4 = vadd.f32 %v3904_v19, %v3842_v27  ;;  %v4363_v19 = vld [vmem:[#allocation11 + $0x30] sm:$0xff]  ;;  %v3501_v53 = vadd.f32 %v8801_v22, %v3415_v18  ;;  %v3416_v22 = vadd.f32 %v8811_v5, %v3330_v57  ;;  %v4362_v5 = vld [vmem:[#allocation11 + $0x28] sm:$0xff]  ;;  %4644 = vmatpush.msrb.mxu1 %v4615_v2 }
 0x3ae   : > { %4390 = vmatpush.msrb.mxu2 %v4363_v19  ;;  %v3844_v33 = vadd.f32 %v8878_v10, %v3758_v13  ;;  %v4561_v10 = vld [vmem:[#allocation11 + $0x88] sm:$0xff]  ;;  %v3331_v42 = vadd.f32 %v8818_v6, %v3245_v3  ;;  %v9438_v19 = vld [vmem:[#allocation33_spill] sm:$0xff]  ;;  %v9441_v57 = vld [vmem:[#allocation55_spill] sm:$0xff] }
 0x3af   : > { %v4014_v35 = vadd.f32 %v3990_v20, %v3928_v4  ;;  %v3929_v20 = vadd.f32 %v3907_v59, %v3843_v52  ;;  %v3587_v12 = vadd.f32 %v8854_v41, %v3501_v53  ;;  %v3502_v27 = vadd.f32 %v8816_v51, %v3416_v22  ;;  %v4614_v51 = vld [vmem:[#allocation11 + $0xa0] sm:$0xff]  ;;  %v9439_v52 = vld [vmem:[#allocation32_spill] sm:$0xff] }
 0x3b0   : > { %v8931_v63 = vpop.f32.mrf.mxu1  ;;  %v3930_v17 = vadd.f32 %v8901_v28, %v3844_v33  ;;  %4391 = vmatpush.msrb.mxu2 %v4362_v5  ;;  %v4361_v28 = vld [vmem:[#allocation11 + $0x20] sm:$0xff]  ;;  %4645 = vmatpush.msrb.mxu1 %v4614_v51  ;;  %v3417_v18 = vadd.f32 %v9437_v15, %v3331_v42  ;;  %v9445_v33 = vld [vmem:[#allocation42_spill] sm:$0xff] }
 0x3b1   : > { %v4100_v34 = vadd.f32 %v4076_v8, %v4014_v35  ;;  %v4015_v62 = vadd.f32 %v3993_v56, %v3929_v20  ;;  %v4082_v29 = vpop.f32.mrf.mxu3  ;;  %v3673_v11 = vadd.f32 %v8882_v49, %v3587_v12  ;;  %v4562_v56 = vld [vmem:[#allocation11 + $0x90] sm:$0xff]  ;;  %v4353_v49 = vld [vmem:[#allocation11 + $0x8] sm:$0xff]  ;;  %v3588_v6 = vadd.f32 %v8862_v58, %v3502_v27  ;;  %v9448_v3 = vld [vmem:[#allocation41_spill] sm:$0xff] }
 0x3b2   : > { %4589 = vmatpush.msrb.mxu0 %v4562_v56  ;;  %v4016_v32 = vadd.f32 %v3996_v40, %v3930_v17  ;;  %4392 = vmatpush.msrb.mxu2 %v4361_v28  ;;  %v9440_v20 = vld [vmem:[#allocation31_spill] sm:$0xff]  ;;  %v9447_v56 = vld [vmem:[#allocation40_spill] sm:$0xff]  ;;  %v9453_v28 = vld [vmem:[#allocation50_spill] sm:$0xff] }
 0x3b3   : > { %v4186_v39 = vadd.f32 %v4162_v47, %v4100_v34  ;;  %v4101_v59 = vadd.f32 %v4079_v48, %v4015_v62  ;;  %v4168_v25 = vpop.f32.mrf.mxu0  ;;  %v4354_v47 = vld [vmem:[#allocation11 + $0x10] sm:$0xff]  ;;  %v3759_v30 = vadd.f32 %v8886_v14, %v3673_v11  ;;  %v3674_v44 = vadd.f32 %v9439_v52, %v3588_v6  ;;  %v9442_v62 = vld [vmem:[#allocation30_spill] sm:$0xff] }
 0x3b4   : > { %4431 = vmatpush.msrb.mxu3 %v4354_v47  ;;  %4590 = vmatpush.msrb.mxu0 %v4561_v10  ;;  %v4102_v34 = vadd.f32 %v4082_v29, %v4016_v32  ;;  %v3503_v12 = vadd.f32 %v9442_v62, %v3417_v18  ;;  %v9446_v47 = vld [vmem:[#allocation35_spill] sm:$0xff]  ;;  %v9452_v32 = vld [vmem:[#allocation49_spill] sm:$0xff] }
 0x3b5   : > { %v4187_v4 = vadd.f32 %v4165_v1, %v4101_v59  ;;  %v3160_v1 = vadd.f32 %v9436_v60, %v8716_v9  ;;  %v3845_v61 = vadd.f32 %v9438_v19, %v3759_v30  ;;  %v9443_v9 = vld [vmem:[#allocation48_spill] sm:$0xff]  ;;  %v3760_v43 = vadd.f32 %v9444_v16, %v3674_v44  ;;  %v9455_v18 = vld [vmem:[#allocation39_spill] sm:$0xff]  ;;  %v9456_v44 = vld [vmem:[#allocation53_spill] sm:$0xff] }
 0x3b6   : > { %4432 = vmatpush.msrb.mxu3 %v4353_v49  ;;  %4591 = vmatpush.msrb.mxu0 %v4560_v46  ;;  %v4188_v36 = vadd.f32 %v4168_v25, %v4102_v34  ;;  %v3589_v59 = vadd.f32 %v9445_v33, %v3503_v12  ;;  %v3161_v45 = vadd.f32 %v9447_v56, %v9446_v47  ;;  %v9450_v49 = vld [vmem:[#allocation43_spill] sm:$0xff]  ;;  %v9454_v46 = vld [vmem:[#allocation36_spill] sm:$0xff]  ;;  %v9459_v12 = vld [vmem:[#allocation54_spill] sm:$0xff] }
 0x3b7   : > { %v3246_v53 = vadd.f32 %v9440_v20, %v3160_v1  ;;  %v3931_v58 = vadd.f32 %v9441_v57, %v3845_v61 }
 0x3b8   : > { %v8940_v7 = vpop.f32.mrf.mxu1  ;;  %4433 = vmatpush.msrb.mxu3 %v4352_v23  ;;  %v3675_v10 = vadd.f32 %v9450_v49, %v3589_v59 }
 0x3b9   : > { %v4085_v40 = vpop.f32.mrf.mxu3  ;;  %v4017_v22 = vadd.f32 %v3999_v24, %v3931_v58  ;;  %v9451_v24 = vld [vmem:[#allocation46_spill] sm:$0xff] }
 0x3ba   : > { %v3247_v42 = vadd.f32 %v9451_v24, %v3161_v45 }
 0x3bb   : > { %v4171_v13 = vpop.f32.mrf.mxu0  ;;  %v4103_v27 = vadd.f32 %v4085_v40, %v4017_v22 }
 0x3bc   : > { %v3333_v23 = vadd.f32 %v9453_v28, %v3247_v42 }
 0x3bd   : > { %v4189_v51 = vadd.f32 %v4171_v13, %v4103_v27 }
 0x3c0   : > { %v8952_v26 = vpop.f32.mrf.mxu1 }
 0x3c1   : > { %v4088_v30 = vpop.f32.mrf.mxu3 }
 0x3c8   : > { %v4248_v55 = vpop.f32.mrf.mxu1 }
 0x3c9   : > { %v4272_v8 = vadd.f32 %v4248_v55, %v4186_v39  ;;  %v3332_v55 = vadd.f32 %v9443_v9, %v3246_v53  ;;  %v9458_v53 = vld [vmem:[#allocation52_spill] sm:$0xff] }
 0x3cb   : > { %v4284_v41 = vadd.f32 %v8964_v50, %v4272_v8  ;;  %v4002_v8 = vpop.f32.mrf.mxu2  ;;  %v3418_v17 = vadd.f32 %v9448_v3, %v3332_v55  ;;  %v4091_v55 = vpop.f32.mrf.mxu3 }
 0x3cd   : > { %vm4292_vm12 = vcmp.gt.f32.partialorder %v4284_v41, 0.0  ;;  %v4300_v37 = vmul.f32 0.3, %v4284_v41 }
 0x3cf   : > { %v4308_v48 = vsel %vm4292_vm12, %v4284_v41, %v4300_v37  ;;  %v9449_v37 = vld [vmem:[#allocation44_spill] sm:$0xff] }
 0x3d0   : > { %4316 = vst.msk [vmem:[#allocation3] sm:$0xff] %vm2482_vm3, %v4308_v48  ;;  %v4251_v35 = vpop.f32.mrf.mxu1  ;;  %v3846_v5 = vadd.f32 %v9449_v37, %v3760_v43  ;;  %v3504_v48 = vadd.f32 %v9452_v32, %v3418_v17 }
 0x3d1   : > { %v4273_v14 = vadd.f32 %v4251_v35, %v4187_v4  ;;  %v3761_v35 = vadd.f32 %v9454_v46, %v3675_v10  ;;  %v4455_v46 = vld [vmem:[#allocation11 + $0x58] sm:$0xff] }
 0x3d2   : > { %v3932_v2 = vadd.f32 %v8919_v54, %v3846_v5  ;;  %v3590_v40 = vadd.f32 %v9455_v18, %v3504_v48  ;;  %4480 = vmatpush.msra.mxu2 %v4455_v46 }
 0x3d3   : > { %v4285_v0 = vadd.f32 %v8964_v50, %v4273_v14  ;;  %v4174_v14 = vpop.f32.mrf.mxu0  ;;  %v4005_v19 = vpop.f32.mrf.mxu2  ;;  %v3847_v57 = vadd.f32 %v9458_v53, %v3761_v35  ;;  %v4454_v35 = vld [vmem:[#allocation11 + $0x50] sm:$0xff] }
 0x3d4   : > { %v4018_v6 = vadd.f32 %v4002_v8, %v3932_v2  ;;  %v3676_v34 = vadd.f32 %v9456_v44, %v3590_v40  ;;  %v9460_v8 = vld [vmem:[#allocation34_spill] sm:$0xff]  ;;  %v4094_v48 = vpop.f32.mrf.mxu3  ;;  %4481 = vmatpush.msra.mxu2 %v4454_v35 }
 0x3d5   : > { %vm4293_vm13 = vcmp.gt.f32.partialorder %v4285_v0, 0.0  ;;  %v4301_v39 = vmul.f32 0.3, %v4285_v0 }
 0x3d6   : > { %v4104_v58 = vadd.f32 %v4088_v30, %v4018_v6  ;;  %v3762_v9 = vadd.f32 %v9459_v12, %v3676_v34  ;;  %v4778_v12 = vld [vmem:[#allocation11 + $0x110] sm:$0xff] }
 0x3d7   : > { %v4309_v11 = vsel %vm4293_vm13, %v4285_v0, %v4301_v39  ;;  %v9457_v0 = vld [vmem:[#allocation51_spill] sm:$0xff]  ;;  %v3933_v39 = vadd.f32 %v8931_v63, %v3847_v57  ;;  %v9462_v63 = vld [vmem:[#allocation56_spill] sm:$0xff] }
 0x3d8   : > { %4317 = vst.msk [vmem:[#allocation3 + $0x8] sm:$0xff] %vm2482_vm3, %v4309_v11  ;;  %v4254_v29 = vpop.f32.mrf.mxu1  ;;  %v3419_v20 = vadd.f32 %v9457_v0, %v3333_v23  ;;  %v4190_v43 = vadd.f32 %v4174_v14, %v4104_v58  ;;  %v3848_v45 = vadd.f32 %v9462_v63, %v3762_v9  ;;  %v4452_v0 = vld [vmem:[#allocation11 + $0x40] sm:$0xff]  ;;  %v4509_v57 = vld [vmem:[#allocation11 + $0x78] sm:$0xff]  ;;  %v4832_v9 = vld [vmem:[#allocation11 + $0x130] sm:$0xff] }
 0x3d9   : > { %v4274_v41 = vadd.f32 %v4254_v29, %v4188_v36  ;;  %v4019_v36 = vadd.f32 %v4005_v19, %v3933_v39  ;;  %v9461_v29 = vld [vmem:[#allocation37_spill] sm:$0xff]  ;;  %v4779_v58 = vld [vmem:[#allocation11 + $0x118] sm:$0xff]  ;;  %4534 = vmatpush.msra.mxu3 %v4509_v57 }
 0x3da   : > { %v3505_v16 = vadd.f32 %v9460_v8, %v3419_v20  ;;  %v3934_v27 = vadd.f32 %v8940_v7, %v3848_v45  ;;  %4804 = vmatpush.msra.mxu0 %v4779_v58  ;;  %v4507_v8 = vld [vmem:[#allocation11 + $0x68] sm:$0xff]  ;;  %v4671_v45 = vld [vmem:[#allocation11 + $0xd8] sm:$0xff] }
 0x3db   : > { %v4286_v25 = vadd.f32 %v8964_v50, %v4274_v41  ;;  %v4177_v3 = vpop.f32.mrf.mxu0  ;;  %v4008_v17 = vpop.f32.mrf.mxu2  ;;  %v4105_v49 = vadd.f32 %v4091_v55, %v4019_v36 }
 0x3dc   : > { %v3591_v33 = vadd.f32 %v9461_v29, %v3505_v16  ;;  %v4020_v30 = vadd.f32 %v4008_v17, %v3934_v27  ;;  %v4777_v16 = vld [vmem:[#allocation11 + $0x108] sm:$0xff]  ;;  %4805 = vmatpush.msra.mxu0 %v4778_v12 }
 0x3dd   : > { %vm4294_vm14 = vcmp.gt.f32.partialorder %v4286_v25, 0.0  ;;  %v4302_v4 = vmul.f32 0.3, %v4286_v25  ;;  %v4191_v42 = vadd.f32 %v4177_v3, %v4105_v49 }
 0x3de   : > { %v3677_v5 = vadd.f32 %v8915_v38, %v3591_v33  ;;  %v4506_v33 = vld [vmem:[#allocation11 + $0x60] sm:$0xff]  ;;  %4806 = vmatpush.msra.mxu0 %v4777_v16 }
 0x3df   : > { %v4324_v60 = vld [vmem:[#allocation3] ss:$2 sm:$0xff]  ;;  %v4332_v1 = vld [vmem:[#allocation3 + $0x1] ss:$2 sm:$0xff]  ;;  %v4310_v15 = vsel %vm4294_vm14, %v4286_v25, %v4302_v4 }
 0x3e0   : > { %v4339_v61 = vmax.f32 %v4324_v60, %v4332_v1  ;;  %4318 = vst.msk [vmem:[#allocation3 + $0x10] sm:$0xff] %vm2482_vm3, %v4310_v15  ;;  %v4257_v54 = vpop.f32.mrf.mxu1  ;;  %v3763_v24 = vadd.f32 %v8921_v31, %v3677_v5  ;;  %v4453_v60 = vld [vmem:[#allocation11 + $0x48] sm:$0xff] }
 0x3e1   : > { %v4275_v52 = vadd.f32 %v4257_v54, %v4189_v51  ;;  %v4106_v51 = vadd.f32 %v4094_v48, %v4020_v30  ;;  %4482 = vmatpush.msra.mxu2 %v4453_v60  ;;  %v4669_v30 = vld [vmem:[#allocation11 + $0xc8] sm:$0xff] }
 0x3e2   : > { %4343 = vst.msk [vmem:[#allocation2 + $0x10] sm:$0xff] %vm2482_vm3, %v4339_v61  ;;  %v3849_v7 = vadd.f32 %v8927_v21, %v3763_v24  ;;  %v4097_v61 = vpop.f32.mrf.mxu3 }
 0x3e3   : > { %v4287_v13 = vadd.f32 %v8964_v50, %v4275_v52  ;;  %v4180_v6 = vpop.f32.mrf.mxu0  ;;  %v4011_v14 = vpop.f32.mrf.mxu2  ;;  %4483 = vmatpush.msra.mxu2 %v4452_v0 }
 0x3e4   : > { %v3935_v1 = vadd.f32 %v8952_v26, %v3849_v7  ;;  %v4192_v18 = vadd.f32 %v4180_v6, %v4106_v51  ;;  %v4723_v7 = vld [vmem:[#allocation11 + $0xe8] sm:$0xff] }
 0x3e5   : > { %vm4295_vm15 = vcmp.gt.f32.partialorder %v4287_v13, 0.0  ;;  %v4303_v62 = vmul.f32 0.3, %v4287_v13 }
 0x3e6   : > { %v4021_v40 = vadd.f32 %v4011_v14, %v3935_v1  ;;  %v9463_v14 = vmov 0.0  }
 0x3e7   : > { %v4311_v22 = vsel %vm4295_vm15, %v4287_v13, %v4303_v62  ;;  %v4833_v13 = vld [vmem:[#allocation11 + $0x138] sm:$0xff]  ;;  %v4508_v62 = vld [vmem:[#allocation11 + $0x70] sm:$0xff] }
 0x3e8   : > { %4319 = vst.msk [vmem:[#allocation3 + $0x18] sm:$0xff] %vm2482_vm3, %v4311_v22  ;;  %v4260_v11 = vpop.f32.mrf.mxu1  ;;  %v4107_v20 = vadd.f32 %v4097_v61, %v4021_v40  ;;  %4858 = vmatpush.msra.mxu1 %v4833_v13  ;;  %4535 = vmatpush.msra.mxu3 %v4508_v62  ;;  %v4886_v61 = vld [vmem:[#allocation11 + $0x150] sm:$0xff] }
 0x3e9   : > { %v4276_v59 = vadd.f32 %v4260_v11, %v4190_v43  ;;  %v4356_v41 = vld [vmem:[#allocation2 + $0xc] sm:$0xff]  ;;  %v4831_v43 = vld [vmem:[#allocation11 + $0x128] sm:$0xff] }
 0x3ea   : > { %v4348_v47 = vld [vmem:[#allocation2 + $0xb] sm:$0xff]  ;;  %6622 = vmatmul.msk.f32.vlgmr.msrb.gmra.mxu2 %vm2482_vm3, %v4356_v41  ;;  %4859 = vmatpush.msra.mxu1 %v4832_v9 }
 0x3eb   : > { %v4555_v56 = vld [vmem:[#allocation2 + $0xf] sm:$0xff]  ;;  %6626 = vmatmul.msk.f32.vlgmr.msrb.gmra.mxu3 %vm2482_vm3, %v4348_v47  ;;  %v4288_v10 = vadd.f32 %v8964_v50, %v4276_v59  ;;  %v4183_v39 = vpop.f32.mrf.mxu0  ;;  %v4776_v47 = vld [vmem:[#allocation11 + $0x100] sm:$0xff]  ;;  %4696 = vmatpush.msrb.mxu2 %v4671_v45 }
 0x3ec   : > { %v4609_v37 = vld [vmem:[#allocation2 + $0x10] sm:$0xff]  ;;  %6638 = vmatmul.msk.f32.vlgmr.msrb.gmra.mxu0 %vm2482_vm3, %v4555_v56  ;;  %v4193_v36 = vadd.f32 %v4183_v39, %v4107_v20  ;;  %4536 = vmatpush.msra.mxu3 %v4507_v8  ;;  %v4830_v56 = vld [vmem:[#allocation11 + $0x120] sm:$0xff] }
 0x3ed   : > { %6642 = vmatmul.msk.f32.vlgmr.msrb.gmra.mxu1 %vm2482_vm3, %v4609_v37  ;;  %vm4296_vm1 = vcmp.gt.f32.partialorder %v4288_v10, 0.0  ;;  %v4304_v25 = vmul.f32 0.3, %v4288_v10  ;;  %4807 = vmatpush.msra.mxu0 %v4776_v47  ;;  %v4447_v60 = vld [vmem:[#allocation2 + $0xd] sm:$0xff] }
 0x3ee   : > { %4860 = vmatpush.msra.mxu1 %v4831_v43  ;;  %4537 = vmatpush.msra.mxu3 %v4506_v33  ;;  %v4501_v1 = vld [vmem:[#allocation2 + $0xe] sm:$0xff] }
 0x3ef   : > { %v4326_v2 = vld [vmem:[#allocation3 + $0x10] ss:$2 sm:$0xff]  ;;  %v4334_v4 = vld [vmem:[#allocation3 + $0x11] ss:$2 sm:$0xff]  ;;  %v4312_v32 = vsel %vm4296_vm1, %v4288_v10, %v4304_v25  ;;  %v4670_v25 = vld [vmem:[#allocation11 + $0xd0] sm:$0xff] }
 0x3f0   : > { %v4340_v38 = vmax.f32 %v4326_v2, %v4334_v4  ;;  %4320 = vst.msk [vmem:[#allocation3 + $0x20] sm:$0xff] %vm2482_vm3, %v4312_v32  ;;  %v4263_v28 = vpop.f32.mrf.mxu1  ;;  %4861 = vmatpush.msra.mxu1 %v4830_v56  ;;  %4697 = vmatpush.msrb.mxu2 %v4670_v25  ;;  %v4981_v47 = vld [vmem:[#allocation14 + $0x70] sm:$0xff] }
 0x3f1   : > { %v4277_v23 = vadd.f32 %v4263_v28, %v4191_v42  ;;  %v4725_v28 = vld [vmem:[#allocation11 + $0xf8] sm:$0xff] }
 0x3f2   : > { %4344 = vst.msk [vmem:[#allocation2 + $0x18] sm:$0xff] %vm2482_vm3, %v4340_v38  ;;  %4698 = vmatpush.msrb.mxu2 %v4669_v30  ;;  %v4668_v38 = vld [vmem:[#allocation11 + $0xc0] sm:$0xff]  ;;  %4750 = vmatpush.msrb.mxu3 %v4725_v28  ;;  %v5076_v25 = vld [vmem:[#allocation14 + $0xb0] sm:$0xff]  ;;  %v4967_v28 = vld [vmem:[#allocation14 + $0x28] sm:$0xff] }
 0x3f3   : > { %v4289_v31 = vadd.f32 %v8964_v50, %v4277_v23  ;;  %v4724_v23 = vld [vmem:[#allocation11 + $0xf0] sm:$0xff] }
 0x3f4   : > { %4699 = vmatpush.msrb.mxu2 %v4668_v38  ;;  %4751 = vmatpush.msrb.mxu3 %v4724_v23  ;;  %v4978_v38 = vld [vmem:[#allocation14 + $0x58] sm:$0xff]  ;;  %v5075_v23 = vld [vmem:[#allocation14 + $0xa8] sm:$0xff] }
 0x3f5   : > { %vm4297_vm2 = vcmp.gt.f32.partialorder %v4289_v31, 0.0  ;;  %v4305_v15 = vmul.f32 0.3, %v4289_v31 }
 0x3f6   : > { %4752 = vmatpush.msrb.mxu3 %v4723_v7  ;;  %v4977_v7 = vld [vmem:[#allocation14 + $0x50] sm:$0xff] }
 0x3f7   : > { %v4313_v19 = vsel %vm4297_vm2, %v4289_v31, %v4305_v15  ;;  %v4722_v15 = vld [vmem:[#allocation11 + $0xe0] sm:$0xff] }
 0x3f8   : > { %4321 = vst.msk [vmem:[#allocation3 + $0x28] sm:$0xff] %vm2482_vm3, %v4313_v19  ;;  %v4266_v21 = vpop.f32.mrf.mxu1  ;;  %4753 = vmatpush.msrb.mxu3 %v4722_v15  ;;  %v5132_v15 = vld [vmem:[#allocation14 + $0xe0] sm:$0xff] }
 0x3f9   : > { %v4278_v54 = vadd.f32 %v4266_v21, %v4192_v18  ;;  %v9031_v52 = vld [vmem:[#allocation2 + $0x14] sm:$0xff] }
 0x3fa   : > { %v9033_v44 = vld [vmem:[#allocation2 + $0x13] sm:$0xff]  ;;  %6623 = vmatmul.msk.f32.gmra.mxu2 %vm2482_vm3, %v9031_v52 }
 0x3fb   : > { %v4556_v34 = vld [vmem:[#allocation2 + $0x17] sm:$0xff]  ;;  %6627 = vmatmul.msk.f32.gmra.mxu3 %vm2482_vm3, %v9033_v44  ;;  %v4290_v53 = vadd.f32 %v8964_v50, %v4278_v54 }
 0x3fc   : > { %v4610_v26 = vld [vmem:[#allocation2 + $0x18] sm:$0xff]  ;;  %6639 = vmatmul.msk.f32.gmra.mxu0 %vm2482_vm3, %v4556_v34  ;;  %v4887_v18 = vld [vmem:[#allocation11 + $0x158] sm:$0xff] }
 0x3fd   : > { %6643 = vmatmul.msk.f32.gmra.mxu1 %vm2482_vm3, %v4610_v26  ;;  %vm4298_vm4 = vcmp.gt.f32.partialorder %v4290_v53, 0.0  ;;  %v4306_v55 = vmul.f32 0.3, %v4290_v53  ;;  %v4448_v40 = vld [vmem:[#allocation2 + $0x15] sm:$0xff] }
 0x3fe   : > { %v4502_v19 = vld [vmem:[#allocation2 + $0x16] sm:$0xff] }
 0x3ff   : > { %v4328_v22 = vld [vmem:[#allocation3 + $0x20] ss:$2 sm:$0xff]  ;;  %v4336_v11 = vld [vmem:[#allocation3 + $0x21] ss:$2 sm:$0xff]  ;;  %v4314_v29 = vsel %vm4298_vm4, %v4290_v53, %v4306_v55  ;;  %v4884_v26 = vld [vmem:[#allocation11 + $0x140] sm:$0xff] }
 0x400   : > { %v4341_v59 = vmax.f32 %v4328_v22, %v4336_v11  ;;  %4322 = vst.msk [vmem:[#allocation3 + $0x30] sm:$0xff] %vm2482_vm3, %v4314_v29  ;;  %v4269_v41 = vpop.f32.mrf.mxu1  ;;  %v4663_v0 = vld [vmem:[#allocation2 + $0x11] sm:$0xff] }
 0x401   : > { %v4279_v63 = vadd.f32 %v4269_v41, %v4193_v36  ;;  %v4717_v20 = vld [vmem:[#allocation2 + $0x12] sm:$0xff] }
 0x402   : > { %4345 = vst.msk [vmem:[#allocation2 + $0x20] sm:$0xff] %vm2482_vm3, %v4341_v59  ;;  %v4982_v41 = vld [vmem:[#allocation14 + $0x78] sm:$0xff] }
 0x403   : > { %v4291_v3 = vadd.f32 %v8964_v50, %v4279_v63 }
 0x405   : > { %vm4299_vm5 = vcmp.gt.f32.partialorder %v4291_v3, 0.0  ;;  %v4307_v17 = vmul.f32 0.3, %v4291_v3 }
 0x407   : > { %v4315_v37 = vsel %vm4299_vm5, %v4291_v3, %v4307_v17  ;;  %v4980_v17 = vld [vmem:[#allocation14 + $0x68] sm:$0xff] }
 0x408   : > { %4323 = vst.msk [vmem:[#allocation3 + $0x38] sm:$0xff] %vm2482_vm3, %v4315_v37  ;;  %v4969_v37 = vld [vmem:[#allocation14 + $0x38] sm:$0xff] }
 0x409   : > { %v4358_v5 = vld [vmem:[#allocation2 + $0x1c] sm:$0xff]  ;;  %5044 = vmatpush.msrb.mxu0 %v4969_v37 }
 0x40a   : > { %v4350_v49 = vld [vmem:[#allocation2 + $0x1b] sm:$0xff]  ;;  %6624 = vmatmul.msk.f32.gmra.mxu2 %vm2482_vm3, %v4358_v5 }
 0x40b   : > { %v4557_v10 = vld [vmem:[#allocation2 + $0x1f] sm:$0xff]  ;;  %6628 = vmatmul.msk.f32.gmra.mxu3 %vm2482_vm3, %v4350_v49 }
 0x40c   : > { %v4611_v27 = vld [vmem:[#allocation2 + $0x20] sm:$0xff]  ;;  %6640 = vmatmul.msk.f32.gmra.mxu0 %vm2482_vm3, %v4557_v10 }
 0x40d   : > { %6644 = vmatmul.msk.f32.gmra.mxu1 %vm2482_vm3, %v4611_v27  ;;  %v4449_v21 = vld [vmem:[#allocation2 + $0x1d] sm:$0xff]  ;;  %v4968_v27 = vld [vmem:[#allocation14 + $0x30] sm:$0xff] }
 0x40e   : > { %v4503_v54 = vld [vmem:[#allocation2 + $0x1e] sm:$0xff]  ;;  %5045 = vmatpush.msrb.mxu0 %v4968_v27 }
 0x40f   : > { %v4330_v50 = vld [vmem:[#allocation3 + $0x30] ss:$2 sm:$0xff]  ;;  %v4338_v24 = vld [vmem:[#allocation3 + $0x31] ss:$2 sm:$0xff] }
 0x410   : > { %v4342_v42 = vmax.f32 %v4330_v50, %v4338_v24  ;;  %v4664_v53 = vld [vmem:[#allocation2 + $0x19] sm:$0xff]  ;;  %5046 = vmatpush.msrb.mxu0 %v4967_v28 }
 0x411   : > { %v4718_v57 = vld [vmem:[#allocation2 + $0x1a] sm:$0xff]  ;;  %v5251_v28 = vld [vmem:[#allocation14 + $0x178] sm:$0xff] }
 0x412   : > { %4346 = vst.msk [vmem:[#allocation2 + $0x28] sm:$0xff] %vm2482_vm3, %v4342_v42  ;;  %v4979_v10 = vld [vmem:[#allocation14 + $0x60] sm:$0xff] }
 0x419   : > { %v4359_v2 = vld [vmem:[#allocation2 + $0x24] sm:$0xff]  ;;  %v4828_v35 = vld [vmem:[#allocation2 + $0x2c] sm:$0xff] }
 0x41a   : > { %v4351_v4 = vld [vmem:[#allocation2 + $0x23] sm:$0xff]  ;;  %6625 = vmatmul.msk.f32.gmra.mxu2 %vm2482_vm3, %v4359_v2  ;;  %v4774_v46 = vld [vmem:[#allocation2 + $0x2b] sm:$0xff] }
 0x41b   : > { %v4558_v32 = vld [vmem:[#allocation2 + $0x27] sm:$0xff]  ;;  %6629 = vmatmul.msk.f32.gmra.mxu3 %vm2482_vm3, %v4351_v4 }
 0x41c   : > { %v4612_v48 = vld [vmem:[#allocation2 + $0x28] sm:$0xff]  ;;  %6641 = vmatmul.msk.f32.gmra.mxu0 %vm2482_vm3, %v4558_v32  ;;  %v5135_v32 = vld [vmem:[#allocation14 + $0xf8] sm:$0xff] }
 0x41d   : > { %6645 = vmatmul.msk.f32.gmra.mxu1 %vm2482_vm3, %v4612_v48  ;;  %v4666_v51 = vld [vmem:[#allocation2 + $0x29] sm:$0xff]  ;;  %v4665_v58 = vld [vmem:[#allocation2 + $0x21] sm:$0xff] }
 0x41e   : > { %v4720_v31 = vld [vmem:[#allocation2 + $0x2a] sm:$0xff]  ;;  %v4719_v13 = vld [vmem:[#allocation2 + $0x22] sm:$0xff] }
 0x41f   : > { %v4882_v6 = vld [vmem:[#allocation2 + $0x2d] sm:$0xff] }
 0x420   : > { %4957 = vst.msk [vmem:[#allocation2 + $0x30] sm:$0xff] %vm626_vm0, %v9463_v14  ;;  %v4504_v34 = vld [vmem:[#allocation2 + $0x26] sm:$0xff] }
 0x422   : > { %6630 = vmatmul.msk.f32.vlgmr.msra.gmra.mxu2 %vm2482_vm3, %v4447_v60  ;;  %v5074_v60 = vld [vmem:[#allocation14 + $0xa0] sm:$0xff] }
 0x423   : > { %6634 = vmatmul.msk.f32.vlgmr.msra.gmra.mxu3 %vm2482_vm3, %v4501_v1  ;;  %4912 = vmatpush.msra.mxu2 %v4887_v18 }
 0x424   : > { %6654 = vmatmul.msk.f32.vlgmr.msra.gmra.mxu0 %vm2482_vm3, %v9033_v44  ;;  %v4450_v44 = vld [vmem:[#allocation2 + $0x25] sm:$0xff]  ;;  %5003 = vmatpush.msra.mxu3 %v4982_v41 }
 0x425   : > { %6658 = vmatmul.msk.f32.vlgmr.msra.gmra.mxu1 %vm2482_vm3, %v9031_v52  ;;  %4913 = vmatpush.msra.mxu2 %v4886_v61  ;;  %v4885_v52 = vld [vmem:[#allocation11 + $0x148] sm:$0xff]  ;;  %v4965_v61 = vld [vmem:[#allocation14 + $0x18] sm:$0xff] }
 0x426   : > { %5004 = vmatpush.msra.mxu3 %v4981_v47 }
 0x427   : > { %4914 = vmatpush.msra.mxu2 %v4885_v52 }
 0x428   : > { %5005 = vmatpush.msra.mxu3 %v4980_v17  ;;  %v5192_v17 = vld [vmem:[#allocation14 + $0x130] sm:$0xff] }
 0x429   : > { %4915 = vmatpush.msra.mxu2 %v4884_v26  ;;  %v4964_v26 = vld [vmem:[#allocation14 + $0x10] sm:$0xff] }
 0x42a   : > { %6631 = vmatmul.msk.f32.gmra.mxu2 %vm2482_vm3, %v4448_v40  ;;  %5006 = vmatpush.msra.mxu3 %v4979_v10 }
 0x42b   : > { %6635 = vmatmul.msk.f32.gmra.mxu3 %vm2482_vm3, %v4502_v19 }
 0x42c   : > { %6655 = vmatmul.msk.f32.gmra.mxu0 %vm2482_vm3, %v4350_v49  ;;  %5007 = vmatpush.msra.mxu3 %v4978_v38  ;;  %v9138_v38 = vld [vmem:[#allocation12] ss:$0 sm:$0xff] }
 0x42d   : > { %6659 = vmatmul.msk.f32.gmra.mxu1 %vm2482_vm3, %v4358_v5  ;;  %v5077_v5 = vld [vmem:[#allocation14 + $0xb8] sm:$0xff] }
 0x42e   : > { %5098 = vmatpush.msrb.mxu1 %v5077_v5  ;;  %5008 = vmatpush.msra.mxu3 %v4977_v7  ;;  %v5189_v7 = vld [vmem:[#allocation14 + $0x118] sm:$0xff] }
 0x430   : > { %5099 = vmatpush.msrb.mxu1 %v5076_v25 }
 0x432   : > { %6632 = vmatmul.msk.f32.gmra.mxu2 %vm2482_vm3, %v4449_v21  ;;  %5100 = vmatpush.msrb.mxu1 %v5075_v23  ;;  %v5309_v23 = vld [vmem:[#allocation14 + $0x1b8] sm:$0xff] }
 0x433   : > { %6636 = vmatmul.msk.f32.gmra.mxu3 %vm2482_vm3, %v4503_v54  ;;  %v5131_v54 = vld [vmem:[#allocation14 + $0xd8] sm:$0xff] }
 0x434   : > { %6656 = vmatmul.msk.f32.gmra.mxu0 %vm2482_vm3, %v4351_v4  ;;  %5101 = vmatpush.msrb.mxu1 %v5074_v60 }
 0x435   : > { %6660 = vmatmul.msk.f32.gmra.mxu1 %vm2482_vm3, %v4359_v2 }
 0x43a   : > { %6633 = vmatmul.msk.f32.gmra.mxu2 %vm2482_vm3, %v4450_v44 }
 0x43b   : > { %6637 = vmatmul.msk.f32.gmra.mxu3 %vm2482_vm3, %v4504_v34  ;;  %v4976_v34 = vld [vmem:[#allocation14 + $0x48] sm:$0xff] }
 0x43c   : > { %6657 = vmatmul.msk.f32.gmra.mxu0 %vm2482_vm3, %v4774_v46  ;;  %5009 = vmatpush.msra.mxu3 %v4976_v34  ;;  %v5306_v34 = vld [vmem:[#allocation14 + $0x1a0] sm:$0xff] }
 0x43d   : > { %6661 = vmatmul.msk.f32.gmra.mxu1 %vm2482_vm3, %v4828_v35  ;;  %v5134_v35 = vld [vmem:[#allocation14 + $0xf0] sm:$0xff] }
 0x442   : > { %6646 = vmatmul.msk.f32.vlgmr.msrb.gmra.mxu2 %vm2482_vm3, %v4663_v0  ;;  %v5072_v0 = vld [vmem:[#allocation14 + $0x90] sm:$0xff] }
 0x443   : > { %6650 = vmatmul.msk.f32.vlgmr.msrb.gmra.mxu3 %vm2482_vm3, %v4717_v20  ;;  %5156 = vmatpush.msrb.mxu2 %v5135_v32 }
 0x445   : > { %5157 = vmatpush.msrb.mxu2 %v5134_v35  ;;  %v5308_v35 = vld [vmem:[#allocation14 + $0x1b0] sm:$0xff] }
 0x44a   : > { %6647 = vmatmul.msk.f32.gmra.mxu2 %vm2482_vm3, %v4664_v53 }
 0x44b   : > { %6651 = vmatmul.msk.f32.gmra.mxu3 %vm2482_vm3, %v4718_v57  ;;  %v5130_v57 = vld [vmem:[#allocation14 + $0xd0] sm:$0xff] }
 0x452   : > { %6648 = vmatmul.msk.f32.gmra.mxu2 %vm2482_vm3, %v4665_v58  ;;  %v4975_v58 = vld [vmem:[#allocation14 + $0x40] sm:$0xff] }
 0x453   : > { %6652 = vmatmul.msk.f32.gmra.mxu3 %vm2482_vm3, %v4719_v13  ;;  %v4963_v13 = vld [vmem:[#allocation14 + $0x8] sm:$0xff] }
 0x454   : > { %5010 = vmatpush.msra.mxu3 %v4975_v58 }
 0x45a   : > { %6649 = vmatmul.msk.f32.gmra.mxu2 %vm2482_vm3, %v4666_v51  ;;  %v4966_v51 = vld [vmem:[#allocation14 + $0x20] sm:$0xff] }
 0x45b   : > { %6653 = vmatmul.msk.f32.gmra.mxu3 %vm2482_vm3, %v4720_v31  ;;  %5047 = vmatpush.msrb.mxu0 %v4966_v51  ;;  %v5249_v51 = vld [vmem:[#allocation14 + $0x168] sm:$0xff] }
 0x45d   : > { %5048 = vmatpush.msrb.mxu0 %v4965_v61  ;;  %v5248_v61 = vld [vmem:[#allocation14 + $0x160] sm:$0xff] }
 0x45f   : > { %5049 = vmatpush.msrb.mxu0 %v4964_v26 }
 0x461   : > { %5050 = vmatpush.msrb.mxu0 %v4963_v13  ;;  %v5187_v13 = vld [vmem:[#allocation14 + $0x108] sm:$0xff] }
 0x462   : > { %6662 = vmatmul.msk.f32.vlgmr.msra.gmra.mxu2 %vm2482_vm3, %v4448_v40 }
 0x469   : > { %v4593_v33 = vpop.f32.mrf.mxu0 }
 0x46a   : > { %6663 = vmatmul.msk.f32.gmra.mxu2 %vm2482_vm3, %v4449_v21  ;;  %v9099_v56 = vpop.f32.mrf.mxu1  ;;  %v5073_v21 = vld [vmem:[#allocation14 + $0x98] sm:$0xff] }
 0x46b   : > { %5102 = vmatpush.msrb.mxu1 %v5073_v21 }
 0x46d   : > { %v4394_v39 = vpop.f32.mrf.mxu2  ;;  %5103 = vmatpush.msrb.mxu1 %v5072_v0 }
 0x46e   : > { %v4435_v62 = vpop.f32.mrf.mxu3 }
 0x46f   : > { %v4436_v42 = vadd.f32 %v4435_v62, %v4394_v39  ;;  %v5071_v39 = vld [vmem:[#allocation14 + $0x88] sm:$0xff] }
 0x470   : > { %v5129_v62 = vld [vmem:[#allocation14 + $0xc8] sm:$0xff]  ;;  %5104 = vmatpush.msrb.mxu1 %v5071_v39  ;;  %v5247_v39 = vld [vmem:[#allocation14 + $0x158] sm:$0xff] }
 0x472   : > { %6664 = vmatmul.msk.f32.gmra.mxu2 %vm2482_vm3, %v4450_v44 }
 0x479   : > { %v9103_v45 = vpop.f32.mrf.mxu0 }
 0x47a   : > { %6665 = vmatmul.msk.f32.gmra.mxu2 %vm2482_vm3, %v4882_v6  ;;  %v9107_v49 = vpop.f32.mrf.mxu1  ;;  %v5133_v6 = vld [vmem:[#allocation14 + $0xe8] sm:$0xff] }
 0x47b   : > { %5158 = vmatpush.msrb.mxu2 %v5133_v6  ;;  %v5367_v6 = vld [vmem:[#allocation14 + $0x1f8] sm:$0xff] }
 0x47d   : > { %v4397_v12 = vpop.f32.mrf.mxu2  ;;  %5159 = vmatpush.msrb.mxu2 %v5132_v15 }
 0x47e   : > { %v4438_v9 = vpop.f32.mrf.mxu3 }
 0x47f   : > { %v4439_v1 = vadd.f32 %v4438_v9, %v4397_v12  ;;  %5160 = vmatpush.msrb.mxu2 %v5131_v54 }
 0x481   : > { %5161 = vmatpush.msrb.mxu2 %v5130_v57 }
 0x483   : > { %5162 = vmatpush.msrb.mxu2 %v5129_v62  ;;  %v5305_v62 = vld [vmem:[#allocation14 + $0x198] sm:$0xff] }
 0x489   : > { %v9109_v24 = vpop.f32.mrf.mxu0 }
 0x48a   : > { %v9111_v2 = vpop.f32.mrf.mxu1 }
 0x48d   : > { %v9087_v55 = vpop.f32.mrf.mxu2 }
 0x48e   : > { %v9089_v8 = vpop.f32.mrf.mxu3 }
 0x48f   : > { %v4442_v12 = vadd.f32 %v9089_v8, %v9087_v55  ;;  %v5193_v8 = vld [vmem:[#allocation14 + $0x138] sm:$0xff] }
 0x490   : > { %5214 = vmatpush.msrb.mxu3 %v5193_v8 }
 0x492   : > { %5215 = vmatpush.msrb.mxu3 %v5192_v17 }
 0x499   : > { %v9117_v31 = vpop.f32.mrf.mxu0 }
 0x49a   : > { %v9119_v19 = vpop.f32.mrf.mxu1 }
 0x49d   : > { %v9091_v16 = vpop.f32.mrf.mxu2 }
 0x49e   : > { %v9093_v43 = vpop.f32.mrf.mxu3 }
 0x4a5   : > { %v4485_v36 = vpop.f32.mrf.mxu2 }
 0x4a6   : > { %v4539_v22 = vpop.f32.mrf.mxu3  ;;  %v4497_v30 = vadd.f32 %v4485_v36, %v4436_v42  ;;  %v4962_v36 = vld [vmem:[#allocation14] sm:$0xff] }
 0x4a7   : > { %5051 = vmatpush.msrb.mxu0 %v4962_v36  ;;  %v5304_v36 = vld [vmem:[#allocation14 + $0x190] sm:$0xff] }
 0x4a8   : > { %v4551_v46 = vadd.f32 %v4539_v22, %v4497_v30  ;;  %v5070_v22 = vld [vmem:[#allocation14 + $0x80] sm:$0xff] }
 0x4a9   : > { %5105 = vmatpush.msrb.mxu1 %v5070_v22  ;;  %5272 = vmatpush.msra.mxu0 %v5251_v28 }
 0x4aa   : > { %v4605_v18 = vadd.f32 %v4593_v33, %v4551_v46  ;;  %v5128_v33 = vld [vmem:[#allocation14 + $0xc0] sm:$0xff] }
 0x4ab   : > { %5163 = vmatpush.msrb.mxu2 %v5128_v33  ;;  %5330 = vmatpush.msra.mxu1 %v5309_v23  ;;  %v5424_v23 = vld [vmem:[#allocation14 + $0x230] sm:$0xff] }
 0x4ac   : > { %v4659_v53 = vadd.f32 %v9099_v56, %v4605_v18  ;;  %v4863_v56 = vpop.f32.mrf.mxu1 }
 0x4ad   : > { %v4488_v11 = vpop.f32.mrf.mxu2  ;;  %5331 = vmatpush.msra.mxu1 %v5308_v35  ;;  %5388 = vmatpush.msra.mxu2 %v5367_v6 }
 0x4ae   : > { %v9097_v59 = vpop.f32.mrf.mxu3  ;;  %v4498_v40 = vadd.f32 %v4488_v11, %v4439_v1  ;;  %v4809_v11 = vpop.f32.mrf.mxu0 }
 0x4b0   : > { %v4552_v20 = vadd.f32 %v9097_v59, %v4498_v40  ;;  %v5188_v40 = vld [vmem:[#allocation14 + $0x110] sm:$0xff] }
 0x4b2   : > { %v4606_v59 = vadd.f32 %v9103_v45, %v4552_v20  ;;  %v4445_v45 = vadd.f32 %v9093_v43, %v9091_v16  ;;  %v5364_v20 = vld [vmem:[#allocation14 + $0x1e0] sm:$0xff] }
 0x4b4   : > { %v4660_v5 = vadd.f32 %v9107_v49, %v4606_v59  ;;  %v5191_v49 = vld [vmem:[#allocation14 + $0x128] sm:$0xff]  ;;  %v5362_v59 = vld [vmem:[#allocation14 + $0x1d0] sm:$0xff] }
 0x4b5   : > { %v9095_v29 = vpop.f32.mrf.mxu2  ;;  %5216 = vmatpush.msrb.mxu3 %v5191_v49  ;;  %v5425_v49 = vld [vmem:[#allocation14 + $0x238] sm:$0xff] }
 0x4b6   : > { %v9105_v3 = vpop.f32.mrf.mxu3  ;;  %v4499_v41 = vadd.f32 %v9095_v29, %v4442_v12  ;;  %v4812_v42 = vpop.f32.mrf.mxu0  ;;  %v5363_v12 = vld [vmem:[#allocation14 + $0x1d8] sm:$0xff] }
 0x4b8   : > { %v4553_v37 = vadd.f32 %v9105_v3, %v4499_v41  ;;  %v5186_v41 = vld [vmem:[#allocation14 + $0x100] sm:$0xff] }
 0x4ba   : > { %v4607_v25 = vadd.f32 %v9109_v24, %v4553_v37  ;;  %v5250_v24 = vld [vmem:[#allocation14 + $0x170] sm:$0xff]  ;;  %v5361_v37 = vld [vmem:[#allocation14 + $0x1c8] sm:$0xff] }
 0x4bb   : > { %5273 = vmatpush.msra.mxu0 %v5250_v24 }
 0x4bc   : > { %v4661_v16 = vadd.f32 %v9111_v2, %v4607_v25  ;;  %v5366_v2 = vld [vmem:[#allocation14 + $0x1f0] sm:$0xff] }
 0x4bd   : > { %v9101_v63 = vpop.f32.mrf.mxu2  ;;  %5274 = vmatpush.msra.mxu0 %v5249_v51  ;;  %5389 = vmatpush.msra.mxu2 %v5366_v2  ;;  %v5541_v2 = vld [vmem:[#allocation14 + $0x2b8] sm:$0xff] }
 0x4be   : > { %v9113_v4 = vpop.f32.mrf.mxu3 }
 0x4bf   : > { %5275 = vmatpush.msra.mxu0 %v5248_v61  ;;  %v5482_v61 = vld [vmem:[#allocation14 + $0x270] sm:$0xff] }
 0x4c1   : > { %5276 = vmatpush.msra.mxu0 %v5247_v39 }
 0x4c5   : > { %v4701_v50 = vpop.f32.mrf.mxu2 }
 0x4c6   : > { %v4755_v52 = vpop.f32.mrf.mxu3  ;;  %v4713_v9 = vadd.f32 %v4701_v50, %v4659_v53  ;;  %v4500_v50 = vadd.f32 %v9101_v63, %v4445_v45  ;;  %v4866_v63 = vpop.f32.mrf.mxu1 }
 0x4c7   : > { %v4815_v53 = vpop.f32.mrf.mxu0 }
 0x4c8   : > { %v4767_v47 = vadd.f32 %v4755_v52, %v4713_v9  ;;  %v4554_v46 = vadd.f32 %v9113_v4, %v4500_v50  ;;  %v5307_v4 = vld [vmem:[#allocation14 + $0x1a8] sm:$0xff]  ;;  %v5246_v9 = vld [vmem:[#allocation14 + $0x150] sm:$0xff] }
 0x4c9   : > { %v5365_v52 = vld [vmem:[#allocation14 + $0x1e8] sm:$0xff]  ;;  %5332 = vmatpush.msra.mxu1 %v5307_v4  ;;  %5277 = vmatpush.msra.mxu0 %v5246_v9  ;;  %v5483_v4 = vld [vmem:[#allocation14 + $0x278] sm:$0xff] }
 0x4ca   : > { %v4821_v29 = vadd.f32 %v4809_v11, %v4767_v47  ;;  %v4608_v21 = vadd.f32 %v9117_v31, %v4554_v46  ;;  %5390 = vmatpush.msra.mxu2 %v5365_v52 }
 0x4cb   : > { %5333 = vmatpush.msra.mxu1 %v5306_v34 }
 0x4cc   : > { %v4875_v32 = vadd.f32 %v4863_v56, %v4821_v29  ;;  %v4662_v31 = vadd.f32 %v9119_v19, %v4608_v21  ;;  %5391 = vmatpush.msra.mxu2 %v5364_v20  ;;  %v5245_v19 = vld [vmem:[#allocation14 + $0x148] sm:$0xff]  ;;  %v5540_v21 = vld [vmem:[#allocation14 + $0x2b0] sm:$0xff] }
 0x4cd   : > { %v9115_v48 = vpop.f32.mrf.mxu2  ;;  %5334 = vmatpush.msra.mxu1 %v5305_v62  ;;  %v5303_v56 = vld [vmem:[#allocation14 + $0x188] sm:$0xff]  ;;  %5278 = vmatpush.msra.mxu0 %v5245_v19  ;;  %v5479_v19 = vld [vmem:[#allocation14 + $0x258] sm:$0xff] }
 0x4ce   : > { %v4758_v10 = vpop.f32.mrf.mxu3  ;;  %v4714_v27 = vadd.f32 %v9115_v48, %v4660_v5  ;;  %v5190_v48 = vld [vmem:[#allocation14 + $0x120] sm:$0xff]  ;;  %v4869_v47 = vpop.f32.mrf.mxu1  ;;  %5392 = vmatpush.msra.mxu2 %v5363_v12  ;;  %v5481_v20 = vld [vmem:[#allocation14 + $0x268] sm:$0xff] }
 0x4cf   : > { %5217 = vmatpush.msrb.mxu3 %v5190_v48  ;;  %5335 = vmatpush.msra.mxu1 %v5304_v36  ;;  %v5244_v5 = vld [vmem:[#allocation14 + $0x140] sm:$0xff]  ;;  %v4818_v28 = vpop.f32.mrf.mxu0 }
 0x4d0   : > { %v4768_v30 = vadd.f32 %v4758_v10, %v4714_v27  ;;  %5393 = vmatpush.msra.mxu2 %v5362_v59  ;;  %5279 = vmatpush.msra.mxu0 %v5244_v5  ;;  %v5477_v5 = vld [vmem:[#allocation14 + $0x248] sm:$0xff] }
 0x4d1   : > { %5218 = vmatpush.msrb.mxu3 %v5189_v7  ;;  %5336 = vmatpush.msra.mxu1 %v5303_v56  ;;  %v5537_v56 = vld [vmem:[#allocation14 + $0x298] sm:$0xff] }
 0x4d2   : > { %v4822_v60 = vadd.f32 %v4812_v42, %v4768_v30  ;;  %v5302_v30 = vld [vmem:[#allocation14 + $0x180] sm:$0xff]  ;;  %5394 = vmatpush.msra.mxu2 %v5361_v37 }
 0x4d3   : > { %5219 = vmatpush.msrb.mxu3 %v5188_v40  ;;  %5337 = vmatpush.msra.mxu1 %v5302_v30  ;;  %v5418_v37 = vld [vmem:[#allocation14 + $0x200] sm:$0xff] }
 0x4d4   : > { %v4876_v0 = vadd.f32 %v4866_v63, %v4822_v60 }
 0x4d5   : > { %v9121_v44 = vpop.f32.mrf.mxu2  ;;  %5220 = vmatpush.msrb.mxu3 %v5187_v13 }
 0x4d6   : > { %v4715_v1 = vadd.f32 %v9121_v44, %v4661_v16  ;;  %v4761_v18 = vpop.f32.mrf.mxu3  ;;  %v4872_v48 = vpop.f32.mrf.mxu1 }
 0x4d7   : > { %5221 = vmatpush.msrb.mxu3 %v5186_v41 }
 0x4d8   : > { %v4769_v44 = vadd.f32 %v4761_v18, %v4715_v1  ;;  %v5422_v18 = vld [vmem:[#allocation14 + $0x220] sm:$0xff] }
 0x4da   : > { %v4823_v22 = vadd.f32 %v4815_v53, %v4769_v44  ;;  %v5539_v53 = vld [vmem:[#allocation14 + $0x2a8] sm:$0xff] }
 0x4dc   : > { %v4877_v45 = vadd.f32 %v4869_v47, %v4823_v22  ;;  %v5419_v47 = vld [vmem:[#allocation14 + $0x208] sm:$0xff] }
 0x4dd   : > { %v9129_v55 = vpop.f32.mrf.mxu2 }
 0x4de   : > { %v4716_v11 = vadd.f32 %v9129_v55, %v4662_v31  ;;  %v4764_v17 = vpop.f32.mrf.mxu3  ;;  %v5480_v31 = vld [vmem:[#allocation14 + $0x260] sm:$0xff] }
 0x4e0   : > { %v4770_v55 = vadd.f32 %v4764_v17, %v4716_v11  ;;  %v5536_v17 = vld [vmem:[#allocation14 + $0x290] sm:$0xff] }
 0x4e2   : > { %v4824_v46 = vadd.f32 %v4818_v28, %v4770_v55 }
 0x4e4   : > { %v4878_v35 = vadd.f32 %v4872_v48, %v4824_v46 }
 0x4e5   : > { %v4917_v3 = vpop.f32.mrf.mxu2 }
 0x4e6   : > { %v4929_v43 = vadd.f32 %v4917_v3, %v4875_v32  ;;  %v5360_v3 = vld [vmem:[#allocation14 + $0x1c0] sm:$0xff] }
 0x4e7   : > { %5395 = vmatpush.msra.mxu2 %v5360_v3 }
 0x4e8   : > { %v4937_v15 = vadd.f32 %v9138_v38, %v4929_v43 }
 0x4ea   : > { %vm4941_vm3 = vcmp.gt.f32.partialorder %v4937_v15, 0.0  ;;  %v4945_v54 = vmul.f32 0.3, %v4937_v15 }
 0x4ec   : > { %v4949_v26 = vsel %vm4941_vm3, %v4937_v15, %v4945_v54  ;;  %v5423_v15 = vld [vmem:[#allocation14 + $0x228] sm:$0xff] }
 0x4ed   : > { %4953 = vst.msk [vmem:[#allocation2 + $0x10] sm:$0xff] %vm626_vm0, %v4949_v26  ;;  %v4920_v57 = vpop.f32.mrf.mxu2 }
 0x4ee   : > { %v4930_v58 = vadd.f32 %v4920_v57, %v4876_v0  ;;  %v5421_v0 = vld [vmem:[#allocation14 + $0x218] sm:$0xff]  ;;  %v5420_v57 = vld [vmem:[#allocation14 + $0x210] sm:$0xff] }
 0x4f0   : > { %v4938_v33 = vadd.f32 %v9138_v38, %v4930_v58  ;;  %v5538_v58 = vld [vmem:[#allocation14 + $0x2a0] sm:$0xff] }
 0x4f2   : > { %vm4942_vm6 = vcmp.gt.f32.partialorder %v4938_v33, 0.0  ;;  %v4946_v8 = vmul.f32 0.3, %v4938_v33 }
 0x4f4   : > { %v4950_v10 = vsel %vm4942_vm6, %v4938_v33, %v4946_v8  ;;  %v4970_v29 = vld [vmem:[#allocation2 + $0xc] sm:$0xff] }
 0x4f5   : > { %v4958_v27 = vld [vmem:[#allocation2 + $0xb] sm:$0xff]  ;;  %4954 = vst.msk [vmem:[#allocation2 + $0x18] sm:$0xff] %vm626_vm0, %v4950_v10  ;;  %v4923_v50 = vpop.f32.mrf.mxu2  ;;  %6666 = vmatmul.msk.f32.vlgmr.msra.gmra.mxu3 %vm626_vm0, %v4970_v29  ;;  %v5476_v29 = vld [vmem:[#allocation14 + $0x240] sm:$0xff] }
 0x4f6   : > { %v5065_v25 = vld [vmem:[#allocation2 + $0xd] sm:$0xff]  ;;  %6670 = vmatmul.msk.f32.vlgmr.msrb.gmra.mxu0 %vm626_vm0, %v4958_v27  ;;  %v4931_v32 = vadd.f32 %v4923_v50, %v4877_v45  ;;  %5446 = vmatpush.msra.mxu3 %v5425_v49  ;;  %v5535_v45 = vld [vmem:[#allocation14 + $0x288] sm:$0xff]  ;;  %v5534_v50 = vld [vmem:[#allocation14 + $0x280] sm:$0xff] }
 0x4f7   : > { %v5123_v42 = vld [vmem:[#allocation2 + $0xe] sm:$0xff]  ;;  %6674 = vmatmul.msk.f32.vlgmr.msrb.gmra.mxu1 %vm626_vm0, %v5065_v25  ;;  %5504 = vmatpush.msrb.mxu0 %v5483_v4 }
 0x4f8   : > { %6678 = vmatmul.msk.f32.vlgmr.msrb.gmra.mxu2 %vm626_vm0, %v5123_v42  ;;  %v4939_v16 = vadd.f32 %v9138_v38, %v4931_v32  ;;  %5447 = vmatpush.msra.mxu3 %v5424_v23  ;;  %v5478_v8 = vld [vmem:[#allocation14 + $0x250] sm:$0xff] }
 0x4f9   : > { %5562 = vmatpush.msrb.mxu1 %v5541_v2  ;;  %5505 = vmatpush.msrb.mxu0 %v5482_v61  ;;  %v5181_v55 = vld [vmem:[#allocation2 + $0xf] sm:$0xff] }
 0x4fa   : > { %vm4943_vm7 = vcmp.gt.f32.partialorder %v4939_v16, 0.0  ;;  %v4947_v43 = vmul.f32 0.3, %v4939_v16  ;;  %5448 = vmatpush.msra.mxu3 %v5423_v15  ;;  %v5239_v10 = vld [vmem:[#allocation2 + $0x10] sm:$0xff] }
 0x4fb   : > { %5563 = vmatpush.msrb.mxu1 %v5540_v21  ;;  %5506 = vmatpush.msrb.mxu0 %v5481_v20 }
 0x4fc   : > { %v4951_v24 = vsel %vm4943_vm7, %v4939_v16, %v4947_v43  ;;  %v9155_v63 = vld [vmem:[#allocation2 + $0x14] sm:$0xff]  ;;  %5449 = vmatpush.msra.mxu3 %v5422_v18 }
 0x4fd   : > { %v9157_v7 = vld [vmem:[#allocation2 + $0x13] sm:$0xff]  ;;  %4955 = vst.msk [vmem:[#allocation2 + $0x20] sm:$0xff] %vm626_vm0, %v4951_v24  ;;  %v4926_v6 = vpop.f32.mrf.mxu2  ;;  %6667 = vmatmul.msk.f32.gmra.mxu3 %vm626_vm0, %v9155_v63  ;;  %5564 = vmatpush.msrb.mxu1 %v5539_v53 }
 0x4fe   : > { %v9159_v51 = vld [vmem:[#allocation2 + $0x15] sm:$0xff]  ;;  %6671 = vmatmul.msk.f32.gmra.mxu0 %vm626_vm0, %v9157_v7  ;;  %v4932_v1 = vadd.f32 %v4926_v6, %v4878_v35  ;;  %5450 = vmatpush.msra.mxu3 %v5421_v0 }
 0x4ff   : > { %v5124_v60 = vld [vmem:[#allocation2 + $0x16] sm:$0xff]  ;;  %6675 = vmatmul.msk.f32.gmra.mxu1 %vm626_vm0, %v9159_v51  ;;  %5507 = vmatpush.msrb.mxu0 %v5480_v31 }
 0x500   : > { %6679 = vmatmul.msk.f32.gmra.mxu2 %vm626_vm0, %v5124_v60  ;;  %v4940_v40 = vadd.f32 %v9138_v38, %v4932_v1  ;;  %5451 = vmatpush.msra.mxu3 %v5420_v57  ;;  %v5297_v27 = vld [vmem:[#allocation2 + $0x11] sm:$0xff] }
 0x501   : > { %5565 = vmatpush.msrb.mxu1 %v5538_v58  ;;  %5508 = vmatpush.msrb.mxu0 %v5479_v19  ;;  %v5355_v25 = vld [vmem:[#allocation2 + $0x12] sm:$0xff] }
 0x502   : > { %vm4944_vm8 = vcmp.gt.f32.partialorder %v4940_v40, 0.0  ;;  %v4948_v54 = vmul.f32 0.3, %v4940_v40  ;;  %5452 = vmatpush.msra.mxu3 %v5419_v47  ;;  %v5182_v42 = vld [vmem:[#allocation2 + $0x17] sm:$0xff] }
 0x503   : > { %5566 = vmatpush.msrb.mxu1 %v5537_v56  ;;  %5509 = vmatpush.msrb.mxu0 %v5478_v8  ;;  %v5240_v30 = vld [vmem:[#allocation2 + $0x18] sm:$0xff] }
 0x504   : > { %v4952_v52 = vsel %vm4944_vm8, %v4940_v40, %v4948_v54  ;;  %v9170_v34 = vld [vmem:[#allocation2 + $0x1c] sm:$0xff]  ;;  %5453 = vmatpush.msra.mxu3 %v5418_v37  ;;  %v5640_v19 = vld [vmem:[#allocation17 + $0x78] sm:$0xff]  ;;  %v5628_v37 = vld [vmem:[#allocation17 + $0x30] sm:$0xff] }
 0x505   : > { %v9172_v44 = vld [vmem:[#allocation2 + $0x1b] sm:$0xff]  ;;  %4956 = vst.msk [vmem:[#allocation2 + $0x28] sm:$0xff] %vm626_vm0, %v4952_v52  ;;  %6668 = vmatmul.msk.f32.gmra.mxu3 %vm626_vm0, %v9170_v34  ;;  %5567 = vmatpush.msrb.mxu1 %v5536_v17  ;;  %v5639_v17 = vld [vmem:[#allocation17 + $0x70] sm:$0xff] }
 0x506   : > { %v9174_v26 = vld [vmem:[#allocation2 + $0x1d] sm:$0xff]  ;;  %6672 = vmatmul.msk.f32.gmra.mxu0 %vm626_vm0, %v9172_v44  ;;  %v5629_v56 = vld [vmem:[#allocation17 + $0x38] sm:$0xff]  ;;  %5655 = vmatpush.msrb.mxu2 %v5640_v19 }
 0x507   : > { %v5125_v38 = vld [vmem:[#allocation2 + $0x1e] sm:$0xff]  ;;  %6676 = vmatmul.msk.f32.gmra.mxu1 %vm626_vm0, %v9174_v26  ;;  %5510 = vmatpush.msrb.mxu0 %v5477_v5 }
 0x508   : > { %6680 = vmatmul.msk.f32.gmra.mxu2 %vm626_vm0, %v5125_v38  ;;  %v5298_v12 = vld [vmem:[#allocation2 + $0x19] sm:$0xff]  ;;  %5568 = vmatpush.msrb.mxu1 %v5535_v45 }
 0x509   : > { %v5356_v9 = vld [vmem:[#allocation2 + $0x1a] sm:$0xff]  ;;  %5511 = vmatpush.msrb.mxu0 %v5476_v29  ;;  %5656 = vmatpush.msrb.mxu2 %v5639_v17 }
 0x50a   : > { %v5183_v22 = vld [vmem:[#allocation2 + $0x1f] sm:$0xff]  ;;  %5569 = vmatpush.msrb.mxu1 %v5534_v50 }
 0x50b   : > { %v5241_v11 = vld [vmem:[#allocation2 + $0x20] sm:$0xff] }
 0x50c   : > { %v9184_v13 = vld [vmem:[#allocation2 + $0x24] sm:$0xff]  ;;  %v5474_v23 = vld [vmem:[#allocation2 + $0x2c] sm:$0xff] }
 0x50d   : > { %v9186_v39 = vld [vmem:[#allocation2 + $0x23] sm:$0xff]  ;;  %6669 = vmatmul.msk.f32.gmra.mxu3 %vm626_vm0, %v9184_v13  ;;  %v5416_v28 = vld [vmem:[#allocation2 + $0x2b] sm:$0xff] }
 0x50e   : > { %v9188_v62 = vld [vmem:[#allocation2 + $0x25] sm:$0xff]  ;;  %6673 = vmatmul.msk.f32.gmra.mxu0 %vm626_vm0, %v9186_v39  ;;  %v5532_v46 = vld [vmem:[#allocation2 + $0x2d] sm:$0xff] }
 0x50f   : > { %v5126_v36 = vld [vmem:[#allocation2 + $0x26] sm:$0xff]  ;;  %6677 = vmatmul.msk.f32.gmra.mxu1 %vm626_vm0, %v9188_v62 }
 0x510   : > { %6681 = vmatmul.msk.f32.gmra.mxu2 %vm626_vm0, %v5126_v36  ;;  %v5299_v33 = vld [vmem:[#allocation2 + $0x21] sm:$0xff]  ;;  %v5300_v3 = vld [vmem:[#allocation2 + $0x29] sm:$0xff] }
 0x511   : > { %v5357_v59 = vld [vmem:[#allocation2 + $0x22] sm:$0xff]  ;;  %v5358_v49 = vld [vmem:[#allocation2 + $0x2a] sm:$0xff] }
 0x512   : > { %v5184_v41 = vld [vmem:[#allocation2 + $0x27] sm:$0xff] }
 0x513   : > { %5619 = vst.msk [vmem:[#allocation2 + $0x20] sm:$0xff] %vm626_vm0, %v9463_v14  ;;  %v5242_v32 = vld [vmem:[#allocation2 + $0x28] sm:$0xff] }
 0x514   : > { %v5627_v50 = vld [vmem:[#allocation17 + $0x28] sm:$0xff] }
 0x515   : > { %6682 = vmatmul.msk.f32.vlgmr.msrb.gmra.mxu3 %vm626_vm0, %v5181_v55 }
 0x516   : > { %6686 = vmatmul.msk.f32.vlgmr.msra.gmra.mxu0 %vm626_vm0, %v5239_v10  ;;  %5684 = vmatpush.msrb.mxu3 %v5629_v56  ;;  %v5638_v10 = vld [vmem:[#allocation17 + $0x68] sm:$0xff] }
 0x517   : > { %6690 = vmatmul.msk.f32.vlgmr.msra.gmra.mxu1 %vm626_vm0, %v5297_v27  ;;  %5657 = vmatpush.msrb.mxu2 %v5638_v10 }
 0x518   : > { %6694 = vmatmul.msk.f32.vlgmr.msra.gmra.mxu2 %vm626_vm0, %v5355_v25  ;;  %5685 = vmatpush.msrb.mxu3 %v5628_v37  ;;  %v5789_v37 = vld [vmem:[#allocation17 + $0x118] sm:$0xff] }
 0x51a   : > { %5686 = vmatpush.msrb.mxu3 %v5627_v50  ;;  %v5787_v50 = vld [vmem:[#allocation17 + $0x108] sm:$0xff] }
 0x51d   : > { %6683 = vmatmul.msk.f32.gmra.mxu3 %vm626_vm0, %v5182_v42 }
 0x51e   : > { %6687 = vmatmul.msk.f32.gmra.mxu0 %vm626_vm0, %v5240_v30 }
 0x51f   : > { %6691 = vmatmul.msk.f32.gmra.mxu1 %vm626_vm0, %v5298_v12 }
 0x520   : > { %6695 = vmatmul.msk.f32.gmra.mxu2 %vm626_vm0, %v5356_v9 }
 0x525   : > { %6684 = vmatmul.msk.f32.gmra.mxu3 %vm626_vm0, %v5183_v22 }
 0x526   : > { %6688 = vmatmul.msk.f32.gmra.mxu0 %vm626_vm0, %v5241_v11 }
 0x527   : > { %6692 = vmatmul.msk.f32.gmra.mxu1 %vm626_vm0, %v5299_v33 }
 0x528   : > { %6696 = vmatmul.msk.f32.gmra.mxu2 %vm626_vm0, %v5357_v59 }
 0x52d   : > { %6685 = vmatmul.msk.f32.gmra.mxu3 %vm626_vm0, %v5184_v41 }
 0x52e   : > { %6689 = vmatmul.msk.f32.gmra.mxu0 %vm626_vm0, %v5242_v32 }
 0x52f   : > { %6693 = vmatmul.msk.f32.gmra.mxu1 %vm626_vm0, %v5300_v3 }
 0x530   : > { %6697 = vmatmul.msk.f32.gmra.mxu2 %vm626_vm0, %v5358_v49  ;;  %v9242_v49 = vld [vmem:[#allocation15] ss:$0 sm:$0xff] }
 0x535   : > { %6698 = vmatmul.msk.f32.vlgmr.msra.gmra.mxu3 %vm626_vm0, %v9157_v7 }
 0x536   : > { %6702 = vmatmul.msk.f32.vlgmr.msrb.gmra.mxu0 %vm626_vm0, %v9155_v63 }
 0x537   : > { %6706 = vmatmul.msk.f32.vlgmr.msrb.gmra.mxu1 %vm626_vm0, %v9159_v51 }
 0x53d   : > { %6699 = vmatmul.msk.f32.gmra.mxu3 %vm626_vm0, %v9172_v44 }
 0x53e   : > { %6703 = vmatmul.msk.f32.gmra.mxu0 %vm626_vm0, %v9170_v34 }
 0x53f   : > { %6707 = vmatmul.msk.f32.gmra.mxu1 %vm626_vm0, %v9174_v26 }
 0x545   : > { %6700 = vmatmul.msk.f32.gmra.mxu3 %vm626_vm0, %v9186_v39 }
 0x546   : > { %6704 = vmatmul.msk.f32.gmra.mxu0 %vm626_vm0, %v9184_v13 }
 0x547   : > { %6708 = vmatmul.msk.f32.gmra.mxu1 %vm626_vm0, %v9188_v62 }
 0x54d   : > { %6701 = vmatmul.msk.f32.gmra.mxu3 %vm626_vm0, %v5416_v28  ;;  %v5637_v28 = vld [vmem:[#allocation17 + $0x60] sm:$0xff] }
 0x54e   : > { %6705 = vmatmul.msk.f32.gmra.mxu0 %vm626_vm0, %v5474_v23  ;;  %v5626_v23 = vld [vmem:[#allocation17 + $0x20] sm:$0xff]  ;;  %5658 = vmatpush.msrb.mxu2 %v5637_v28 }
 0x54f   : > { %6709 = vmatmul.msk.f32.gmra.mxu1 %vm626_vm0, %v5532_v46  ;;  %5687 = vmatpush.msrb.mxu3 %v5626_v23 }
 0x573   : > { %v5053_v16 = vpop.f32.mrf.mxu0 }
 0x574   : > { %v5107_v43 = vpop.f32.mrf.mxu1 }
 0x578   : > { %v5012_v48 = vpop.f32.mrf.mxu3 }
 0x579   : > { %v5054_v44 = vadd.f32 %v5053_v16, %v5012_v48  ;;  %v5625_v48 = vld [vmem:[#allocation17 + $0x18] sm:$0xff] }
 0x57a   : > { %5688 = vmatpush.msrb.mxu3 %v5625_v48  ;;  %v5745_v48 = vld [vmem:[#allocation17 + $0xc8] sm:$0xff] }
 0x57b   : > { %v5056_v24 = vpop.f32.mrf.mxu0  ;;  %v5165_v6 = vpop.f32.mrf.mxu2  ;;  %v5119_v0 = vadd.f32 %v5107_v43, %v5054_v44  ;;  %v5636_v43 = vld [vmem:[#allocation17 + $0x58] sm:$0xff]  ;;  %v5622_v44 = vld [vmem:[#allocation17] sm:$0xff] }
 0x57c   : > { %v5110_v35 = vpop.f32.mrf.mxu1  ;;  %5659 = vmatpush.msrb.mxu2 %v5636_v43 }
 0x57d   : > { %v5177_v57 = vadd.f32 %v5165_v6, %v5119_v0  ;;  %v5624_v6 = vld [vmem:[#allocation17 + $0x10] sm:$0xff] }
 0x57e   : > { %5689 = vmatpush.msrb.mxu3 %v5624_v6 }
 0x580   : > { %v5015_v63 = vpop.f32.mrf.mxu3 }
 0x581   : > { %v5057_v31 = vadd.f32 %v5056_v24, %v5015_v63 }
 0x583   : > { %v5059_v7 = vpop.f32.mrf.mxu0  ;;  %v5168_v2 = vpop.f32.mrf.mxu2  ;;  %v5120_v62 = vadd.f32 %v5110_v35, %v5057_v31 }
 0x584   : > { %v5113_v51 = vpop.f32.mrf.mxu1 }
 0x585   : > { %v5178_v22 = vadd.f32 %v5168_v2, %v5120_v62  ;;  %v5709_v62 = vld [vmem:[#allocation17 + $0xb8] sm:$0xff] }
 0x588   : > { %v5018_v60 = vpop.f32.mrf.mxu3 }
 0x589   : > { %v5060_v11 = vadd.f32 %v5059_v7, %v5018_v60 }
 0x58b   : > { %v5062_v1 = vpop.f32.mrf.mxu0  ;;  %v5171_v52 = vpop.f32.mrf.mxu2  ;;  %v5121_v47 = vadd.f32 %v5113_v51, %v5060_v11  ;;  %v5635_v51 = vld [vmem:[#allocation17 + $0x50] sm:$0xff] }
 0x58c   : > { %v5116_v15 = vpop.f32.mrf.mxu1  ;;  %5660 = vmatpush.msrb.mxu2 %v5635_v51  ;;  %v5750_v11 = vld [vmem:[#allocation17 + $0xf0] sm:$0xff]  ;;  %v5702_v51 = vld [vmem:[#allocation17 + $0x80] sm:$0xff] }
 0x58d   : > { %v5179_v29 = vadd.f32 %v5171_v52, %v5121_v47  ;;  %v5707_v47 = vld [vmem:[#allocation17 + $0xa8] sm:$0xff] }
 0x590   : > { %v5021_v4 = vpop.f32.mrf.mxu3 }
 0x591   : > { %v5063_v27 = vadd.f32 %v5062_v1, %v5021_v4 }
 0x593   : > { %v5281_v18 = vpop.f32.mrf.mxu0  ;;  %v5174_v20 = vpop.f32.mrf.mxu2  ;;  %v5122_v46 = vadd.f32 %v5116_v15, %v5063_v27  ;;  %v5705_v27 = vld [vmem:[#allocation17 + $0x98] sm:$0xff] }
 0x594   : > { %v5339_v40 = vpop.f32.mrf.mxu1 }
 0x595   : > { %v5180_v4 = vadd.f32 %v5174_v20, %v5122_v46  ;;  %v5793_v20 = vld [vmem:[#allocation17 + $0x138] sm:$0xff]  ;;  %v5786_v46 = vld [vmem:[#allocation17 + $0x100] sm:$0xff] }
 0x596   : > { %5808 = vmatpush.msra.mxu0 %v5793_v20 }
 0x598   : > { %v5223_v61 = vpop.f32.mrf.mxu3 }
 0x599   : > { %v5235_v13 = vadd.f32 %v5223_v61, %v5177_v57 }
 0x59b   : > { %v5284_v21 = vpop.f32.mrf.mxu0  ;;  %v5293_v12 = vadd.f32 %v5281_v18, %v5235_v13  ;;  %v5397_v9 = vpop.f32.mrf.mxu2  ;;  %v5634_v18 = vld [vmem:[#allocation17 + $0x48] sm:$0xff] }
 0x59c   : > { %v5342_v54 = vpop.f32.mrf.mxu1  ;;  %5661 = vmatpush.msrb.mxu2 %v5634_v18 }
 0x59d   : > { %v5351_v33 = vadd.f32 %v5339_v40, %v5293_v12  ;;  %v5623_v40 = vld [vmem:[#allocation17 + $0x8] sm:$0xff]  ;;  %v5751_v12 = vld [vmem:[#allocation17 + $0xf8] sm:$0xff] }
 0x59e   : > { %5690 = vmatpush.msrb.mxu3 %v5623_v40 }
 0x59f   : > { %v5409_v5 = vadd.f32 %v5397_v9, %v5351_v33 }
 0x5a0   : > { %v5226_v34 = vpop.f32.mrf.mxu3  ;;  %5691 = vmatpush.msrb.mxu3 %v5622_v44 }
 0x5a1   : > { %v5236_v59 = vadd.f32 %v5226_v34, %v5178_v22  ;;  %v5633_v34 = vld [vmem:[#allocation17 + $0x40] sm:$0xff]  ;;  %v5708_v22 = vld [vmem:[#allocation17 + $0xb0] sm:$0xff] }
 0x5a2   : > { %5662 = vmatpush.msrb.mxu2 %v5633_v34  ;;  %5766 = vmatpush.msra.mxu3 %v5751_v12  ;;  %v5857_v12 = vld [vmem:[#allocation20 + $0x60] sm:$0xff] }
 0x5a3   : > { %v5287_v26 = vpop.f32.mrf.mxu0  ;;  %v5294_v55 = vadd.f32 %v5284_v21, %v5236_v59  ;;  %v5400_v42 = vpop.f32.mrf.mxu2 }
 0x5a4   : > { %v9236_v38 = vpop.f32.mrf.mxu1  ;;  %5724 = vmatpush.msra.mxu2 %v5709_v62  ;;  %5767 = vmatpush.msra.mxu3 %v5750_v11  ;;  %v5929_v62 = vld [vmem:[#allocation20 + $0xb8] sm:$0xff]  ;;  %v5847_v11 = vld [vmem:[#allocation20 + $0x28] sm:$0xff] }
 0x5a5   : > { %v5352_v30 = vadd.f32 %v5342_v54, %v5294_v55  ;;  %v5748_v55 = vld [vmem:[#allocation17 + $0xe0] sm:$0xff] }
 0x5a6   : > { %5725 = vmatpush.msra.mxu2 %v5708_v22  ;;  %v5928_v22 = vld [vmem:[#allocation20 + $0xb0] sm:$0xff] }
 0x5a7   : > { %v5410_v35 = vadd.f32 %v5400_v42, %v5352_v30  ;;  %v5747_v42 = vld [vmem:[#allocation17 + $0xd8] sm:$0xff]  ;;  %v5704_v30 = vld [vmem:[#allocation17 + $0x90] sm:$0xff] }
 0x5a8   : > { %v5229_v53 = vpop.f32.mrf.mxu3  ;;  %5726 = vmatpush.msra.mxu2 %v5707_v47  ;;  %v5846_v47 = vld [vmem:[#allocation20 + $0x20] sm:$0xff] }
 0x5a9   : > { %v5237_v32 = vadd.f32 %v5229_v53, %v5179_v29  ;;  %v5792_v53 = vld [vmem:[#allocation17 + $0x130] sm:$0xff] }
 0x5aa   : > { %5809 = vmatpush.msra.mxu0 %v5792_v53 }
 0x5ab   : > { %v9238_v58 = vpop.f32.mrf.mxu0  ;;  %v5295_v63 = vadd.f32 %v5287_v26, %v5237_v32  ;;  %v5403_v26 = vpop.f32.mrf.mxu2 }
 0x5ac   : > { %v9240_v39 = vpop.f32.mrf.mxu1 }
 0x5ad   : > { %v5353_v61 = vadd.f32 %v9236_v38, %v5295_v63  ;;  %v5791_v38 = vld [vmem:[#allocation17 + $0x128] sm:$0xff] }
 0x5ae   : > { %5810 = vmatpush.msra.mxu0 %v5791_v38  ;;  %v5858_v38 = vld [vmem:[#allocation20 + $0x68] sm:$0xff] }
 0x5af   : > { %v5411_v57 = vadd.f32 %v5403_v26, %v5353_v61 }
 0x5b0   : > { %v5232_v36 = vpop.f32.mrf.mxu3 }
 0x5b1   : > { %v5238_v21 = vadd.f32 %v5232_v36, %v5180_v4 }
 0x5b3   : > { %v5513_v41 = vpop.f32.mrf.mxu0  ;;  %v5296_v31 = vadd.f32 %v9238_v58, %v5238_v21  ;;  %v5749_v58 = vld [vmem:[#allocation17 + $0xe8] sm:$0xff]  ;;  %v5406_v29 = vpop.f32.mrf.mxu2 }
 0x5b4   : > { %v5571_v8 = vpop.f32.mrf.mxu1  ;;  %5768 = vmatpush.msra.mxu3 %v5749_v58  ;;  %v5845_v58 = vld [vmem:[#allocation20 + $0x18] sm:$0xff] }
 0x5b5   : > { %v5354_v56 = vadd.f32 %v9240_v39, %v5296_v31  ;;  %v5860_v31 = vld [vmem:[#allocation20 + $0x78] sm:$0xff] }
 0x5b6   : > { %5769 = vmatpush.msra.mxu3 %v5748_v55  ;;  %5875 = vmatpush.msra.mxu1 %v5860_v31  ;;  %v5924_v55 = vld [vmem:[#allocation20 + $0x90] sm:$0xff] }
 0x5b8   : > { %v5455_v45 = vpop.f32.mrf.mxu3  ;;  %5770 = vmatpush.msra.mxu3 %v5747_v42 }
 0x5b9   : > { %v5467_v25 = vadd.f32 %v5455_v45, %v5409_v5  ;;  %v5706_v5 = vld [vmem:[#allocation17 + $0xa0] sm:$0xff]  ;;  %v5788_v45 = vld [vmem:[#allocation17 + $0x110] sm:$0xff] }
 0x5ba   : > { %5727 = vmatpush.msra.mxu2 %v5706_v5  ;;  %v5844_v5 = vld [vmem:[#allocation20 + $0x10] sm:$0xff] }
 0x5bb   : > { %v5525_v3 = vadd.f32 %v5513_v41, %v5467_v25  ;;  %v5516_v24 = vpop.f32.mrf.mxu0  ;;  %v5790_v41 = vld [vmem:[#allocation17 + $0x120] sm:$0xff]  ;;  %v5412_v25 = vadd.f32 %v5406_v29, %v5354_v56  ;;  %v5843_v29 = vld [vmem:[#allocation20 + $0x8] sm:$0xff] }
 0x5bc   : > { %v5574_v60 = vpop.f32.mrf.mxu1  ;;  %5811 = vmatpush.msra.mxu0 %v5790_v41  ;;  %5728 = vmatpush.msra.mxu2 %v5705_v27  ;;  %v5925_v56 = vld [vmem:[#allocation20 + $0x98] sm:$0xff]  ;;  %v5923_v27 = vld [vmem:[#allocation20 + $0x88] sm:$0xff] }
 0x5bd   : > { %v5583_v16 = vadd.f32 %v5571_v8, %v5525_v3  ;;  %v5746_v3 = vld [vmem:[#allocation17 + $0xd0] sm:$0xff] }
 0x5be   : > { %5812 = vmatpush.msra.mxu0 %v5789_v37  ;;  %5729 = vmatpush.msra.mxu2 %v5704_v30  ;;  %v5854_v37 = vld [vmem:[#allocation20 + $0x48] sm:$0xff] }
 0x5bf   : > { %v5591_v7 = vadd.f32 %v9242_v49, %v5583_v16  ;;  %v5703_v16 = vld [vmem:[#allocation17 + $0x88] sm:$0xff]  ;;  %5771 = vmatpush.msra.mxu3 %v5746_v3  ;;  %v6013_v3 = vld [vmem:[#allocation20 + $0x138] sm:$0xff] }
 0x5c0   : > { %v5458_v1 = vpop.f32.mrf.mxu3  ;;  %5813 = vmatpush.msra.mxu0 %v5788_v45  ;;  %5730 = vmatpush.msra.mxu2 %v5703_v16  ;;  %v5853_v45 = vld [vmem:[#allocation20 + $0x40] sm:$0xff]  ;;  %v6011_v16 = vld [vmem:[#allocation20 + $0x128] sm:$0xff] }
 0x5c1   : > { %vm5595_vm9 = vcmp.gt.f32.partialorder %v5591_v7, 0.0  ;;  %v5599_v2 = vmul.f32 0.3, %v5591_v7  ;;  %v5468_v15 = vadd.f32 %v5458_v1, %v5410_v35  ;;  %v5744_v1 = vld [vmem:[#allocation17 + $0xc0] sm:$0xff]  ;;  %5772 = vmatpush.msra.mxu3 %v5745_v48 }
 0x5c2   : > { %5814 = vmatpush.msra.mxu0 %v5787_v50  ;;  %5731 = vmatpush.msra.mxu2 %v5702_v51  ;;  %v5922_v50 = vld [vmem:[#allocation20 + $0x80] sm:$0xff]  ;;  %v6009_v51 = vld [vmem:[#allocation20 + $0x118] sm:$0xff] }
 0x5c3   : > { %v5603_v54 = vsel %vm5595_vm9, %v5591_v7, %v5599_v2  ;;  %v5526_v52 = vadd.f32 %v5516_v24, %v5468_v15  ;;  %v5519_v9 = vpop.f32.mrf.mxu0  ;;  %5773 = vmatpush.msra.mxu3 %v5744_v1  ;;  %v6010_v48 = vld [vmem:[#allocation20 + $0x120] sm:$0xff]  ;;  %v6008_v1 = vld [vmem:[#allocation20 + $0x110] sm:$0xff] }
 0x5c4   : > { %5607 = vst.msk [vmem:[#allocation3] sm:$0xff] %vm626_vm0, %v5603_v54  ;;  %v5577_v19 = vpop.f32.mrf.mxu1  ;;  %5815 = vmatpush.msra.mxu0 %v5786_v46  ;;  %v5966_v46 = vld [vmem:[#allocation20 + $0xd0] sm:$0xff] }
 0x5c5   : > { %v5584_v0 = vadd.f32 %v5574_v60, %v5526_v52 }
 0x5c7   : > { %v5592_v13 = vadd.f32 %v9242_v49, %v5584_v0 }
 0x5c8   : > { %v5461_v36 = vpop.f32.mrf.mxu3 }
 0x5c9   : > { %vm5596_vm10 = vcmp.gt.f32.partialorder %v5592_v13, 0.0  ;;  %v5600_v33 = vmul.f32 0.3, %v5592_v13  ;;  %v5469_v59 = vadd.f32 %v5461_v36, %v5411_v57  ;;  %v5848_v36 = vld [vmem:[#allocation20 + $0x30] sm:$0xff] }
 0x5cb   : > { %v5604_v8 = vsel %vm5596_vm10, %v5592_v13, %v5600_v33  ;;  %v5527_v17 = vadd.f32 %v5519_v9, %v5469_v59  ;;  %v5522_v43 = vpop.f32.mrf.mxu0  ;;  %v5859_v13 = vld [vmem:[#allocation20 + $0x70] sm:$0xff]  ;;  %v5856_v9 = vld [vmem:[#allocation20 + $0x58] sm:$0xff]  ;;  %v5927_v33 = vld [vmem:[#allocation20 + $0xa8] sm:$0xff] }
 0x5cc   : > { %5608 = vst.msk [vmem:[#allocation3 + $0x8] sm:$0xff] %vm626_vm0, %v5604_v8  ;;  %v5580_v60 = vpop.f32.mrf.mxu1  ;;  %5876 = vmatpush.msra.mxu1 %v5859_v13  ;;  %v5971_v8 = vld [vmem:[#allocation20 + $0xf8] sm:$0xff] }
 0x5cd   : > { %v5585_v10 = vadd.f32 %v5577_v19, %v5527_v17  ;;  %v5926_v19 = vld [vmem:[#allocation20 + $0xa0] sm:$0xff]  ;;  %v5855_v17 = vld [vmem:[#allocation20 + $0x50] sm:$0xff]  ;;  %5986 = vmatpush.msrb.mxu0 %v5971_v8 }
 0x5ce   : > { %5877 = vmatpush.msra.mxu1 %v5858_v38 }
 0x5cf   : > { %v5593_v39 = vadd.f32 %v9242_v49, %v5585_v10  ;;  %v5970_v10 = vld [vmem:[#allocation20 + $0xf0] sm:$0xff] }
 0x5d0   : > { %v5464_v32 = vpop.f32.mrf.mxu3  ;;  %5878 = vmatpush.msra.mxu1 %v5857_v12  ;;  %5987 = vmatpush.msrb.mxu0 %v5970_v10 }
 0x5d1   : > { %vm5597_vm11 = vcmp.gt.f32.partialorder %v5593_v39, 0.0  ;;  %v5601_v28 = vmul.f32 0.3, %v5593_v39  ;;  %v5470_v23 = vadd.f32 %v5464_v32, %v5412_v25  ;;  %v5969_v25 = vld [vmem:[#allocation20 + $0xe8] sm:$0xff]  ;;  %v5968_v32 = vld [vmem:[#allocation20 + $0xe0] sm:$0xff] }
 0x5d2   : > { %5879 = vmatpush.msra.mxu1 %v5856_v9  ;;  %5988 = vmatpush.msrb.mxu0 %v5969_v25 }
 0x5d3   : > { %v5611_v24 = vld [vmem:[#allocation3] ss:$2 sm:$0xff]  ;;  %v5613_v35 = vld [vmem:[#allocation3 + $0x1] ss:$2 sm:$0xff]  ;;  %v5605_v63 = vsel %vm5597_vm11, %v5593_v39, %v5601_v28  ;;  %v5528_v7 = vadd.f32 %v5522_v43, %v5470_v23  ;;  %v5967_v28 = vld [vmem:[#allocation20 + $0xd8] sm:$0xff] }
 0x5d4   : > { %v5615_v6 = vmax.f32 %v5611_v24, %v5613_v35  ;;  %5609 = vst.msk [vmem:[#allocation3 + $0x10] sm:$0xff] %vm626_vm0, %v5605_v63  ;;  %5880 = vmatpush.msra.mxu1 %v5855_v17  ;;  %v5842_v39 = vld [vmem:[#allocation20] sm:$0xff]  ;;  %v6012_v23 = vld [vmem:[#allocation20 + $0x130] sm:$0xff]  ;;  %5989 = vmatpush.msrb.mxu0 %v5968_v32  ;;  %v5965_v43 = vld [vmem:[#allocation20 + $0xc8] sm:$0xff] }
 0x5d5   : > { %v5586_v4 = vadd.f32 %v5580_v60, %v5528_v7  ;;  %v5964_v7 = vld [vmem:[#allocation20 + $0xc0] sm:$0xff] }
 0x5d6   : > { %5617 = vst.msk [vmem:[#allocation2 + $0x10] sm:$0xff] %vm626_vm0, %v5615_v6  ;;  %5881 = vmatpush.msra.mxu1 %v5854_v37  ;;  %5990 = vmatpush.msrb.mxu0 %v5967_v28 }
 0x5d7   : > { %v5594_v2 = vadd.f32 %v9242_v49, %v5586_v4 }
 0x5d8   : > { %5882 = vmatpush.msra.mxu1 %v5853_v45  ;;  %5991 = vmatpush.msrb.mxu0 %v5966_v46 }
 0x5d9   : > { %vm5598_vm12 = vcmp.gt.f32.partialorder %v5594_v2, 0.0  ;;  %v5602_v15 = vmul.f32 0.3, %v5594_v2 }
 0x5da   : > { %6028 = vmatpush.msrb.mxu1 %v6013_v3  ;;  %5992 = vmatpush.msrb.mxu0 %v5965_v43 }
 0x5db   : > { %v5606_v18 = vsel %vm5598_vm12, %v5594_v2, %v5602_v15  ;;  %v6873_v2 = vld [vmem:[#allocation18] ss:$0 sm:$0xff]  ;;  %v6007_v15 = vld [vmem:[#allocation20 + $0x108] sm:$0xff] }
 0x5dc   : > { %5610 = vst.msk [vmem:[#allocation3 + $0x18] sm:$0xff] %vm626_vm0, %v5606_v18  ;;  %6029 = vmatpush.msrb.mxu1 %v6012_v23  ;;  %5993 = vmatpush.msrb.mxu0 %v5964_v7 }
 0x5dd   : > { %v5630_v40 = vld [vmem:[#allocation2 + $0xf] sm:$0xff] }
 0x5de   : > { %v5620_v61 = vld [vmem:[#allocation2 + $0xe] sm:$0xff]  ;;  %6710 = vmatmul.msk.f32.vlgmr.msrb.gmra.mxu2 %vm626_vm0, %v5630_v40  ;;  %6030 = vmatpush.msrb.mxu1 %v6011_v16  ;;  %v6006_v40 = vld [vmem:[#allocation20 + $0x100] sm:$0xff] }
 0x5df   : > { %6712 = vmatmul.msk.f32.vlgmr.msrb.gmra.mxu3 %vm626_vm0, %v5620_v61  ;;  %v5699_v20 = vld [vmem:[#allocation2 + $0x10] sm:$0xff] }
 0x5e0   : > { %5944 = vmatpush.msrb.mxu3 %v5929_v62  ;;  %6031 = vmatpush.msrb.mxu1 %v6010_v48 }
 0x5e2   : > { %5945 = vmatpush.msrb.mxu3 %v5928_v22  ;;  %6032 = vmatpush.msrb.mxu1 %v6009_v51 }
 0x5e3   : > { %v5612_v21 = vld [vmem:[#allocation3 + $0x10] ss:$2 sm:$0xff]  ;;  %v5614_v54 = vld [vmem:[#allocation3 + $0x11] ss:$2 sm:$0xff] }
 0x5e4   : > { %v5616_v52 = vmax.f32 %v5612_v21, %v5614_v54  ;;  %5946 = vmatpush.msrb.mxu3 %v5927_v33  ;;  %6033 = vmatpush.msrb.mxu1 %v6008_v1 }
 0x5e6   : > { %5618 = vst.msk [vmem:[#allocation2 + $0x18] sm:$0xff] %vm626_vm0, %v5616_v52  ;;  %5947 = vmatpush.msrb.mxu3 %v5926_v19  ;;  %6034 = vmatpush.msrb.mxu1 %v6007_v15 }
 0x5e8   : > { %5948 = vmatpush.msrb.mxu3 %v5925_v56  ;;  %6035 = vmatpush.msrb.mxu1 %v6006_v40 }
 0x5ea   : > { %5949 = vmatpush.msrb.mxu3 %v5924_v55  ;;  %v6874_v55 = vld [vmem:[#allocation21] ss:$0 sm:$0xff] }
 0x5ec   : > { %5950 = vmatpush.msrb.mxu3 %v5923_v27 }
 0x5ed   : > { %v5631_v34 = vld [vmem:[#allocation2 + $0x17] sm:$0xff] }
 0x5ee   : > { %v5621_v44 = vld [vmem:[#allocation2 + $0x16] sm:$0xff]  ;;  %6711 = vmatmul.msk.f32.gmra.mxu2 %vm626_vm0, %v5631_v34  ;;  %5951 = vmatpush.msrb.mxu3 %v5922_v50 }
 0x5ef   : > { %v5783_v49 = vld [vmem:[#allocation2 + $0x12] sm:$0xff]  ;;  %6713 = vmatmul.msk.f32.gmra.mxu3 %vm626_vm0, %v5621_v44  ;;  %v5784_v26 = vld [vmem:[#allocation2 + $0x1a] sm:$0xff] }
 0x5f0   : > { %6718 = vmatmul.msk.f32.vlgmr.msra.gmra.mxu0 %vm626_vm0, %v5783_v49  ;;  %v5742_v0 = vld [vmem:[#allocation2 + $0x19] sm:$0xff]  ;;  %v5741_v53 = vld [vmem:[#allocation2 + $0x11] sm:$0xff] }
 0x5f1   : > { %5839 = vst.msk [vmem:[#allocation2 + $0x20] sm:$0xff] %vm626_vm0, %v9463_v14  ;;  %v5700_v57 = vld [vmem:[#allocation2 + $0x18] sm:$0xff] }
 0x5f2   : > { %v5849_v14 = vld [vmem:[#allocation20 + $0x38] sm:$0xff] }
 0x5f3   : > { %5904 = vmatpush.msrb.mxu2 %v5849_v14 }
 0x5f5   : > { %5905 = vmatpush.msrb.mxu2 %v5848_v36 }
 0x5f6   : > { %6714 = vmatmul.msk.f32.vlgmr.msra.gmra.mxu2 %vm626_vm0, %v5699_v20 }
 0x5f7   : > { %6716 = vmatmul.msk.f32.vlgmr.msra.gmra.mxu3 %vm626_vm0, %v5741_v53  ;;  %5906 = vmatpush.msrb.mxu2 %v5847_v11 }
 0x5f8   : > { %6719 = vmatmul.msk.f32.gmra.mxu0 %vm626_vm0, %v5784_v26 }
 0x5f9   : > { %5907 = vmatpush.msrb.mxu2 %v5846_v47 }
 0x5fb   : > { %5908 = vmatpush.msrb.mxu2 %v5845_v58 }
 0x5fd   : > { %5909 = vmatpush.msrb.mxu2 %v5844_v5 }
 0x5fe   : > { %6715 = vmatmul.msk.f32.gmra.mxu2 %vm626_vm0, %v5700_v57 }
 0x5ff   : > { %6717 = vmatmul.msk.f32.gmra.mxu3 %vm626_vm0, %v5742_v0  ;;  %5910 = vmatpush.msrb.mxu2 %v5843_v29 }
 0x601   : > { %5911 = vmatpush.msrb.mxu2 %v5842_v39 }
 0x661   : > { %v5664_v59 = vpop.f32.mrf.mxu2 }
 0x662   : > { %v5693_v41 = vpop.f32.mrf.mxu3 }
 0x663   : > { %v5694_v24 = vadd.f32 %v5693_v41, %v5664_v59 }
 0x66d   : > { %v5817_v60 = vpop.f32.mrf.mxu0 }
 0x671   : > { %v5667_v42 = vpop.f32.mrf.mxu2 }
 0x672   : > { %v5696_v30 = vpop.f32.mrf.mxu3 }
 0x673   : > { %v5697_v61 = vadd.f32 %v5696_v30, %v5667_v42 }
 0x675   : > { %v5820_v0 = vpop.f32.mrf.mxu0 }
 0x679   : > { %v5733_v35 = vpop.f32.mrf.mxu2 }
 0x67a   : > { %v5775_v63 = vpop.f32.mrf.mxu3  ;;  %v5739_v6 = vadd.f32 %v5733_v35, %v5694_v24 }
 0x67c   : > { %v5781_v4 = vadd.f32 %v5775_v63, %v5739_v6 }
 0x67e   : > { %v5823_v18 = vadd.f32 %v5817_v60, %v5781_v4 }
 0x680   : > { %v5829_v21 = vadd.f32 %v6873_v2, %v5823_v18 }
 0x681   : > { %v5736_v54 = vpop.f32.mrf.mxu2 }
 0x682   : > { %vm5831_vm13 = vcmp.gt.f32.partialorder %v5829_v21, 0.0  ;;  %v5833_v52 = vmul.f32 0.3, %v5829_v21  ;;  %v5740_v34 = vadd.f32 %v5736_v54, %v5697_v61  ;;  %v5778_v44 = vpop.f32.mrf.mxu3 }
 0x684   : > { %v5835_v49 = vsel %vm5831_vm13, %v5829_v21, %v5833_v52  ;;  %v5782_v26 = vadd.f32 %v5778_v44, %v5740_v34 }
 0x685   : > { %5837 = vst.msk [vmem:[#allocation2 + $0x10] sm:$0xff] %vm626_vm0, %v5835_v49 }
 0x686   : > { %v5824_v20 = vadd.f32 %v5820_v0, %v5782_v26 }
 0x688   : > { %v5830_v53 = vadd.f32 %v6873_v2, %v5824_v20 }
 0x68a   : > { %vm5832_vm14 = vcmp.gt.f32.partialorder %v5830_v53, 0.0  ;;  %v5834_v57 = vmul.f32 0.3, %v5830_v53 }
 0x68c   : > { %v5836_v31 = vsel %vm5832_vm14, %v5830_v53, %v5834_v57  ;;  %v5850_v13 = vld [vmem:[#allocation2 + $0xf] sm:$0xff] }
 0x68d   : > { %v5840_v38 = vld [vmem:[#allocation2 + $0xe] sm:$0xff]  ;;  %5838 = vst.msk [vmem:[#allocation2 + $0x18] sm:$0xff] %vm626_vm0, %v5836_v31  ;;  %6720 = vmatmul.msk.f32.vlgmr.msra.gmra.mxu1 %vm626_vm0, %v5850_v13 }
 0x68e   : > { %v5919_v14 = vld [vmem:[#allocation2 + $0x10] sm:$0xff]  ;;  %6722 = vmatmul.msk.f32.vlgmr.msrb.gmra.mxu2 %vm626_vm0, %v5840_v38 }
 0x68f   : > { %6724 = vmatmul.msk.f32.vlgmr.msrb.gmra.mxu3 %vm626_vm0, %v5919_v14 }
 0x694   : > { %v5851_v62 = vld [vmem:[#allocation2 + $0x17] sm:$0xff] }
 0x695   : > { %v5841_v12 = vld [vmem:[#allocation2 + $0x16] sm:$0xff]  ;;  %6721 = vmatmul.msk.f32.gmra.mxu1 %vm626_vm0, %v5851_v62 }
 0x696   : > { %v5920_v9 = vld [vmem:[#allocation2 + $0x18] sm:$0xff]  ;;  %6723 = vmatmul.msk.f32.gmra.mxu2 %vm626_vm0, %v5841_v12 }
 0x697   : > { %v5961_v36 = vld [vmem:[#allocation2 + $0x11] sm:$0xff]  ;;  %6725 = vmatmul.msk.f32.gmra.mxu3 %vm626_vm0, %v5920_v9  ;;  %v5962_v11 = vld [vmem:[#allocation2 + $0x19] sm:$0xff] }
 0x698   : > { %6726 = vmatmul.msk.f32.vlgmr.msrb.gmra.mxu0 %vm626_vm0, %v5961_v36  ;;  %v6003_v22 = vld [vmem:[#allocation2 + $0x12] sm:$0xff]  ;;  %v6004_v33 = vld [vmem:[#allocation2 + $0x1a] sm:$0xff] }
 0x69d   : > { %6728 = vmatmul.msk.f32.vlgmr.msrb.gmra.mxu1 %vm626_vm0, %v6003_v22 }
 0x6a0   : > { %6727 = vmatmul.msk.f32.gmra.mxu0 %vm626_vm0, %v5962_v11 }
 0x6a5   : > { %6729 = vmatmul.msk.f32.gmra.mxu1 %vm626_vm0, %v6004_v33 }
 0x70a   : > { %v5884_v59 = vpop.f32.mrf.mxu1 }
 0x711   : > { %v5913_v41 = vpop.f32.mrf.mxu2 }
 0x712   : > { %v5914_v47 = vadd.f32 %v5913_v41, %v5884_v59  ;;  %v5953_v19 = vpop.f32.mrf.mxu3  ;;  %v5887_v58 = vpop.f32.mrf.mxu1 }
 0x714   : > { %v5959_v56 = vadd.f32 %v5953_v19, %v5914_v47 }
 0x715   : > { %v5995_v8 = vpop.f32.mrf.mxu0 }
 0x716   : > { %v6001_v37 = vadd.f32 %v5995_v8, %v5959_v56 }
 0x719   : > { %v5916_v17 = vpop.f32.mrf.mxu2 }
 0x71a   : > { %v5917_v5 = vadd.f32 %v5916_v17, %v5887_v58  ;;  %v6037_v10 = vpop.f32.mrf.mxu1  ;;  %v5956_v29 = vpop.f32.mrf.mxu3 }
 0x71b   : > { %v6043_v45 = vadd.f32 %v6037_v10, %v6001_v37 }
 0x71c   : > { %v5960_v27 = vadd.f32 %v5956_v29, %v5917_v5 }
 0x71d   : > { %v6049_v25 = vadd.f32 %v6874_v55, %v6043_v45  ;;  %v5998_v50 = vpop.f32.mrf.mxu0 }
 0x71e   : > { %v6002_v42 = vadd.f32 %v5998_v50, %v5960_v27 }
 0x71f   : > { %vm6051_vm15 = vcmp.gt.f32.partialorder %v6049_v25, 0.0  ;;  %v6053_v39 = vmul.f32 0.3, %v6049_v25 }
 0x721   : > { %v6055_v30 = vsel %vm6051_vm15, %v6049_v25, %v6053_v39 }
 0x722   : > { %6057 = vst.msk [vmem:[#allocation3] sm:$0xff] %vm626_vm0, %v6055_v30  ;;  %v6040_v32 = vpop.f32.mrf.mxu1 }
 0x723   : > { %v6044_v3 = vadd.f32 %v6040_v32, %v6002_v42 }
 0x725   : > { %v6050_v28 = vadd.f32 %v6874_v55, %v6044_v3 }
 0x727   : > { %vm6052_vm1 = vcmp.gt.f32.partialorder %v6050_v28, 0.0  ;;  %v6054_v23 = vmul.f32 0.3, %v6050_v28 }
 0x729   : > { %v6056_v46 = vsel %vm6052_vm1, %v6050_v28, %v6054_v23 }
 0x72a   : > { %6058 = vst.msk [vmem:[#allocation3 + $0x8] sm:$0xff] %vm626_vm0, %v6056_v46 }
 0x731   : > { %v6059_v16 = vld [vmem:[#allocation3] ss:$2 sm:$0xff]  ;;  %v6060_v43 = vld [vmem:[#allocation3 + $0x1] ss:$2 sm:$0xff] }
 0x732   : > { %v6061_v48 = vmax.f32 %v6059_v16, %v6060_v43 }
 0x734   : > { %6062 = vst.msk [vmem:[%s625_s24] sm:$0xff] %vm626_vm0, %v6061_v48 }
 0x735 PF: > { %s30_s25 = sadd.s32 1, %s7269_s25  }
 0x736   : > { %p27_p7 = scmp.ge.s32.totalorder %s30_s25, 4  }
 0x738   :  { %29 = sbr.rel (!%p27_p7) target bundleno = 10 (0xa), region = 226 }
 0x73d   :  { %6082 = vsyncpa [#allocation5], 1 }
 0x73e   :  { %6084 = vsyncpa [#allocation5 + $0x1], 1 }
 0x73f   :  { %6085 = vsyncpa [#allocation7], 1 }
 0x740   :  { %6086 = vsyncpa [#allocation10], 1 }
 0x741   :  { %6087 = vsyncpa [#allocation13], 1 }
 0x742   :  { %6088 = vsyncpa [#allocation16], 1 }
 0x743   :  { %6089 = vsyncpa [#allocation19], 1 }
 0x744   :  { %6090 = vsyncpa [#allocation22], 1 }

// kernel: unified_cnn_forward.3
= control target key start
LH: loop header
LB: loop body
LE: loop exit
PB: predicated region body
PF: predicated region fallthrough
CT: control target
= control target key end

     0   :  { %s7613_s0 = inlined_call_operand.vmem [shape: bf16[2,512], index: 0, kind: input, shape index: {}]   ;;  %s7614_s1 = inlined_call_operand.hbm [shape: bf16[2048,512], index: 1, kind: input, shape index: {}]   ;;  %s7615_s2 = inlined_call_operand.hbm [shape: f32[1,2048], index: 2, kind: input, shape index: {}]   ;;  %s7616_s3 = inlined_call_operand.hbm [shape: bf16[2048,1024], index: 3, kind: input, shape index: {}]   ;;  %s7617_s4 = inlined_call_operand.hbm [shape: f32[1,1024], index: 4, kind: input, shape index: {}]   ;;  %s7618_s5 = inlined_call_operand.vmem [shape: f32[1024,8], index: 5, kind: input, shape index: {}]   ;;  %s7619_s6 = inlined_call_operand.hbm [shape: f32[1,8], index: 6, kind: input, shape index: {}]   ;;  %s7620_s7 = inlined_call_operand.hbm [shape: f32[2,8], index: 7, kind: output, shape index: {}]  }
   0x1   :  { %7621 = sst [smem:[#allocation18_spill]] %s7615_s2 }
   0x2   :  { %7622 = sst [smem:[#allocation19_spill]] %s7617_s4 }
   0x3   :  { %7623 = sst [smem:[#allocation20_spill]] %s7619_s6 }
   0x4   :  { %12 = vsyncpa [#allocation4], 0 }
   0x5   :  { %14 = vsyncpa [#allocation4 + $0x1], 0 }
   0x6   :  { %15 = vsyncpa [#allocation7], 0 }
   0x7   :  { %17 = vsyncpa [#allocation7 + $0x1], 0 }
   0x8   :  { %18 = vsyncpa [#allocation10], 0 }
   0x9   :  { %19 = vsyncpa [#allocation5], 0  ;;  %s6165_s24 = smov 0   ;;  %s6167_s25 = smov 0  }
   0xa   :  { %s6169_s26 = smov 0   ;;  %s6171_s27 = smov 0  }
   0xb LB: > { %s6184_s28 = sadd.s32 4294967295, %s6115_s27   ;;  %p66_p0 = scmp.ne.s32.totalorder %s6107_s25, %s6103_s24  ;;  %s6115_s27 = sphi %s6171_s27, %s7637_s27   ;;  %s6111_s26 = sphi %s6169_s26, %s7636_s26   ;;  %s6107_s25 = sphi %s6167_s25, %s7635_s25   ;;  %s6103_s24 = sphi %s6165_s24, %s7634_s24  }
   0xc   : > { %p67_p1 = scmp.eq.s32.totalorder %s6184_s28, 0  ;;  %p3858_p2 = scmp.ge.s32.totalorder %s6115_s27, 1 }
   0xd   : > { %p213_p3 = scmp.lt.s32.totalorder %s6115_s27, 5  ;;  %p3859_p4 = scmp.ne.s32.totalorder %s6184_s28, 0 }
   0xe   : > { %p6193_p5 = por %p67_p1, %p66_p0  ;;  %s7625_s4 = sld [smem:[#allocation19_spill]] }
   0xf   : > { %p6200_p6 = pnand %p3858_p2, %p213_p3  ;;  %s6117_s11 = smov [#allocation9]  }
  0x10   : > { %s230_s12 = sshll.u32 %s6117_s11, 4  ;;  %s6213_s14 = sadd.s32 1, %s6115_s27   ;;  %s231_s12 = int_to_ptr.vmem [resolvable:$true] %s230_s12 }
  0x11   : > { %p5826_p7 = pneg %p6200_p6  ;;  %s53_s15 = sadd.s32 1, %s6111_s26 }
  0x12   : > { %s50_s16 = ssub.s32 %s6115_s27, %s6213_s14  ;;  %p60_p10 = scmp.ne.s32.totalorder %s6111_s26, %s6107_s25 }
  0x13   : > { %p6208_p8 = pnand %p5826_p7, %p67_p1  ;;  %p51_p9 = scmp.eq.s32.totalorder %s50_s16, 0 }
  0x14   : > { %s228_s9 = sshll.u32 %s7625_s4, 4  ;;  %p61_p11 = scmp.eq.s32.totalorder %s6115_s27, 0  ;;  %s229_s9 = int_to_ptr.hbm [resolvable:$true] %s228_s9 }
  0x15   : > { %5829 = dma.hbm_to_vmem [thread:$0]  (!%p6208_p8), %s229_s9, 128, %s231_s12, [#allocation10]  }
  0x16   : > { %p5845_p12 = scmp.lt.s32.totalorder %s6115_s27, 4  ;;  %p62_p13 = por %p61_p11, %p60_p10 }
  0x17   : > { %s6225_s17 = scalar_select %p51_p9, %s6111_s26, %s53_s15  }
  0x18   : > { %s6228_s18 = sand.u32 1, %s6111_s26   ;;  %s279_s19 = sand.u32 1, %s6115_s27  }
  0x19   : > { %7628 = sst [smem:[#allocation17_spill]] %s6225_s17  ;;  %s3866_s20 = sshll.u32 %s6228_s18, 2 }
  0x1a   : > { %p6232_p0 = pnand %p5845_p12, %p62_p13  ;;  %s3867_s22 = sshll.u32 %s6115_s27, 2 }
  0x1b   : > { %s7630_s2 = sld [smem:[#allocation18_spill]]  ;;  %s283_s9 = scalar_lea.vmem [#allocation6], %s3866_s20 }
  0x1c   : > { %s291_s11 = sshll.u32 %s283_s9, 4  ;;  %s6240_s12 = scalar_lea.sflag [#allocation7], %s279_s19  ;;  %s292_s11 = int_to_ptr.vmem [resolvable:$true] %s291_s11 }
  0x1d   : > { %p5925_p3 = pneg %p6232_p0 }
  0x21   : > { %s287_s30 = scalar_lea.hbm %s7630_s2, %s3867_s22  ;;  %s5928_s22 = scalar_lea.hbm %s7630_s2, 16 }
  0x22   : > { %s289_s8 = sshll.u32 %s287_s30, 4  ;;  %s290_s8 = int_to_ptr.hbm [resolvable:$true] %s289_s8 }
  0x23   : > { %s5921_s15 = sshra.s32 %s290_s8, 4  ;;  %s5922_s15 = int_to_ptr.hbm [resolvable:$true] %s5921_s15 }
  0x24   : > { %s5923_s16 = scalar_lea.hbm %s5922_s15, 4  ;;  %p5929_p10 = scmp.lt.s32.totalorder %s5922_s15, %s7630_s2 }
  0x25   : > { %p5924_p2 = scmp.ne.s32.totalorder %s5922_s15, %s5923_s16  ;;  %p5930_p11 = scmp.lt.s32.totalorder %s5928_s22, %s5923_s16 }
  0x27   : > { %p5926_p7 = pnand %p5925_p3, %p5924_p2  ;;  %p5931_p12 = por %p5930_p11, %p5929_p10 }
  0x29   : > { %p5927_p9 = pneg %p5926_p7 }
  0x2b   : > { %p5932_p13 = pnand %p5931_p12, %p5927_p9 }
  0x2d   : > { %5935 = shalt.err (!%p5932_p13)
}
  0x2e   : > { %5839 = dma.hbm_to_vmem [thread:$0]  (!%p6232_p0), %s290_s8, 64, %s292_s11, %s6240_s12  }
  0x2f   : > { %s7631_s6 = sld [smem:[#allocation20_spill]]  ;;  %s6118_s15 = smov [#allocation11]  }
  0x30   : > { %s245_s16 = sshll.u32 %s6118_s15, 4  ;;  %s3862_s23 = sshll.u32 %s6228_s18, 10  ;;  %s246_s16 = int_to_ptr.vmem [resolvable:$true] %s245_s16 }
  0x31   : > { %s5421_s22 = sshll.u32 %s6115_s27, 10  ;;  %s260_s8 = scalar_lea.vmem [#allocation3], %s3862_s23 }
  0x32   : > { %s266_s2 = scalar_lea.hbm %s7614_s1, %s5421_s22  ;;  %s269_s11 = sshll.u32 %s260_s8, 4  ;;  %s270_s11 = int_to_ptr.vmem [resolvable:$true] %s269_s11 }
  0x33   : > { %s267_s19 = sshll.u32 %s266_s2, 4  ;;  %s257_s4 = scalar_lea.sflag [#allocation4], %s6228_s18  ;;  %s268_s19 = int_to_ptr.hbm [resolvable:$true] %s267_s19 }
  0x34   : > { %s5981_s30 = sshra.s32 %s268_s19, 4  ;;  %s5988_s15 = scalar_lea.hbm %s7614_s1, 4096  ;;  %s5982_s30 = int_to_ptr.hbm [resolvable:$true] %s5981_s30 }
  0x35   : > { %s243_s9 = sshll.u32 %s7631_s6, 4  ;;  %s5983_s6 = scalar_lea.hbm %s5982_s30, 1024  ;;  %s244_s9 = int_to_ptr.hbm [resolvable:$true] %s243_s9 }
  0x36   : > { %5832 = dma.hbm_to_vmem [thread:$0]  (!%p6208_p8), %s244_s9, 16, %s246_s16, [#allocation10]  }
  0x37   : > { %p5984_p2 = scmp.ne.s32.totalorder %s5982_s30, %s5983_s6  ;;  %p5989_p8 = scmp.lt.s32.totalorder %s5982_s30, %s7614_s1 }
  0x38   : > { %p5990_p10 = scmp.lt.s32.totalorder %s5988_s15, %s5983_s6 }
  0x39   : > { %p5986_p7 = pnand %p5984_p2, %p5925_p3 }
  0x3a   : > { %p5991_p11 = por %p5990_p10, %p5989_p8 }
  0x3b   : > { %p5987_p9 = pneg %p5986_p7 }
  0x3d   : > { %p5992_p12 = pnand %p5991_p11, %p5987_p9 }
  0x3f   : > { %5995 = shalt.err (!%p5992_p12)
}
  0x40   : > { %s6119_s2 = smov 256   ;;  %s6120_s23 = smov 16  }
  0x41   : > { %5836 = dma.hbm_to_vmem [thread:$0]  (!%p6232_p0), %s268_s19, 16384, %s270_s11, %s257_s4, %s6119_s2, %s6119_s2, %s6120_s23  }
  0x42   : > { %s5423_s20 = sshll.u32 %s6115_s27, 11  ;;  %s7632_s24 = sshll.u32 %s6228_s18, 11 }
  0x43   : > { %s302_s8 = scalar_lea.vmem [#allocation8], %s7632_s24  ;;  %s308_s30 = scalar_lea.hbm %s7616_s3, %s5423_s20 }
  0x44   : > { %s311_s13 = sshll.u32 %s302_s8, 4  ;;  %s309_s6 = sshll.u32 %s308_s30, 4  ;;  %s312_s13 = int_to_ptr.vmem [resolvable:$true] %s311_s13  ;;  %s310_s6 = int_to_ptr.hbm [resolvable:$true] %s309_s6 }
  0x45   : > { %s6011_s15 = sshra.s32 %s310_s6, 4  ;;  %s6018_s18 = scalar_lea.hbm %s7616_s3, 8192  ;;  %s6012_s15 = int_to_ptr.hbm [resolvable:$true] %s6011_s15 }
  0x46   : > { %s6013_s16 = scalar_lea.hbm %s6012_s15, 2048  ;;  %p6019_p9 = scmp.lt.s32.totalorder %s6012_s15, %s7616_s3 }
  0x47   : > { %p6014_p13 = scmp.ne.s32.totalorder %s6012_s15, %s6013_s16  ;;  %p6020_p8 = scmp.lt.s32.totalorder %s6018_s18, %s6013_s16 }
  0x49   : > { %p6016_p2 = pnand %p6014_p13, %p5925_p3  ;;  %p6021_p10 = por %p6020_p8, %p6019_p9 }
  0x4b   : > { %p6017_p7 = pneg %p6016_p2 }
  0x4d   : > { %p6022_p11 = pnand %p6021_p10, %p6017_p7 }
  0x4f   : > { %6025 = shalt.err (!%p6022_p11)
}
  0x50   : > { %s6121_s17 = smov 512   ;;  %s6122_s22 = smov 32  }
  0x51   : > { %5842 = dma.hbm_to_vmem [thread:$0]  (!%p6232_p0), %s310_s6, 32768, %s312_s13, %s6240_s12, %s6121_s17, %s6121_s17, %s6122_s22  }
  0x52   : > { %323 = sbr.rel (%p6200_p6) target bundleno = 1044 (0x414), region = 48  ;;  %s325_s2 = sand.u32 (!%p6200_p6), 1, %s6107_s25  }
  0x53   : > { %s3873_s23 = sshll.u32 (!%p6200_p6), %s325_s2, 10  ;;  %s326_s20 = scalar_lea.sflag (!%p6200_p6), [#allocation4], %s325_s2 }
  0x54   : > { %s6300_s24 = scalar_lea.vmem (!%p6200_p6), [#allocation3], %s3873_s23 }
  0x57   : > { %6086 = dma.done.wait (%p6193_p5), %s326_s20, 16384  }
  0x58   : > { %6088 = vsyncadd (%p6193_p5), %s326_s20, 4294950912  ;;  %s335_s8 = sand.u32 1, %s6184_s28   ;;  %s3874_s21 = sshll.u32 %s325_s2, 2 }
  0x59   : > { %s336_s12 = scalar_lea.sflag [#allocation7], %s335_s8  ;;  %s6307_s13 = scalar_lea.vmem [#allocation6], %s3874_s21 }
  0x5a   : > { %6090 = dma.done.wait (%p6193_p5), %s336_s12, 32832  }
  0x5b   : > { %6092 = vsyncadd (%p6193_p5), %s336_s12, 4294934464  ;;  %s3875_s10 = sshll.u32 %s325_s2, 11 }
  0x5c   : > { %s6313_s9 = scalar_lea.vmem [#allocation8], %s3875_s10 }
  0x5d   : > { %6094 = dma.done.wait (%p67_p1), [#allocation10], 144  }
  0x5e   : > { %6096 = vsyncadd (%p67_p1), [#allocation10], 4294967152  ;;  %402 = sbr.rel (%p3859_p4) target bundleno = 102 (0x66), region = 72 }
  0x63   : > { %v6123_v0 = vmov 0.0  }
  0x64   : > { %403 = vst [vmem:[#allocation2] sm:$0xff] %v6123_v0 }
  0x65   : > { %404 = vst [vmem:[#allocation2 + $0x8] sm:$0xff] %v6123_v0 }
  0x66 PF: > { %v3993_v1 = vld [vmem:[%s6300_s24 + $0xe0] sm:$0xf]  ;;  %v5454_v2 = vld [vmem:[%s6300_s24 + $0xec] sm:$0xf0]  ;;  %v5452_v3 = vld [vmem:[%s6300_s24 + $0xe4] sm:$0xf] }
  0x67   : > { %v3994_v4 = vor.u32 %v5454_v2, %v3993_v1  ;;  %v3995_v5 = vld [vmem:[%s6300_s24 + $0xf0] sm:$0xf0]  ;;  %v4001_v6 = vld [vmem:[%s6300_s24 + $0xe8] sm:$0xf]  ;;  %v5455_v7 = vld [vmem:[%s6300_s24 + $0xf4] sm:$0xf0] }
  0x68   : > { %v3998_v8 = vor.u32 %v5452_v3, %v3995_v5  ;;  %v4002_v9 = vor.u32 %v5455_v7, %v4001_v6  ;;  %v5453_v10 = vld [vmem:[%s6300_s24 + $0xec] sm:$0xf]  ;;  %v4003_v11 = vld [vmem:[%s6300_s24 + $0xf8] sm:$0xf0]  ;;  %v3977_v13 = vld [vmem:[%s6300_s24 + $0xc0] sm:$0xf] }
  0x69   : > { %1194 = vmatpush.bf16.xpose.msra.mxu0 %v3994_v4  ;;  %v4006_v12 = vor.u32 %v5453_v10, %v4003_v11  ;;  %v5450_v14 = vld [vmem:[%s6300_s24 + $0xcc] sm:$0xf0]  ;;  %v5448_v15 = vld [vmem:[%s6300_s24 + $0xc4] sm:$0xf]  ;;  %v3979_v16 = vld [vmem:[%s6300_s24 + $0xd0] sm:$0xf0] }
  0x6a   : > { %1207 = vmatpush.bf16.xpose.msra.mxu1 %v3998_v8  ;;  %1220 = vmatpush.bf16.xpose.msra.mxu2 %v4002_v9  ;;  %v3985_v17 = vld [vmem:[%s6300_s24 + $0xc8] sm:$0xf]  ;;  %v5451_v18 = vld [vmem:[%s6300_s24 + $0xd4] sm:$0xf0]  ;;  %v5449_v19 = vld [vmem:[%s6300_s24 + $0xcc] sm:$0xf]  ;;  %v3978_v21 = vor.u32 %v5450_v14, %v3977_v13  ;;  %v3982_v22 = vor.u32 %v5448_v15, %v3979_v16 }
  0x6b   : > { %1233 = vmatpush.bf16.xpose.msra.mxu3 %v4006_v12  ;;  %v3987_v20 = vld [vmem:[%s6300_s24 + $0xd8] sm:$0xf0]  ;;  %v3986_v23 = vor.u32 %v5451_v18, %v3985_v17  ;;  %v3961_v25 = vld [vmem:[%s6300_s24 + $0xa0] sm:$0xf]  ;;  %v5446_v26 = vld [vmem:[%s6300_s24 + $0xac] sm:$0xf0] }
  0x6c   : > { %v3990_v24 = vor.u32 %v5449_v19, %v3987_v20  ;;  %v5444_v27 = vld [vmem:[%s6300_s24 + $0xa4] sm:$0xf]  ;;  %v3963_v28 = vld [vmem:[%s6300_s24 + $0xb0] sm:$0xf0]  ;;  %v3969_v29 = vld [vmem:[%s6300_s24 + $0xa8] sm:$0xf]  ;;  %v3962_v33 = vor.u32 %v5446_v26, %v3961_v25 }
  0x6d   : > { %v5447_v30 = vld [vmem:[%s6300_s24 + $0xb4] sm:$0xf0]  ;;  %v5445_v31 = vld [vmem:[%s6300_s24 + $0xac] sm:$0xf]  ;;  %v3971_v32 = vld [vmem:[%s6300_s24 + $0xb8] sm:$0xf0]  ;;  %v3966_v34 = vor.u32 %v5444_v27, %v3963_v28 }
  0x6e   : > { %v3970_v35 = vor.u32 %v5447_v30, %v3969_v29  ;;  %v3974_v36 = vor.u32 %v5445_v31, %v3971_v32  ;;  %v3945_v37 = vld [vmem:[%s6300_s24 + $0x80] sm:$0xf]  ;;  %v5442_v38 = vld [vmem:[%s6300_s24 + $0x8c] sm:$0xf0]  ;;  %v5440_v39 = vld [vmem:[%s6300_s24 + $0x84] sm:$0xf] }
  0x6f   : > { %v3947_v40 = vld [vmem:[%s6300_s24 + $0x90] sm:$0xf0]  ;;  %v3953_v41 = vld [vmem:[%s6300_s24 + $0x88] sm:$0xf]  ;;  %v5443_v42 = vld [vmem:[%s6300_s24 + $0x94] sm:$0xf0]  ;;  %v3946_v45 = vor.u32 %v5442_v38, %v3945_v37 }
  0x70   : > { %v5441_v43 = vld [vmem:[%s6300_s24 + $0x8c] sm:$0xf]  ;;  %v3955_v44 = vld [vmem:[%s6300_s24 + $0x98] sm:$0xf0]  ;;  %v3950_v46 = vor.u32 %v5440_v39, %v3947_v40  ;;  %v3954_v47 = vor.u32 %v5443_v42, %v3953_v41  ;;  %v3929_v49 = vld [vmem:[%s6300_s24 + $0x60] sm:$0xf] }
  0x71   : > { %1195 = vmatpush.bf16.xpose.msra.mxu0 %v3978_v21  ;;  %v3958_v48 = vor.u32 %v5441_v43, %v3955_v44  ;;  %v5438_v50 = vld [vmem:[%s6300_s24 + $0x6c] sm:$0xf0]  ;;  %v5436_v51 = vld [vmem:[%s6300_s24 + $0x64] sm:$0xf]  ;;  %v3931_v52 = vld [vmem:[%s6300_s24 + $0x70] sm:$0xf0] }
  0x72   : > { %1208 = vmatpush.bf16.xpose.msra.mxu1 %v3982_v22  ;;  %1221 = vmatpush.bf16.xpose.msra.mxu2 %v3986_v23  ;;  %v3937_v53 = vld [vmem:[%s6300_s24 + $0x68] sm:$0xf]  ;;  %v5439_v54 = vld [vmem:[%s6300_s24 + $0x74] sm:$0xf0]  ;;  %v5437_v55 = vld [vmem:[%s6300_s24 + $0x6c] sm:$0xf]  ;;  %v3930_v57 = vor.u32 %v5438_v50, %v3929_v49  ;;  %v3934_v58 = vor.u32 %v5436_v51, %v3931_v52 }
  0x73   : > { %1234 = vmatpush.bf16.xpose.msra.mxu3 %v3990_v24  ;;  %v3939_v56 = vld [vmem:[%s6300_s24 + $0x78] sm:$0xf0]  ;;  %v3938_v59 = vor.u32 %v5439_v54, %v3937_v53  ;;  %v3913_v61 = vld [vmem:[%s6300_s24 + $0x40] sm:$0xf]  ;;  %v5434_v62 = vld [vmem:[%s6300_s24 + $0x4c] sm:$0xf0] }
  0x74   : > { %v3942_v60 = vor.u32 %v5437_v55, %v3939_v56  ;;  %v5432_v63 = vld [vmem:[%s6300_s24 + $0x44] sm:$0xf]  ;;  %v3915_v0 = vld [vmem:[%s6300_s24 + $0x50] sm:$0xf0]  ;;  %v3921_v1 = vld [vmem:[%s6300_s24 + $0x48] sm:$0xf]  ;;  %v3914_v5 = vor.u32 %v5434_v62, %v3913_v61 }
  0x75   : > { %v5435_v2 = vld [vmem:[%s6300_s24 + $0x54] sm:$0xf0]  ;;  %v5433_v3 = vld [vmem:[%s6300_s24 + $0x4c] sm:$0xf]  ;;  %v3923_v4 = vld [vmem:[%s6300_s24 + $0x58] sm:$0xf0]  ;;  %v3918_v6 = vor.u32 %v5432_v63, %v3915_v0 }
  0x76   : > { %v3922_v7 = vor.u32 %v5435_v2, %v3921_v1  ;;  %v3926_v8 = vor.u32 %v5433_v3, %v3923_v4  ;;  %v3897_v9 = vld [vmem:[%s6300_s24 + $0x20] sm:$0xf]  ;;  %v5430_v10 = vld [vmem:[%s6300_s24 + $0x2c] sm:$0xf0]  ;;  %v5428_v11 = vld [vmem:[%s6300_s24 + $0x24] sm:$0xf] }
  0x77   : > { %v3899_v12 = vld [vmem:[%s6300_s24 + $0x30] sm:$0xf0]  ;;  %v3905_v13 = vld [vmem:[%s6300_s24 + $0x28] sm:$0xf]  ;;  %v5431_v14 = vld [vmem:[%s6300_s24 + $0x34] sm:$0xf0]  ;;  %v3898_v17 = vor.u32 %v5430_v10, %v3897_v9 }
  0x78   : > { %v5429_v15 = vld [vmem:[%s6300_s24 + $0x2c] sm:$0xf]  ;;  %v3907_v16 = vld [vmem:[%s6300_s24 + $0x38] sm:$0xf0]  ;;  %v3902_v18 = vor.u32 %v5428_v11, %v3899_v12  ;;  %v3906_v19 = vor.u32 %v5431_v14, %v3905_v13  ;;  %v3881_v21 = vld [vmem:[%s6300_s24] sm:$0xf] }
  0x79   : > { %1196 = vmatpush.bf16.xpose.msra.mxu0 %v3962_v33  ;;  %v3910_v20 = vor.u32 %v5429_v15, %v3907_v16  ;;  %v5426_v22 = vld [vmem:[%s6300_s24 + $0xc] sm:$0xf0]  ;;  %v5424_v23 = vld [vmem:[%s6300_s24 + $0x4] sm:$0xf]  ;;  %v3883_v24 = vld [vmem:[%s6300_s24 + $0x10] sm:$0xf0] }
  0x7a   : > { %1209 = vmatpush.bf16.xpose.msra.mxu1 %v3966_v34  ;;  %1222 = vmatpush.bf16.xpose.msra.mxu2 %v3970_v35  ;;  %v3889_v25 = vld [vmem:[%s6300_s24 + $0x8] sm:$0xf]  ;;  %v5427_v26 = vld [vmem:[%s6300_s24 + $0x14] sm:$0xf0]  ;;  %v5425_v27 = vld [vmem:[%s6300_s24 + $0xc] sm:$0xf]  ;;  %v3882_v32 = vor.u32 %v5426_v22, %v3881_v21 }
  0x7b   : > { %1235 = vmatpush.bf16.xpose.msra.mxu3 %v3974_v36  ;;  %v3891_v28 = vld [vmem:[%s6300_s24 + $0x18] sm:$0xf0]  ;;  %v4121_v29 = vld [vmem:[%s6300_s24 + $0x1e0] sm:$0xf]  ;;  %v5486_v30 = vld [vmem:[%s6300_s24 + $0x1ec] sm:$0xf0]  ;;  %v3886_v36 = vor.u32 %v5424_v23, %v3883_v24  ;;  %v3890_v37 = vor.u32 %v5427_v26, %v3889_v25 }
  0x7c   : > { %v5484_v31 = vld [vmem:[%s6300_s24 + $0x1e4] sm:$0xf]  ;;  %v4123_v33 = vld [vmem:[%s6300_s24 + $0x1f0] sm:$0xf0]  ;;  %v4129_v34 = vld [vmem:[%s6300_s24 + $0x1e8] sm:$0xf]  ;;  %v3894_v40 = vor.u32 %v5425_v27, %v3891_v28  ;;  %v4122_v41 = vor.u32 %v5486_v30, %v4121_v29 }
  0x7d   : > { %v5487_v35 = vld [vmem:[%s6300_s24 + $0x1f4] sm:$0xf0]  ;;  %v5485_v38 = vld [vmem:[%s6300_s24 + $0x1ec] sm:$0xf]  ;;  %v4131_v39 = vld [vmem:[%s6300_s24 + $0x1f8] sm:$0xf0]  ;;  %v4126_v42 = vor.u32 %v5484_v31, %v4123_v33 }
  0x7e   : > { %v4130_v43 = vor.u32 %v5487_v35, %v4129_v34  ;;  %v4134_v44 = vor.u32 %v5485_v38, %v4131_v39  ;;  %v4113_v49 = vld [vmem:[%s6300_s24 + $0x1c8] sm:$0xf]  ;;  %v5483_v50 = vld [vmem:[%s6300_s24 + $0x1d4] sm:$0xf0]  ;;  %v5481_v51 = vld [vmem:[%s6300_s24 + $0x1cc] sm:$0xf] }
  0x7f   : > { %v4115_v52 = vld [vmem:[%s6300_s24 + $0x1d8] sm:$0xf0]  ;;  %v4114_v55 = vor.u32 %v5483_v50, %v4113_v49  ;;  %v405_v61 = vld [vmem:[%s7613_s0] sm:$0xf]  ;;  %v5479_v63 = vld [vmem:[%s6300_s24 + $0x1b4] sm:$0xf0] }
  0x80   : > { %v4118_v56 = vor.u32 %v5481_v51, %v4115_v52  ;;  %v4097_v62 = vld [vmem:[%s6300_s24 + $0x1a8] sm:$0xf]  ;;  %545 = vst [vmem:[#allocation1] ss:$9 sm:$0xff] %v405_v61  ;;  %v5477_v0 = vld [vmem:[%s6300_s24 + $0x1ac] sm:$0xf] }
  0x81   : > { %1197 = vmatpush.bf16.xpose.msra.mxu0 %v3946_v45  ;;  %v4105_v45 = vld [vmem:[%s6300_s24 + $0x1c0] sm:$0xf]  ;;  %v4099_v1 = vld [vmem:[%s6300_s24 + $0x1b8] sm:$0xf0]  ;;  %v4098_v4 = vor.u32 %v5479_v63, %v4097_v62  ;;  %v4075_v9 = vld [vmem:[%s6300_s24 + $0x190] sm:$0xf0] }
  0x82   : > { %1210 = vmatpush.bf16.xpose.msra.mxu1 %v3950_v46  ;;  %1223 = vmatpush.bf16.xpose.msra.mxu2 %v3954_v47  ;;  %v5482_v46 = vld [vmem:[%s6300_s24 + $0x1cc] sm:$0xf0]  ;;  %v5480_v47 = vld [vmem:[%s6300_s24 + $0x1c4] sm:$0xf]  ;;  %v4081_v10 = vld [vmem:[%s6300_s24 + $0x188] sm:$0xf] }
  0x83   : > { %1236 = vmatpush.bf16.xpose.msra.mxu3 %v3958_v48  ;;  %v4107_v48 = vld [vmem:[%s6300_s24 + $0x1d0] sm:$0xf0]  ;;  %v4106_v53 = vor.u32 %v5482_v46, %v4105_v45  ;;  %v5475_v11 = vld [vmem:[%s6300_s24 + $0x194] sm:$0xf0]  ;;  %v5473_v16 = vld [vmem:[%s6300_s24 + $0x18c] sm:$0xf] }
  0x84   : > { %v4110_v54 = vor.u32 %v5480_v47, %v4107_v48  ;;  %v4057_v22 = vld [vmem:[%s6300_s24 + $0x160] sm:$0xf]  ;;  %v5470_v23 = vld [vmem:[%s6300_s24 + $0x16c] sm:$0xf0]  ;;  %v5468_v24 = vld [vmem:[%s6300_s24 + $0x164] sm:$0xf] }
  0x85   : > { %v4059_v25 = vld [vmem:[%s6300_s24 + $0x170] sm:$0xf0]  ;;  %v4065_v26 = vld [vmem:[%s6300_s24 + $0x168] sm:$0xf]  ;;  %v5471_v27 = vld [vmem:[%s6300_s24 + $0x174] sm:$0xf0]  ;;  %v4058_v30 = vor.u32 %v5470_v23, %v4057_v22 }
  0x86   : > { %v5469_v28 = vld [vmem:[%s6300_s24 + $0x16c] sm:$0xf]  ;;  %v4067_v29 = vld [vmem:[%s6300_s24 + $0x178] sm:$0xf0]  ;;  %v4062_v31 = vor.u32 %v5468_v24, %v4059_v25  ;;  %v4041_v34 = vld [vmem:[%s6300_s24 + $0x140] sm:$0xf] }
  0x87   : > { %v6418_v12 = vld [vmem:[#allocation1 + $0x12] sm:$0xff]  ;;  %v6421_v13 = vld [vmem:[#allocation1] sm:$0xff]  ;;  %v6425_v15 = vld [vmem:[#allocation1 + $0x9] sm:$0xff]  ;;  %v4070_v33 = vor.u32 %v5469_v28, %v4067_v29  ;;  %vm3374_vm0 = vcmask 1041408   ;;  %vm3376_vm1 = vcmask 1045508   ;;  %vm3378_vm2 = vcmask 1043456  }
  0x88   : > { %v6423_v14 = vld [vmem:[#allocation1 + $0x1b] sm:$0xff]  ;;  %v5466_v35 = vld [vmem:[%s6300_s24 + $0x14c] sm:$0xf0]  ;;  %v5467_v39 = vld [vmem:[%s6300_s24 + $0x154] sm:$0xf0]  ;;  %p5415_p1 = scmp.ne.s32.totalorder %s6184_s28, 3 }
  0x89   : > { %1198 = vmatpush.bf16.xpose.msra.mxu0 %v3930_v57  ;;  %v4089_v57 = vld [vmem:[%s6300_s24 + $0x1a0] sm:$0xf]  ;;  %v4049_v38 = vld [vmem:[%s6300_s24 + $0x148] sm:$0xf]  ;;  %v5462_v47 = vld [vmem:[%s6300_s24 + $0x12c] sm:$0xf0] }
  0x8a   : > { %1211 = vmatpush.bf16.xpose.msra.mxu1 %v3934_v58  ;;  %1224 = vmatpush.bf16.xpose.msra.mxu2 %v3938_v59  ;;  %v5478_v58 = vld [vmem:[%s6300_s24 + $0x1ac] sm:$0xf0]  ;;  %v5476_v59 = vld [vmem:[%s6300_s24 + $0x1a4] sm:$0xf]  ;;  %v4025_v46 = vld [vmem:[%s6300_s24 + $0x120] sm:$0xf] }
  0x8b   : > { %1237 = vmatpush.bf16.xpose.msra.mxu3 %v3942_v60  ;;  %v4091_v60 = vld [vmem:[%s6300_s24 + $0x1b0] sm:$0xf0]  ;;  %v4090_v2 = vor.u32 %v5478_v58, %v4089_v57  ;;  %v5460_v48 = vld [vmem:[%s6300_s24 + $0x124] sm:$0xf]  ;;  %v4033_v50 = vld [vmem:[%s6300_s24 + $0x128] sm:$0xf] }
  0x8c   : > { %v4094_v3 = vor.u32 %v5476_v59, %v4091_v60  ;;  %v4027_v49 = vld [vmem:[%s6300_s24 + $0x130] sm:$0xf0]  ;;  %v5463_v51 = vld [vmem:[%s6300_s24 + $0x134] sm:$0xf0]  ;;  %v5461_v52 = vld [vmem:[%s6300_s24 + $0x12c] sm:$0xf] }
  0x8d   : > { %v4009_v58 = vld [vmem:[%s6300_s24 + $0x100] sm:$0xf]  ;;  %v5458_v59 = vld [vmem:[%s6300_s24 + $0x10c] sm:$0xf0]  ;;  %v5456_v60 = vld [vmem:[%s6300_s24 + $0x104] sm:$0xf] }
  0x8e   : > { %v4011_v61 = vld [vmem:[%s6300_s24 + $0x110] sm:$0xf0]  ;;  %v4017_v62 = vld [vmem:[%s6300_s24 + $0x108] sm:$0xf]  ;;  %v5459_v63 = vld [vmem:[%s6300_s24 + $0x114] sm:$0xf0] }
  0x8f   : > { %v4233_v22 = vld [vmem:[%s6300_s24 + $0x2c0] sm:$0xf]  ;;  %v5514_v23 = vld [vmem:[%s6300_s24 + $0x2cc] sm:$0xf0]  ;;  %v5512_v24 = vld [vmem:[%s6300_s24 + $0x2c4] sm:$0xf] }
  0x90   : > { %v4235_v25 = vld [vmem:[%s6300_s24 + $0x2d0] sm:$0xf0]  ;;  %v5513_v28 = vld [vmem:[%s6300_s24 + $0x2cc] sm:$0xf]  ;;  %v4243_v29 = vld [vmem:[%s6300_s24 + $0x2d8] sm:$0xf0] }
  0x91   : > { %1199 = vmatpush.bf16.xpose.msra.mxu0 %v3914_v5  ;;  %v4102_v5 = vor.u32 %v5477_v0, %v4099_v1  ;;  %v5457_v0 = vld [vmem:[%s6300_s24 + $0x10c] sm:$0xf]  ;;  %v4019_v1 = vld [vmem:[%s6300_s24 + $0x118] sm:$0xf0] }
  0x92   : > { %1212 = vmatpush.bf16.xpose.msra.mxu1 %v3918_v6  ;;  %1225 = vmatpush.bf16.xpose.msra.mxu2 %v3922_v7  ;;  %v4073_v6 = vld [vmem:[%s6300_s24 + $0x180] sm:$0xf]  ;;  %v5474_v7 = vld [vmem:[%s6300_s24 + $0x18c] sm:$0xf0] }
  0x93   : > { %1238 = vmatpush.bf16.xpose.msra.mxu3 %v3926_v8  ;;  %v5472_v8 = vld [vmem:[%s6300_s24 + $0x184] sm:$0xf] }
  0x99   : > { %1200 = vmatpush.bf16.xpose.msra.mxu0 %v3898_v17  ;;  %v4083_v17 = vld [vmem:[%s6300_s24 + $0x198] sm:$0xf0] }
  0x9a   : > { %1213 = vmatpush.bf16.xpose.msra.mxu1 %v3902_v18  ;;  %1226 = vmatpush.bf16.xpose.msra.mxu2 %v3906_v19  ;;  %v4074_v18 = vor.u32 %v5474_v7, %v4073_v6  ;;  %v4078_v19 = vor.u32 %v5472_v8, %v4075_v9  ;;  %v4086_v21 = vor.u32 %v5473_v16, %v4083_v17  ;;  %v4251_v6 = vld [vmem:[%s6300_s24 + $0x2f0] sm:$0xf0]  ;;  %v4257_v7 = vld [vmem:[%s6300_s24 + $0x2e8] sm:$0xf]  ;;  %v5519_v8 = vld [vmem:[%s6300_s24 + $0x2f4] sm:$0xf0] }
  0x9b   : > { %1239 = vmatpush.bf16.xpose.msra.mxu3 %v3910_v20  ;;  %v4082_v20 = vor.u32 %v5475_v11, %v4081_v10  ;;  %v4014_v9 = vor.u32 %v5456_v60, %v4011_v61  ;;  %v4018_v10 = vor.u32 %v5459_v63, %v4017_v62  ;;  %v5517_v11 = vld [vmem:[%s6300_s24 + $0x2ec] sm:$0xf]  ;;  %v4259_v16 = vld [vmem:[%s6300_s24 + $0x2f8] sm:$0xf0]  ;;  %v4022_v17 = vor.u32 %v5457_v0, %v4019_v1  ;;  %v5500_v60 = vld [vmem:[%s6300_s24 + $0x264] sm:$0xf] }
  0x9c   : > { %v4187_v61 = vld [vmem:[%s6300_s24 + $0x270] sm:$0xf0]  ;;  %v4193_v62 = vld [vmem:[%s6300_s24 + $0x268] sm:$0xf]  ;;  %v5503_v63 = vld [vmem:[%s6300_s24 + $0x274] sm:$0xf0] }
  0x9d   : > { %v5501_v0 = vld [vmem:[%s6300_s24 + $0x26c] sm:$0xf]  ;;  %v4195_v1 = vld [vmem:[%s6300_s24 + $0x278] sm:$0xf0] }
  0xa1   : > { %1201 = vmatpush.bf16.xpose.msra.mxu0 %v3882_v32  ;;  %v4066_v32 = vor.u32 %v5471_v27, %v4065_v26  ;;  %v4241_v26 = vld [vmem:[%s6300_s24 + $0x2c8] sm:$0xf]  ;;  %v5515_v27 = vld [vmem:[%s6300_s24 + $0x2d4] sm:$0xf0] }
  0xa2   : > { %1214 = vmatpush.bf16.xpose.msra.mxu1 %v3886_v36  ;;  %1227 = vmatpush.bf16.xpose.msra.mxu2 %v3890_v37  ;;  %v5464_v36 = vld [vmem:[%s6300_s24 + $0x144] sm:$0xf]  ;;  %v4043_v37 = vld [vmem:[%s6300_s24 + $0x150] sm:$0xf0] }
  0xa3   : > { %1240 = vmatpush.bf16.xpose.msra.mxu3 %v3894_v40  ;;  %v5465_v40 = vld [vmem:[%s6300_s24 + $0x14c] sm:$0xf] }
  0xa8   : > { %1202 = vmatmul.bf16.vlgmr.msra.gmra.mxu0 %v6421_v13 }
  0xa9   : > { %1246 = vmatpush.bf16.xpose.msrb.mxu0 %v4122_v41  ;;  %1228 = vmatmul.bf16.vlgmr.msra.gmra.mxu2 %v6418_v12  ;;  %v4051_v41 = vld [vmem:[%s6300_s24 + $0x158] sm:$0xf0] }
  0xaa   : > { %1259 = vmatpush.bf16.xpose.msrb.mxu1 %v4126_v42  ;;  %1272 = vmatpush.bf16.xpose.msrb.mxu2 %v4130_v43  ;;  %v4042_v42 = vor.u32 %v5466_v35, %v4041_v34  ;;  %v4046_v43 = vor.u32 %v5464_v36, %v4043_v37  ;;  %v4054_v45 = vor.u32 %v5465_v40, %v4051_v41  ;;  %v4217_v34 = vld [vmem:[%s6300_s24 + $0x2a0] sm:$0xf]  ;;  %v5510_v35 = vld [vmem:[%s6300_s24 + $0x2ac] sm:$0xf0]  ;;  %v5508_v36 = vld [vmem:[%s6300_s24 + $0x2a4] sm:$0xf] }
  0xab   : > { %1285 = vmatpush.bf16.xpose.msrb.mxu3 %v4134_v44  ;;  %1215 = vmatmul.bf16.vlgmr.msra.gmra.mxu1 %v6425_v15  ;;  %v4050_v44 = vor.u32 %v5467_v39, %v4049_v38  ;;  %v4219_v37 = vld [vmem:[%s6300_s24 + $0x2b0] sm:$0xf0]  ;;  %v4225_v38 = vld [vmem:[%s6300_s24 + $0x2a8] sm:$0xf]  ;;  %v5511_v39 = vld [vmem:[%s6300_s24 + $0x2b4] sm:$0xf0] }
  0xac   : > { %1241 = vmatmul.bf16.vlgmr.msra.gmra.mxu3 %v6423_v14  ;;  %v5509_v40 = vld [vmem:[%s6300_s24 + $0x2ac] sm:$0xf]  ;;  %v4227_v41 = vld [vmem:[%s6300_s24 + $0x2b8] sm:$0xf0] }
  0xb1   : > { %1247 = vmatpush.bf16.xpose.msrb.mxu0 %v4106_v53  ;;  %v4035_v53 = vld [vmem:[%s6300_s24 + $0x138] sm:$0xf0] }
  0xb2   : > { %1260 = vmatpush.bf16.xpose.msrb.mxu1 %v4110_v54  ;;  %1273 = vmatpush.bf16.xpose.msrb.mxu2 %v4114_v55  ;;  %v4026_v54 = vor.u32 %v5462_v47, %v4025_v46  ;;  %v4030_v55 = vor.u32 %v5460_v48, %v4027_v49  ;;  %v4038_v57 = vor.u32 %v5461_v52, %v4035_v53  ;;  %v4201_v46 = vld [vmem:[%s6300_s24 + $0x280] sm:$0xf]  ;;  %v5506_v47 = vld [vmem:[%s6300_s24 + $0x28c] sm:$0xf0]  ;;  %v5504_v48 = vld [vmem:[%s6300_s24 + $0x284] sm:$0xf] }
  0xb3   : > { %1286 = vmatpush.bf16.xpose.msrb.mxu3 %v4118_v56  ;;  %v4034_v56 = vor.u32 %v5463_v51, %v4033_v50  ;;  %v4203_v49 = vld [vmem:[%s6300_s24 + $0x290] sm:$0xf0]  ;;  %v4209_v50 = vld [vmem:[%s6300_s24 + $0x288] sm:$0xf]  ;;  %v5507_v51 = vld [vmem:[%s6300_s24 + $0x294] sm:$0xf0] }
  0xb4   : > { %v5505_v52 = vld [vmem:[%s6300_s24 + $0x28c] sm:$0xf]  ;;  %v4211_v53 = vld [vmem:[%s6300_s24 + $0x298] sm:$0xf0] }
  0xb9   : > { %1248 = vmatpush.bf16.xpose.msrb.mxu0 %v4090_v2  ;;  %v4249_v2 = vld [vmem:[%s6300_s24 + $0x2e0] sm:$0xf] }
  0xba   : > { %1261 = vmatpush.bf16.xpose.msrb.mxu1 %v4094_v3  ;;  %1274 = vmatpush.bf16.xpose.msrb.mxu2 %v4098_v4  ;;  %v5518_v3 = vld [vmem:[%s6300_s24 + $0x2ec] sm:$0xf0]  ;;  %v5516_v4 = vld [vmem:[%s6300_s24 + $0x2e4] sm:$0xf] }
  0xbb   : > { %1287 = vmatpush.bf16.xpose.msrb.mxu3 %v4102_v5  ;;  %v4010_v5 = vor.u32 %v5458_v59, %v4009_v58  ;;  %v4185_v58 = vld [vmem:[%s6300_s24 + $0x260] sm:$0xf]  ;;  %v5502_v59 = vld [vmem:[%s6300_s24 + $0x26c] sm:$0xf0] }
  0xc1   : > { %1249 = vmatpush.bf16.xpose.msrb.mxu0 %v4074_v18  ;;  %v4250_v18 = vor.u32 %v5518_v3, %v4249_v2  ;;  %v4186_v2 = vor.u32 %v5502_v59, %v4185_v58  ;;  %v4190_v3 = vor.u32 %v5500_v60, %v4187_v61  ;;  %v4361_v58 = vld [vmem:[%s6300_s24 + $0x3c0] sm:$0xf]  ;;  %v5546_v59 = vld [vmem:[%s6300_s24 + $0x3cc] sm:$0xf0]  ;;  %v5544_v60 = vld [vmem:[%s6300_s24 + $0x3c4] sm:$0xf] }
  0xc2   : > { %1262 = vmatpush.bf16.xpose.msrb.mxu1 %v4078_v19  ;;  %1275 = vmatpush.bf16.xpose.msrb.mxu2 %v4082_v20  ;;  %v4254_v19 = vor.u32 %v5516_v4, %v4251_v6  ;;  %v4258_v20 = vor.u32 %v5519_v8, %v4257_v7  ;;  %v4194_v4 = vor.u32 %v5503_v63, %v4193_v62  ;;  %v4169_v6 = vld [vmem:[%s6300_s24 + $0x240] sm:$0xf]  ;;  %v5498_v7 = vld [vmem:[%s6300_s24 + $0x24c] sm:$0xf0]  ;;  %v5496_v8 = vld [vmem:[%s6300_s24 + $0x244] sm:$0xf] }
  0xc3   : > { %1288 = vmatpush.bf16.xpose.msrb.mxu3 %v4086_v21  ;;  %v4262_v21 = vor.u32 %v5517_v11, %v4259_v16  ;;  %v5499_v11 = vld [vmem:[%s6300_s24 + $0x254] sm:$0xf0]  ;;  %v5497_v16 = vld [vmem:[%s6300_s24 + $0x24c] sm:$0xf]  ;;  %v4363_v61 = vld [vmem:[%s6300_s24 + $0x3d0] sm:$0xf0] }
  0xc4   : > { %v4369_v62 = vld [vmem:[%s6300_s24 + $0x3c8] sm:$0xf]  ;;  %v5547_v63 = vld [vmem:[%s6300_s24 + $0x3d4] sm:$0xf0] }
  0xc9   : > { %1250 = vmatpush.bf16.xpose.msrb.mxu0 %v4058_v30  ;;  %v4234_v30 = vor.u32 %v5514_v23, %v4233_v22  ;;  %v4153_v22 = vld [vmem:[%s6300_s24 + $0x220] sm:$0xf]  ;;  %v5494_v23 = vld [vmem:[%s6300_s24 + $0x22c] sm:$0xf0] }
  0xca   : > { %1263 = vmatpush.bf16.xpose.msrb.mxu1 %v4062_v31  ;;  %1276 = vmatpush.bf16.xpose.msrb.mxu2 %v4066_v32  ;;  %v4238_v31 = vor.u32 %v5512_v24, %v4235_v25  ;;  %v4242_v32 = vor.u32 %v5515_v27, %v4241_v26  ;;  %v5492_v24 = vld [vmem:[%s6300_s24 + $0x224] sm:$0xf]  ;;  %v4155_v25 = vld [vmem:[%s6300_s24 + $0x230] sm:$0xf0]  ;;  %v4161_v26 = vld [vmem:[%s6300_s24 + $0x228] sm:$0xf] }
  0xcb   : > { %1289 = vmatpush.bf16.xpose.msrb.mxu3 %v4070_v33  ;;  %v4246_v33 = vor.u32 %v5513_v28, %v4243_v29  ;;  %v5495_v27 = vld [vmem:[%s6300_s24 + $0x234] sm:$0xf0]  ;;  %v5493_v28 = vld [vmem:[%s6300_s24 + $0x22c] sm:$0xf]  ;;  %v4163_v29 = vld [vmem:[%s6300_s24 + $0x238] sm:$0xf0] }
  0xd1   : > { %1251 = vmatpush.bf16.xpose.msrb.mxu0 %v4042_v42  ;;  %v4218_v42 = vor.u32 %v5510_v35, %v4217_v34  ;;  %v4137_v34 = vld [vmem:[%s6300_s24 + $0x200] sm:$0xf]  ;;  %v5490_v35 = vld [vmem:[%s6300_s24 + $0x20c] sm:$0xf0] }
  0xd2   : > { %1264 = vmatpush.bf16.xpose.msrb.mxu1 %v4046_v43  ;;  %1277 = vmatpush.bf16.xpose.msrb.mxu2 %v4050_v44  ;;  %v4222_v43 = vor.u32 %v5508_v36, %v4219_v37  ;;  %v4226_v44 = vor.u32 %v5511_v39, %v4225_v38  ;;  %v5488_v36 = vld [vmem:[%s6300_s24 + $0x204] sm:$0xf]  ;;  %v4139_v37 = vld [vmem:[%s6300_s24 + $0x210] sm:$0xf0]  ;;  %v4145_v38 = vld [vmem:[%s6300_s24 + $0x208] sm:$0xf] }
  0xd3   : > { %1290 = vmatpush.bf16.xpose.msrb.mxu3 %v4054_v45  ;;  %v4230_v45 = vor.u32 %v5509_v40, %v4227_v41  ;;  %v5491_v39 = vld [vmem:[%s6300_s24 + $0x214] sm:$0xf0]  ;;  %v5489_v40 = vld [vmem:[%s6300_s24 + $0x20c] sm:$0xf]  ;;  %v4147_v41 = vld [vmem:[%s6300_s24 + $0x218] sm:$0xf0] }
  0xd9   : > { %1252 = vmatpush.bf16.xpose.msrb.mxu0 %v4026_v54  ;;  %v4202_v54 = vor.u32 %v5506_v47, %v4201_v46  ;;  %v4379_v46 = vld [vmem:[%s6300_s24 + $0x3f0] sm:$0xf0]  ;;  %v4385_v47 = vld [vmem:[%s6300_s24 + $0x3e8] sm:$0xf] }
  0xda   : > { %1265 = vmatpush.bf16.xpose.msrb.mxu1 %v4030_v55  ;;  %1278 = vmatpush.bf16.xpose.msrb.mxu2 %v4034_v56  ;;  %v4206_v55 = vor.u32 %v5504_v48, %v4203_v49  ;;  %v4210_v56 = vor.u32 %v5507_v51, %v4209_v50  ;;  %v5551_v48 = vld [vmem:[%s6300_s24 + $0x3f4] sm:$0xf0]  ;;  %v4142_v49 = vor.u32 %v5488_v36, %v4139_v37  ;;  %v5549_v51 = vld [vmem:[%s6300_s24 + $0x3ec] sm:$0xf]  ;;  %v5532_v36 = vld [vmem:[%s6300_s24 + $0x364] sm:$0xf] }
  0xdb   : > { %1291 = vmatpush.bf16.xpose.msrb.mxu3 %v4038_v57  ;;  %v4214_v57 = vor.u32 %v5505_v52, %v4211_v53  ;;  %v4146_v50 = vor.u32 %v5491_v39, %v4145_v38  ;;  %v4387_v52 = vld [vmem:[%s6300_s24 + $0x3f8] sm:$0xf0]  ;;  %v4150_v53 = vor.u32 %v5489_v40, %v4147_v41  ;;  %v4315_v37 = vld [vmem:[%s6300_s24 + $0x370] sm:$0xf0]  ;;  %v4321_v38 = vld [vmem:[%s6300_s24 + $0x368] sm:$0xf] }
  0xdc   : > { %v5535_v39 = vld [vmem:[%s6300_s24 + $0x374] sm:$0xf0]  ;;  %v5533_v40 = vld [vmem:[%s6300_s24 + $0x36c] sm:$0xf]  ;;  %v4323_v41 = vld [vmem:[%s6300_s24 + $0x378] sm:$0xf0] }
  0xe1   : > { %1253 = vmatpush.bf16.xpose.msrb.mxu0 %v4010_v5  ;;  %v4198_v5 = vor.u32 %v5501_v0, %v4195_v1  ;;  %v5545_v0 = vld [vmem:[%s6300_s24 + $0x3cc] sm:$0xf]  ;;  %v4371_v1 = vld [vmem:[%s6300_s24 + $0x3d8] sm:$0xf0] }
  0xe2   : > { %1266 = vmatpush.bf16.xpose.msrb.mxu1 %v4014_v9  ;;  %1279 = vmatpush.bf16.xpose.msrb.mxu2 %v4018_v10  ;;  %v4171_v9 = vld [vmem:[%s6300_s24 + $0x250] sm:$0xf0]  ;;  %v4177_v10 = vld [vmem:[%s6300_s24 + $0x248] sm:$0xf] }
  0xe3   : > { %1292 = vmatpush.bf16.xpose.msrb.mxu3 %v4022_v17  ;;  %v4179_v17 = vld [vmem:[%s6300_s24 + $0x258] sm:$0xf0] }
  0xe8   : > { %1254 = vmatmul.bf16.vlgmr.msrb.gmra.mxu0 %v6421_v13 }
  0xe9   : > { %1298 = vmatpush.bf16.xpose.msra.mxu0 %v4250_v18  ;;  %1280 = vmatmul.bf16.vlgmr.msrb.gmra.mxu2 %v6418_v12  ;;  %v4170_v18 = vor.u32 %v5498_v7, %v4169_v6  ;;  %v4345_v6 = vld [vmem:[%s6300_s24 + $0x3a0] sm:$0xf]  ;;  %v5542_v7 = vld [vmem:[%s6300_s24 + $0x3ac] sm:$0xf0] }
  0xea   : > { %1311 = vmatpush.bf16.xpose.msra.mxu1 %v4254_v19  ;;  %1324 = vmatpush.bf16.xpose.msra.mxu2 %v4258_v20  ;;  %v4174_v19 = vor.u32 %v5496_v8, %v4171_v9  ;;  %v4178_v20 = vor.u32 %v5499_v11, %v4177_v10  ;;  %v5540_v8 = vld [vmem:[%s6300_s24 + $0x3a4] sm:$0xf]  ;;  %v4347_v9 = vld [vmem:[%s6300_s24 + $0x3b0] sm:$0xf0]  ;;  %v4353_v10 = vld [vmem:[%s6300_s24 + $0x3a8] sm:$0xf] }
  0xeb   : > { %1337 = vmatpush.bf16.xpose.msra.mxu3 %v4262_v21  ;;  %1267 = vmatmul.bf16.vlgmr.msrb.gmra.mxu1 %v6425_v15  ;;  %v4182_v21 = vor.u32 %v5497_v16, %v4179_v17  ;;  %v5543_v11 = vld [vmem:[%s6300_s24 + $0x3b4] sm:$0xf0]  ;;  %v5541_v16 = vld [vmem:[%s6300_s24 + $0x3ac] sm:$0xf]  ;;  %v4355_v17 = vld [vmem:[%s6300_s24 + $0x3b8] sm:$0xf0] }
  0xec   : > { %1293 = vmatmul.bf16.vlgmr.msrb.gmra.mxu3 %v6423_v14 }
  0xf1   : > { %1299 = vmatpush.bf16.xpose.msra.mxu0 %v4234_v30  ;;  %v4154_v30 = vor.u32 %v5494_v23, %v4153_v22  ;;  %v4329_v22 = vld [vmem:[%s6300_s24 + $0x380] sm:$0xf]  ;;  %v5538_v23 = vld [vmem:[%s6300_s24 + $0x38c] sm:$0xf0] }
  0xf2   : > { %1312 = vmatpush.bf16.xpose.msra.mxu1 %v4238_v31  ;;  %1325 = vmatpush.bf16.xpose.msra.mxu2 %v4242_v32  ;;  %v4158_v31 = vor.u32 %v5492_v24, %v4155_v25  ;;  %v4162_v32 = vor.u32 %v5495_v27, %v4161_v26  ;;  %v5536_v24 = vld [vmem:[%s6300_s24 + $0x384] sm:$0xf]  ;;  %v4331_v25 = vld [vmem:[%s6300_s24 + $0x390] sm:$0xf0]  ;;  %v4337_v26 = vld [vmem:[%s6300_s24 + $0x388] sm:$0xf] }
  0xf3   : > { %1338 = vmatpush.bf16.xpose.msra.mxu3 %v4246_v33  ;;  %v4166_v33 = vor.u32 %v5493_v28, %v4163_v29  ;;  %v5539_v27 = vld [vmem:[%s6300_s24 + $0x394] sm:$0xf0]  ;;  %v5537_v28 = vld [vmem:[%s6300_s24 + $0x38c] sm:$0xf]  ;;  %v4339_v29 = vld [vmem:[%s6300_s24 + $0x398] sm:$0xf0] }
  0xf9   : > { %1300 = vmatpush.bf16.xpose.msra.mxu0 %v4218_v42  ;;  %v4377_v42 = vld [vmem:[%s6300_s24 + $0x3e0] sm:$0xf] }
  0xfa   : > { %1313 = vmatpush.bf16.xpose.msra.mxu1 %v4222_v43  ;;  %1326 = vmatpush.bf16.xpose.msra.mxu2 %v4226_v44  ;;  %v5550_v43 = vld [vmem:[%s6300_s24 + $0x3ec] sm:$0xf0]  ;;  %v5548_v44 = vld [vmem:[%s6300_s24 + $0x3e4] sm:$0xf] }
  0xfb   : > { %1339 = vmatpush.bf16.xpose.msra.mxu3 %v4230_v45  ;;  %v4138_v45 = vor.u32 %v5490_v35, %v4137_v34  ;;  %v4313_v34 = vld [vmem:[%s6300_s24 + $0x360] sm:$0xf]  ;;  %v5534_v35 = vld [vmem:[%s6300_s24 + $0x36c] sm:$0xf0] }
 0x101   : > { %1301 = vmatpush.bf16.xpose.msra.mxu0 %v4202_v54  ;;  %v4378_v54 = vor.u32 %v5550_v43, %v4377_v42  ;;  %v4314_v42 = vor.u32 %v5534_v35, %v4313_v34  ;;  %v5740_v34 = vld [vmem:[%s6313_s9 + $0x5dc] sm:$0xf0] }
 0x102   : > { %1314 = vmatpush.bf16.xpose.msra.mxu1 %v4206_v55  ;;  %1327 = vmatpush.bf16.xpose.msra.mxu2 %v4210_v56  ;;  %v4382_v55 = vor.u32 %v5548_v44, %v4379_v46  ;;  %v4386_v56 = vor.u32 %v5551_v48, %v4385_v47  ;;  %v4318_v44 = vor.u32 %v5532_v36, %v4315_v37  ;;  %v4297_v48 = vld [vmem:[%s6300_s24 + $0x340] sm:$0xf] }
 0x103   : > { %1340 = vmatpush.bf16.xpose.msra.mxu3 %v4214_v57  ;;  %v4390_v57 = vor.u32 %v5549_v51, %v4387_v52  ;;  %v4326_v46 = vor.u32 %v5533_v40, %v4323_v41  ;;  %v4299_v52 = vld [vmem:[%s6300_s24 + $0x350] sm:$0xf0]  ;;  %v4841_v41 = vld [vmem:[%s6313_s9 + $0x380] sm:$0xf] }
 0x109   : > { %1302 = vmatpush.bf16.xpose.msra.mxu0 %v4186_v2  ;;  %v4362_v2 = vor.u32 %v5546_v59, %v4361_v58 }
 0x10a   : > { %1315 = vmatpush.bf16.xpose.msra.mxu1 %v4190_v3  ;;  %1328 = vmatpush.bf16.xpose.msra.mxu2 %v4194_v4  ;;  %v4366_v3 = vor.u32 %v5544_v60, %v4363_v61  ;;  %v4370_v4 = vor.u32 %v5547_v63, %v4369_v62 }
 0x10b   : > { %1341 = vmatpush.bf16.xpose.msra.mxu3 %v4198_v5  ;;  %v4374_v5 = vor.u32 %v5545_v0, %v4371_v1  ;;  %v4281_v0 = vld [vmem:[%s6300_s24 + $0x320] sm:$0xf]  ;;  %v5526_v1 = vld [vmem:[%s6300_s24 + $0x32c] sm:$0xf0] }
 0x111   : > { %1303 = vmatpush.bf16.xpose.msra.mxu0 %v4170_v18  ;;  %v4346_v18 = vor.u32 %v5542_v7, %v4345_v6  ;;  %v5527_v6 = vld [vmem:[%s6300_s24 + $0x334] sm:$0xf0]  ;;  %v5525_v7 = vld [vmem:[%s6300_s24 + $0x32c] sm:$0xf] }
 0x112   : > { %1316 = vmatpush.bf16.xpose.msra.mxu1 %v4174_v19  ;;  %1329 = vmatpush.bf16.xpose.msra.mxu2 %v4178_v20  ;;  %v4350_v19 = vor.u32 %v5540_v8, %v4347_v9  ;;  %v4354_v20 = vor.u32 %v5543_v11, %v4353_v10  ;;  %v4291_v8 = vld [vmem:[%s6300_s24 + $0x338] sm:$0xf0]  ;;  %v4282_v10 = vor.u32 %v5526_v1, %v4281_v0  ;;  %v5652_v0 = vld [vmem:[%s6313_s9 + $0x31c] sm:$0xf0] }
 0x113   : > { %1342 = vmatpush.bf16.xpose.msra.mxu3 %v4182_v21  ;;  %v4358_v21 = vor.u32 %v5541_v16, %v4355_v17  ;;  %v4294_v17 = vor.u32 %v5525_v7, %v4291_v8 }
 0x119   : > { %1304 = vmatpush.bf16.xpose.msra.mxu0 %v4154_v30  ;;  %v4330_v30 = vor.u32 %v5538_v23, %v4329_v22  ;;  %v4273_v22 = vld [vmem:[%s6300_s24 + $0x308] sm:$0xf]  ;;  %v5523_v23 = vld [vmem:[%s6300_s24 + $0x314] sm:$0xf0] }
 0x11a   : > { %1317 = vmatpush.bf16.xpose.msra.mxu1 %v4158_v31  ;;  %1330 = vmatpush.bf16.xpose.msra.mxu2 %v4162_v32  ;;  %v4334_v31 = vor.u32 %v5536_v24, %v4331_v25  ;;  %v4338_v32 = vor.u32 %v5539_v27, %v4337_v26  ;;  %v5521_v24 = vld [vmem:[%s6300_s24 + $0x30c] sm:$0xf]  ;;  %v4275_v25 = vld [vmem:[%s6300_s24 + $0x318] sm:$0xf0]  ;;  %v4617_v26 = vld [vmem:[%s6313_s9 + $0x1c0] sm:$0xf] }
 0x11b   : > { %1343 = vmatpush.bf16.xpose.msra.mxu3 %v4166_v33  ;;  %v4342_v33 = vor.u32 %v5537_v28, %v4339_v29  ;;  %v5612_v27 = vld [vmem:[%s6313_s9 + $0x1dc] sm:$0xf0]  ;;  %v4278_v35 = vor.u32 %v5521_v24, %v4275_v25 }
 0x11c   : > { %v4873_v29 = vld [vmem:[%s6313_s9 + $0x3c0] sm:$0xf]  ;;  %v4618_v36 = vor.u32 %v5612_v27, %v4617_v26 }
 0x11d   : > { %v5700_v27 = vld [vmem:[%s6313_s9 + $0x49c] sm:$0xf0] }
 0x121   : > { %1305 = vmatpush.bf16.xpose.msra.mxu0 %v4138_v45  ;;  %v4322_v45 = vor.u32 %v5535_v39, %v4321_v38  ;;  %v4585_v38 = vld [vmem:[%s6313_s9 + $0x180] sm:$0xf] }
 0x122   : > { %1318 = vmatpush.bf16.xpose.msra.mxu1 %v4142_v49  ;;  %1331 = vmatpush.bf16.xpose.msra.mxu2 %v4146_v50  ;;  %v5530_v49 = vld [vmem:[%s6300_s24 + $0x34c] sm:$0xf0]  ;;  %v5528_v50 = vld [vmem:[%s6300_s24 + $0x344] sm:$0xf]  ;;  %v5604_v39 = vld [vmem:[%s6313_s9 + $0x19c] sm:$0xf0] }
 0x123   : > { %1344 = vmatpush.bf16.xpose.msra.mxu3 %v4150_v53  ;;  %v4305_v53 = vld [vmem:[%s6300_s24 + $0x348] sm:$0xf]  ;;  %v4298_v58 = vor.u32 %v5530_v49, %v4297_v48  ;;  %v4302_v60 = vor.u32 %v5528_v50, %v4299_v52 }
 0x124   : > { %v4553_v49 = vld [vmem:[%s6313_s9 + $0x140] sm:$0xf] }
 0x125   : > { %v6576_v43 = vpop.f32.mrf.mxu0  ;;  %v5596_v50 = vld [vmem:[%s6313_s9 + $0x15c] sm:$0xf0] }
 0x126   : > { %v4809_v52 = vld [vmem:[%s6313_s9 + $0x340] sm:$0xf] }
 0x128   : > { %1306 = vmatmul.bf16.vlgmr.msra.gmra.mxu0 %v6421_v13  ;;  %v6578_v47 = vpop.f32.mrf.mxu1 }
 0x129   : > { %1350 = vmatpush.bf16.xpose.msrb.mxu0 %v4378_v54  ;;  %1332 = vmatmul.bf16.vlgmr.msra.gmra.mxu2 %v6418_v12  ;;  %v5531_v54 = vld [vmem:[%s6300_s24 + $0x354] sm:$0xf0] }
 0x12a   : > { %1363 = vmatpush.bf16.xpose.msrb.mxu1 %v4382_v55  ;;  %1376 = vmatpush.bf16.xpose.msrb.mxu2 %v4386_v56  ;;  %v5529_v55 = vld [vmem:[%s6300_s24 + $0x34c] sm:$0xf]  ;;  %v4307_v56 = vld [vmem:[%s6300_s24 + $0x358] sm:$0xf0]  ;;  %v4306_v61 = vor.u32 %v5531_v54, %v4305_v53  ;;  %v5660_v53 = vld [vmem:[%s6313_s9 + $0x35c] sm:$0xf0] }
 0x12b   : > { %1389 = vmatpush.bf16.xpose.msrb.mxu3 %v4390_v57  ;;  %1319 = vmatmul.bf16.vlgmr.msra.gmra.mxu1 %v6425_v15  ;;  %v4310_v62 = vor.u32 %v5529_v55, %v4307_v56  ;;  %v4554_v55 = vor.u32 %v5596_v50, %v4553_v49  ;;  %v5065_v56 = vld [vmem:[%s6313_s9 + $0x540] sm:$0xf]  ;;  %v5608_v49 = vld [vmem:[%s6313_s9 + $0x1c4] sm:$0xf] }
 0x12c   : > { %1345 = vmatmul.bf16.vlgmr.msra.gmra.mxu3 %v6423_v14  ;;  %v6583_v51 = vpop.f32.mrf.mxu2  ;;  %v4619_v50 = vld [vmem:[%s6313_s9 + $0x1e0] sm:$0xf0] }
 0x12d   : > { %v1205_v59 = vpop.f32.mrf.mxu0 }
 0x12e   : > { %v4810_v59 = vor.u32 %v5660_v53, %v4809_v52  ;;  %v5672_v53 = vld [vmem:[%s6313_s9 + $0x3c4] sm:$0xf] }
 0x12f   : > { %v6590_v57 = vpop.f32.mrf.mxu3 }
 0x130   : > { %v1218_v63 = vpop.f32.mrf.mxu1 }
 0x131   : > { %1351 = vmatpush.bf16.xpose.msrb.mxu0 %v4362_v2  ;;  %v5524_v2 = vld [vmem:[%s6300_s24 + $0x324] sm:$0xf]  ;;  %v4777_v63 = vld [vmem:[%s6313_s9 + $0x300] sm:$0xf] }
 0x132   : > { %1364 = vmatpush.bf16.xpose.msrb.mxu1 %v4366_v3  ;;  %1377 = vmatpush.bf16.xpose.msrb.mxu2 %v4370_v4  ;;  %v4283_v4 = vld [vmem:[%s6300_s24 + $0x330] sm:$0xf0] }
 0x133   : > { %1390 = vmatpush.bf16.xpose.msrb.mxu3 %v4374_v5  ;;  %v4289_v5 = vld [vmem:[%s6300_s24 + $0x328] sm:$0xf]  ;;  %v4286_v11 = vor.u32 %v5524_v2, %v4283_v4 }
 0x134   : > { %v1231_v3 = vpop.f32.mrf.mxu2  ;;  %v4290_v16 = vor.u32 %v5527_v6, %v4289_v5  ;;  %v5033_v2 = vld [vmem:[%s6313_s9 + $0x500] sm:$0xf] }
 0x135   : > { %v5716_v3 = vld [vmem:[%s6313_s9 + $0x51c] sm:$0xf0] }
 0x136   : > { %v5580_v5 = vld [vmem:[%s6313_s9 + $0xdc] sm:$0xf0]  ;;  %v5034_v8 = vor.u32 %v5716_v3, %v5033_v2  ;;  %v5600_v3 = vld [vmem:[%s6313_s9 + $0x184] sm:$0xf] }
 0x137   : > { %v1244_v9 = vpop.f32.mrf.mxu3  ;;  %v4745_v6 = vld [vmem:[%s6313_s9 + $0x2c0] sm:$0xf] }
 0x139   : > { %1352 = vmatpush.bf16.xpose.msrb.mxu0 %v4346_v18  ;;  %v4265_v18 = vld [vmem:[%s6300_s24 + $0x300] sm:$0xf] }
 0x13a   : > { %1365 = vmatpush.bf16.xpose.msrb.mxu1 %v4350_v19  ;;  %1378 = vmatpush.bf16.xpose.msrb.mxu2 %v4354_v20  ;;  %v5522_v19 = vld [vmem:[%s6300_s24 + $0x30c] sm:$0xf0]  ;;  %v5520_v20 = vld [vmem:[%s6300_s24 + $0x304] sm:$0xf] }
 0x13b   : > { %1391 = vmatpush.bf16.xpose.msrb.mxu3 %v4358_v21  ;;  %v4267_v21 = vld [vmem:[%s6300_s24 + $0x310] sm:$0xf0]  ;;  %v4266_v28 = vor.u32 %v5522_v19, %v4265_v18  ;;  %v4457_v18 = vld [vmem:[%s6313_s9 + $0x80] sm:$0xf] }
 0x13c   : > { %v5572_v19 = vld [vmem:[%s6313_s9 + $0x9c] sm:$0xf0] }
 0x13d   : > { %v4458_v26 = vor.u32 %v5572_v19, %v4457_v18  ;;  %v5656_v19 = vld [vmem:[%s6313_s9 + $0x344] sm:$0xf] }
 0x141   : > { %1353 = vmatpush.bf16.xpose.msrb.mxu0 %v4330_v30  ;;  %v5676_v30 = vld [vmem:[%s6313_s9 + $0x3dc] sm:$0xf0] }
 0x142   : > { %1366 = vmatpush.bf16.xpose.msrb.mxu1 %v4334_v31  ;;  %1379 = vmatpush.bf16.xpose.msrb.mxu2 %v4338_v32  ;;  %v4270_v31 = vor.u32 %v5520_v20, %v4267_v21  ;;  %v4274_v32 = vor.u32 %v5523_v23, %v4273_v22  ;;  %v4874_v37 = vor.u32 %v5676_v30, %v4873_v29  ;;  %v4713_v21 = vld [vmem:[%s6313_s9 + $0x280] sm:$0xf] }
 0x143   : > { %1392 = vmatpush.bf16.xpose.msrb.mxu3 %v4342_v33  ;;  %v5129_v33 = vld [vmem:[%s6313_s9 + $0x5c0] sm:$0xf] }
 0x144   : > { %v5130_v40 = vor.u32 %v5740_v34, %v5129_v33  ;;  %v5636_v22 = vld [vmem:[%s6313_s9 + $0x29c] sm:$0xf0] }
 0x145   : > { %v4714_v29 = vor.u32 %v5636_v22, %v4713_v21  ;;  %v4425_v30 = vld [vmem:[%s6313_s9 + $0x40] sm:$0xf] }
 0x146   : > { %v4681_v33 = vld [vmem:[%s6313_s9 + $0x240] sm:$0xf] }
 0x147   : > { %v5628_v34 = vld [vmem:[%s6313_s9 + $0x25c] sm:$0xf0] }
 0x149   : > { %1354 = vmatpush.bf16.xpose.msrb.mxu0 %v4314_v42  ;;  %v5668_v42 = vld [vmem:[%s6313_s9 + $0x39c] sm:$0xf0] }
 0x14a   : > { %1367 = vmatpush.bf16.xpose.msrb.mxu1 %v4318_v44  ;;  %1380 = vmatpush.bf16.xpose.msrb.mxu2 %v4322_v45  ;;  %v4586_v44 = vor.u32 %v5604_v39, %v4585_v38  ;;  %v5097_v45 = vld [vmem:[%s6313_s9 + $0x580] sm:$0xf]  ;;  %v4842_v48 = vor.u32 %v5668_v42, %v4841_v41 }
 0x14b   : > { %1393 = vmatpush.bf16.xpose.msrb.mxu3 %v4326_v46  ;;  %v5732_v46 = vld [vmem:[%s6313_s9 + $0x59c] sm:$0xf0] }
 0x14c   : > { %v5098_v54 = vor.u32 %v5732_v46, %v5097_v45  ;;  %v4393_v41 = vld [vmem:[%s6313_s9] sm:$0xf] }
 0x14d   : > { %v5556_v42 = vld [vmem:[%s6313_s9 + $0x1c] sm:$0xf0] }
 0x151   : > { %1355 = vmatpush.bf16.xpose.msrb.mxu0 %v4298_v58  ;;  %v5724_v58 = vld [vmem:[%s6313_s9 + $0x55c] sm:$0xf0] }
 0x152   : > { %1368 = vmatpush.bf16.xpose.msrb.mxu1 %v4302_v60  ;;  %1381 = vmatpush.bf16.xpose.msrb.mxu2 %v4306_v61  ;;  %v4521_v60 = vld [vmem:[%s6313_s9 + $0x100] sm:$0xf]  ;;  %v5066_v1 = vor.u32 %v5724_v58, %v5065_v56  ;;  %v4394_v58 = vor.u32 %v5556_v42, %v4393_v41  ;;  %v5568_v42 = vld [vmem:[%s6313_s9 + $0x84] sm:$0xf] }
 0x153   : > { %1394 = vmatpush.bf16.xpose.msrb.mxu3 %v4310_v62  ;;  %v5588_v61 = vld [vmem:[%s6313_s9 + $0x11c] sm:$0xf0]  ;;  %v6630_v62 = vld [vmem:[%s6307_s13] sm:$0xf] }
 0x154   : > { %v536_v4 = vperm.slane %v6630_v62, 0  ;;  %v537_v7 = vperm.slane %v6630_v62, 1 }
 0x159   : > { %1356 = vmatpush.bf16.xpose.msrb.mxu0 %v4282_v10  ;;  %v5001_v10 = vld [vmem:[%s6313_s9 + $0x4c0] sm:$0xf] }
 0x15a   : > { %1369 = vmatpush.bf16.xpose.msrb.mxu1 %v4286_v11  ;;  %1382 = vmatpush.bf16.xpose.msrb.mxu2 %v4290_v16  ;;  %v5708_v11 = vld [vmem:[%s6313_s9 + $0x4dc] sm:$0xf0]  ;;  %v1204_v16 = vadd.f32 %v6576_v43, %v536_v4  ;;  %v4587_v4 = vld [vmem:[%s6313_s9 + $0x1a0] sm:$0xf0] }
 0x15b   : > { %1395 = vmatpush.bf16.xpose.msrb.mxu3 %v4294_v17  ;;  %v5002_v25 = vor.u32 %v5708_v11, %v5001_v10  ;;  %v4969_v43 = vld [vmem:[%s6313_s9 + $0x480] sm:$0xf] }
 0x161   : > { %1357 = vmatpush.bf16.xpose.msrb.mxu0 %v4266_v28  ;;  %v1217_v28 = vadd.f32 %v6578_v47, %v1204_v16  ;;  %v5692_v47 = vld [vmem:[%s6313_s9 + $0x45c] sm:$0xf0]  ;;  %v5592_v16 = vld [vmem:[%s6313_s9 + $0x144] sm:$0xf] }
 0x162   : > { %1370 = vmatpush.bf16.xpose.msrb.mxu1 %v4270_v31  ;;  %1383 = vmatpush.bf16.xpose.msrb.mxu2 %v4274_v32  ;;  %v5564_v31 = vld [vmem:[%s6313_s9 + $0x5c] sm:$0xf0] }
 0x163   : > { %1396 = vmatpush.bf16.xpose.msrb.mxu3 %v4278_v35  ;;  %v4970_v35 = vor.u32 %v5700_v27, %v4969_v43  ;;  %v1230_v38 = vadd.f32 %v6583_v51, %v1217_v28  ;;  %v4523_v43 = vld [vmem:[%s6313_s9 + $0x120] sm:$0xf0] }
 0x164   : > { %v5648_v27 = vld [vmem:[%s6313_s9 + $0x304] sm:$0xf] }
 0x165   : > { %v1255_v20 = vpop.f32.mrf.mxu0  ;;  %v4779_v28 = vld [vmem:[%s6313_s9 + $0x320] sm:$0xf0] }
 0x166   : > { %v1256_v23 = vadd.f32 %v1255_v20, %v537_v7  ;;  %v4590_v7 = vor.u32 %v5600_v3, %v4587_v4  ;;  %v4811_v20 = vld [vmem:[%s6313_s9 + $0x360] sm:$0xf0]  ;;  %v4625_v3 = vld [vmem:[%s6313_s9 + $0x1c8] sm:$0xf] }
 0x167   : > { %v5613_v4 = vld [vmem:[%s6313_s9 + $0x1e4] sm:$0xf0] }
 0x168   : > { %1358 = vmatmul.bf16.vlgmr.msrb.gmra.mxu0 %v6421_v13  ;;  %v4522_v13 = vor.u32 %v5588_v61, %v4521_v60  ;;  %v1268_v24 = vpop.f32.mrf.mxu1  ;;  %v5684_v60 = vld [vmem:[%s6313_s9 + $0x41c] sm:$0xf0]  ;;  %v1243_v61 = vadd.f32 %v6590_v57, %v1230_v38 }
 0x169   : > { %2944 = vmatpush.bf16.msra.mxu0 %v4618_v36  ;;  %1371 = vmatmul.bf16.vlgmr.msrb.gmra.mxu1 %v6425_v15  ;;  %v4778_v15 = vor.u32 %v5652_v0, %v4777_v63  ;;  %v1269_v32 = vadd.f32 %v1268_v24, %v1256_v23  ;;  %v4426_v36 = vor.u32 %v5564_v31, %v4425_v30  ;;  %v5720_v23 = vld [vmem:[%s6313_s9 + $0x544] sm:$0xf] }
 0x16a   : > { %2957 = vmatpush.bf16.msra.mxu1 %v4874_v37  ;;  %2970 = vmatpush.bf16.msra.mxu2 %v5130_v40  ;;  %v4937_v37 = vld [vmem:[%s6313_s9 + $0x440] sm:$0xf]  ;;  %v4682_v40 = vor.u32 %v5628_v34, %v4681_v33  ;;  %v4622_v0 = vor.u32 %v5608_v49, %v4619_v50  ;;  %v5067_v24 = vld [vmem:[%s6313_s9 + $0x560] sm:$0xf0]  ;;  %v4782_v33 = vor.u32 %v5648_v27, %v4779_v28  ;;  %v4561_v28 = vld [vmem:[%s6313_s9 + $0x148] sm:$0xf] }
 0x16b   : > { %1384 = vmatmul.bf16.vlgmr.msrb.gmra.mxu2 %v6418_v12  ;;  %1397 = vmatmul.bf16.vlgmr.msrb.gmra.mxu3 %v6423_v14  ;;  %v4489_v12 = vld [vmem:[%s6313_s9 + $0xc0] sm:$0xf]  ;;  %v4938_v51 = vor.u32 %v5692_v47, %v4937_v37  ;;  %v5712_v31 = vld [vmem:[%s6313_s9 + $0x504] sm:$0xf] }
 0x16c   : > { %v5644_v14 = vld [vmem:[%s6313_s9 + $0x2dc] sm:$0xf0]  ;;  %v4490_v9 = vor.u32 %v5580_v5, %v4489_v12  ;;  %v1281_v39 = vpop.f32.mrf.mxu2  ;;  %v4843_v12 = vld [vmem:[%s6313_s9 + $0x3a0] sm:$0xf0] }
 0x16d   : > { %2945 = vmatpush.bf16.msra.mxu0 %v4586_v44  ;;  %v4746_v17 = vor.u32 %v5644_v14, %v4745_v6  ;;  %v4649_v44 = vld [vmem:[%s6313_s9 + $0x200] sm:$0xf]  ;;  %v1282_v45 = vadd.f32 %v1281_v39, %v1269_v32  ;;  %v1257_v52 = vpop.f32.mrf.mxu0  ;;  %v6681_v14 = vpack.c.bf16 %v1243_v61, %v1243_v61  ;;  %v5035_v32 = vld [vmem:[%s6313_s9 + $0x520] sm:$0xf0] }
 0x16e   : > { %2958 = vmatpush.bf16.msra.mxu1 %v4842_v48  ;;  %2971 = vmatpush.bf16.msra.mxu2 %v5098_v54  ;;  %v5620_v48 = vld [vmem:[%s6313_s9 + $0x21c] sm:$0xf0]  ;;  %v4875_v54 = vld [vmem:[%s6313_s9 + $0x3e0] sm:$0xf0]  ;;  %v5038_v47 = vor.u32 %v5712_v31, %v5035_v32  ;;  %v5661_v31 = vld [vmem:[%s6313_s9 + $0x364] sm:$0xf0] }
 0x16f   : > { %v1294_v46 = vpop.f32.mrf.mxu3  ;;  %v4650_v63 = vor.u32 %v5620_v48, %v4649_v44  ;;  %v4878_v2 = vor.u32 %v5672_v53, %v4875_v54  ;;  %v5576_v34 = vld [vmem:[%s6313_s9 + $0xc4] sm:$0xf]  ;;  %v5321_v32 = vld [vmem:[%s6313_s9 + $0x740] sm:$0xf] }
 0x170   : > { %v1295_v56 = vadd.f32 %v1294_v46, %v1282_v45  ;;  %v4747_v37 = vld [vmem:[%s6313_s9 + $0x2e0] sm:$0xf0] }
 0x171   : > { %2946 = vmatpush.bf16.msra.mxu0 %v4554_v55  ;;  %v1270_v55 = vpop.f32.mrf.mxu1  ;;  %v5704_v39 = vld [vmem:[%s6313_s9 + $0x4c4] sm:$0xf] }
 0x172   : > { %2959 = vmatpush.bf16.msra.mxu1 %v4810_v59  ;;  %2972 = vmatpush.bf16.msra.mxu2 %v5066_v1  ;;  %v4905_v59 = vld [vmem:[%s6313_s9 + $0x400] sm:$0xf]  ;;  %v5736_v1 = vld [vmem:[%s6313_s9 + $0x5c4] sm:$0xf]  ;;  %v6679_v6 = vpack.c.bf16 %v1295_v56, %v1295_v56 }
 0x173   : > { %v4906_v5 = vor.u32 %v5684_v60, %v4905_v59  ;;  %v4459_v44 = vld [vmem:[%s6313_s9 + $0xa0] sm:$0xf0] }
 0x174   : > { %v1283_v10 = vpop.f32.mrf.mxu2  ;;  %v5632_v45 = vld [vmem:[%s6313_s9 + $0x284] sm:$0xf]  ;;  %v4462_v49 = vor.u32 %v5568_v42, %v4459_v44 }
 0x175   : > { %2947 = vmatpush.bf16.msra.mxu0 %v4522_v13  ;;  %v5131_v13 = vld [vmem:[%s6313_s9 + $0x5e0] sm:$0xf0] }
 0x176   : > { %2960 = vmatpush.bf16.msra.mxu1 %v4778_v15  ;;  %2973 = vmatpush.bf16.msra.mxu2 %v5034_v8  ;;  %v5664_v15 = vld [vmem:[%s6313_s9 + $0x384] sm:$0xf]  ;;  %v5134_v57 = vor.u32 %v5736_v1, %v5131_v13 }
 0x177   : > { %v5728_v8 = vld [vmem:[%s6313_s9 + $0x584] sm:$0xf]  ;;  %v4846_v11 = vor.u32 %v5664_v15, %v4843_v12  ;;  %v1296_v18 = vpop.f32.mrf.mxu3  ;;  %v4881_v15 = vld [vmem:[%s6313_s9 + $0x3c8] sm:$0xf] }
 0x178   : > { %v4715_v46 = vld [vmem:[%s6313_s9 + $0x2a0] sm:$0xf0]  ;;  %v5677_v12 = vld [vmem:[%s6313_s9 + $0x3e4] sm:$0xf0] }
 0x179   : > { %2948 = vmatpush.bf16.msra.mxu0 %v4490_v9  ;;  %v5099_v9 = vld [vmem:[%s6313_s9 + $0x5a0] sm:$0xf0]  ;;  %v4718_v53 = vor.u32 %v5632_v45, %v4715_v46  ;;  %v4882_v18 = vor.u32 %v5677_v12, %v4881_v15  ;;  %v4497_v46 = vld [vmem:[%s6313_s9 + $0xc8] sm:$0xf] }
 0x17a   : > { %2961 = vmatpush.bf16.msra.mxu1 %v4746_v17  ;;  %2974 = vmatpush.bf16.msra.mxu2 %v5002_v25  ;;  %v4555_v17 = vld [vmem:[%s6313_s9 + $0x160] sm:$0xf0]  ;;  %v5102_v21 = vor.u32 %v5728_v8, %v5099_v9  ;;  %v4814_v25 = vor.u32 %v5656_v19, %v4811_v20  ;;  %v4593_v19 = vld [vmem:[%s6313_s9 + $0x188] sm:$0xf] }
 0x17b   : > { %v4558_v22 = vor.u32 %v5592_v16, %v4555_v17  ;;  %v5696_v50 = vld [vmem:[%s6313_s9 + $0x484] sm:$0xf]  ;;  %v4626_v17 = vor.u32 %v5613_v4, %v4625_v3  ;;  %v5605_v20 = vld [vmem:[%s6313_s9 + $0x1a4] sm:$0xf0] }
 0x17c   : > { %v4971_v52 = vld [vmem:[%s6313_s9 + $0x4a0] sm:$0xf0]  ;;  %v4433_v12 = vld [vmem:[%s6313_s9 + $0x48] sm:$0xf] }
 0x17d   : > { %2949 = vmatpush.bf16.msra.mxu0 %v4458_v26  ;;  %v5584_v26 = vld [vmem:[%s6313_s9 + $0x104] sm:$0xf] }
 0x17e   : > { %2962 = vmatpush.bf16.msra.mxu1 %v4714_v29  ;;  %2975 = vmatpush.bf16.msra.mxu2 %v4970_v35  ;;  %v5070_v29 = vor.u32 %v5720_v23, %v5067_v24  ;;  %v4526_v30 = vor.u32 %v5584_v26, %v4523_v43  ;;  %v4491_v35 = vld [vmem:[%s6313_s9 + $0xe0] sm:$0xf0]  ;;  %v5353_v24 = vld [vmem:[%s6313_s9 + $0x780] sm:$0xf]  ;;  %v4594_v26 = vor.u32 %v5605_v20, %v4593_v19  ;;  %v4657_v19 = vld [vmem:[%s6313_s9 + $0x208] sm:$0xf] }
 0x17f   : > { %v4494_v38 = vor.u32 %v5576_v34, %v4491_v35  ;;  %v5560_v54 = vld [vmem:[%s6313_s9 + $0x44] sm:$0xf] }
 0x180   : > { %v5624_v55 = vld [vmem:[%s6313_s9 + $0x244] sm:$0xf] }
 0x181   : > { %2950 = vmatpush.bf16.msra.mxu0 %v4426_v36  ;;  %v5640_v36 = vld [vmem:[%s6313_s9 + $0x2c4] sm:$0xf] }
 0x182   : > { %2963 = vmatpush.bf16.msra.mxu1 %v4682_v40  ;;  %2976 = vmatpush.bf16.msra.mxu2 %v4938_v51  ;;  %v5003_v40 = vld [vmem:[%s6313_s9 + $0x4e0] sm:$0xf0]  ;;  %v4750_v41 = vor.u32 %v5640_v36, %v4747_v37  ;;  %v4529_v37 = vld [vmem:[%s6313_s9 + $0x108] sm:$0xf] }
 0x183   : > { %v5006_v48 = vor.u32 %v5704_v39, %v5003_v40  ;;  %v4427_v51 = vld [vmem:[%s6313_s9 + $0x60] sm:$0xf0]  ;;  %v5653_v39 = vld [vmem:[%s6313_s9 + $0x324] sm:$0xf0]  ;;  %v5289_v40 = vld [vmem:[%s6313_s9 + $0x700] sm:$0xf] }
 0x184   : > { %v4683_v56 = vld [vmem:[%s6313_s9 + $0x260] sm:$0xf0]  ;;  %v4430_v59 = vor.u32 %v5560_v54, %v4427_v51  ;;  %v538_v54 = vperm.slane %v6630_v62, 2 }
 0x185   : > { %2951 = vmatpush.bf16.msra.mxu0 %v4394_v58  ;;  %v4974_v58 = vor.u32 %v5696_v50, %v4971_v52  ;;  %v5552_v60 = vld [vmem:[%s6313_s9 + $0x4] sm:$0xf]  ;;  %v5645_v50 = vld [vmem:[%s6313_s9 + $0x2e4] sm:$0xf0]  ;;  %v5257_v52 = vld [vmem:[%s6313_s9 + $0x6c0] sm:$0xf] }
 0x186   : > { %2964 = vmatpush.bf16.msra.mxu1 %v4650_v63  ;;  %2977 = vmatpush.bf16.msra.mxu2 %v4906_v5  ;;  %v5688_v61 = vld [vmem:[%s6313_s9 + $0x444] sm:$0xf] }
 0x187   : > { %v4939_v63 = vld [vmem:[%s6313_s9 + $0x460] sm:$0xf0] }
 0x188   : > { %2952 = vmatmul.bf16.vlgmr.msra.gmra.mxu0 %v6681_v14  ;;  %v4395_v1 = vld [vmem:[%s6313_s9 + $0x20] sm:$0xf0]  ;;  %v4942_v5 = vor.u32 %v5688_v61, %v4939_v63  ;;  %v5637_v63 = vld [vmem:[%s6313_s9 + $0x2a4] sm:$0xf0] }
 0x189   : > { %2996 = vmatpush.bf16.msrb.mxu0 %v4622_v0  ;;  %2965 = vmatmul.bf16.vlgmr.msra.gmra.mxu1 %v6679_v6  ;;  %v4686_v0 = vor.u32 %v5624_v55, %v4683_v56  ;;  %v5616_v13 = vld [vmem:[%s6313_s9 + $0x204] sm:$0xf]  ;;  %v4398_v8 = vor.u32 %v5552_v60, %v4395_v1  ;;  %v4721_v60 = vld [vmem:[%s6313_s9 + $0x288] sm:$0xf]  ;;  %v5764_v1 = vld [vmem:[%s6313_s9 + $0x69c] sm:$0xf0] }
 0x18a   : > { %3009 = vmatpush.bf16.msrb.mxu1 %v4878_v2  ;;  %3022 = vmatpush.bf16.msrb.mxu2 %v5134_v57  ;;  %v4651_v2 = vld [vmem:[%s6313_s9 + $0x220] sm:$0xf0]  ;;  %v5385_v57 = vld [vmem:[%s6313_s9 + $0x7c0] sm:$0xf]  ;;  %v4722_v15 = vor.u32 %v5637_v63, %v4721_v60  ;;  %v5725_v60 = vld [vmem:[%s6313_s9 + $0x564] sm:$0xf0] }
 0x18b   : > { %v5680_v10 = vld [vmem:[%s6313_s9 + $0x404] sm:$0xf]  ;;  %v4654_v16 = vor.u32 %v5616_v13, %v4651_v2 }
 0x18d   : > { %2997 = vmatpush.bf16.msrb.mxu0 %v4590_v7  ;;  %v5804_v7 = vld [vmem:[%s6313_s9 + $0x7dc] sm:$0xf0] }
 0x18e   : > { %3010 = vmatpush.bf16.msrb.mxu1 %v4846_v11  ;;  %3023 = vmatpush.bf16.msrb.mxu2 %v5102_v21  ;;  %v5386_v9 = vor.u32 %v5804_v7, %v5385_v57  ;;  %v4907_v11 = vld [vmem:[%s6313_s9 + $0x420] sm:$0xf0]  ;;  %v4849_v21 = vld [vmem:[%s6313_s9 + $0x388] sm:$0xf] }
 0x18f   : > { %v4910_v23 = vor.u32 %v5680_v10, %v4907_v11  ;;  %v4689_v57 = vld [vmem:[%s6313_s9 + $0x248] sm:$0xf]  ;;  %v5756_v10 = vld [vmem:[%s6313_s9 + $0x65c] sm:$0xf0] }
 0x190   : > { %2983 = vmatpush.bf16.msra.mxu3 %v5386_v9  ;;  %v5193_v9 = vld [vmem:[%s6313_s9 + $0x640] sm:$0xf] }
 0x191   : > { %2998 = vmatpush.bf16.msrb.mxu0 %v4558_v22  ;;  %v5669_v22 = vld [vmem:[%s6313_s9 + $0x3a4] sm:$0xf0]  ;;  %v5194_v11 = vor.u32 %v5756_v10, %v5193_v9  ;;  %v4531_v9 = vld [vmem:[%s6313_s9 + $0x128] sm:$0xf0] }
 0x192   : > { %3011 = vmatpush.bf16.msrb.mxu1 %v4814_v25  ;;  %3024 = vmatpush.bf16.msrb.mxu2 %v5070_v29  ;;  %v5796_v25 = vld [vmem:[%s6313_s9 + $0x79c] sm:$0xf0]  ;;  %v4850_v27 = vor.u32 %v5669_v22, %v4849_v21  ;;  %v5597_v29 = vld [vmem:[%s6313_s9 + $0x164] sm:$0xf0]  ;;  %v5649_v10 = vld [vmem:[%s6313_s9 + $0x30c] sm:$0xf] }
 0x193   : > { %v5354_v43 = vor.u32 %v5796_v25, %v5353_v24  ;;  %v4562_v35 = vor.u32 %v5597_v29, %v4561_v28  ;;  %v5621_v22 = vld [vmem:[%s6313_s9 + $0x224] sm:$0xf0]  ;;  %v5748_v28 = vld [vmem:[%s6313_s9 + $0x61c] sm:$0xf0] }
 0x194   : > { %v5741_v24 = vld [vmem:[%s6313_s9 + $0x5e4] sm:$0xf0] }
 0x195   : > { %2999 = vmatpush.bf16.msrb.mxu0 %v4526_v30  ;;  %v4817_v30 = vld [vmem:[%s6313_s9 + $0x348] sm:$0xf]  ;;  %2984 = vmatpush.bf16.msra.mxu3 %v5354_v43  ;;  %v5609_v43 = vld [vmem:[%s6313_s9 + $0x1cc] sm:$0xf] }
 0x196   : > { %3012 = vmatpush.bf16.msrb.mxu1 %v4782_v33  ;;  %3025 = vmatpush.bf16.msrb.mxu2 %v5038_v47  ;;  %v5788_v33 = vld [vmem:[%s6313_s9 + $0x75c] sm:$0xf0]  ;;  %v4818_v36 = vor.u32 %v5661_v31, %v4817_v30  ;;  %v5589_v47 = vld [vmem:[%s6313_s9 + $0x124] sm:$0xf0]  ;;  %v4627_v30 = vld [vmem:[%s6313_s9 + $0x1e8] sm:$0xf0] }
 0x197   : > { %v5322_v34 = vor.u32 %v5788_v33, %v5321_v32  ;;  %v4530_v44 = vor.u32 %v5589_v47, %v4529_v37  ;;  %v5673_v31 = vld [vmem:[%s6313_s9 + $0x3cc] sm:$0xf]  ;;  %v5800_v37 = vld [vmem:[%s6313_s9 + $0x7c4] sm:$0xf] }
 0x198   : > { %v4883_v32 = vld [vmem:[%s6313_s9 + $0x3e8] sm:$0xf0]  ;;  %v5387_v47 = vld [vmem:[%s6313_s9 + $0x7e0] sm:$0xf0] }
 0x199   : > { %3000 = vmatpush.bf16.msrb.mxu0 %v4494_v38  ;;  %v4785_v38 = vld [vmem:[%s6313_s9 + $0x308] sm:$0xf]  ;;  %2985 = vmatpush.bf16.msra.mxu3 %v5322_v34 }
 0x19a   : > { %3013 = vmatpush.bf16.msrb.mxu1 %v4750_v41  ;;  %3026 = vmatpush.bf16.msrb.mxu2 %v5006_v48  ;;  %v5780_v41 = vld [vmem:[%s6313_s9 + $0x71c] sm:$0xf0]  ;;  %v4786_v45 = vor.u32 %v5653_v39, %v4785_v38  ;;  %v5581_v48 = vld [vmem:[%s6313_s9 + $0xe4] sm:$0xf0]  ;;  %v4658_v38 = vor.u32 %v5621_v22, %v4657_v19 }
 0x19b   : > { %v5290_v42 = vor.u32 %v5780_v41, %v5289_v40  ;;  %v4498_v55 = vor.u32 %v5581_v48, %v4497_v46  ;;  %v4630_v41 = vor.u32 %v5609_v43, %v4627_v30  ;;  %v5601_v46 = vld [vmem:[%s6313_s9 + $0x18c] sm:$0xf]  ;;  %v5009_v22 = vld [vmem:[%s6313_s9 + $0x4c8] sm:$0xf] }
 0x19c   : > { %v4595_v48 = vld [vmem:[%s6313_s9 + $0x1a8] sm:$0xf0] }
 0x19d   : > { %3001 = vmatpush.bf16.msrb.mxu0 %v4462_v49  ;;  %v4753_v49 = vld [vmem:[%s6313_s9 + $0x2c8] sm:$0xf]  ;;  %2986 = vmatpush.bf16.msra.mxu3 %v5290_v42  ;;  %v4886_v42 = vor.u32 %v5673_v31, %v4883_v32  ;;  %v4755_v43 = vld [vmem:[%s6313_s9 + $0x2e8] sm:$0xf0] }
 0x19e   : > { %3014 = vmatpush.bf16.msrb.mxu1 %v4718_v53  ;;  %3027 = vmatpush.bf16.msrb.mxu2 %v4974_v58  ;;  %v5772_v53 = vld [vmem:[%s6313_s9 + $0x6dc] sm:$0xf0]  ;;  %v4754_v56 = vor.u32 %v5645_v50, %v4753_v49  ;;  %v4465_v58 = vld [vmem:[%s6313_s9 + $0x88] sm:$0xf]  ;;  %v5665_v49 = vld [vmem:[%s6313_s9 + $0x38c] sm:$0xf] }
 0x19f   : > { %v5258_v51 = vor.u32 %v5772_v53, %v5257_v52  ;;  %v4851_v50 = vld [vmem:[%s6313_s9 + $0x3a8] sm:$0xf0]  ;;  %v5390_v52 = vor.u32 %v5800_v37, %v5387_v47  ;;  %v5792_v53 = vld [vmem:[%s6313_s9 + $0x784] sm:$0xf] }
 0x1a0   : > { %v5633_v37 = vld [vmem:[%s6313_s9 + $0x28c] sm:$0xf] }
 0x1a1   : > { %3002 = vmatpush.bf16.msrb.mxu0 %v4430_v59  ;;  %v5573_v59 = vld [vmem:[%s6313_s9 + $0xa4] sm:$0xf0]  ;;  %2987 = vmatpush.bf16.msra.mxu3 %v5258_v51  ;;  %v4723_v47 = vld [vmem:[%s6313_s9 + $0x2a8] sm:$0xf0] }
 0x1a2   : > { %3015 = vmatpush.bf16.msrb.mxu1 %v4686_v0  ;;  %3028 = vmatpush.bf16.msrb.mxu2 %v4942_v5  ;;  %v5225_v0 = vld [vmem:[%s6313_s9 + $0x680] sm:$0xf]  ;;  %v4466_v4 = vor.u32 %v5573_v59, %v4465_v58  ;;  %v5565_v5 = vld [vmem:[%s6313_s9 + $0x64] sm:$0xf0]  ;;  %v4854_v58 = vor.u32 %v5665_v49, %v4851_v50  ;;  %v5561_v49 = vld [vmem:[%s6313_s9 + $0x4c] sm:$0xf] }
 0x1a3   : > { %v5226_v3 = vor.u32 %v5764_v1, %v5225_v0  ;;  %v5073_v59 = vld [vmem:[%s6313_s9 + $0x548] sm:$0xf]  ;;  %v4563_v0 = vld [vmem:[%s6313_s9 + $0x168] sm:$0xf0] }
 0x1a4   : > { %v5657_v1 = vld [vmem:[%s6313_s9 + $0x34c] sm:$0xf] }
 0x1a5   : > { %3003 = vmatpush.bf16.msrb.mxu0 %v4398_v8  ;;  %v1307_v61 = vpop.f32.mrf.mxu0  ;;  %v5629_v8 = vld [vmem:[%s6313_s9 + $0x264] sm:$0xf0]  ;;  %2988 = vmatpush.bf16.msra.mxu3 %v5226_v3  ;;  %v5784_v3 = vld [vmem:[%s6313_s9 + $0x744] sm:$0xf]  ;;  %v4435_v50 = vld [vmem:[%s6313_s9 + $0x68] sm:$0xf0] }
 0x1a6   : > { %3016 = vmatpush.bf16.msrb.mxu1 %v4654_v16  ;;  %3029 = vmatpush.bf16.msrb.mxu2 %v4910_v23  ;;  %v1308_v13 = vadd.f32 %v1307_v61, %v538_v54  ;;  %v4434_v16 = vor.u32 %v5565_v5, %v4433_v12  ;;  %v4690_v21 = vor.u32 %v5629_v8, %v4689_v57  ;;  %v5137_v23 = vld [vmem:[%s6313_s9 + $0x5c8] sm:$0xf]  ;;  %v5355_v54 = vld [vmem:[%s6313_s9 + $0x7a0] sm:$0xf0]  ;;  %v5593_v61 = vld [vmem:[%s6313_s9 + $0x14c] sm:$0xf] }
 0x1a7   : > { %v5138_v39 = vor.u32 %v5741_v24, %v5137_v23  ;;  %v4566_v12 = vor.u32 %v5593_v61, %v4563_v0  ;;  %v5041_v57 = vld [vmem:[%s6313_s9 + $0x508] sm:$0xf]  ;;  %v5585_v8 = vld [vmem:[%s6313_s9 + $0x10c] sm:$0xf] }
 0x1a8   : > { %3004 = vmatmul.bf16.vlgmr.msrb.gmra.mxu0 %v6681_v14  ;;  %v1320_v2 = vpop.f32.mrf.mxu1  ;;  %v5709_v23 = vld [vmem:[%s6313_s9 + $0x4e4] sm:$0xf0]  ;;  %v5577_v24 = vld [vmem:[%s6313_s9 + $0xcc] sm:$0xf] }
 0x1a9   : > { %3048 = vmatpush.bf16.msra.mxu0 %v4626_v17  ;;  %3017 = vmatmul.bf16.vlgmr.msrb.gmra.mxu1 %v6679_v6  ;;  %v1321_v7 = vadd.f32 %v1320_v2, %v1308_v13  ;;  %v4401_v17 = vld [vmem:[%s6313_s9 + $0x8] sm:$0xf]  ;;  %v4819_v13 = vld [vmem:[%s6313_s9 + $0x368] sm:$0xf0]  ;;  %v5358_v2 = vor.u32 %v5792_v53, %v5355_v54  ;;  %v5010_v30 = vor.u32 %v5709_v23, %v5009_v22  ;;  %v5606_v22 = vld [vmem:[%s6313_s9 + $0x1ac] sm:$0xf0] }
 0x1aa   : > { %3061 = vmatpush.bf16.msra.mxu1 %v4882_v18  ;;  %v5557_v18 = vld [vmem:[%s6313_s9 + $0x24] sm:$0xf0]  ;;  %2989 = vmatpush.bf16.msra.mxu3 %v5194_v11  ;;  %v4822_v5 = vor.u32 %v5657_v1, %v4819_v13  ;;  %v4787_v11 = vld [vmem:[%s6313_s9 + $0x328] sm:$0xf0]  ;;  %v4857_v23 = vld [vmem:[%s6313_s9 + $0x390] sm:$0xf] }
 0x1ab   : > { %v4691_v53 = vld [vmem:[%s6313_s9 + $0x268] sm:$0xf0]  ;;  %v5685_v61 = vld [vmem:[%s6313_s9 + $0x424] sm:$0xf0] }
 0x1ac   : > { %v1333_v20 = vpop.f32.mrf.mxu2  ;;  %v4403_v0 = vld [vmem:[%s6313_s9 + $0x28] sm:$0xf0] }
 0x1ad   : > { %3049 = vmatpush.bf16.msra.mxu0 %v4594_v26  ;;  %v1334_v25 = vadd.f32 %v1333_v20, %v1321_v7  ;;  %v1309_v29 = vpop.f32.mrf.mxu0  ;;  %v5717_v7 = vld [vmem:[%s6313_s9 + $0x524] sm:$0xf0]  ;;  %v4534_v20 = vor.u32 %v5585_v8, %v4531_v9  ;;  %v5617_v1 = vld [vmem:[%s6313_s9 + $0x20c] sm:$0xf] }
 0x1ae   : > { %3062 = vmatpush.bf16.msra.mxu1 %v4850_v27  ;;  %v5161_v27 = vld [vmem:[%s6313_s9 + $0x600] sm:$0xf]  ;;  %v5042_v19 = vor.u32 %v5717_v7, %v5041_v57  ;;  %v5259_v29 = vld [vmem:[%s6313_s9 + $0x6e0] sm:$0xf0]  ;;  %v4659_v13 = vld [vmem:[%s6313_s9 + $0x228] sm:$0xf0] }
 0x1af   : > { %v1346_v26 = vpop.f32.mrf.mxu3  ;;  %v5162_v33 = vor.u32 %v5748_v28, %v5161_v27  ;;  %v5768_v28 = vld [vmem:[%s6313_s9 + $0x6c4] sm:$0xf]  ;;  %v4889_v57 = vld [vmem:[%s6313_s9 + $0x3d0] sm:$0xf]  ;;  %v4662_v9 = vor.u32 %v5617_v1, %v4659_v13 }
 0x1b0   : > { %v1322_v34 = vpop.f32.mrf.mxu1  ;;  %v5678_v7 = vld [vmem:[%s6313_s9 + $0x3ec] sm:$0xf0] }
 0x1b1   : > { %3050 = vmatpush.bf16.msra.mxu0 %v4562_v35  ;;  %v1347_v35 = vadd.f32 %v1346_v26, %v1334_v25  ;;  %2990 = vmatpush.bf16.msra.mxu3 %v5162_v33  ;;  %v4499_v25 = vld [vmem:[%s6313_s9 + $0xe8] sm:$0xf0]  ;;  %v4977_v33 = vld [vmem:[%s6313_s9 + $0x488] sm:$0xf]  ;;  %v4729_v13 = vld [vmem:[%s6313_s9 + $0x290] sm:$0xf] }
 0x1b2   : > { %3063 = vmatpush.bf16.msra.mxu1 %v4818_v36  ;;  %v4402_v36 = vor.u32 %v5557_v18, %v4401_v17  ;;  %v5776_v17 = vld [vmem:[%s6313_s9 + $0x704] sm:$0xf]  ;;  %v5641_v26 = vld [vmem:[%s6313_s9 + $0x2cc] sm:$0xf]  ;;  %v4502_v31 = vor.u32 %v5577_v24, %v4499_v25  ;;  %v5701_v34 = vld [vmem:[%s6313_s9 + $0x4a4] sm:$0xf0] }
 0x1b3   : > { %v6782_v40 = vpack.c.bf16 %v1347_v35, %v1347_v35  ;;  %v5291_v18 = vld [vmem:[%s6313_s9 + $0x720] sm:$0xf0]  ;;  %v4758_v32 = vor.u32 %v5641_v26, %v4755_v43  ;;  %v5569_v35 = vld [vmem:[%s6313_s9 + $0x8c] sm:$0xf]  ;;  %v5670_v24 = vld [vmem:[%s6313_s9 + $0x3ac] sm:$0xf0] }
 0x1b4   : > { %v5294_v27 = vor.u32 %v5776_v17, %v5291_v18  ;;  %v5744_v17 = vld [vmem:[%s6313_s9 + $0x604] sm:$0xf] }
 0x1b5   : > { %3051 = vmatpush.bf16.msra.mxu0 %v4530_v44  ;;  %v5105_v44 = vld [vmem:[%s6313_s9 + $0x588] sm:$0xf]  ;;  %2978 = vmatmul.bf16.vlgmr.msra.gmra.mxu2 %v6782_v40  ;;  %v5163_v18 = vld [vmem:[%s6313_s9 + $0x620] sm:$0xf0] }
 0x1b6   : > { %3064 = vmatpush.bf16.msra.mxu1 %v4786_v45  ;;  %v5733_v45 = vld [vmem:[%s6313_s9 + $0x5a4] sm:$0xf0]  ;;  %3074 = vmatpush.bf16.msra.mxu2 %v5138_v39  ;;  %v5760_v39 = vld [vmem:[%s6313_s9 + $0x684] sm:$0xf]  ;;  %v5166_v25 = vor.u32 %v5744_v17, %v5163_v18 }
 0x1b7   : > { %v5106_v51 = vor.u32 %v5733_v45, %v5105_v44  ;;  %v1348_v63 = vpop.f32.mrf.mxu3  ;;  %3035 = vmatpush.bf16.msrb.mxu3 %v5390_v52  ;;  %v4726_v45 = vor.u32 %v5633_v37, %v4723_v47  ;;  %v5625_v52 = vld [vmem:[%s6313_s9 + $0x24c] sm:$0xf]  ;;  %v5393_v18 = vld [vmem:[%s6313_s9 + $0x7c8] sm:$0xf] }
 0x1b8   : > { %v5553_v63 = vld [vmem:[%s6313_s9 + $0xc] sm:$0xf] }
 0x1b9   : > { %3052 = vmatpush.bf16.msra.mxu0 %v4498_v55  ;;  %v1335_v55 = vpop.f32.mrf.mxu2  ;;  %v4406_v8 = vor.u32 %v5553_v63, %v4403_v0  ;;  %v5043_v47 = vld [vmem:[%s6313_s9 + $0x528] sm:$0xf0]  ;;  %v4473_v63 = vld [vmem:[%s6313_s9 + $0x90] sm:$0xf] }
 0x1ba   : > { %3065 = vmatpush.bf16.msra.mxu1 %v4754_v56  ;;  %v4598_v56 = vor.u32 %v5601_v46, %v4595_v48  ;;  %3075 = vmatpush.bf16.msra.mxu2 %v5106_v51  ;;  %v4945_v46 = vld [vmem:[%s6313_s9 + $0x448] sm:$0xf]  ;;  %v5752_v51 = vld [vmem:[%s6313_s9 + $0x644] sm:$0xf]  ;;  %v5574_v0 = vld [vmem:[%s6313_s9 + $0xac] sm:$0xf0] }
 0x1bb   : > { %3036 = vmatpush.bf16.msrb.mxu3 %v5358_v2  ;;  %v5693_v48 = vld [vmem:[%s6313_s9 + $0x464] sm:$0xf0]  ;;  %v5195_v55 = vld [vmem:[%s6313_s9 + $0x660] sm:$0xf0]  ;;  %v5737_v2 = vld [vmem:[%s6313_s9 + $0x5cc] sm:$0xf] }
 0x1bd   : > { %3053 = vmatpush.bf16.msra.mxu0 %v4466_v4  ;;  %v5323_v4 = vld [vmem:[%s6313_s9 + $0x760] sm:$0xf0] }
 0x1be   : > { %3066 = vmatpush.bf16.msra.mxu1 %v4722_v15  ;;  %v5074_v15 = vor.u32 %v5725_v60, %v5073_v59  ;;  %v4438_v59 = vor.u32 %v5561_v49, %v4435_v50  ;;  %v4694_v60 = vor.u32 %v5625_v52, %v4691_v53  ;;  %v5011_v49 = vld [vmem:[%s6313_s9 + $0x4e8] sm:$0xf0]  ;;  %v4505_v50 = vld [vmem:[%s6313_s9 + $0xd0] sm:$0xf]  ;;  %v539_v53 = vperm.slane %v6630_v62, 3 }
 0x1bf   : > { %v5582_v52 = vld [vmem:[%s6313_s9 + $0xec] sm:$0xf0] }
 0x1c0   : > { %3076 = vmatpush.bf16.msra.mxu2 %v5074_v15  ;;  %v4633_v15 = vld [vmem:[%s6313_s9 + $0x1d0] sm:$0xf] }
 0x1c1   : > { %3054 = vmatpush.bf16.msra.mxu0 %v4434_v16  ;;  %v5326_v16 = vor.u32 %v5784_v3, %v5323_v4  ;;  %v5198_v3 = vor.u32 %v5752_v51, %v5195_v55  ;;  %v5139_v4 = vld [vmem:[%s6313_s9 + $0x5e8] sm:$0xf0]  ;;  %v5646_v51 = vld [vmem:[%s6313_s9 + $0x2ec] sm:$0xf0] }
 0x1c2   : > { %3067 = vmatpush.bf16.msra.mxu1 %v4690_v21  ;;  %v4790_v21 = vor.u32 %v5649_v10, %v4787_v11  ;;  %v5142_v10 = vor.u32 %v5737_v2, %v5139_v4  ;;  %v5638_v2 = vld [vmem:[%s6313_s9 + $0x2ac] sm:$0xf0]  ;;  %v4474_v4 = vor.u32 %v5574_v0, %v4473_v63  ;;  %v5789_v63 = vld [vmem:[%s6313_s9 + $0x764] sm:$0xf0] }
 0x1c3   : > { %3037 = vmatpush.bf16.msrb.mxu3 %v5326_v16  ;;  %v5729_v16 = vld [vmem:[%s6313_s9 + $0x58c] sm:$0xf]  ;;  %v5081_v0 = vld [vmem:[%s6313_s9 + $0x550] sm:$0xf] }
 0x1c4   : > { %3077 = vmatpush.bf16.msra.mxu2 %v5042_v19  ;;  %v4890_v19 = vor.u32 %v5678_v7, %v4889_v57  ;;  %v4947_v57 = vld [vmem:[%s6313_s9 + $0x468] sm:$0xf0]  ;;  %v4441_v7 = vld [vmem:[%s6313_s9 + $0x50] sm:$0xf] }
 0x1c5   : > { %3055 = vmatpush.bf16.msra.mxu0 %v4402_v36  ;;  %v4467_v36 = vld [vmem:[%s6313_s9 + $0xa8] sm:$0xf0]  ;;  %3030 = vmatmul.bf16.vlgmr.msrb.gmra.mxu2 %v6782_v40 }
 0x1c6   : > { %3068 = vmatpush.bf16.msra.mxu1 %v4658_v38  ;;  %v5262_v38 = vor.u32 %v5768_v28, %v5259_v29  ;;  %v4470_v44 = vor.u32 %v5569_v35, %v4467_v36  ;;  %v4858_v28 = vor.u32 %v5670_v24, %v4857_v23  ;;  %v5075_v29 = vld [vmem:[%s6313_s9 + $0x568] sm:$0xf0] }
 0x1c7   : > { %3038 = vmatpush.bf16.msrb.mxu3 %v5294_v27  ;;  %v5721_v27 = vld [vmem:[%s6313_s9 + $0x54c] sm:$0xf] }
 0x1c8   : > { %3056 = vmatmul.bf16.vlgmr.msra.gmra.mxu0 %v6681_v14  ;;  %3078 = vmatpush.bf16.msra.mxu2 %v5010_v30  ;;  %v4569_v30 = vld [vmem:[%s6313_s9 + $0x150] sm:$0xf]  ;;  %v5713_v36 = vld [vmem:[%s6313_s9 + $0x50c] sm:$0xf] }
 0x1c9   : > { %3100 = vmatpush.bf16.msrb.mxu0 %v4630_v41  ;;  %3069 = vmatmul.bf16.vlgmr.msra.gmra.mxu1 %v6679_v6  ;;  %v5227_v41 = vld [vmem:[%s6313_s9 + $0x6a0] sm:$0xf0] }
 0x1ca   : > { %3113 = vmatpush.bf16.msrb.mxu1 %v4886_v42  ;;  %v4978_v42 = vor.u32 %v5701_v34, %v4977_v33  ;;  %v5230_v54 = vor.u32 %v5760_v39, %v5227_v41  ;;  %v5662_v33 = vld [vmem:[%s6313_s9 + $0x36c] sm:$0xf0]  ;;  %v5078_v34 = vor.u32 %v5721_v27, %v5075_v29 }
 0x1cb   : > { %3039 = vmatpush.bf16.msrb.mxu3 %v5262_v38  ;;  %v4537_v38 = vld [vmem:[%s6313_s9 + $0x110] sm:$0xf] }
 0x1cc   : > { %3079 = vmatpush.bf16.msra.mxu2 %v4978_v42  ;;  %v5590_v39 = vld [vmem:[%s6313_s9 + $0x12c] sm:$0xf0] }
 0x1cd   : > { %3101 = vmatpush.bf16.msrb.mxu0 %v4598_v56  ;;  %v4946_v56 = vor.u32 %v5693_v48, %v4945_v46  ;;  %v4793_v41 = vld [vmem:[%s6313_s9 + $0x310] sm:$0xf]  ;;  %v5705_v46 = vld [vmem:[%s6313_s9 + $0x4cc] sm:$0xf] }
 0x1ce   : > { %3114 = vmatpush.bf16.msrb.mxu1 %v4854_v58  ;;  %v4913_v58 = vld [vmem:[%s6313_s9 + $0x408] sm:$0xf]  ;;  %v5654_v42 = vld [vmem:[%s6313_s9 + $0x32c] sm:$0xf0]  ;;  %v5014_v55 = vor.u32 %v5705_v46, %v5011_v49 }
 0x1cf   : > { %3040 = vmatpush.bf16.msrb.mxu3 %v5230_v54  ;;  %v4794_v48 = vor.u32 %v5654_v42, %v4793_v41  ;;  %v4761_v54 = vld [vmem:[%s6313_s9 + $0x2d0] sm:$0xf]  ;;  %v5797_v46 = vld [vmem:[%s6313_s9 + $0x7a4] sm:$0xf0] }
 0x1d0   : > { %3080 = vmatpush.bf16.msra.mxu2 %v4946_v56  ;;  %v4506_v56 = vor.u32 %v5582_v52, %v4505_v50  ;;  %v5622_v29 = vld [vmem:[%s6313_s9 + $0x22c] sm:$0xf0]  ;;  %v5602_v52 = vld [vmem:[%s6313_s9 + $0x194] sm:$0xf] }
 0x1d1   : > { %3102 = vmatpush.bf16.msrb.mxu0 %v4566_v12  ;;  %v5614_v12 = vld [vmem:[%s6313_s9 + $0x1ec] sm:$0xf0] }
 0x1d2   : > { %3115 = vmatpush.bf16.msrb.mxu1 %v4822_v5  ;;  %v4914_v5 = vor.u32 %v5685_v61, %v4913_v58  ;;  %v4634_v11 = vor.u32 %v5614_v12, %v4633_v15  ;;  %v5697_v58 = vld [vmem:[%s6313_s9 + $0x48c] sm:$0xf]  ;;  %v5734_v50 = vld [vmem:[%s6313_s9 + $0x5ac] sm:$0xf0] }
 0x1d3   : > { %3041 = vmatpush.bf16.msrb.mxu3 %v5198_v3  ;;  %v4979_v61 = vld [vmem:[%s6313_s9 + $0x4a8] sm:$0xf0] }
 0x1d4   : > { %3081 = vmatpush.bf16.msra.mxu2 %v4914_v5  ;;  %v4982_v3 = vor.u32 %v5697_v58, %v4979_v61  ;;  %v5689_v15 = vld [vmem:[%s6313_s9 + $0x44c] sm:$0xf]  ;;  %v4730_v5 = vor.u32 %v5638_v2, %v4729_v13  ;;  %v5329_v61 = vld [vmem:[%s6313_s9 + $0x748] sm:$0xf]  ;;  %v5594_v13 = vld [vmem:[%s6313_s9 + $0x154] sm:$0xf] }
 0x1d5   : > { %3103 = vmatpush.bf16.msrb.mxu0 %v4534_v20  ;;  %v5107_v20 = vld [vmem:[%s6313_s9 + $0x5a8] sm:$0xf0]  ;;  %v4571_v2 = vld [vmem:[%s6313_s9 + $0x170] sm:$0xf0] }
 0x1d6   : > { %3116 = vmatpush.bf16.msrb.mxu1 %v4790_v21  ;;  %v4601_v21 = vld [vmem:[%s6313_s9 + $0x190] sm:$0xf]  ;;  %v5110_v26 = vor.u32 %v5729_v16, %v5107_v20  ;;  %v4950_v16 = vor.u32 %v5689_v15, %v4947_v57  ;;  %v5681_v20 = vld [vmem:[%s6313_s9 + $0x40c] sm:$0xf]  ;;  %v5330_v15 = vor.u32 %v5789_v63, %v5329_v61  ;;  %v5297_v57 = vld [vmem:[%s6313_s9 + $0x708] sm:$0xf] }
 0x1d7   : > { %v4602_v43 = vor.u32 %v5606_v22, %v4601_v21  ;;  %3082 = vmatmul.bf16.vlgmr.msra.gmra.mxu2 %v6782_v40  ;;  %3042 = vmatpush.bf16.msrb.mxu3 %v5166_v25  ;;  %v4915_v25 = vld [vmem:[%s6313_s9 + $0x428] sm:$0xf0]  ;;  %v4699_v61 = vld [vmem:[%s6313_s9 + $0x270] sm:$0xf0] }
 0x1d8   : > { %3126 = vmatpush.bf16.msrb.mxu2 %v5142_v10  ;;  %v5630_v10 = vld [vmem:[%s6313_s9 + $0x26c] sm:$0xf0] }
 0x1d9   : > { %3104 = vmatpush.bf16.msrb.mxu0 %v4502_v31  ;;  %v5598_v31 = vld [vmem:[%s6313_s9 + $0x16c] sm:$0xf0] }
 0x1da   : > { %3117 = vmatpush.bf16.msrb.mxu1 %v4758_v32  ;;  %v4825_v32 = vld [vmem:[%s6313_s9 + $0x350] sm:$0xf]  ;;  %v4570_v35 = vor.u32 %v5598_v31, %v4569_v30 }
 0x1db   : > { %v4826_v37 = vor.u32 %v5662_v33, %v4825_v32  ;;  %v5145_v30 = vld [vmem:[%s6313_s9 + $0x5d0] sm:$0xf]  ;;  %v5610_v33 = vld [vmem:[%s6313_s9 + $0x1d4] sm:$0xf] }
 0x1dc   : > { %3127 = vmatpush.bf16.msrb.mxu2 %v5110_v26  ;;  %v4409_v26 = vld [vmem:[%s6313_s9 + $0x10] sm:$0xf] }
 0x1dd   : > { %3105 = vmatpush.bf16.msrb.mxu0 %v4470_v44  ;;  %v5046_v44 = vor.u32 %v5713_v36, %v5043_v47  ;;  %v5742_v32 = vld [vmem:[%s6313_s9 + $0x5ec] sm:$0xf0]  ;;  %v4918_v36 = vor.u32 %v5681_v20, %v4915_v25  ;;  %v4891_v47 = vld [vmem:[%s6313_s9 + $0x3f0] sm:$0xf0] }
 0x1de   : > { %3118 = vmatpush.bf16.msrb.mxu1 %v4726_v45  ;;  %v4538_v45 = vor.u32 %v5590_v39, %v4537_v38  ;;  %v5146_v42 = vor.u32 %v5742_v32, %v5145_v30  ;;  %v5642_v30 = vld [vmem:[%s6313_s9 + $0x2d4] sm:$0xf] }
 0x1e0   : > { %3128 = vmatpush.bf16.msrb.mxu2 %v5078_v34  ;;  %v4635_v34 = vld [vmem:[%s6313_s9 + $0x1f0] sm:$0xf0] }
 0x1e1   : > { %3106 = vmatpush.bf16.msrb.mxu0 %v4438_v59 }
 0x1e2   : > { %3119 = vmatpush.bf16.msrb.mxu1 %v4694_v60  ;;  %v4762_v60 = vor.u32 %v5646_v51, %v4761_v54  ;;  %v5666_v51 = vld [vmem:[%s6313_s9 + $0x394] sm:$0xf] }
 0x1e4   : > { %3129 = vmatpush.bf16.msrb.mxu2 %v5046_v44  ;;  %v4638_v44 = vor.u32 %v5610_v33, %v4635_v34 }
 0x1e5   : > { %3107 = vmatpush.bf16.msrb.mxu0 %v4406_v8  ;;  %v1359_v59 = vpop.f32.mrf.mxu0  ;;  %v5566_v8 = vld [vmem:[%s6313_s9 + $0x6c] sm:$0xf0] }
 0x1e6   : > { %3120 = vmatpush.bf16.msrb.mxu1 %v4662_v9  ;;  %v1360_v62 = vadd.f32 %v1359_v59, %v539_v53  ;;  %v1372_v1 = vpop.f32.mrf.mxu1  ;;  %v4697_v9 = vld [vmem:[%s6313_s9 + $0x250] sm:$0xf]  ;;  %v4442_v17 = vor.u32 %v5566_v8, %v4441_v7  ;;  %v4603_v53 = vld [vmem:[%s6313_s9 + $0x1b0] sm:$0xf0]  ;;  %v5781_v7 = vld [vmem:[%s6313_s9 + $0x724] sm:$0xf0] }
 0x1e7   : > { %v4698_v24 = vor.u32 %v5630_v10, %v4697_v9  ;;  %v5049_v8 = vld [vmem:[%s6313_s9 + $0x510] sm:$0xf] }
 0x1e8   : > { %3108 = vmatmul.bf16.vlgmr.msrb.gmra.mxu0 %v6681_v14  ;;  %3130 = vmatpush.bf16.msrb.mxu2 %v5014_v55  ;;  %v1373_v12 = vadd.f32 %v1372_v1, %v1360_v62  ;;  %v4859_v55 = vld [vmem:[%s6313_s9 + $0x3b0] sm:$0xf0]  ;;  %v5726_v1 = vld [vmem:[%s6313_s9 + $0x56c] sm:$0xf0] }
 0x1e9   : > { %3152 = vmatpush.bf16.msra.mxu0 %v4634_v11  ;;  %3121 = vmatmul.bf16.vlgmr.msrb.gmra.mxu1 %v6679_v6  ;;  %v4862_v62 = vor.u32 %v5666_v51, %v4859_v55  ;;  %v5718_v10 = vld [vmem:[%s6313_s9 + $0x52c] sm:$0xf0] }
 0x1ea   : > { %3165 = vmatpush.bf16.msra.mxu1 %v4890_v19  ;;  %v5805_v19 = vld [vmem:[%s6313_s9 + $0x7e4] sm:$0xf0]  ;;  %v5050_v20 = vor.u32 %v5718_v10, %v5049_v8  ;;  %v5618_v8 = vld [vmem:[%s6313_s9 + $0x214] sm:$0xf] }
 0x1eb   : > { %v5738_v10 = vld [vmem:[%s6313_s9 + $0x5d4] sm:$0xf] }
 0x1ec   : > { %3131 = vmatpush.bf16.msrb.mxu2 %v4982_v3  ;;  %v5658_v3 = vld [vmem:[%s6313_s9 + $0x354] sm:$0xf] }
 0x1ed   : > { %3153 = vmatpush.bf16.msra.mxu0 %v4602_v43  ;;  %v1361_v23 = vpop.f32.mrf.mxu0  ;;  %v5558_v43 = vld [vmem:[%s6313_s9 + $0x2c] sm:$0xf0] }
 0x1ee   : > { %3166 = vmatpush.bf16.msra.mxu1 %v4858_v28  ;;  %v1385_v11 = vpop.f32.mrf.mxu2  ;;  %v1398_v22 = vpop.f32.mrf.mxu3  ;;  %v4665_v28 = vld [vmem:[%s6313_s9 + $0x210] sm:$0xf]  ;;  %v4410_v39 = vor.u32 %v5558_v43, %v4409_v26  ;;  %v5773_v23 = vld [vmem:[%s6313_s9 + $0x6e4] sm:$0xf0] }
 0x1ef   : > { %v1386_v21 = vadd.f32 %v1385_v11, %v1373_v12  ;;  %v1374_v27 = vpop.f32.mrf.mxu1  ;;  %v4666_v41 = vor.u32 %v5622_v29, %v4665_v28  ;;  %v5082_v12 = vor.u32 %v5726_v1, %v5081_v0  ;;  %v5586_v11 = vld [vmem:[%s6313_s9 + $0x114] sm:$0xf]  ;;  %v5710_v43 = vld [vmem:[%s6313_s9 + $0x4ec] sm:$0xf0]  ;;  %v5749_v1 = vld [vmem:[%s6313_s9 + $0x624] sm:$0xf0] }
 0x1f0   : > { %3132 = vmatpush.bf16.msrb.mxu2 %v4950_v16  ;;  %v4539_v16 = vld [vmem:[%s6313_s9 + $0x130] sm:$0xf0] }
 0x1f1   : > { %3154 = vmatpush.bf16.msra.mxu0 %v4570_v35  ;;  %v1399_v31 = vadd.f32 %v1398_v22, %v1386_v21  ;;  %v5394_v35 = vor.u32 %v5805_v19, %v5393_v18  ;;  %v4795_v18 = vld [vmem:[%s6313_s9 + $0x330] sm:$0xf0]  ;;  %v5298_v19 = vor.u32 %v5781_v7, %v5297_v57  ;;  %v4542_v21 = vor.u32 %v5586_v11, %v4539_v16  ;;  %v5265_v22 = vld [vmem:[%s6313_s9 + $0x6c8] sm:$0xf] }
 0x1f2   : > { %3167 = vmatpush.bf16.msra.mxu1 %v4826_v37  ;;  %v5674_v37 = vld [vmem:[%s6313_s9 + $0x3d4] sm:$0xf]  ;;  %v5266_v33 = vor.u32 %v5773_v23, %v5265_v22  ;;  %v5679_v22 = vld [vmem:[%s6313_s9 + $0x3f4] sm:$0xf0] }
 0x1f3   : > { %v6904_v38 = vpack.c.bf16 %v1399_v31, %v1399_v31  ;;  %v4894_v49 = vor.u32 %v5674_v37, %v4891_v47  ;;  %v5578_v27 = vld [vmem:[%s6313_s9 + $0xd4] sm:$0xf]  ;;  %v5765_v37 = vld [vmem:[%s6313_s9 + $0x6a4] sm:$0xf0]  ;;  %v4985_v47 = vld [vmem:[%s6313_s9 + $0x490] sm:$0xf] }
 0x1f4   : > { %3133 = vmatpush.bf16.msrb.mxu2 %v4918_v36  ;;  %v4507_v28 = vld [vmem:[%s6313_s9 + $0xf0] sm:$0xf0]  ;;  %v5233_v36 = vld [vmem:[%s6313_s9 + $0x688] sm:$0xf] }
 0x1f5   : > { %3155 = vmatpush.bf16.msra.mxu0 %v4538_v45  ;;  %v5361_v45 = vld [vmem:[%s6313_s9 + $0x788] sm:$0xf]  ;;  %2991 = vmatmul.bf16.vlgmr.msra.gmra.mxu3 %v6904_v38  ;;  %v4763_v31 = vld [vmem:[%s6313_s9 + $0x2f0] sm:$0xf0] }
 0x1f6   : > { %3168 = vmatpush.bf16.msra.mxu1 %v4794_v48  ;;  %v5113_v48 = vld [vmem:[%s6313_s9 + $0x590] sm:$0xf]  ;;  %3087 = vmatpush.bf16.msra.mxu3 %v5394_v35  ;;  %v1387_v54 = vpop.f32.mrf.mxu2  ;;  %v5362_v58 = vor.u32 %v5797_v46, %v5361_v45  ;;  %v4510_v35 = vor.u32 %v5578_v27, %v4507_v28  ;;  %v5634_v45 = vld [vmem:[%s6313_s9 + $0x294] sm:$0xf]  ;;  %v5363_v27 = vld [vmem:[%s6313_s9 + $0x7a8] sm:$0xf0] }
 0x1f7   : > { %v5114_v59 = vor.u32 %v5734_v50, %v5113_v48  ;;  %3134 = vmatmul.bf16.vlgmr.msrb.gmra.mxu2 %v6782_v40  ;;  %v4731_v46 = vld [vmem:[%s6313_s9 + $0x2b0] sm:$0xf0]  ;;  %v5234_v48 = vor.u32 %v5765_v37, %v5233_v36  ;;  %v4953_v54 = vld [vmem:[%s6313_s9 + $0x450] sm:$0xf] }
 0x1f8   : > { %3178 = vmatpush.bf16.msra.mxu2 %v5146_v42  ;;  %v5570_v42 = vld [vmem:[%s6313_s9 + $0x94] sm:$0xf]  ;;  %v4734_v55 = vor.u32 %v5634_v45, %v4731_v46  ;;  %v4577_v46 = vld [vmem:[%s6313_s9 + $0x158] sm:$0xf] }
 0x1f9   : > { %3156 = vmatpush.bf16.msra.mxu0 %v4506_v56  ;;  %v1400_v56 = vpop.f32.mrf.mxu3  ;;  %v5554_v57 = vld [vmem:[%s6313_s9 + $0x14] sm:$0xf] }
 0x1fa   : > { %3169 = vmatpush.bf16.msra.mxu1 %v4762_v60  ;;  %v4606_v60 = vor.u32 %v5602_v52, %v4603_v53  ;;  %3088 = vmatpush.bf16.msra.mxu3 %v5362_v58  ;;  %v5201_v52 = vld [vmem:[%s6313_s9 + $0x648] sm:$0xf]  ;;  %v5694_v56 = vld [vmem:[%s6313_s9 + $0x46c] sm:$0xf0]  ;;  %v5562_v58 = vld [vmem:[%s6313_s9 + $0x54] sm:$0xf] }
 0x1fb   : > { %v5757_v53 = vld [vmem:[%s6313_s9 + $0x664] sm:$0xf0]  ;;  %v4411_v7 = vld [vmem:[%s6313_s9 + $0x30] sm:$0xf0] }
 0x1fc   : > { %3179 = vmatpush.bf16.msra.mxu2 %v5114_v59  ;;  %v4443_v59 = vld [vmem:[%s6313_s9 + $0x70] sm:$0xf0]  ;;  %v5202_v0 = vor.u32 %v5757_v53, %v5201_v52  ;;  %v4414_v23 = vor.u32 %v5554_v57, %v4411_v7  ;;  %v4513_v7 = vld [vmem:[%s6313_s9 + $0xd8] sm:$0xf] }
 0x1fd   : > { %3157 = vmatpush.bf16.msra.mxu0 %v4474_v4  ;;  %v4827_v4 = vld [vmem:[%s6313_s9 + $0x370] sm:$0xf0] }
 0x1fe   : > { %3170 = vmatpush.bf16.msra.mxu1 %v4730_v5  ;;  %v4574_v5 = vor.u32 %v5594_v13, %v4571_v2  ;;  %v4830_v9 = vor.u32 %v5658_v3, %v4827_v4  ;;  %3089 = vmatpush.bf16.msra.mxu3 %v5330_v15  ;;  %v4954_v13 = vor.u32 %v5694_v56, %v4953_v54  ;;  %v5801_v3 = vld [vmem:[%s6313_s9 + $0x7cc] sm:$0xf]  ;;  %v4921_v15 = vld [vmem:[%s6313_s9 + $0x410] sm:$0xf]  ;;  %v5147_v16 = vld [vmem:[%s6313_s9 + $0x5f0] sm:$0xf0] }
 0x1ff   : > { %v4446_v2 = vor.u32 %v5562_v58, %v4443_v59  ;;  %v5395_v4 = vld [vmem:[%s6313_s9 + $0x7e8] sm:$0xf0]  ;;  %v5730_v28 = vld [vmem:[%s6313_s9 + $0x594] sm:$0xf] }
 0x200   : > { %3180 = vmatpush.bf16.msra.mxu2 %v5082_v12  ;;  %v5083_v45 = vld [vmem:[%s6313_s9 + $0x570] sm:$0xf0] }
 0x201   : > { %3158 = vmatpush.bf16.msra.mxu0 %v4442_v17  ;;  %v5650_v17 = vld [vmem:[%s6313_s9 + $0x314] sm:$0xf] }
 0x202   : > { %3171 = vmatpush.bf16.msra.mxu1 %v4698_v24  ;;  %v5017_v24 = vld [vmem:[%s6313_s9 + $0x4d0] sm:$0xf]  ;;  %v4798_v26 = vor.u32 %v5650_v17, %v4795_v18  ;;  %3090 = vmatpush.bf16.msra.mxu3 %v5298_v19  ;;  %v4641_v17 = vld [vmem:[%s6313_s9 + $0x1d8] sm:$0xf]  ;;  %v5398_v19 = vor.u32 %v5801_v3, %v5395_v4  ;;  %v5714_v56 = vld [vmem:[%s6313_s9 + $0x514] sm:$0xf] }
 0x203   : > { %v5018_v34 = vor.u32 %v5710_v43, %v5017_v24  ;;  %v5615_v18 = vld [vmem:[%s6313_s9 + $0x1f4] sm:$0xf0]  ;;  %v5793_v43 = vld [vmem:[%s6313_s9 + $0x78c] sm:$0xf]  ;;  %v5051_v59 = vld [vmem:[%s6313_s9 + $0x530] sm:$0xf0] }
 0x204   : > { %3181 = vmatpush.bf16.msra.mxu2 %v5050_v20  ;;  %v5366_v36 = vor.u32 %v5793_v43, %v5363_v27  ;;  %v5769_v3 = vld [vmem:[%s6313_s9 + $0x6cc] sm:$0xf]  ;;  %v5019_v57 = vld [vmem:[%s6313_s9 + $0x4f0] sm:$0xf0]  ;;  %v5639_v43 = vld [vmem:[%s6313_s9 + $0x2b4] sm:$0xf0] }
 0x205   : > { %3159 = vmatpush.bf16.msra.mxu0 %v4410_v39  ;;  %v2953_v25 = vpop.f32.mrf.mxu0  ;;  %3043 = vmatmul.bf16.vlgmr.msrb.gmra.mxu3 %v6904_v38  ;;  %v4766_v39 = vor.u32 %v5642_v30, %v4763_v31  ;;  %v5115_v30 = vld [vmem:[%s6313_s9 + $0x5b0] sm:$0xf0]  ;;  %v4609_v31 = vld [vmem:[%s6313_s9 + $0x198] sm:$0xf]  ;;  %v5267_v4 = vld [vmem:[%s6313_s9 + $0x6e8] sm:$0xf0] }
 0x206   : > { %3172 = vmatpush.bf16.msra.mxu1 %v4666_v41  ;;  %v2966_v29 = vpop.f32.mrf.mxu1  ;;  %v5702_v41 = vld [vmem:[%s6313_s9 + $0x4ac] sm:$0xf0]  ;;  %3091 = vmatpush.bf16.msra.mxu3 %v5266_v33  ;;  %v5607_v33 = vld [vmem:[%s6313_s9 + $0x1b4] sm:$0xf0]  ;;  %v5118_v37 = vor.u32 %v5730_v28, %v5115_v30 }
 0x207   : > { %v6942_v32 = vadd.f32 %v2966_v29, %v2953_v25  ;;  %v5150_v25 = vor.u32 %v5738_v10, %v5147_v16  ;;  %v4769_v10 = vld [vmem:[%s6313_s9 + $0x2d8] sm:$0xf]  ;;  %v5270_v16 = vor.u32 %v5769_v3, %v5267_v4  ;;  %v4899_v3 = vld [vmem:[%s6313_s9 + $0x3f8] sm:$0xf0] }
 0x208   : > { %3160 = vmatmul.bf16.vlgmr.msra.gmra.mxu0 %v6681_v14  ;;  %3182 = vmatpush.bf16.msra.mxu2 %v5018_v34  ;;  %v4865_v34 = vld [vmem:[%s6313_s9 + $0x398] sm:$0xf] }
 0x209   : > { %3204 = vmatpush.bf16.msrb.mxu0 %v4638_v44  ;;  %3173 = vmatmul.bf16.vlgmr.msra.gmra.mxu1 %v6679_v6  ;;  %v4475_v44 = vld [vmem:[%s6313_s9 + $0xb0] sm:$0xf0] }
 0x20a   : > { %3217 = vmatpush.bf16.msrb.mxu1 %v4894_v49  ;;  %v4986_v49 = vor.u32 %v5702_v41, %v4985_v47  ;;  %v4478_v50 = vor.u32 %v5570_v42, %v4475_v44  ;;  %3092 = vmatpush.bf16.msra.mxu3 %v5234_v48  ;;  %v4610_v47 = vor.u32 %v5607_v33, %v4609_v31  ;;  %v5331_v41 = vld [vmem:[%s6313_s9 + $0x768] sm:$0xf0]  ;;  %v5722_v42 = vld [vmem:[%s6313_s9 + $0x554] sm:$0xf]  ;;  %v5599_v48 = vld [vmem:[%s6313_s9 + $0x174] sm:$0xf0] }
 0x20b   : > { %v5086_v53 = vor.u32 %v5722_v42, %v5083_v45  ;;  %v4578_v54 = vor.u32 %v5599_v48, %v4577_v46  ;;  %v5753_v31 = vld [vmem:[%s6313_s9 + $0x64c] sm:$0xf]  ;;  %v5631_v42 = vld [vmem:[%s6313_s9 + $0x274] sm:$0xf0] }
 0x20c   : > { %3183 = vmatpush.bf16.msra.mxu2 %v4986_v49  ;;  %v4833_v49 = vld [vmem:[%s6313_s9 + $0x358] sm:$0xf]  ;;  %v5203_v33 = vld [vmem:[%s6313_s9 + $0x668] sm:$0xf0] }
 0x20d   : > { %3205 = vmatpush.bf16.msrb.mxu0 %v4606_v60  ;;  %v2955_v51 = vpop.f32.mrf.mxu0  ;;  %v5626_v60 = vld [vmem:[%s6313_s9 + $0x254] sm:$0xf]  ;;  %v5745_v45 = vld [vmem:[%s6313_s9 + $0x60c] sm:$0xf] }
 0x20e   : > { %3218 = vmatpush.bf16.msrb.mxu1 %v4862_v62  ;;  %v2968_v63 = vpop.f32.mrf.mxu1  ;;  %v5169_v62 = vld [vmem:[%s6313_s9 + $0x608] sm:$0xf]  ;;  %v4702_v12 = vor.u32 %v5626_v60, %v4699_v61  ;;  %3093 = vmatpush.bf16.msra.mxu3 %v5202_v0  ;;  %v5777_v51 = vld [vmem:[%s6313_s9 + $0x70c] sm:$0xf]  ;;  %v4545_v60 = vld [vmem:[%s6313_s9 + $0x118] sm:$0xf] }
 0x20f   : > { %v5170_v11 = vor.u32 %v5749_v1, %v5169_v62  ;;  %v5591_v61 = vld [vmem:[%s6313_s9 + $0x134] sm:$0xf0]  ;;  %v5171_v46 = vld [vmem:[%s6313_s9 + $0x628] sm:$0xf0] }
 0x210   : > { %3184 = vmatpush.bf16.msra.mxu2 %v4954_v13  ;;  %v4801_v63 = vld [vmem:[%s6313_s9 + $0x318] sm:$0xf]  ;;  %v5054_v13 = vor.u32 %v5714_v56, %v5051_v59 }
 0x211   : > { %3206 = vmatpush.bf16.msrb.mxu0 %v4574_v5  ;;  %v5686_v5 = vld [vmem:[%s6313_s9 + $0x42c] sm:$0xf0]  ;;  %v5655_v0 = vld [vmem:[%s6313_s9 + $0x334] sm:$0xf0] }
 0x212   : > { %3219 = vmatpush.bf16.msrb.mxu1 %v4830_v9  ;;  %v4667_v9 = vld [vmem:[%s6313_s9 + $0x230] sm:$0xf0]  ;;  %v4922_v20 = vor.u32 %v5686_v5, %v4921_v15  ;;  %3094 = vmatpush.bf16.msra.mxu3 %v5170_v11  ;;  %v4802_v5 = vor.u32 %v5655_v0, %v4801_v63  ;;  %v5647_v11 = vld [vmem:[%s6313_s9 + $0x2f4] sm:$0xf0]  ;;  %v5611_v0 = vld [vmem:[%s6313_s9 + $0x1dc] sm:$0xf] }
 0x213   : > { %v4670_v24 = vor.u32 %v5618_v8, %v4667_v9  ;;  %v5706_v15 = vld [vmem:[%s6313_s9 + $0x4d4] sm:$0xf]  ;;  %v5583_v8 = vld [vmem:[%s6313_s9 + $0xf4] sm:$0xf0] }
 0x214   : > { %3185 = vmatpush.bf16.msra.mxu2 %v4922_v20  ;;  %v5235_v20 = vld [vmem:[%s6313_s9 + $0x6a8] sm:$0xf0]  ;;  %v5559_v56 = vld [vmem:[%s6313_s9 + $0x34] sm:$0xf0] }
 0x215   : > { %3207 = vmatpush.bf16.msrb.mxu0 %v4542_v21  ;;  %v4897_v21 = vld [vmem:[%s6313_s9 + $0x3d8] sm:$0xf]  ;;  %3095 = vmatmul.bf16.vlgmr.msra.gmra.mxu3 %v6904_v38 }
 0x216   : > { %3220 = vmatpush.bf16.msrb.mxu1 %v4798_v26  ;;  %v4642_v26 = vor.u32 %v5615_v18, %v4641_v17  ;;  %v4898_v29 = vor.u32 %v5679_v22, %v4897_v21  ;;  %3139 = vmatpush.bf16.msrb.mxu3 %v5398_v19  ;;  %v5022_v17 = vor.u32 %v5706_v15, %v5019_v57  ;;  %v5761_v19 = vld [vmem:[%s6313_s9 + $0x68c] sm:$0xf]  ;;  %v5698_v21 = vld [vmem:[%s6313_s9 + $0x494] sm:$0xf]  ;;  %v5623_v59 = vld [vmem:[%s6313_s9 + $0x234] sm:$0xf0] }
 0x217   : > { %3186 = vmatmul.bf16.vlgmr.msra.gmra.mxu2 %v6782_v40  ;;  %v4514_v18 = vor.u32 %v5583_v8, %v4513_v7  ;;  %v4770_v22 = vor.u32 %v5647_v11, %v4769_v10  ;;  %v5238_v27 = vor.u32 %v5761_v19, %v5235_v20  ;;  %v5743_v63 = vld [vmem:[%s6313_s9 + $0x5f4] sm:$0xf0]  ;;  %v5369_v57 = vld [vmem:[%s6313_s9 + $0x790] sm:$0xf]  ;;  %v4867_v19 = vld [vmem:[%s6313_s9 + $0x3b8] sm:$0xf0] }
 0x218   : > { %3230 = vmatpush.bf16.msrb.mxu2 %v5150_v25  ;;  %v5575_v25 = vld [vmem:[%s6313_s9 + $0xb4] sm:$0xf0]  ;;  %v5798_v7 = vld [vmem:[%s6313_s9 + $0x7ac] sm:$0xf0] }
 0x219   : > { %3208 = vmatpush.bf16.msrb.mxu0 %v4510_v35  ;;  %v5671_v35 = vld [vmem:[%s6313_s9 + $0x3b4] sm:$0xf0]  ;;  %v5370_v20 = vor.u32 %v5798_v7, %v5369_v57  ;;  %v5571_v57 = vld [vmem:[%s6313_s9 + $0x9c] sm:$0xf] }
 0x21a   : > { %3221 = vmatpush.bf16.msrb.mxu1 %v4766_v39  ;;  %v5785_v39 = vld [vmem:[%s6313_s9 + $0x74c] sm:$0xf]  ;;  %v4866_v44 = vor.u32 %v5671_v35, %v4865_v34  ;;  %3140 = vmatpush.bf16.msrb.mxu3 %v5366_v36  ;;  %v5690_v34 = vld [vmem:[%s6313_s9 + $0x454] sm:$0xf]  ;;  %v5121_v8 = vld [vmem:[%s6313_s9 + $0x598] sm:$0xf] }
 0x21b   : > { %v5334_v52 = vor.u32 %v5785_v39, %v5331_v41  ;;  %v4955_v36 = vld [vmem:[%s6313_s9 + $0x470] sm:$0xf0]  ;;  %v4705_v41 = vld [vmem:[%s6313_s9 + $0x258] sm:$0xf]  ;;  %v4483_v7 = vld [vmem:[%s6313_s9 + $0xb8] sm:$0xf0] }
 0x21c   : > { %3231 = vmatpush.bf16.msrb.mxu2 %v5118_v37  ;;  %v4449_v37 = vld [vmem:[%s6313_s9 + $0x58] sm:$0xf]  ;;  %v4958_v48 = vor.u32 %v5690_v34, %v4955_v36  ;;  %v5782_v36 = vld [vmem:[%s6313_s9 + $0x72c] sm:$0xf0] }
 0x21d   : > { %3209 = vmatpush.bf16.msrb.mxu0 %v4478_v50  ;;  %v5663_v50 = vld [vmem:[%s6313_s9 + $0x374] sm:$0xf0] }
 0x21e   : > { %3222 = vmatpush.bf16.msrb.mxu1 %v4734_v55  ;;  %v5299_v55 = vld [vmem:[%s6313_s9 + $0x728] sm:$0xf0]  ;;  %v4834_v58 = vor.u32 %v5663_v50, %v4833_v49  ;;  %3141 = vmatpush.bf16.msrb.mxu3 %v5334_v52  ;;  %v5401_v50 = vld [vmem:[%s6313_s9 + $0x7d0] sm:$0xf]  ;;  %v5735_v11 = vld [vmem:[%s6313_s9 + $0x5b4] sm:$0xf0] }
 0x21f   : > { %v5302_v62 = vor.u32 %v5777_v51, %v5299_v55  ;;  %v5806_v52 = vld [vmem:[%s6313_s9 + $0x7ec] sm:$0xf0]  ;;  %v4923_v51 = vld [vmem:[%s6313_s9 + $0x430] sm:$0xf0]  ;;  %v4417_v55 = vld [vmem:[%s6313_s9 + $0x18] sm:$0xf] }
 0x220   : > { %3232 = vmatpush.bf16.msrb.mxu2 %v5086_v53  ;;  %v5682_v53 = vld [vmem:[%s6313_s9 + $0x414] sm:$0xf]  ;;  %v4418_v4 = vor.u32 %v5559_v56, %v4417_v55 }
 0x221   : > { %3210 = vmatpush.bf16.msrb.mxu0 %v4446_v2  ;;  %v4546_v2 = vor.u32 %v5591_v61, %v4545_v60  ;;  %v5153_v60 = vld [vmem:[%s6313_s9 + $0x5d8] sm:$0xf]  ;;  %v5174_v61 = vor.u32 %v5745_v45, %v5171_v46  ;;  %v4803_v45 = vld [vmem:[%s6313_s9 + $0x338] sm:$0xf0] }
 0x222   : > { %3223 = vmatpush.bf16.msrb.mxu1 %v4702_v12  ;;  %3142 = vmatpush.bf16.msrb.mxu3 %v5302_v62  ;;  %v4643_v62 = vld [vmem:[%s6313_s9 + $0x1f8] sm:$0xf0] }
 0x224   : > { %3233 = vmatpush.bf16.msrb.mxu2 %v5054_v13  ;;  %v4926_v13 = vor.u32 %v5682_v53, %v4923_v51  ;;  %v5273_v53 = vld [vmem:[%s6313_s9 + $0x6d0] sm:$0xf]  ;;  %v5025_v51 = vld [vmem:[%s6313_s9 + $0x4d8] sm:$0xf] }
 0x225   : > { %3211 = vmatpush.bf16.msrb.mxu0 %v4414_v23  ;;  %v3005_v1 = vpop.f32.mrf.mxu0  ;;  %v4987_v23 = vld [vmem:[%s6313_s9 + $0x4b0] sm:$0xf0] }
 0x226   : > { %3224 = vmatpush.bf16.msrb.mxu1 %v4670_v24  ;;  %v3018_v12 = vpop.f32.mrf.mxu1  ;;  %v4481_v24 = vld [vmem:[%s6313_s9 + $0x98] sm:$0xf]  ;;  %3143 = vmatpush.bf16.msrb.mxu3 %v5270_v16  ;;  %v5603_v16 = vld [vmem:[%s6313_s9 + $0x19c] sm:$0xf] }
 0x227   : > { %v7011_v9 = vadd.f32 %v3018_v12, %v3005_v1  ;;  %v4482_v30 = vor.u32 %v5575_v25, %v4481_v24  ;;  %v5402_v1 = vor.u32 %v5806_v52, %v5401_v50  ;;  %v5154_v12 = vor.u32 %v5743_v63, %v5153_v60  ;;  %v5790_v24 = vld [vmem:[%s6313_s9 + $0x76c] sm:$0xf0]  ;;  %v5089_v25 = vld [vmem:[%s6313_s9 + $0x558] sm:$0xf]  ;;  %v4515_v60 = vld [vmem:[%s6313_s9 + $0xf8] sm:$0xf0] }
 0x228   : > { %3212 = vmatmul.bf16.vlgmr.msrb.gmra.mxu0 %v6681_v14  ;;  %3234 = vmatpush.bf16.msrb.mxu2 %v5022_v17  ;;  %v4611_v17 = vld [vmem:[%s6313_s9 + $0x1b8] sm:$0xf0] }
 0x229   : > { %3256 = vmatpush.bf16.msra.mxu0 %v4642_v26  ;;  %3225 = vmatmul.bf16.vlgmr.msrb.gmra.mxu1 %v6679_v6  ;;  %v4737_v26 = vld [vmem:[%s6313_s9 + $0x298] sm:$0xf]  ;;  %v5643_v63 = vld [vmem:[%s6313_s9 + $0x2dc] sm:$0xf] }
 0x22a   : > { %3269 = vmatpush.bf16.msra.mxu1 %v4898_v29  ;;  %v4990_v29 = vor.u32 %v5698_v21, %v4987_v23  ;;  %v4738_v35 = vor.u32 %v5639_v43, %v4737_v26  ;;  %3144 = vmatpush.bf16.msrb.mxu3 %v5238_v27  ;;  %v5122_v21 = vor.u32 %v5735_v11, %v5121_v8  ;;  %v5337_v23 = vld [vmem:[%s6313_s9 + $0x750] sm:$0xf]  ;;  %v5727_v43 = vld [vmem:[%s6313_s9 + $0x574] sm:$0xf0]  ;;  %v5595_v27 = vld [vmem:[%s6313_s9 + $0x15c] sm:$0xf] }
 0x22b   : > { %v5635_v8 = vld [vmem:[%s6313_s9 + $0x29c] sm:$0xf] }
 0x22c   : > { %3235 = vmatpush.bf16.msrb.mxu2 %v4990_v29  ;;  %v5659_v29 = vld [vmem:[%s6313_s9 + $0x35c] sm:$0xf] }
 0x22d   : > { %3257 = vmatpush.bf16.msra.mxu0 %v4610_v47  ;;  %v3007_v28 = vpop.f32.mrf.mxu0  ;;  %v5567_v47 = vld [vmem:[%s6313_s9 + $0x74] sm:$0xf0] }
 0x22e   : > { %3270 = vmatpush.bf16.msra.mxu1 %v4866_v44  ;;  %v3020_v39 = vpop.f32.mrf.mxu1  ;;  %v5206_v44 = vor.u32 %v5753_v31, %v5203_v33  ;;  %v4450_v49 = vor.u32 %v5567_v47, %v4449_v37  ;;  %v4579_v28 = vld [vmem:[%s6313_s9 + $0x178] sm:$0xf0]  ;;  %v5338_v31 = vor.u32 %v5790_v24, %v5337_v23  ;;  %v5090_v33 = vor.u32 %v5727_v43, %v5089_v25  ;;  %v5057_v37 = vld [vmem:[%s6313_s9 + $0x518] sm:$0xf] }
 0x22f   : > { %v4582_v34 = vor.u32 %v5595_v27, %v4579_v28  ;;  %v5719_v39 = vld [vmem:[%s6313_s9 + $0x534] sm:$0xf0]  ;;  %v5563_v24 = vld [vmem:[%s6313_s9 + $0x5c] sm:$0xf] }
 0x230   : > { %3145 = vmatpush.bf16.msrb.mxu3 %v5206_v44  ;;  %3236 = vmatpush.bf16.msrb.mxu2 %v4958_v48  ;;  %v5651_v44 = vld [vmem:[%s6313_s9 + $0x31c] sm:$0xf]  ;;  %v5058_v50 = vor.u32 %v5719_v39, %v5057_v37  ;;  %v5695_v23 = vld [vmem:[%s6313_s9 + $0x474] sm:$0xf0] }
 0x231   : > { %3258 = vmatpush.bf16.msra.mxu0 %v4578_v54  ;;  %v4706_v54 = vor.u32 %v5631_v42, %v4705_v41  ;;  %v5587_v41 = vld [vmem:[%s6313_s9 + $0x11c] sm:$0xf]  ;;  %v4806_v56 = vor.u32 %v5651_v44, %v4803_v45  ;;  %v4929_v37 = vld [vmem:[%s6313_s9 + $0x418] sm:$0xf] }
 0x232   : > { %3271 = vmatpush.bf16.msra.mxu1 %v4834_v58  ;;  %v4673_v58 = vld [vmem:[%s6313_s9 + $0x218] sm:$0xf]  ;;  %v4547_v42 = vld [vmem:[%s6313_s9 + $0x138] sm:$0xf0] }
 0x233   : > { %v4674_v15 = vor.u32 %v5623_v59, %v4673_v58  ;;  %v4550_v52 = vor.u32 %v5587_v41, %v4547_v42  ;;  %v5711_v58 = vld [vmem:[%s6313_s9 + $0x4f4] sm:$0xf0]  ;;  %v5579_v59 = vld [vmem:[%s6313_s9 + $0xdc] sm:$0xf] }
 0x234   : > { %3146 = vmatpush.bf16.msrb.mxu3 %v5174_v61  ;;  %3237 = vmatpush.bf16.msrb.mxu2 %v4926_v13  ;;  %v5026_v13 = vor.u32 %v5711_v58, %v5025_v51  ;;  %v4451_v25 = vld [vmem:[%s6313_s9 + $0x78] sm:$0xf0]  ;;  %v5371_v58 = vld [vmem:[%s6313_s9 + $0x7b0] sm:$0xf0] }
 0x235   : > { %3259 = vmatpush.bf16.msra.mxu0 %v4546_v2  ;;  %v5675_v2 = vld [vmem:[%s6313_s9 + $0x3dc] sm:$0xf] }
 0x236   : > { %3272 = vmatpush.bf16.msra.mxu1 %v4802_v5  ;;  %v4646_v5 = vor.u32 %v5611_v0, %v4643_v62  ;;  %v4902_v10 = vor.u32 %v5675_v2, %v4899_v3  ;;  %v4771_v0 = vld [vmem:[%s6313_s9 + $0x2f8] sm:$0xf0]  ;;  %v4518_v2 = vor.u32 %v5579_v59, %v4515_v60  ;;  %v5241_v3 = vld [vmem:[%s6313_s9 + $0x690] sm:$0xf] }
 0x237   : > { %3147 = vmatmul.bf16.vlgmr.msrb.gmra.mxu3 %v6904_v38  ;;  %3238 = vmatmul.bf16.vlgmr.msrb.gmra.mxu2 %v6782_v40  ;;  %v5627_v43 = vld [vmem:[%s6313_s9 + $0x25c] sm:$0xf] }
 0x238   : > { %3191 = vmatpush.bf16.msra.mxu3 %v5402_v1  ;;  %3282 = vmatpush.bf16.msra.mxu2 %v5154_v12  ;;  %v2979_v61 = vpop.f32.mrf.mxu2  ;;  %v4774_v12 = vor.u32 %v5643_v63, %v4771_v0  ;;  %v4707_v27 = vld [vmem:[%s6313_s9 + $0x278] sm:$0xf0] }
 0x239   : > { %3260 = vmatpush.bf16.msra.mxu0 %v4514_v18  ;;  %v5667_v18 = vld [vmem:[%s6313_s9 + $0x39c] sm:$0xf]  ;;  %v7086_v62 = vadd.f32 %v2979_v61, %v6942_v32 }
 0x23a   : > { %3273 = vmatpush.bf16.msra.mxu1 %v4770_v22  ;;  %v4614_v22 = vor.u32 %v5603_v16, %v4611_v17  ;;  %v4870_v26 = vor.u32 %v5667_v18, %v4867_v19  ;;  %v4739_v32 = vld [vmem:[%s6313_s9 + $0x2b8] sm:$0xf0]  ;;  %v4486_v18 = vor.u32 %v5571_v57, %v4483_v7  ;;  %v5209_v19 = vld [vmem:[%s6313_s9 + $0x650] sm:$0xf] }
 0x23b   : > { %v5555_v39 = vld [vmem:[%s6313_s9 + $0x1c] sm:$0xf] }
 0x23c   : > { %3192 = vmatpush.bf16.msra.mxu3 %v5370_v20  ;;  %3283 = vmatpush.bf16.msra.mxu2 %v5122_v21  ;;  %v5758_v20 = vld [vmem:[%s6313_s9 + $0x66c] sm:$0xf0]  ;;  %v4961_v21 = vld [vmem:[%s6313_s9 + $0x458] sm:$0xf]  ;;  %v4419_v41 = vld [vmem:[%s6313_s9 + $0x38] sm:$0xf0] }
 0x23d   : > { %3261 = vmatpush.bf16.msra.mxu0 %v4482_v30  ;;  %v4835_v30 = vld [vmem:[%s6313_s9 + $0x378] sm:$0xf0]  ;;  %v5210_v28 = vor.u32 %v5758_v20, %v5209_v19 }
 0x23e   : > { %3274 = vmatpush.bf16.msra.mxu1 %v4738_v35  ;;  %v5305_v35 = vld [vmem:[%s6313_s9 + $0x710] sm:$0xf]  ;;  %v4838_v47 = vor.u32 %v5659_v29, %v4835_v30  ;;  %v4962_v30 = vor.u32 %v5695_v23, %v4961_v21  ;;  %v5619_v42 = vld [vmem:[%s6313_s9 + $0x21c] sm:$0xf]  ;;  %v5243_v23 = vld [vmem:[%s6313_s9 + $0x6b0] sm:$0xf0] }
 0x23f   : > { %v5306_v48 = vor.u32 %v5782_v36, %v5305_v35  ;;  %v5177_v29 = vld [vmem:[%s6313_s9 + $0x610] sm:$0xf]  ;;  %v5403_v35 = vld [vmem:[%s6313_s9 + $0x7f0] sm:$0xf0]  ;;  %v4710_v36 = vor.u32 %v5627_v43, %v4707_v27  ;;  %v4675_v44 = vld [vmem:[%s6313_s9 + $0x238] sm:$0xf0] }
 0x240   : > { %3193 = vmatpush.bf16.msra.mxu3 %v5338_v31  ;;  %3284 = vmatpush.bf16.msra.mxu2 %v5090_v33  ;;  %v4454_v31 = vor.u32 %v5563_v24, %v4451_v25  ;;  %v5750_v33 = vld [vmem:[%s6313_s9 + $0x62c] sm:$0xf0]  ;;  %v5731_v60 = vld [vmem:[%s6313_s9 + $0x59c] sm:$0xf] }
 0x241   : > { %3262 = vmatpush.bf16.msra.mxu0 %v4450_v49  ;;  %v5178_v45 = vor.u32 %v5750_v33, %v5177_v29  ;;  %v5123_v61 = vld [vmem:[%s6313_s9 + $0x5b8] sm:$0xf0] }
 0x242   : > { %3275 = vmatpush.bf16.msra.mxu1 %v4706_v54  ;;  %v5774_v54 = vld [vmem:[%s6313_s9 + $0x6ec] sm:$0xf0]  ;;  %v5126_v0 = vor.u32 %v5731_v60, %v5123_v61  ;;  %v5715_v57 = vld [vmem:[%s6313_s9 + $0x51c] sm:$0xf] }
 0x243   : > { %v5274_v1 = vor.u32 %v5774_v54, %v5273_v53  ;;  %v4678_v53 = vor.u32 %v5619_v42, %v4675_v44  ;;  %v5059_v7 = vld [vmem:[%s6313_s9 + $0x538] sm:$0xf0] }
 0x244   : > { %3194 = vmatpush.bf16.msra.mxu3 %v5306_v48  ;;  %3285 = vmatpush.bf16.msra.mxu2 %v5058_v50  ;;  %v5155_v48 = vld [vmem:[%s6313_s9 + $0x5f8] sm:$0xf0] }
 0x245   : > { %3263 = vmatpush.bf16.msra.mxu0 %v4418_v4  ;;  %v3057_v46 = vpop.f32.mrf.mxu0  ;;  %v5766_v4 = vld [vmem:[%s6313_s9 + $0x6ac] sm:$0xf0]  ;;  %v5699_v25 = vld [vmem:[%s6313_s9 + $0x49c] sm:$0xf] }
 0x246   : > { %3276 = vmatpush.bf16.msra.mxu1 %v4674_v15  ;;  %v3070_v49 = vpop.f32.mrf.mxu1  ;;  %v4993_v15 = vld [vmem:[%s6313_s9 + $0x498] sm:$0xf]  ;;  %v5242_v11 = vor.u32 %v5766_v4, %v5241_v3  ;;  %v5691_v33 = vld [vmem:[%s6313_s9 + $0x45c] sm:$0xf] }
 0x247   : > { %v7078_v55 = vadd.f32 %v3070_v49, %v3057_v46  ;;  %v5739_v46 = vld [vmem:[%s6313_s9 + $0x5dc] sm:$0xf] }
 0x248   : > { %3264 = vmatmul.bf16.vlgmr.msra.gmra.mxu0 %v6681_v14  ;;  %3195 = vmatpush.bf16.msra.mxu3 %v5274_v1  ;;  %v5158_v54 = vor.u32 %v5739_v46, %v5155_v48  ;;  %v5786_v1 = vld [vmem:[%s6313_s9 + $0x754] sm:$0xf]  ;;  %v5683_v42 = vld [vmem:[%s6313_s9 + $0x41c] sm:$0xf] }
 0x249   : > { %3308 = vmatpush.bf16.msrb.mxu0 %v4646_v5  ;;  %3277 = vmatmul.bf16.vlgmr.msra.gmra.mxu1 %v6679_v6  ;;  %v5703_v5 = vld [vmem:[%s6313_s9 + $0x4b4] sm:$0xf0]  ;;  %v4931_v44 = vld [vmem:[%s6313_s9 + $0x438] sm:$0xf0] }
 0x24a   : > { %3321 = vmatpush.bf16.msrb.mxu1 %v4902_v10  ;;  %3286 = vmatpush.bf16.msra.mxu2 %v5026_v13  ;;  %v4994_v17 = vor.u32 %v5703_v5, %v4993_v15  ;;  %v5339_v13 = vld [vmem:[%s6313_s9 + $0x770] sm:$0xf0]  ;;  %v4934_v48 = vor.u32 %v5683_v42, %v4931_v44 }
 0x24b   : > { %v5342_v3 = vor.u32 %v5786_v1, %v5339_v13  ;;  %v5307_v5 = vld [vmem:[%s6313_s9 + $0x730] sm:$0xf0]  ;;  %v5775_v1 = vld [vmem:[%s6313_s9 + $0x6f4] sm:$0xf0] }
 0x24c   : > { %3196 = vmatpush.bf16.msra.mxu3 %v5242_v11  ;;  %v5770_v11 = vld [vmem:[%s6313_s9 + $0x6d4] sm:$0xf] }
 0x24d   : > { %3309 = vmatpush.bf16.msrb.mxu0 %v4614_v22  ;;  %v3059_v10 = vpop.f32.mrf.mxu0  ;;  %v4742_v22 = vor.u32 %v5635_v8, %v4739_v32 }
 0x24e   : > { %3322 = vmatpush.bf16.msrb.mxu1 %v4870_v26  ;;  %v3072_v16 = vpop.f32.mrf.mxu1  ;;  %v2981_v26 = vpop.f32.mrf.mxu2  ;;  %3287 = vmatpush.bf16.msra.mxu2 %v4994_v17  ;;  %v5062_v10 = vor.u32 %v5715_v57, %v5059_v7  ;;  %v5707_v17 = vld [vmem:[%s6313_s9 + $0x4dc] sm:$0xf]  ;;  %v5217_v7 = vld [vmem:[%s6313_s9 + $0x658] sm:$0xf] }
 0x24f   : > { %v5275_v16 = vld [vmem:[%s6313_s9 + $0x6f0] sm:$0xf0]  ;;  %v4995_v26 = vld [vmem:[%s6313_s9 + $0x4b8] sm:$0xf0] }
 0x250   : > { %3197 = vmatpush.bf16.msra.mxu3 %v5210_v28  ;;  %v5278_v19 = vor.u32 %v5770_v11, %v5275_v16  ;;  %v4998_v29 = vor.u32 %v5699_v25, %v4995_v26  ;;  %v5803_v16 = vld [vmem:[%s6313_s9 + $0x7dc] sm:$0xf] }
 0x251   : > { %3310 = vmatpush.bf16.msrb.mxu0 %v4582_v34  ;;  %v5802_v34 = vld [vmem:[%s6313_s9 + $0x7d4] sm:$0xf] }
 0x252   : > { %3323 = vmatpush.bf16.msrb.mxu1 %v4838_v47  ;;  %v5687_v47 = vld [vmem:[%s6313_s9 + $0x434] sm:$0xf0]  ;;  %3288 = vmatpush.bf16.msra.mxu2 %v4962_v30  ;;  %v5406_v49 = vor.u32 %v5802_v34, %v5403_v35  ;;  %v5754_v30 = vld [vmem:[%s6313_s9 + $0x654] sm:$0xf]  ;;  %v4963_v34 = vld [vmem:[%s6313_s9 + $0x478] sm:$0xf0] }
 0x253   : > { %v4930_v50 = vor.u32 %v5687_v47, %v4929_v37  ;;  %v4966_v35 = vor.u32 %v5691_v33, %v4963_v34  ;;  %v5746_v37 = vld [vmem:[%s6313_s9 + $0x614] sm:$0xf]  ;;  %v5771_v34 = vld [vmem:[%s6313_s9 + $0x6dc] sm:$0xf] }
 0x254   : > { %3198 = vmatpush.bf16.msra.mxu3 %v5178_v45  ;;  %v5179_v47 = vld [vmem:[%s6313_s9 + $0x630] sm:$0xf0] }
 0x255   : > { %3311 = vmatpush.bf16.msrb.mxu0 %v4550_v52  ;;  %v4422_v52 = vor.u32 %v5555_v39, %v4419_v41  ;;  %v5409_v39 = vld [vmem:[%s6313_s9 + $0x7d8] sm:$0xf]  ;;  %v5182_v45 = vor.u32 %v5746_v37, %v5179_v47 }
 0x256   : > { %3324 = vmatpush.bf16.msrb.mxu1 %v4806_v56  ;;  %v3031_v51 = vpop.f32.mrf.mxu2  ;;  %v5794_v56 = vld [vmem:[%s6313_s9 + $0x794] sm:$0xf]  ;;  %3289 = vmatpush.bf16.msra.mxu2 %v4930_v50  ;;  %v5807_v41 = vld [vmem:[%s6313_s9 + $0x7f4] sm:$0xf0] }
 0x257   : > { %v7119_v59 = vadd.f32 %v3031_v51, %v7011_v9  ;;  %v5374_v63 = vor.u32 %v5794_v56, %v5371_v58  ;;  %3199 = vmatmul.bf16.vlgmr.msra.gmra.mxu3 %v6904_v38  ;;  %v5723_v9 = vld [vmem:[%s6313_s9 + $0x55c] sm:$0xf]  ;;  %v5410_v46 = vor.u32 %v5807_v41, %v5409_v39  ;;  %v5799_v50 = vld [vmem:[%s6313_s9 + $0x7b4] sm:$0xf0] }
 0x258   : > { %3243 = vmatpush.bf16.msrb.mxu3 %v5406_v49  ;;  %v5377_v49 = vld [vmem:[%s6313_s9 + $0x798] sm:$0xf]  ;;  %v5763_v39 = vld [vmem:[%s6313_s9 + $0x69c] sm:$0xf] }
 0x259   : > { %3312 = vmatpush.bf16.msrb.mxu0 %v4518_v2  ;;  %3290 = vmatmul.bf16.vlgmr.msra.gmra.mxu2 %v6782_v40  ;;  %v5091_v2 = vld [vmem:[%s6313_s9 + $0x578] sm:$0xf0]  ;;  %v5313_v56 = vld [vmem:[%s6313_s9 + $0x718] sm:$0xf] }
 0x25a   : > { %3325 = vmatpush.bf16.msrb.mxu1 %v4774_v12  ;;  %3334 = vmatpush.bf16.msrb.mxu2 %v5158_v54  ;;  %v5094_v4 = vor.u32 %v5723_v9, %v5091_v2  ;;  %v5778_v12 = vld [vmem:[%s6313_s9 + $0x714] sm:$0xf]  ;;  %v5791_v54 = vld [vmem:[%s6313_s9 + $0x774] sm:$0xf0]  ;;  %v5251_v41 = vld [vmem:[%s6313_s9 + $0x6b8] sm:$0xf0] }
 0x25b   : > { %v5310_v32 = vor.u32 %v5778_v12, %v5307_v5  ;;  %v5783_v58 = vld [vmem:[%s6313_s9 + $0x734] sm:$0xf0] }
 0x25c   : > { %3244 = vmatpush.bf16.msrb.mxu3 %v5374_v63  ;;  %v5314_v60 = vor.u32 %v5783_v58, %v5313_v56 }
 0x25d   : > { %3313 = vmatpush.bf16.msrb.mxu0 %v4486_v18  ;;  %v5027_v18 = vld [vmem:[%s6313_s9 + $0x4f8] sm:$0xf0] }
 0x25e   : > { %3326 = vmatpush.bf16.msrb.mxu1 %v4742_v22  ;;  %3335 = vmatpush.bf16.msrb.mxu2 %v5126_v0  ;;  %v3033_v15 = vpop.f32.mrf.mxu2  ;;  %v5030_v20 = vor.u32 %v5707_v17, %v5027_v18  ;;  %v5762_v22 = vld [vmem:[%s6313_s9 + $0x694] sm:$0xf]  ;;  %v5281_v0 = vld [vmem:[%s6313_s9 + $0x6d8] sm:$0xf]  ;;  %v5411_v17 = vld [vmem:[%s6313_s9 + $0x7f8] sm:$0xf0] }
 0x25f   : > { %v5246_v28 = vor.u32 %v5762_v22, %v5243_v23  ;;  %v5379_v22 = vld [vmem:[%s6313_s9 + $0x7b8] sm:$0xf0] }
 0x260   : > { %3245 = vmatpush.bf16.msrb.mxu3 %v5342_v3  ;;  %v5249_v3 = vld [vmem:[%s6313_s9 + $0x698] sm:$0xf] }
 0x261   : > { %3314 = vmatpush.bf16.msrb.mxu0 %v4454_v31  ;;  %v5211_v31 = vld [vmem:[%s6313_s9 + $0x670] sm:$0xf0] }
 0x262   : > { %3327 = vmatpush.bf16.msrb.mxu1 %v4710_v36  ;;  %3336 = vmatpush.bf16.msrb.mxu2 %v5094_v4  ;;  %v5767_v4 = vld [vmem:[%s6313_s9 + $0x6b4] sm:$0xf0] }
 0x263   : > { %v5250_v12 = vor.u32 %v5767_v4, %v5249_v3 }
 0x264   : > { %3246 = vmatpush.bf16.msrb.mxu3 %v5310_v32  ;;  %v5185_v32 = vld [vmem:[%s6313_s9 + $0x618] sm:$0xf] }
 0x265   : > { %3315 = vmatpush.bf16.msrb.mxu0 %v4422_v52  ;;  %v3109_v8 = vpop.f32.mrf.mxu0  ;;  %v5378_v52 = vor.u32 %v5799_v50, %v5377_v49  ;;  %v5219_v49 = vld [vmem:[%s6313_s9 + $0x678] sm:$0xf0] }
 0x266   : > { %3328 = vmatpush.bf16.msrb.mxu1 %v4678_v53  ;;  %3337 = vmatpush.bf16.msrb.mxu2 %v5062_v10  ;;  %v3083_v21 = vpop.f32.mrf.mxu2  ;;  %v5345_v53 = vld [vmem:[%s6313_s9 + $0x758] sm:$0xf] }
 0x267   : > { %v7144_v24 = vadd.f32 %v3083_v21, %v7078_v55  ;;  %v5214_v55 = vor.u32 %v5754_v30, %v5211_v31  ;;  %v5346_v51 = vor.u32 %v5791_v54, %v5345_v53  ;;  %v5751_v10 = vld [vmem:[%s6313_s9 + $0x634] sm:$0xf0]  ;;  %v5795_v21 = vld [vmem:[%s6313_s9 + $0x79c] sm:$0xf] }
 0x268   : > { %3316 = vmatmul.bf16.vlgmr.msrb.gmra.mxu0 %v6681_v14  ;;  %v3122_v14 = vpop.f32.mrf.mxu1  ;;  %3247 = vmatpush.bf16.msrb.mxu3 %v5278_v19  ;;  %v5186_v18 = vor.u32 %v5751_v10, %v5185_v32  ;;  %v5414_v19 = vor.u32 %v5803_v16, %v5411_v17  ;;  %v5382_v26 = vor.u32 %v5795_v21, %v5379_v22  ;;  %v5779_v31 = vld [vmem:[%s6313_s9 + $0x71c] sm:$0xf] }
 0x269   : > { %3329 = vmatmul.bf16.vlgmr.msrb.gmra.mxu1 %v6679_v6  ;;  %v7135_v6 = vadd.f32 %v3122_v14, %v3109_v8  ;;  %v5759_v8 = vld [vmem:[%s6313_s9 + $0x674] sm:$0xf0]  ;;  %v5747_v54 = vld [vmem:[%s6313_s9 + $0x61c] sm:$0xf] }
 0x26a   : > { %3338 = vmatpush.bf16.msrb.mxu2 %v5030_v20 }
 0x26c   : > { %3248 = vmatpush.bf16.msrb.mxu3 %v5246_v28 }
 0x26d   : > { %v3111_v43 = vpop.f32.mrf.mxu0 }
 0x26e   : > { %3339 = vmatpush.bf16.msrb.mxu2 %v4998_v29  ;;  %v3085_v36 = vpop.f32.mrf.mxu2  ;;  %v5787_v43 = vld [vmem:[%s6313_s9 + $0x75c] sm:$0xf] }
 0x270   : > { %v3124_v27 = vpop.f32.mrf.mxu1  ;;  %3249 = vmatpush.bf16.msrb.mxu3 %v5214_v55  ;;  %v5283_v55 = vld [vmem:[%s6313_s9 + $0x6f8] sm:$0xf0] }
 0x271   : > { %v5347_v27 = vld [vmem:[%s6313_s9 + $0x778] sm:$0xf0]  ;;  %v5286_v47 = vor.u32 %v5771_v34, %v5283_v55 }
 0x272   : > { %3340 = vmatpush.bf16.msrb.mxu2 %v4966_v35  ;;  %v5350_v29 = vor.u32 %v5787_v43, %v5347_v27 }
 0x274   : > { %3250 = vmatpush.bf16.msrb.mxu3 %v5182_v45  ;;  %v5254_v45 = vor.u32 %v5763_v39, %v5251_v41 }
 0x276   : > { %3341 = vmatpush.bf16.msrb.mxu2 %v4934_v48  ;;  %v5755_v48 = vld [vmem:[%s6313_s9 + $0x65c] sm:$0xf] }
 0x277   : > { %3251 = vmatmul.bf16.vlgmr.msrb.gmra.mxu3 %v6904_v38  ;;  %v5222_v53 = vor.u32 %v5755_v48, %v5219_v49 }
 0x278   : > { %3295 = vmatpush.bf16.msra.mxu3 %v5410_v46  ;;  %v2992_v9 = vpop.f32.mrf.mxu3 }
 0x279   : > { %3342 = vmatmul.bf16.vlgmr.msrb.gmra.mxu2 %v6782_v40  ;;  %v2993_v2 = vadd.f32 %v2992_v9, %v7086_v62  ;;  %v5282_v40 = vor.u32 %v5775_v1, %v5281_v0  ;;  %v5218_v62 = vor.u32 %v5759_v8, %v5217_v7 }
 0x27a   : > { %v7171_v15 = vpop.f32.mrf.mxu2 }
 0x27b   : > { %v3136_v1 = vadd.f32 %v7171_v15, %v7135_v6 }
 0x27c   : > { %3296 = vmatpush.bf16.msra.mxu3 %v5378_v52 }
 0x280   : > { %3297 = vmatpush.bf16.msra.mxu3 %v5346_v51  ;;  %v2994_v14 = vpop.f32.mrf.mxu3  ;;  %v5187_v51 = vld [vmem:[%s6313_s9 + $0x638] sm:$0xf0] }
 0x282   : > { %v3137_v11 = vpop.f32.mrf.mxu2 }
 0x284   : > { %3298 = vmatpush.bf16.msra.mxu3 %v5314_v60  ;;  %v5190_v60 = vor.u32 %v5747_v54, %v5187_v51 }
 0x285   : > { %v3161_v61 = vpop.f32.mrf.mxu0 }
 0x286   : > { %v3174_v63 = vpop.f32.mrf.mxu1 }
 0x287   : > { %v3175_v13 = vadd.f32 %v3174_v63, %v3161_v61 }
 0x288   : > { %3299 = vmatpush.bf16.msra.mxu3 %v5282_v40  ;;  %v3044_v20 = vpop.f32.mrf.mxu3 }
 0x289   : > { %v3045_v23 = vadd.f32 %v3044_v20, %v7119_v59  ;;  %v5315_v59 = vld [vmem:[%s6313_s9 + $0x738] sm:$0xf0] }
 0x28a   : > { %v5318_v33 = vor.u32 %v5779_v31, %v5315_v59 }
 0x28b   : > { %v3368_v25 = vrot.slane %v3045_v23, 6 }
 0x28c   : > { %3300 = vmatpush.bf16.msra.mxu3 %v5250_v12 }
 0x28d   : > { %v3163_v5 = vpop.f32.mrf.mxu0  ;;  %v3375_v28 = vsel %vm3374_vm0, %v2993_v2, %v3368_v25 }
 0x28e   : > { %v3176_v57 = vpop.f32.mrf.mxu1 }
 0x28f   : > { %v1402_v57 = vld [vmem:[#allocation2] sm:$0xff] }
 0x290   : > { %3301 = vmatpush.bf16.msra.mxu3 %v5218_v62  ;;  %v3046_v30 = vpop.f32.mrf.mxu3 }
 0x294   : > { %3302 = vmatpush.bf16.msra.mxu3 %v5186_v18 }
 0x297   : > { %3303 = vmatmul.bf16.vlgmr.msra.gmra.mxu3 %v6904_v38 }
 0x298   : > { %3347 = vmatpush.bf16.msrb.mxu3 %v5414_v19  ;;  %v3096_v42 = vpop.f32.mrf.mxu3 }
 0x29a   : > { %v3187_v44 = vpop.f32.mrf.mxu2 }
 0x29b   : > { %v3188_v46 = vadd.f32 %v3187_v44, %v3175_v13  ;;  %v3097_v13 = vadd.f32 %v3096_v42, %v7144_v24 }
 0x29c   : > { %3348 = vmatpush.bf16.msrb.mxu3 %v5382_v26 }
 0x29d   : > { %v3369_v4 = vrot.slane %v3097_v13, 4 }
 0x2a0   : > { %3349 = vmatpush.bf16.msrb.mxu3 %v5350_v29  ;;  %v3098_v56 = vpop.f32.mrf.mxu3 }
 0x2a2   : > { %v3189_v58 = vpop.f32.mrf.mxu2 }
 0x2a4   : > { %3350 = vmatpush.bf16.msrb.mxu3 %v5318_v33 }
 0x2a5   : > { %v3213_v35 = vpop.f32.mrf.mxu0 }
 0x2a6   : > { %v3226_v36 = vpop.f32.mrf.mxu1 }
 0x2a7   : > { %v3227_v37 = vadd.f32 %v3226_v36, %v3213_v35  ;;  %v1403_v36 = vld [vmem:[#allocation2 + $0x8] sm:$0xff] }
 0x2a8   : > { %3351 = vmatpush.bf16.msrb.mxu3 %v5286_v47 }
 0x2ac   : > { %3352 = vmatpush.bf16.msrb.mxu3 %v5254_v45 }
 0x2ad   : > { %v3215_v50 = vpop.f32.mrf.mxu0 }
 0x2ae   : > { %v3228_v52 = vpop.f32.mrf.mxu1 }
 0x2b0   : > { %3353 = vmatpush.bf16.msrb.mxu3 %v5222_v53 }
 0x2b4   : > { %3354 = vmatpush.bf16.msrb.mxu3 %v5190_v60 }
 0x2b7   : > { %3355 = vmatmul.bf16.vlgmr.msrb.gmra.mxu3 %v6904_v38 }
 0x2ba   : > { %v3148_v9 = vpop.f32.mrf.mxu3  ;;  %v3239_v40 = vpop.f32.mrf.mxu2 }
 0x2bb   : > { %v3149_v2 = vadd.f32 %v3148_v9, %v3136_v1  ;;  %v3240_v3 = vadd.f32 %v3239_v40, %v3227_v37 }
 0x2bd   : > { %v3370_v12 = vrot.slane %v3149_v2, 2 }
 0x2bf   : > { %v3377_v38 = vsel %vm3376_vm1, %v3369_v4, %v3370_v12 }
 0x2c0   : > { %v3379_v8 = vsel %vm3378_vm2, %v3375_v28, %v3377_v38 }
 0x2c1   : > { %v3385_v14 = vadd.f32 %v3379_v8, %v1402_v57 }
 0x2c2   : > { %v3150_v62 = vpop.f32.mrf.mxu3  ;;  %v3241_v6 = vpop.f32.mrf.mxu2 }
 0x2c3   : > { %3387 = vst [vmem:[#allocation2] sm:$0xff] %v3385_v14 }
 0x2c5   : > { %v3265_v61 = vpop.f32.mrf.mxu0 }
 0x2c6   : > { %v3278_v63 = vpop.f32.mrf.mxu1 }
 0x2c7   : > { %v3279_v0 = vadd.f32 %v3278_v63, %v3265_v61 }
 0x2cd   : > { %v3267_v5 = vpop.f32.mrf.mxu0 }
 0x2ce   : > { %v3280_v7 = vpop.f32.mrf.mxu1 }
 0x2da   : > { %v3200_v10 = vpop.f32.mrf.mxu3 }
 0x2db   : > { %v3201_v11 = vadd.f32 %v3200_v10, %v3188_v46 }
 0x2dc   : > { %v3291_v16 = vpop.f32.mrf.mxu2 }
 0x2dd   : > { %v3292_v17 = vadd.f32 %v3291_v16, %v3279_v0 }
 0x2e2   : > { %v3202_v20 = vpop.f32.mrf.mxu3 }
 0x2e4   : > { %v3293_v21 = vpop.f32.mrf.mxu2 }
 0x2e5   : > { %v3317_v24 = vpop.f32.mrf.mxu0 }
 0x2e6   : > { %v3330_v15 = vpop.f32.mrf.mxu1 }
 0x2e7   : > { %v3331_v32 = vadd.f32 %v3330_v15, %v3317_v24 }
 0x2ed   : > { %v3319_v18 = vpop.f32.mrf.mxu0 }
 0x2ee   : > { %v3332_v19 = vpop.f32.mrf.mxu1 }
 0x2fa   : > { %v3252_v22 = vpop.f32.mrf.mxu3 }
 0x2fb   : > { %v3253_v23 = vadd.f32 %v3252_v22, %v3240_v3 }
 0x2fc   : > { %v3343_v25 = vpop.f32.mrf.mxu2 }
 0x2fd   : > { %v3371_v26 = vrot.slane %v3253_v23, 6  ;;  %v3344_v31 = vadd.f32 %v3343_v25, %v3331_v32 }
 0x2ff   : > { %v3380_v43 = vsel %vm3374_vm0, %v3201_v11, %v3371_v26 }
 0x302   : > { %v3254_v27 = vpop.f32.mrf.mxu3 }
 0x304   : > { %v3345_v28 = vpop.f32.mrf.mxu2 }
 0x31a   : > { %v3304_v29 = vpop.f32.mrf.mxu3 }
 0x31b   : > { %v3305_v59 = vadd.f32 %v3304_v29, %v3292_v17 }
 0x31d   : > { %v3372_v55 = vrot.slane %v3305_v59, 4 }
 0x322   : > { %v3306_v30 = vpop.f32.mrf.mxu3 }
 0x33a   : > { %v3356_v33 = vpop.f32.mrf.mxu3 }
 0x33b   : > { %v3357_v34 = vadd.f32 %v3356_v33, %v3344_v31 }
 0x33d   : > { %v3373_v35 = vrot.slane %v3357_v34, 2 }
 0x33f   : > { %v3381_v37 = vsel %vm3376_vm1, %v3372_v55, %v3373_v35  ;;  %3392 = sbr.rel (%p5415_p1) target bundleno = 1039 (0x40f), region = 76 }
 0x340   : > { %v3382_v47 = vsel %vm3378_vm2, %v3380_v43, %v3381_v37 }
 0x341   : > { %v3386_v39 = vadd.f32 %v3382_v47, %v1403_v36 }
 0x342   : > { %v3358_v41 = vpop.f32.mrf.mxu3 }
 0x343   : > { %3388 = vst [vmem:[#allocation2 + $0x8] sm:$0xff] %v3386_v39 }
 0x344   : > { %v3468_v42 = vld [vmem:[%s7618_s5 + $0x178] sm:$0xff]  ;;  %v3467_v45 = vld [vmem:[%s7618_s5 + $0x170] sm:$0xff]  ;;  %v3466_v50 = vld [vmem:[%s7618_s5 + $0x168] sm:$0xff]  ;;  %vm3734_vm3 = vcmask 58368  }
 0x345   : > { %v3436_v44 = vld [vmem:[%s7618_s5 + $0x78] sm:$0xff]  ;;  %3614 = vmatpush.msra.mxu2 %v3468_v42  ;;  %v3435_v48 = vld [vmem:[%s7618_s5 + $0x70] sm:$0xff]  ;;  %v3434_v53 = vld [vmem:[%s7618_s5 + $0x68] sm:$0xff] }
 0x346   : > { %3574 = vmatpush.msra.mxu0 %v3436_v44  ;;  %v3484_v46 = vld [vmem:[%s7618_s5 + $0x1f8] sm:$0xff]  ;;  %v3483_v52 = vld [vmem:[%s7618_s5 + $0x1f0] sm:$0xff]  ;;  %v3482_v51 = vld [vmem:[%s7618_s5 + $0x1e8] sm:$0xff] }
 0x347   : > { %v3452_v49 = vld [vmem:[%s7618_s5 + $0xf8] sm:$0xff]  ;;  %3634 = vmatpush.msra.mxu3 %v3484_v46  ;;  %3615 = vmatpush.msra.mxu2 %v3467_v45  ;;  %v3451_v54 = vld [vmem:[%s7618_s5 + $0xf0] sm:$0xff]  ;;  %v3465_v56 = vld [vmem:[%s7618_s5 + $0x160] sm:$0xff] }
 0x348   : > { %3594 = vmatpush.msra.mxu1 %v3452_v49  ;;  %3575 = vmatpush.msra.mxu0 %v3435_v48  ;;  %v3433_v58 = vld [vmem:[%s7618_s5 + $0x60] sm:$0xff]  ;;  %v3450_v60 = vld [vmem:[%s7618_s5 + $0xe8] sm:$0xff]  ;;  %v3464_v0 = vld [vmem:[%s7618_s5 + $0x158] sm:$0xff] }
 0x349   : > { %3635 = vmatpush.msra.mxu3 %v3483_v52  ;;  %3616 = vmatpush.msra.mxu2 %v3466_v50  ;;  %v3481_v61 = vld [vmem:[%s7618_s5 + $0x1e0] sm:$0xff]  ;;  %v3432_v1 = vld [vmem:[%s7618_s5 + $0x58] sm:$0xff]  ;;  %v3463_v2 = vld [vmem:[%s7618_s5 + $0x150] sm:$0xff] }
 0x34a   : > { %3595 = vmatpush.msra.mxu1 %v3451_v54  ;;  %3576 = vmatpush.msra.mxu0 %v3434_v53  ;;  %v3449_v63 = vld [vmem:[%s7618_s5 + $0xe0] sm:$0xff]  ;;  %v3480_v13 = vld [vmem:[%s7618_s5 + $0x1d8] sm:$0xff]  ;;  %v3431_v40 = vld [vmem:[%s7618_s5 + $0x50] sm:$0xff] }
 0x34b   : > { %3636 = vmatpush.msra.mxu3 %v3482_v51  ;;  %3617 = vmatpush.msra.mxu2 %v3465_v56  ;;  %v3448_v9 = vld [vmem:[%s7618_s5 + $0xd8] sm:$0xff]  ;;  %v3479_v3 = vld [vmem:[%s7618_s5 + $0x1d0] sm:$0xff]  ;;  %v3462_v12 = vld [vmem:[%s7618_s5 + $0x148] sm:$0xff] }
 0x34c   : > { %3596 = vmatpush.msra.mxu1 %v3450_v60  ;;  %3577 = vmatpush.msra.mxu0 %v3433_v58  ;;  %v3447_v4 = vld [vmem:[%s7618_s5 + $0xd0] sm:$0xff]  ;;  %v3430_v5 = vld [vmem:[%s7618_s5 + $0x48] sm:$0xff]  ;;  %v3461_v38 = vld [vmem:[%s7618_s5 + $0x140] sm:$0xff] }
 0x34d   : > { %3637 = vmatpush.msra.mxu3 %v3481_v61  ;;  %3618 = vmatpush.msra.mxu2 %v3464_v0  ;;  %v3478_v57 = vld [vmem:[%s7618_s5 + $0x1c8] sm:$0xff]  ;;  %v3429_v8 = vld [vmem:[%s7618_s5 + $0x40] sm:$0xff]  ;;  %v3460_v6 = vld [vmem:[%s7618_s5 + $0x138] sm:$0xff] }
 0x34e   : > { %3597 = vmatpush.msra.mxu1 %v3449_v63  ;;  %3578 = vmatpush.msra.mxu0 %v3432_v1  ;;  %v3446_v7 = vld [vmem:[%s7618_s5 + $0xc8] sm:$0xff]  ;;  %v3477_v14 = vld [vmem:[%s7618_s5 + $0x1c0] sm:$0xff]  ;;  %v3428_v24 = vld [vmem:[%s7618_s5 + $0x38] sm:$0xff] }
 0x34f   : > { %3638 = vmatpush.msra.mxu3 %v3480_v13  ;;  %3619 = vmatpush.msra.mxu2 %v3463_v2  ;;  %v3445_v62 = vld [vmem:[%s7618_s5 + $0xc0] sm:$0xff]  ;;  %v3476_v15 = vld [vmem:[%s7618_s5 + $0x1b8] sm:$0xff]  ;;  %v3459_v10 = vld [vmem:[%s7618_s5 + $0x130] sm:$0xff] }
 0x350   : > { %3598 = vmatpush.msra.mxu1 %v3448_v9  ;;  %3579 = vmatpush.msra.mxu0 %v3431_v40  ;;  %v3444_v32 = vld [vmem:[%s7618_s5 + $0xb8] sm:$0xff]  ;;  %v3427_v11 = vld [vmem:[%s7618_s5 + $0x30] sm:$0xff]  ;;  %v3458_v18 = vld [vmem:[%s7618_s5 + $0x128] sm:$0xff] }
 0x351   : > { %3639 = vmatpush.msra.mxu3 %v3479_v3  ;;  %3620 = vmatpush.msra.mxu2 %v3462_v12  ;;  %v3475_v16 = vld [vmem:[%s7618_s5 + $0x1b0] sm:$0xff]  ;;  %v3426_v19 = vld [vmem:[%s7618_s5 + $0x28] sm:$0xff]  ;;  %v3457_v22 = vld [vmem:[%s7618_s5 + $0x120] sm:$0xff] }
 0x352   : > { %3599 = vmatpush.msra.mxu1 %v3447_v4  ;;  %3580 = vmatpush.msra.mxu0 %v3430_v5  ;;  %v3443_v17 = vld [vmem:[%s7618_s5 + $0xb0] sm:$0xff]  ;;  %v3474_v20 = vld [vmem:[%s7618_s5 + $0x1a8] sm:$0xff]  ;;  %v3425_v23 = vld [vmem:[%s7618_s5 + $0x20] sm:$0xff] }
 0x353   : > { %3640 = vmatpush.msra.mxu3 %v3478_v57  ;;  %3621 = vmatpush.msra.mxu2 %v3461_v38  ;;  %v3442_v21 = vld [vmem:[%s7618_s5 + $0xa8] sm:$0xff]  ;;  %v3473_v25 = vld [vmem:[%s7618_s5 + $0x1a0] sm:$0xff]  ;;  %v3456_v43 = vld [vmem:[%s7618_s5 + $0x118] sm:$0xff] }
 0x354   : > { %3600 = vmatpush.msra.mxu1 %v3446_v7  ;;  %3581 = vmatpush.msra.mxu0 %v3429_v8  ;;  %v3441_v26 = vld [vmem:[%s7618_s5 + $0xa0] sm:$0xff]  ;;  %v3424_v27 = vld [vmem:[%s7618_s5 + $0x18] sm:$0xff]  ;;  %v3455_v30 = vld [vmem:[%s7618_s5 + $0x110] sm:$0xff] }
 0x355   : > { %3641 = vmatpush.msra.mxu3 %v3477_v14  ;;  %3622 = vmatpush.msra.mxu2 %v3460_v6  ;;  %v3472_v28 = vld [vmem:[%s7618_s5 + $0x198] sm:$0xff]  ;;  %v3423_v31 = vld [vmem:[%s7618_s5 + $0x10] sm:$0xff]  ;;  %v3454_v34 = vld [vmem:[%s7618_s5 + $0x108] sm:$0xff] }
 0x356   : > { %3601 = vmatpush.msra.mxu1 %v3445_v62  ;;  %3582 = vmatpush.msra.mxu0 %v3428_v24  ;;  %v3440_v29 = vld [vmem:[%s7618_s5 + $0x98] sm:$0xff]  ;;  %v3471_v59 = vld [vmem:[%s7618_s5 + $0x190] sm:$0xff]  ;;  %v3422_v55 = vld [vmem:[%s7618_s5 + $0x8] sm:$0xff] }
 0x357   : > { %3642 = vmatpush.msra.mxu3 %v3476_v15  ;;  %3623 = vmatpush.msra.mxu2 %v3459_v10  ;;  %v3439_v33 = vld [vmem:[%s7618_s5 + $0x90] sm:$0xff]  ;;  %v3470_v35 = vld [vmem:[%s7618_s5 + $0x188] sm:$0xff]  ;;  %v3453_v37 = vld [vmem:[%s7618_s5 + $0x100] sm:$0xff] }
 0x358   : > { %3602 = vmatpush.msra.mxu1 %v3444_v32  ;;  %3583 = vmatpush.msra.mxu0 %v3427_v11  ;;  %v3438_v36 = vld [vmem:[%s7618_s5 + $0x88] sm:$0xff]  ;;  %v3421_v47 = vld [vmem:[%s7618_s5] sm:$0xff]  ;;  %v3532_v39 = vld [vmem:[%s7618_s5 + $0x378] sm:$0xff] }
 0x359   : > { %3643 = vmatpush.msra.mxu3 %v3475_v16  ;;  %3624 = vmatpush.msra.mxu2 %v3458_v18  ;;  %v3469_v41 = vld [vmem:[%s7618_s5 + $0x180] sm:$0xff]  ;;  %v3500_v42 = vld [vmem:[%s7618_s5 + $0x278] sm:$0xff]  ;;  %v3531_v45 = vld [vmem:[%s7618_s5 + $0x370] sm:$0xff] }
 0x35a   : > { %3603 = vmatpush.msra.mxu1 %v3443_v17  ;;  %3584 = vmatpush.msra.mxu0 %v3426_v19  ;;  %v3548_v44 = vld [vmem:[%s7618_s5 + $0x3f8] sm:$0xff]  ;;  %v3437_v46 = vld [vmem:[%s7618_s5 + $0x80] sm:$0xff]  ;;  %v3499_v48 = vld [vmem:[%s7618_s5 + $0x270] sm:$0xff] }
 0x35b   : > { %3644 = vmatpush.msra.mxu3 %v3474_v20  ;;  %3625 = vmatpush.msra.mxu2 %v3457_v22  ;;  %v3516_v49 = vld [vmem:[%s7618_s5 + $0x2f8] sm:$0xff]  ;;  %v3530_v50 = vld [vmem:[%s7618_s5 + $0x368] sm:$0xff]  ;;  %v3547_v52 = vld [vmem:[%s7618_s5 + $0x3f0] sm:$0xff] }
 0x35c   : > { %3604 = vmatpush.msra.mxu1 %v3442_v21  ;;  %3585 = vmatpush.msra.mxu0 %v3425_v23  ;;  %v3498_v53 = vld [vmem:[%s7618_s5 + $0x268] sm:$0xff]  ;;  %v3515_v54 = vld [vmem:[%s7618_s5 + $0x2f0] sm:$0xff]  ;;  %v3529_v51 = vld [vmem:[%s7618_s5 + $0x360] sm:$0xff] }
 0x35d   : > { %3645 = vmatpush.msra.mxu3 %v3473_v25  ;;  %3626 = vmatpush.msra.mxu2 %v3456_v43  ;;  %v3546_v56 = vld [vmem:[%s7618_s5 + $0x3e8] sm:$0xff]  ;;  %v3497_v58 = vld [vmem:[%s7618_s5 + $0x260] sm:$0xff]  ;;  %v3528_v63 = vld [vmem:[%s7618_s5 + $0x358] sm:$0xff] }
 0x35e   : > { %3605 = vmatpush.msra.mxu1 %v3441_v26  ;;  %3586 = vmatpush.msra.mxu0 %v3424_v27  ;;  %v3514_v60 = vld [vmem:[%s7618_s5 + $0x2e8] sm:$0xff]  ;;  %v3395_v61 = vld [vmem:[#allocation9] sm:$0xff]  ;;  %v3496_v40 = vld [vmem:[%s7618_s5 + $0x258] sm:$0xff] }
 0x35f   : > { %3646 = vmatpush.msra.mxu3 %v3472_v28  ;;  %3627 = vmatpush.msra.mxu2 %v3455_v30  ;;  %v3545_v0 = vld [vmem:[%s7618_s5 + $0x3e0] sm:$0xff]  ;;  %v3397_v1 = vperm.slane %v3395_v61, 0  ;;  %v3398_v13 = vperm.slane %v3395_v61, 1  ;;  %v3399_v9 = vperm.slane %v3395_v61, 2  ;;  %v3400_v2 = vperm.slane %v3395_v61, 3  ;;  %v3527_v57 = vld [vmem:[%s7618_s5 + $0x350] sm:$0xff] }
 0x360   : > { %3606 = vmatpush.msra.mxu1 %v3440_v29  ;;  %3587 = vmatpush.msra.mxu0 %v3423_v31  ;;  %v3513_v3 = vld [vmem:[%s7618_s5 + $0x2e0] sm:$0xff]  ;;  %v3401_v4 = vperm.slane %v3395_v61, 4  ;;  %v3402_v12 = vperm.slane %v3395_v61, 5  ;;  %v3403_v5 = vperm.slane %v3395_v61, 6  ;;  %v3544_v7 = vld [vmem:[%s7618_s5 + $0x3d8] sm:$0xff]  ;;  %v3495_v62 = vld [vmem:[%s7618_s5 + $0x250] sm:$0xff] }
 0x361   : > { %3647 = vmatpush.msra.mxu3 %v3471_v59  ;;  %3628 = vmatpush.msra.mxu2 %v3454_v34  ;;  %v3405_v38 = vrot.slane %v3398_v13, 6  ;;  %v3406_v8 = vrot.slane %v3399_v9, 4  ;;  %v3407_v14 = vrot.slane %v3400_v2, 2  ;;  %v3512_v6 = vld [vmem:[%s7618_s5 + $0x2d8] sm:$0xff]  ;;  %v3393_v24 = vld [vmem:[#allocation2] sm:$0xff]  ;;  %v3404_v15 = vperm.slane %v3395_v61, 7 }
 0x362   : > { %3607 = vmatpush.msra.mxu1 %v3439_v33  ;;  %3588 = vmatpush.msra.mxu0 %v3422_v55  ;;  %v3408_v32 = vrot.slane %v3402_v12, 6  ;;  %v3409_v10 = vrot.slane %v3403_v5, 4  ;;  %v3526_v11 = vld [vmem:[%s7618_s5 + $0x348] sm:$0xff]  ;;  %v3543_v16 = vld [vmem:[%s7618_s5 + $0x3d0] sm:$0xff]  ;;  %v3525_v25 = vld [vmem:[%s7618_s5 + $0x340] sm:$0xff] }
 0x363   : > { %3648 = vmatpush.msra.mxu3 %v3470_v35  ;;  %3629 = vmatpush.msra.mxu2 %v3453_v37  ;;  %v3411_v17 = vsel %vm3374_vm0, %v3397_v1, %v3405_v38  ;;  %v3412_v18 = vsel %vm3376_vm1, %v3406_v8, %v3407_v14  ;;  %v3494_v19 = vld [vmem:[%s7618_s5 + $0x248] sm:$0xff]  ;;  %v3511_v20 = vld [vmem:[%s7618_s5 + $0x2d0] sm:$0xff]  ;;  %v3410_v22 = vrot.slane %v3404_v15, 2  ;;  %v3493_v28 = vld [vmem:[%s7618_s5 + $0x240] sm:$0xff] }
 0x364   : > { %3608 = vmatpush.msra.mxu1 %v3438_v36  ;;  %3589 = vmatpush.msra.mxu0 %v3421_v47  ;;  %v3413_v21 = vsel %vm3378_vm2, %v3411_v17, %v3412_v18  ;;  %v3414_v23 = vsel %vm3374_vm0, %v3401_v4, %v3408_v32  ;;  %v3542_v26 = vld [vmem:[%s7618_s5 + $0x3c8] sm:$0xff]  ;;  %v3394_v27 = vld [vmem:[#allocation2 + $0x8] sm:$0xff]  ;;  %v3524_v31 = vld [vmem:[%s7618_s5 + $0x338] sm:$0xff] }
 0x365   : > { %3694 = vmatpush.msrb.mxu2 %v3532_v39  ;;  %3649 = vmatpush.msra.mxu3 %v3469_v41  ;;  %v3419_v43 = vadd.f32 %v3413_v21, %v3393_v24  ;;  %v3510_v29 = vld [vmem:[%s7618_s5 + $0x2c8] sm:$0xff]  ;;  %v3415_v30 = vsel %vm3376_vm1, %v3409_v10, %v3410_v22  ;;  %v3541_v59 = vld [vmem:[%s7618_s5 + $0x3c0] sm:$0xff]  ;;  %v3492_v34 = vld [vmem:[%s7618_s5 + $0x238] sm:$0xff] }
 0x366   : > { %3654 = vmatpush.msrb.mxu0 %v3500_v42  ;;  %3609 = vmatpush.msra.mxu1 %v3437_v46  ;;  %v3416_v33 = vsel %vm3378_vm2, %v3414_v23, %v3415_v30  ;;  %v3509_v55 = vld [vmem:[%s7618_s5 + $0x2c0] sm:$0xff]  ;;  %v3523_v36 = vld [vmem:[%s7618_s5 + $0x330] sm:$0xff]  ;;  %v3540_v37 = vld [vmem:[%s7618_s5 + $0x3b8] sm:$0xff] }
 0x367   : > { %3714 = vmatpush.msrb.mxu3 %v3548_v44  ;;  %3695 = vmatpush.msrb.mxu2 %v3531_v45  ;;  %3555 = vst [vmem:[#allocation1] ss:$4 sm:$0xff] %v3419_v43  ;;  %v3420_v35 = vadd.f32 %v3416_v33, %v3394_v27  ;;  %v3491_v47 = vld [vmem:[%s7618_s5 + $0x230] sm:$0xff]  ;;  %v3508_v39 = vld [vmem:[%s7618_s5 + $0x2b8] sm:$0xff]  ;;  %v3522_v41 = vld [vmem:[%s7618_s5 + $0x328] sm:$0xff] }
 0x368   : > { %3655 = vmatpush.msrb.mxu0 %v3499_v48  ;;  %3674 = vmatpush.msrb.mxu1 %v3516_v49  ;;  %v3539_v42 = vld [vmem:[%s7618_s5 + $0x3b0] sm:$0xff]  ;;  %v3490_v44 = vld [vmem:[%s7618_s5 + $0x228] sm:$0xff]  ;;  %v3521_v46 = vld [vmem:[%s7618_s5 + $0x320] sm:$0xff] }
 0x369   : > { %3696 = vmatpush.msrb.mxu2 %v3530_v50  ;;  %3715 = vmatpush.msrb.mxu3 %v3547_v52  ;;  %3557 = vst [vmem:[#allocation1 + $0x20] ss:$4 sm:$0xff] %v3420_v35  ;;  %v3507_v45 = vld [vmem:[%s7618_s5 + $0x2b0] sm:$0xff]  ;;  %v3538_v48 = vld [vmem:[%s7618_s5 + $0x3a8] sm:$0xff]  ;;  %v3489_v50 = vld [vmem:[%s7618_s5 + $0x220] sm:$0xff] }
 0x36a   : > { %3656 = vmatpush.msrb.mxu0 %v3498_v53  ;;  %3675 = vmatpush.msrb.mxu1 %v3515_v54  ;;  %v3506_v52 = vld [vmem:[%s7618_s5 + $0x2a8] sm:$0xff]  ;;  %v3520_v53 = vld [vmem:[%s7618_s5 + $0x318] sm:$0xff]  ;;  %v3537_v54 = vld [vmem:[%s7618_s5 + $0x3a0] sm:$0xff] }
 0x36b   : > { %3697 = vmatpush.msrb.mxu2 %v3529_v51  ;;  %3716 = vmatpush.msrb.mxu3 %v3546_v56  ;;  %v3519_v61 = vld [vmem:[%s7618_s5 + $0x310] sm:$0xff]  ;;  %v3504_v13 = vld [vmem:[%s7618_s5 + $0x298] sm:$0xff]  ;;  %v3518_v9 = vld [vmem:[%s7618_s5 + $0x308] sm:$0xff] }
 0x36c   : > { %3657 = vmatpush.msrb.mxu0 %v3497_v58  ;;  %3676 = vmatpush.msrb.mxu1 %v3514_v60  ;;  %v3488_v58 = vld [vmem:[%s7618_s5 + $0x218] sm:$0xff]  ;;  %v3505_v60 = vld [vmem:[%s7618_s5 + $0x2a0] sm:$0xff]  ;;  %v3487_v1 = vld [vmem:[%s7618_s5 + $0x210] sm:$0xff] }
 0x36d   : > { %3698 = vmatpush.msrb.mxu2 %v3528_v63  ;;  %3717 = vmatpush.msrb.mxu3 %v3545_v0  ;;  %v3536_v63 = vld [vmem:[%s7618_s5 + $0x398] sm:$0xff]  ;;  %v3535_v2 = vld [vmem:[%s7618_s5 + $0x390] sm:$0xff]  ;;  %v3517_v4 = vld [vmem:[%s7618_s5 + $0x300] sm:$0xff] }
 0x36e   : > { %3658 = vmatpush.msrb.mxu0 %v3496_v40  ;;  %3677 = vmatpush.msrb.mxu1 %v3513_v3  ;;  %v3560_v49 = vld.sshfl [vmem:[#allocation1 + $0x10] sm:$0xff pattern:$0x73625140]  ;;  %v3558_v51 = vld.sshfl [vmem:[#allocation1] sm:$0xff pattern:$0x73625140] }
 0x36f   : > { %3699 = vmatpush.msrb.mxu2 %v3527_v57  ;;  %3718 = vmatpush.msrb.mxu3 %v3544_v7  ;;  %v3561_v56 = vld.sshfl [vmem:[#allocation1 + $0x18] sm:$0xff pattern:$0x73625140]  ;;  %v3559_v0 = vld.sshfl [vmem:[#allocation1 + $0x8] sm:$0xff pattern:$0x73625140] }
 0x370   : > { %3659 = vmatpush.msrb.mxu0 %v3495_v62  ;;  %3678 = vmatpush.msrb.mxu1 %v3512_v6  ;;  %v3486_v40 = vld [vmem:[%s7618_s5 + $0x208] sm:$0xff]  ;;  %v3503_v3 = vld [vmem:[%s7618_s5 + $0x290] sm:$0xff]  ;;  %v3485_v57 = vld [vmem:[%s7618_s5 + $0x200] sm:$0xff] }
 0x371   : > { %3700 = vmatpush.msrb.mxu2 %v3526_v11  ;;  %3719 = vmatpush.msrb.mxu3 %v3543_v16  ;;  %v3534_v12 = vld [vmem:[%s7618_s5 + $0x388] sm:$0xff]  ;;  %v3564_v5 = vld.sshfl [vmem:[#allocation1 + $0x30] sm:$0xff pattern:$0x73625140]  ;;  %v3533_v38 = vld [vmem:[%s7618_s5 + $0x380] sm:$0xff] }
 0x372   : > { %3660 = vmatpush.msrb.mxu0 %v3494_v19  ;;  %3679 = vmatpush.msrb.mxu1 %v3511_v20  ;;  %v3502_v7 = vld [vmem:[%s7618_s5 + $0x288] sm:$0xff]  ;;  %v3562_v8 = vld.sshfl [vmem:[#allocation1 + $0x20] sm:$0xff pattern:$0x73625140] }
 0x373   : > { %3701 = vmatpush.msrb.mxu2 %v3525_v25  ;;  %3720 = vmatpush.msrb.mxu3 %v3542_v26  ;;  %v3565_v14 = vld.sshfl [vmem:[#allocation1 + $0x38] sm:$0xff pattern:$0x73625140]  ;;  %v3501_v62 = vld [vmem:[%s7618_s5 + $0x280] sm:$0xff]  ;;  %v5890_v24 = vld [vmem:[#allocation11] ss:$0 sm:$0xff] }
 0x374   : > { %3661 = vmatpush.msrb.mxu0 %v3493_v28  ;;  %3680 = vmatpush.msrb.mxu1 %v3510_v29  ;;  %v3563_v6 = vld.sshfl [vmem:[#allocation1 + $0x28] sm:$0xff pattern:$0x73625140] }
 0x375   : > { %3702 = vmatpush.msrb.mxu2 %v3524_v31  ;;  %3721 = vmatpush.msrb.mxu3 %v3541_v59 }
 0x376   : > { %3662 = vmatpush.msrb.mxu0 %v3492_v34  ;;  %3681 = vmatpush.msrb.mxu1 %v3509_v55 }
 0x377   : > { %3703 = vmatpush.msrb.mxu2 %v3523_v36  ;;  %3722 = vmatpush.msrb.mxu3 %v3540_v37 }
 0x378   : > { %3663 = vmatpush.msrb.mxu0 %v3491_v47  ;;  %3682 = vmatpush.msrb.mxu1 %v3508_v39 }
 0x379   : > { %3704 = vmatpush.msrb.mxu2 %v3522_v41  ;;  %3723 = vmatpush.msrb.mxu3 %v3539_v42 }
 0x37a   : > { %3664 = vmatpush.msrb.mxu0 %v3490_v44  ;;  %3683 = vmatpush.msrb.mxu1 %v3507_v45 }
 0x37b   : > { %3705 = vmatpush.msrb.mxu2 %v3521_v46  ;;  %3724 = vmatpush.msrb.mxu3 %v3538_v48 }
 0x37c   : > { %3630 = vmatmul.f32.vlgmr.msra.gmra.mxu2 %v3560_v49  ;;  %3665 = vmatpush.msrb.mxu0 %v3489_v50 }
 0x37d   : > { %3684 = vmatpush.msrb.mxu1 %v3506_v52  ;;  %3706 = vmatpush.msrb.mxu2 %v3520_v53 }
 0x37e   : > { %3725 = vmatpush.msrb.mxu3 %v3537_v54  ;;  %3590 = vmatmul.f32.vlgmr.msra.gmra.mxu0 %v3558_v51 }
 0x37f   : > { %3650 = vmatmul.f32.vlgmr.msra.gmra.mxu3 %v3561_v56  ;;  %3666 = vmatpush.msrb.mxu0 %v3488_v58 }
 0x380   : > { %3685 = vmatpush.msrb.mxu1 %v3505_v60  ;;  %3707 = vmatpush.msrb.mxu2 %v3519_v61 }
 0x381   : > { %3726 = vmatpush.msrb.mxu3 %v3536_v63  ;;  %3610 = vmatmul.f32.vlgmr.msra.gmra.mxu1 %v3559_v0 }
 0x382   : > { %3667 = vmatpush.msrb.mxu0 %v3487_v1  ;;  %3686 = vmatpush.msrb.mxu1 %v3504_v13 }
 0x383   : > { %3708 = vmatpush.msrb.mxu2 %v3518_v9  ;;  %3727 = vmatpush.msrb.mxu3 %v3535_v2 }
 0x384   : > { %3668 = vmatpush.msrb.mxu0 %v3486_v40  ;;  %3687 = vmatpush.msrb.mxu1 %v3503_v3 }
 0x385   : > { %3709 = vmatpush.msrb.mxu2 %v3517_v4  ;;  %3728 = vmatpush.msrb.mxu3 %v3534_v12 }
 0x386   : > { %3710 = vmatmul.f32.vlgmr.msrb.gmra.mxu2 %v3564_v5  ;;  %3669 = vmatpush.msrb.mxu0 %v3485_v57 }
 0x387   : > { %3688 = vmatpush.msrb.mxu1 %v3502_v7  ;;  %3729 = vmatpush.msrb.mxu3 %v3533_v38 }
 0x388   : > { %3670 = vmatmul.f32.vlgmr.msrb.gmra.mxu0 %v3562_v8  ;;  %3730 = vmatmul.f32.vlgmr.msrb.gmra.mxu3 %v3565_v14 }
 0x389   : > { %3689 = vmatpush.msrb.mxu1 %v3501_v62 }
 0x38a   : > { %3690 = vmatmul.f32.vlgmr.msrb.gmra.mxu1 %v3563_v6 }
 0x3fb   : > { %v3591_v15 = vpop.f32.mrf.mxu0 }
 0x3fc   : > { %v3592_v32 = vadd.f32 %v5890_v24, %v3591_v15 }
 0x3fe   : > { %v3611_v10 = vpop.f32.mrf.mxu1 }
 0x3ff   : > { %v3612_v11 = vadd.f32 %v3611_v10, %v3592_v32  ;;  %v3631_v16 = vpop.f32.mrf.mxu2 }
 0x401   : > { %v3632_v17 = vadd.f32 %v3631_v16, %v3612_v11 }
 0x402   : > { %v3651_v18 = vpop.f32.mrf.mxu3 }
 0x403   : > { %v3652_v19 = vadd.f32 %v3651_v18, %v3632_v17 }
 0x405   : > { %v3671_v20 = vpop.f32.mrf.mxu0 }
 0x406   : > { %v3672_v21 = vadd.f32 %v3671_v20, %v3652_v19 }
 0x407   : > { %v3691_v22 = vpop.f32.mrf.mxu1 }
 0x408   : > { %v3692_v23 = vadd.f32 %v3691_v22, %v3672_v21 }
 0x409   : > { %v3711_v25 = vpop.f32.mrf.mxu2 }
 0x40a   : > { %v3712_v26 = vadd.f32 %v3711_v25, %v3692_v23 }
 0x40b   : > { %v3731_v43 = vpop.f32.mrf.mxu3 }
 0x40c   : > { %v3732_v27 = vadd.f32 %v3731_v43, %v3712_v26 }
 0x40e   : > { %3735 = vst.msk [vmem:[#allocation12] sm:$0x3] %vm3734_vm3, %v3732_v27 }
 0x40f PF: > { %p5848_p4 = scmp.eq.s32.totalorder %s6184_s28, 3  ;;  %s6124_s8 = smov [#allocation12]  }
 0x410   : > { %s3742_s21 = sshll.u32 %s6124_s8, 4  ;;  %s3744_s10 = sshll.u32 %s7620_s7, 4  ;;  %s3743_s21 = int_to_ptr.vmem [resolvable:$true] %s3742_s21  ;;  %s3745_s10 = int_to_ptr.hbm [resolvable:$true] %s3744_s10 }
 0x411   : > { %5823 = dma.vmem_to_hbm [thread:$0]  (%p5848_p4), %s3743_s21, 32, %s3745_s10, [#allocation5]  }
 0x412   : > { %6098 = dma.done.wait (%p5848_p4), [#allocation5], 32  }
 0x413   : > { %6100 = vsyncadd (%p5848_p4), [#allocation5], 4294967264 }
 0x414 PF: > { %s7633_s9 = sld [smem:[#allocation17_spill]]  ;;  %p22_p5 = scmp.ge.s32.totalorder %s6213_s14, 6  }
 0x415   : > { %s7634_s24 = smov %s6107_s25  ;;  %s7635_s25 = smov %s6111_s26 }
 0x416   : > { %s7637_s27 = smov %s6213_s14  ;;  %24 = sbr.rel (!%p22_p5) target bundleno = 11 (0xb), region = 126 }
 0x41a   : > { %s7636_s26 = smov %s7633_s9 }
 0x41b   :  { %3758 = vsyncpa [#allocation4], 1 }
 0x41c   :  { %3760 = vsyncpa [#allocation4 + $0x1], 1 }
 0x41d   :  { %3761 = vsyncpa [#allocation7], 1 }
 0x41e   :  { %3763 = vsyncpa [#allocation7 + $0x1], 1 }
 0x41f   :  { %3764 = vsyncpa [#allocation10], 1 }
 0x420   :  { %3765 = vsyncpa [#allocation5], 1 }
 0x421   :  { %3767 = vsyncpa [#allocation5 + $0x1], 1 }

</bundles_post_ra>
